<compile_context>
chip_gen: v7x
topology: tpu7x:2x2x1
jax: 0.10.0
libtpu: 0.0.40
codegen_flags: <defaults>
</compile_context>

<pallas_src>
import functools

import jax
import jax.numpy as jnp
import numpy as np
from jax.experimental import pallas as pl
from jax.experimental.pallas import tpu as pltpu


# ----------------------------------------------------------------------------
# Fused Pallas kernel: whole ExemplarFeatureLearning forward for one batch
# block of Bb batches.
# ----------------------------------------------------------------------------
def _fused_kernel(*refs, num_heads, num_iterations, eps, use_boxes,
                  batch_block):
    refs = list(refs)
    img_ref, exm_ref = refs[0], refs[1]
    idx = 2
    if use_boxes:
        box_ref = refs[idx]
        sw0, sb0, sw1, sb1, sw2, sb2 = refs[idx + 1:idx + 7]
        idx += 7
    (wqkv1, bqkv1, wo1, bo1,
     wq2, bq2, wkv2, bkv2, wo2, bo2,
     fw0a, fw0b, fb0, fw1, fb1,
     g1, bn1, g2, bn2) = refs[idx:idx + 19]
    idx += 19
    out_ref = refs[idx]          # (Bb, K, C) output block
    o_scr = refs[idx + 1]        # (Bb*K, C) bf16 scratch: per-head context slab
    k2t_ref = refs[idx + 2]      # (Bb, C, HW) bf16 scratch: image K^T
    v2_ref = refs[idx + 3]       # (Bb, HW, C) bf16 scratch: image V

    Bb = batch_block
    K, C = out_ref.shape[1], out_ref.shape[2]
    HW = img_ref.shape[1]
    H = num_heads
    Dh = C // H
    M = Bb * K                   # flattened exemplar rows in this block

    bf16 = jnp.bfloat16
    f32 = jnp.float32

    def _ln(x, g_ref, b_ref):
        m = jnp.mean(x, axis=-1, keepdims=True)
        xc = x - m
        var = jnp.mean(xc * xc, axis=-1, keepdims=True)
        return xc * jax.lax.rsqrt(var + eps) * g_ref[...] + b_ref[...]

    def _attn_into(row0, nq, q_bf, kT_bf, v_bf):
        """Per-head softmax(Q K^T) V for ONE batch; scale pre-folded into Wq.

        q_bf: (nq, C) bf16, kT_bf: (C, Nk) bf16, v_bf: (Nk, C) bf16.
        Writes the lane-contiguous context slab rows [row0, row0+nq) of o_scr;
        the output projection is done afterwards as one fused matmul.
        """
        for h in range(H):
            lo, hi = h * Dh, (h + 1) * Dh
            s = jnp.dot(q_bf[:, lo:hi], kT_bf[lo:hi, :],
                        preferred_element_type=f32)
            s = s - jnp.max(s, axis=-1, keepdims=True)
            p = jnp.exp(s)
            r = pl.reciprocal(jnp.sum(p, axis=-1, keepdims=True), approx=True)
            # Dropout(p=0.1) on the attention weights is identity at inference.
            oh = jnp.dot(p.astype(bf16), v_bf[:, lo:hi],
                         preferred_element_type=f32) * r
            o_scr[row0:row0 + nq, lo:hi] = oh.astype(bf16)

    # ---- exemplar features, flattened over the Bb batches of this block ----
    F = exm_ref[...].astype(f32).reshape(M, C)

    # Shape-embedding MLP on the boxes.
    if use_boxes:
        h0 = box_ref[...].astype(bf16).reshape(M, 4)
        h1 = jnp.maximum(
            jnp.dot(h0, sw0[...], preferred_element_type=f32) + sb0[...], 0.0)
        h2 = jnp.maximum(
            jnp.dot(h1.astype(bf16), sw1[...], preferred_element_type=f32)
            + sb1[...], 0.0)
        h3 = jnp.dot(h2.astype(bf16), sw2[...],
                     preferred_element_type=f32) + sb2[...]
        F = F + h3

    # ---- image K/V projection: once per block, iteration-invariant ---------
    img = img_ref[...].astype(bf16).reshape(Bb * HW, C)
    kv = jnp.dot(img, wkv2[...], preferred_element_type=f32) + bkv2[...]
    for b in range(Bb):
        blk = kv[b * HW:(b + 1) * HW, :]                  # (HW, 2C) f32
        k2t_ref[b] = blk[:, :C].T.astype(bf16)            # (C, HW) pre-transposed
        v2_ref[b] = blk[:, C:].astype(bf16)               # (HW, C)

    for _ in range(num_iterations):
        # --- mhca1: self attention on normalized exemplar features ---------
        Fn = _ln(F, g1, bn1).astype(bf16)
        qkv = jnp.dot(Fn, wqkv1[...],
                      preferred_element_type=f32) + bqkv1[...]      # (M, 3C)
        qkv_bf = qkv.astype(bf16)
        for b in range(Bb):
            r0 = b * K
            qb = qkv_bf[r0:r0 + K, :C]
            kTb = qkv[r0:r0 + K, C:2 * C].T.astype(bf16)  # one transpose/batch
            vb = qkv_bf[r0:r0 + K, 2 * C:]
            _attn_into(r0, K, qb, kTb, vb)
        o1 = o_scr[...]                                   # (M, C) bf16
        F = F + (jnp.dot(o1, wo1[...], preferred_element_type=f32) + bo1[...])

        # --- mhca2: cross attention to image features + fusion MLP ----------
        Fn = _ln(F, g2, bn2).astype(bf16)
        q2 = (jnp.dot(Fn, wq2[...], preferred_element_type=f32)
              + bq2[...]).astype(bf16)                    # (M, C)
        for b in range(Bb):
            r0 = b * K
            _attn_into(r0, K, q2[r0:r0 + K, :], k2t_ref[b], v2_ref[b])
        o2 = jnp.dot(o_scr[...], wo2[...],
                     preferred_element_type=f32) + bo2[...]
        # fusion(concat([F, o2])) == F @ W0a + o2 @ W0b (+ bias, relu), W1 ...
        fused = (jnp.dot(F.astype(bf16), fw0a[...], preferred_element_type=f32)
                 + jnp.dot(o2.astype(bf16), fw0b[...],
                           preferred_element_type=f32)
                 + fb0[...])
        fused = jnp.maximum(fused, 0.0)
        fused = jnp.dot(fused.astype(bf16), fw1[...],
                        preferred_element_type=f32) + fb1[...]
        F = F + fused

    out_ref[...] = F.reshape(Bb, K, C).astype(out_ref.dtype)


def _wspec(arr):
    """Full-array (grid-invariant) BlockSpec for a weight tensor."""
    n = arr.ndim
    return pl.BlockSpec(arr.shape, lambda b: (0,) * n)


def exemplar_feature_learning(params, image_features, exemplar_features,
                              exemplar_boxes=None, num_heads=8,
                              num_iterations=2, batch_block=None):
    """image_features [B,HW,C], exemplar_features [B,K,C], boxes [B,K,4]."""
    B, HW, C = image_features.shape
    K = exemplar_features.shape[1]
    assert C % num_heads == 0
    use_boxes = exemplar_boxes is not None

    # Batch blocking: raise the matmul M dim and amortize the resident weights,
    # but keep >= 2 parallel grid steps when possible (both v7x TCs busy).
    if batch_block is None:
        batch_block = B // 2 if (B >= 2 and B % 2 == 0) else 1
    assert B % batch_block == 0
    Bb = batch_block
    n_blocks = B // Bb

    f32, bf16 = jnp.float32, jnp.bfloat16
    scale = (C // num_heads) ** -0.5

    m1, m2, fus = params["mhca1"], params["mhca2"], params["fusion"]
    # Merged projections; softmax scale folded into the Q weights & bias.
    wqkv1 = jnp.concatenate(
        [m1["q"]["w"] * scale, m1["k"]["w"], m1["v"]["w"]], axis=1).astype(bf16)
    bqkv1 = jnp.concatenate(
        [m1["q"]["b"] * scale, m1["k"]["b"], m1["v"]["b"]])[None, :].astype(f32)
    wq2 = (m2["q"]["w"] * scale).astype(bf16)
    bq2 = (m2["q"]["b"] * scale)[None, :].astype(f32)
    wkv2 = jnp.concatenate([m2["k"]["w"], m2["v"]["w"]], axis=1).astype(bf16)
    bkv2 = jnp.concatenate([m2["k"]["b"], m2["v"]["b"]])[None, :].astype(f32)
    fw0 = fus["l0"]["w"]

    weights = [
        wqkv1, bqkv1,
        m1["out"]["w"].astype(bf16), m1["out"]["b"][None, :].astype(f32),
        wq2, bq2, wkv2, bkv2,
        m2["out"]["w"].astype(bf16), m2["out"]["b"][None, :].astype(f32),
        fw0[:C, :].astype(bf16), fw0[C:, :].astype(bf16),
        fus["l0"]["b"][None, :].astype(f32),
        fus["l1"]["w"].astype(bf16), fus["l1"]["b"][None, :].astype(f32),
        params["norm1"]["g"][None, :].astype(f32),
        params["norm1"]["b"][None, :].astype(f32),
        params["norm2"]["g"][None, :].astype(f32),
        params["norm2"]["b"][None, :].astype(f32),
    ]

    inputs = [image_features, exemplar_features]
    in_specs = [pl.BlockSpec((Bb, HW, C), lambda b: (b, 0, 0)),
                pl.BlockSpec((Bb, K, C), lambda b: (b, 0, 0))]
    if use_boxes:
        s = params["shape"]
        box_weights = [
            s["l0"]["w"].astype(bf16), s["l0"]["b"][None, :].astype(f32),
            s["l1"]["w"].astype(bf16), s["l1"]["b"][None, :].astype(f32),
            s["l2"]["w"].astype(bf16), s["l2"]["b"][None, :].astype(f32)]
        inputs += [exemplar_boxes] + box_weights
        in_specs += [pl.BlockSpec((Bb, K, 4), lambda b: (b, 0, 0))]
        in_specs += [_wspec(w) for w in box_weights]
    inputs += weights
    in_specs += [_wspec(w) for w in weights]

    kernel = functools.partial(_fused_kernel, num_heads=num_heads,
                               num_iterations=num_iterations, eps=1e-5,
                               use_boxes=use_boxes, batch_block=Bb)
    return pl.pallas_call(
        kernel,
        out_shape=jax.ShapeDtypeStruct((B, K, C), exemplar_features.dtype),
        grid=(n_blocks,),
        in_specs=in_specs,
        out_specs=pl.BlockSpec((Bb, K, C), lambda b: (b, 0, 0)),
        scratch_shapes=[pltpu.VMEM((Bb * K, C), bf16),    # per-head context slab
                        pltpu.VMEM((Bb, C, HW), bf16),    # image K^T
                        pltpu.VMEM((Bb, HW, C), bf16)],   # image V
        compiler_params=pltpu.CompilerParams(
            dimension_semantics=("parallel",),
            vmem_limit_bytes=32 * 1024 * 1024),
    )(*inputs)


# ----------------------------------------------------------------------------
# Pure-JAX reference (mirrors the PyTorch module) for numerical checking.
# ----------------------------------------------------------------------------
def _ref_linear(x, w, b, act=None):
    y = x @ w + b
    return jnp.maximum(y, 0.0) if act == "relu" else y


def _ref_layernorm(x, g, b, eps=1e-5):
    m = jnp.mean(x, axis=-1, keepdims=True)
    v = jnp.mean((x - m) ** 2, axis=-1, keepdims=True)
    return (x - m) / jnp.sqrt(v + eps) * g + b


def _ref_mhca(p, q_in, k_in, v_in, num_heads):
    B, Nq, C = q_in.shape
    Nk = k_in.shape[1]
    Dh = C // num_heads
    q = _ref_linear(q_in, p["q"]["w"], p["q"]["b"]).reshape(B, Nq, num_heads, Dh)
    k = _ref_linear(k_in, p["k"]["w"], p["k"]["b"]).reshape(B, Nk, num_heads, Dh)
    v = _ref_linear(v_in, p["v"]["w"], p["v"]["b"]).reshape(B, Nk, num_heads, Dh)
    q, k, v = (t.transpose(0, 2, 1, 3) for t in (q, k, v))
    attn = jax.nn.softmax((q @ jnp.swapaxes(k, -2, -1)) * (Dh ** -0.5), axis=-1)
    o = (attn @ v).transpose(0, 2, 1, 3).reshape(B, Nq, C)
    return _ref_linear(o, p["out"]["w"], p["out"]["b"])


def reference_forward(params, image_features, exemplar_features,
                      exemplar_boxes=None, num_heads=8, num_iterations=2):
    F_exm = exemplar_features
    if exemplar_boxes is not None:
        s = params["shape"]
        h = _ref_linear(exemplar_boxes, s["l0"]["w"], s["l0"]["b"], "relu")
        h = _ref_linear(h, s["l1"]["w"], s["l1"]["b"], "relu")
        h = _ref_linear(h, s["l2"]["w"], s["l2"]["b"])
        F_exm = F_exm + h
    for _ in range(num_iterations):
        Fn = _ref_layernorm(F_exm, params["norm1"]["g"], params["norm1"]["b"])
        F_exm = F_exm + _ref_mhca(params["mhca1"], Fn, Fn, Fn, num_heads)
        Fn = _ref_layernorm(F_exm, params["norm2"]["g"], params["norm2"]["b"])
        F_tmp = _ref_mhca(params["mhca2"], Fn, image_features, image_features,
                          num_heads)
        F_cat = jnp.concatenate([F_exm, F_tmp], axis=-1)
        f = params["fusion"]
        F_fused = _ref_linear(
            _ref_linear(F_cat, f["l0"]["w"], f["l0"]["b"], "relu"),
            f["l1"]["w"], f["l1"]["b"])
        F_exm = F_exm + F_fused
    return F_exm


# ----------------------------------------------------------------------------
# Deterministic parameter init (shapes from ExemplarFeatureLearning.__init__)
# ----------------------------------------------------------------------------
def init_params(key, embed_dim=256, hidden=256):
    ks = jax.random.split(key, 13)

    def lin(k, cin, cout):
        k1, k2 = jax.random.split(k)
        return {"w": 0.02 * jax.random.normal(k1, (cin, cout), jnp.float32),
                "b": 0.01 * jax.random.normal(k2, (cout,), jnp.float32)}

    return {
        "shape": {"l0": lin(ks[0], 4, hidden),
                  "l1": lin(ks[1], hidden, hidden),
                  "l2": lin(ks[2], hidden, embed_dim)},
        "mhca1": {"q": lin(ks[3], embed_dim, embed_dim),
                  "k": lin(ks[4], embed_dim, embed_dim),
                  "v": lin(ks[5], embed_dim, embed_dim),
                  "out": lin(ks[6], embed_dim, embed_dim)},
        "mhca2": {"q": lin(ks[7], embed_dim, embed_dim),
                  "k": lin(ks[8], embed_dim, embed_dim),
                  "v": lin(ks[9], embed_dim, embed_dim),
                  "out": lin(ks[10], embed_dim, embed_dim)},
        "fusion": {"l0": lin(ks[11], 2 * embed_dim, embed_dim),
                   "l1": lin(ks[12], embed_dim, embed_dim)},
        "norm1": {"g": jnp.ones((embed_dim,), jnp.float32),
                  "b": jnp.zeros((embed_dim,), jnp.float32)},
        "norm2": {"g": jnp.ones((embed_dim,), jnp.float32),
                  "b": jnp.zeros((embed_dim,), jnp.float32)},
    }


# ----------------------------------------------------------------------------
if __name__ == "__main__":
    B, K, HW, C = 2, 8, 64, 256          # image features: 8x8 spatial flattened
    key = jax.random.PRNGKey(0)
    k_img, k_exm, k_box, k_par = jax.random.split(key, 4)

    image_features = jax.random.normal(k_img, (B, HW, C), jnp.float32)
    exemplar_features = jax.random.normal(k_exm, (B, K, C), jnp.float32)
    exemplar_boxes = jax.random.uniform(k_box, (B, K, 4), jnp.float32)
    params = init_params(k_par, embed_dim=C)

    fwd = jax.jit(exemplar_feature_learning)
    out = jax.block_until_ready(
        fwd(params, image_features, exemplar_features, exemplar_boxes))
    assert out.shape == (B, K, C)

    ref = jax.block_until_ready(
        reference_forward(params, image_features, exemplar_features,
                          exemplar_boxes))
    np.testing.assert_allclose(np.asarray(out), np.asarray(ref),
                               rtol=2e-2, atol=2e-2)
    print("KERNEL_OK")
</pallas_src>

<mosaic_0001>
module attributes {stable_mosaic.version = 11 : i64} {
  func.func @_fused_kernel(%arg0: i32, %arg1: memref<1x64x256xf32, #tpu.memory_space<vmem>>, %arg2: memref<1x8x256xf32, #tpu.memory_space<vmem>>, %arg3: memref<1x8x4xf32, #tpu.memory_space<vmem>>, %arg4: memref<4x256xbf16, #tpu.memory_space<vmem>>, %arg5: memref<1x256xf32, #tpu.memory_space<vmem>>, %arg6: memref<256x256xbf16, #tpu.memory_space<vmem>>, %arg7: memref<1x256xf32, #tpu.memory_space<vmem>>, %arg8: memref<256x256xbf16, #tpu.memory_space<vmem>>, %arg9: memref<1x256xf32, #tpu.memory_space<vmem>>, %arg10: memref<256x768xbf16, #tpu.memory_space<vmem>>, %arg11: memref<1x768xf32, #tpu.memory_space<vmem>>, %arg12: memref<256x256xbf16, #tpu.memory_space<vmem>>, %arg13: memref<1x256xf32, #tpu.memory_space<vmem>>, %arg14: memref<256x256xbf16, #tpu.memory_space<vmem>>, %arg15: memref<1x256xf32, #tpu.memory_space<vmem>>, %arg16: memref<256x512xbf16, #tpu.memory_space<vmem>>, %arg17: memref<1x512xf32, #tpu.memory_space<vmem>>, %arg18: memref<256x256xbf16, #tpu.memory_space<vmem>>, %arg19: memref<1x256xf32, #tpu.memory_space<vmem>>, %arg20: memref<256x256xbf16, #tpu.memory_space<vmem>>, %arg21: memref<256x256xbf16, #tpu.memory_space<vmem>>, %arg22: memref<1x256xf32, #tpu.memory_space<vmem>>, %arg23: memref<256x256xbf16, #tpu.memory_space<vmem>>, %arg24: memref<1x256xf32, #tpu.memory_space<vmem>>, %arg25: memref<1x256xf32, #tpu.memory_space<vmem>>, %arg26: memref<1x256xf32, #tpu.memory_space<vmem>>, %arg27: memref<1x256xf32, #tpu.memory_space<vmem>>, %arg28: memref<1x256xf32, #tpu.memory_space<vmem>>, %arg29: memref<1x8x256xf32, #tpu.memory_space<vmem>>, %arg30: memref<8x256xbf16, #tpu.memory_space<vmem>>, %arg31: memref<1x256x64xbf16, #tpu.memory_space<vmem>>, %arg32: memref<1x64x256xbf16, #tpu.memory_space<vmem>>) attributes {dimension_semantics = [#tpu.dimension_semantics<parallel>], iteration_bounds = array<i64: 2>, scalar_prefetch = 0 : i64, scratch_operands = 3 : i64, tpu.core_type = #tpu.core_type<tc>, window_params = [{transform_indices = @transform_0, window_bounds = array<i64: 1, 64, 256>}, {transform_indices = @transform_1, window_bounds = array<i64: 1, 8, 256>}, {transform_indices = @transform_2, window_bounds = array<i64: 1, 8, 4>}, {pipeline_mode = #tpu.pipeline_mode<synchronous>, transform_indices = @transform_3, window_bounds = array<i64: 4, 256>}, {pipeline_mode = #tpu.pipeline_mode<synchronous>, transform_indices = @transform_4, window_bounds = array<i64: 1, 256>}, {pipeline_mode = #tpu.pipeline_mode<synchronous>, transform_indices = @transform_5, window_bounds = array<i64: 256, 256>}, {pipeline_mode = #tpu.pipeline_mode<synchronous>, transform_indices = @transform_6, window_bounds = array<i64: 1, 256>}, {pipeline_mode = #tpu.pipeline_mode<synchronous>, transform_indices = @transform_7, window_bounds = array<i64: 256, 256>}, {pipeline_mode = #tpu.pipeline_mode<synchronous>, transform_indices = @transform_8, window_bounds = array<i64: 1, 256>}, {pipeline_mode = #tpu.pipeline_mode<synchronous>, transform_indices = @transform_9, window_bounds = array<i64: 256, 768>}, {pipeline_mode = #tpu.pipeline_mode<synchronous>, transform_indices = @transform_10, window_bounds = array<i64: 1, 768>}, {pipeline_mode = #tpu.pipeline_mode<synchronous>, transform_indices = @transform_11, window_bounds = array<i64: 256, 256>}, {pipeline_mode = #tpu.pipeline_mode<synchronous>, transform_indices = @transform_12, window_bounds = array<i64: 1, 256>}, {pipeline_mode = #tpu.pipeline_mode<synchronous>, transform_indices = @transform_13, window_bounds = array<i64: 256, 256>}, {pipeline_mode = #tpu.pipeline_mode<synchronous>, transform_indices = @transform_14, window_bounds = array<i64: 1, 256>}, {pipeline_mode = #tpu.pipeline_mode<synchronous>, transform_indices = @transform_15, window_bounds = array<i64: 256, 512>}, {pipeline_mode = #tpu.pipeline_mode<synchronous>, transform_indices = @transform_16, window_bounds = array<i64: 1, 512>}, {pipeline_mode = #tpu.pipeline_mode<synchronous>, transform_indices = @transform_17, window_bounds = array<i64: 256, 256>}, {pipeline_mode = #tpu.pipeline_mode<synchronous>, transform_indices = @transform_18, window_bounds = array<i64: 1, 256>}, {pipeline_mode = #tpu.pipeline_mode<synchronous>, transform_indices = @transform_19, window_bounds = array<i64: 256, 256>}, {pipeline_mode = #tpu.pipeline_mode<synchronous>, transform_indices = @transform_20, window_bounds = array<i64: 256, 256>}, {pipeline_mode = #tpu.pipeline_mode<synchronous>, transform_indices = @transform_21, window_bounds = array<i64: 1, 256>}, {pipeline_mode = #tpu.pipeline_mode<synchronous>, transform_indices = @transform_22, window_bounds = array<i64: 256, 256>}, {pipeline_mode = #tpu.pipeline_mode<synchronous>, transform_indices = @transform_23, window_bounds = array<i64: 1, 256>}, {pipeline_mode = #tpu.pipeline_mode<synchronous>, transform_indices = @transform_24, window_bounds = array<i64: 1, 256>}, {pipeline_mode = #tpu.pipeline_mode<synchronous>, transform_indices = @transform_25, window_bounds = array<i64: 1, 256>}, {pipeline_mode = #tpu.pipeline_mode<synchronous>, transform_indices = @transform_26, window_bounds = array<i64: 1, 256>}, {pipeline_mode = #tpu.pipeline_mode<synchronous>, transform_indices = @transform_27, window_bounds = array<i64: 1, 256>}, {transform_indices = @transform_28, window_bounds = array<i64: 1, 8, 256>}]} {
    %c0 = arith.constant 0 : index
    %c0_0 = arith.constant 0 : index
    %c0_1 = arith.constant 0 : index
    %0 = vector.load %arg2[%c0, %c0_0, %c0_1] : memref<1x8x256xf32, #tpu.memory_space<vmem>>, vector<1x8x256xf32>
    %1 = vector.shape_cast %0 : vector<1x8x256xf32> to vector<8x256xf32>
    %c0_2 = arith.constant 0 : index
    %c0_3 = arith.constant 0 : index
    %c0_4 = arith.constant 0 : index
    %2 = vector.load %arg3[%c0_2, %c0_3, %c0_4] : memref<1x8x4xf32, #tpu.memory_space<vmem>>, vector<1x8x4xf32>
    %3 = arith.truncf %2 : vector<1x8x4xf32> to vector<1x8x4xbf16>
    %4 = vector.shape_cast %3 : vector<1x8x4xbf16> to vector<8x4xbf16>
    %c0_5 = arith.constant 0 : index
    %c0_6 = arith.constant 0 : index
    %5 = vector.load %arg4[%c0_5, %c0_6] : memref<4x256xbf16, #tpu.memory_space<vmem>>, vector<4x256xbf16>
    %cst = arith.constant dense<0.000000e+00> : vector<8x256xf32>
    %6 = tpu.matmul %4, %5, %cst {dimension_numbers = #tpu.dot_dimension_numbers<[1], [0], [0], [1], [0, 0, 1, 1], [], []>} : vector<8x4xbf16>, vector<4x256xbf16>, vector<8x256xf32> -> vector<8x256xf32>
    %c0_7 = arith.constant 0 : index
    %c0_8 = arith.constant 0 : index
    %7 = vector.load %arg5[%c0_7, %c0_8] : memref<1x256xf32, #tpu.memory_space<vmem>>, vector<1x256xf32>
    %8 = vector.broadcast %7 : vector<1x256xf32> to vector<8x256xf32>
    %9 = arith.addf %6, %8 : vector<8x256xf32>
    %cst_9 = arith.constant 0.000000e+00 : f32
    %10 = vector.broadcast %cst_9 : f32 to vector<8x256xf32>
    %11 = arith.maximumf %9, %10 : vector<8x256xf32>
    %12 = arith.truncf %11 : vector<8x256xf32> to vector<8x256xbf16>
    %c0_10 = arith.constant 0 : index
    %c0_11 = arith.constant 0 : index
    %13 = vector.load %arg6[%c0_10, %c0_11] : memref<256x256xbf16, #tpu.memory_space<vmem>>, vector<256x256xbf16>
    %cst_12 = arith.constant dense<0.000000e+00> : vector<8x256xf32>
    %14 = tpu.matmul %12, %13, %cst_12 {dimension_numbers = #tpu.dot_dimension_numbers<[1], [0], [0], [1], [0, 0, 1, 1], [], []>} : vector<8x256xbf16>, vector<256x256xbf16>, vector<8x256xf32> -> vector<8x256xf32>
    %c0_13 = arith.constant 0 : index
    %c0_14 = arith.constant 0 : index
    %15 = vector.load %arg7[%c0_13, %c0_14] : memref<1x256xf32, #tpu.memory_space<vmem>>, vector<1x256xf32>
    %16 = vector.broadcast %15 : vector<1x256xf32> to vector<8x256xf32>
    %17 = arith.addf %14, %16 : vector<8x256xf32>
    %cst_15 = arith.constant 0.000000e+00 : f32
    %18 = vector.broadcast %cst_15 : f32 to vector<8x256xf32>
    %19 = arith.maximumf %17, %18 : vector<8x256xf32>
    %20 = arith.truncf %19 : vector<8x256xf32> to vector<8x256xbf16>
    %c0_16 = arith.constant 0 : index
    %c0_17 = arith.constant 0 : index
    %21 = vector.load %arg8[%c0_16, %c0_17] : memref<256x256xbf16, #tpu.memory_space<vmem>>, vector<256x256xbf16>
    %cst_18 = arith.constant dense<0.000000e+00> : vector<8x256xf32>
    %22 = tpu.matmul %20, %21, %cst_18 {dimension_numbers = #tpu.dot_dimension_numbers<[1], [0], [0], [1], [0, 0, 1, 1], [], []>} : vector<8x256xbf16>, vector<256x256xbf16>, vector<8x256xf32> -> vector<8x256xf32>
    %c0_19 = arith.constant 0 : index
    %c0_20 = arith.constant 0 : index
    %23 = vector.load %arg9[%c0_19, %c0_20] : memref<1x256xf32, #tpu.memory_space<vmem>>, vector<1x256xf32>
    %24 = vector.broadcast %23 : vector<1x256xf32> to vector<8x256xf32>
    %25 = arith.addf %22, %24 : vector<8x256xf32>
    %26 = arith.addf %1, %25 : vector<8x256xf32>
    %c0_21 = arith.constant 0 : index
    %c0_22 = arith.constant 0 : index
    %c0_23 = arith.constant 0 : index
    %27 = vector.load %arg1[%c0_21, %c0_22, %c0_23] : memref<1x64x256xf32, #tpu.memory_space<vmem>>, vector<1x64x256xf32>
    %28 = arith.truncf %27 : vector<1x64x256xf32> to vector<1x64x256xbf16>
    %29 = vector.shape_cast %28 : vector<1x64x256xbf16> to vector<64x256xbf16>
    %c0_24 = arith.constant 0 : index
    %c0_25 = arith.constant 0 : index
    %30 = vector.load %arg16[%c0_24, %c0_25] : memref<256x512xbf16, #tpu.memory_space<vmem>>, vector<256x512xbf16>
    %cst_26 = arith.constant dense<0.000000e+00> : vector<64x512xf32>
    %31 = tpu.matmul %29, %30, %cst_26 {dimension_numbers = #tpu.dot_dimension_numbers<[1], [0], [0], [1], [0, 0, 1, 1], [], []>} : vector<64x256xbf16>, vector<256x512xbf16>, vector<64x512xf32> -> vector<64x512xf32>
    %c0_27 = arith.constant 0 : index
    %c0_28 = arith.constant 0 : index
    %32 = vector.load %arg17[%c0_27, %c0_28] : memref<1x512xf32, #tpu.memory_space<vmem>>, vector<1x512xf32>
    %33 = vector.broadcast %32 : vector<1x512xf32> to vector<64x512xf32>
    %34 = arith.addf %31, %33 : vector<64x512xf32>
    %35 = vector.extract_strided_slice %34 {offsets = [0, 0], sizes = [64, 256], strides = [1, 1]} : vector<64x512xf32> to vector<64x256xf32>
    %36 = tpu.transpose %35, [1, 0] : vector<64x256xf32> -> vector<256x64xf32>
    %37 = arith.truncf %36 : vector<256x64xf32> to vector<256x64xbf16>
    %c0_29 = arith.constant 0 : index
    %c0_30 = arith.constant 0 : index
    %c0_31 = arith.constant 0 : index
    %38 = vector.load %arg31[%c0_29, %c0_30, %c0_31] : memref<1x256x64xbf16, #tpu.memory_space<vmem>>, vector<1x256x64xbf16>
    %39 = vector.shape_cast %38 : vector<1x256x64xbf16> to vector<256x64xbf16>
    %40 = vector.shape_cast %37 : vector<256x64xbf16> to vector<1x256x64xbf16>
    tpu.vector_store %arg31[%c0_29, %c0_30, %c0_31], %40 {strides = array<i32>} : memref<1x256x64xbf16, #tpu.memory_space<vmem>>, vector<1x256x64xbf16>,
    %41 = vector.extract_strided_slice %34 {offsets = [0, 256], sizes = [64, 256], strides = [1, 1]} : vector<64x512xf32> to vector<64x256xf32>
    %42 = arith.truncf %41 : vector<64x256xf32> to vector<64x256xbf16>
    %c0_32 = arith.constant 0 : index
    %c0_33 = arith.constant 0 : index
    %c0_34 = arith.constant 0 : index
    %43 = vector.load %arg32[%c0_32, %c0_33, %c0_34] : memref<1x64x256xbf16, #tpu.memory_space<vmem>>, vector<1x64x256xbf16>
    %44 = vector.shape_cast %43 : vector<1x64x256xbf16> to vector<64x256xbf16>
    %45 = vector.shape_cast %42 : vector<64x256xbf16> to vector<1x64x256xbf16>
    tpu.vector_store %arg32[%c0_32, %c0_33, %c0_34], %45 {strides = array<i32>} : memref<1x64x256xbf16, #tpu.memory_space<vmem>>, vector<1x64x256xbf16>,
    %cst_35 = arith.constant dense<0.000000e+00> : vector<8xf32>
    %46 = vector.multi_reduction <add>, %26, %cst_35 [1] : vector<8x256xf32> to vector<8xf32>
    %47 = vector.shape_cast %46 : vector<8xf32> to vector<8x1xf32>
    %cst_36 = arith.constant 2.560000e+02 : f32
    %48 = vector.broadcast %cst_36 : f32 to vector<8x1xf32>
    %49 = arith.divf %47, %48 : vector<8x1xf32>
    %50 = vector.broadcast %49 : vector<8x1xf32> to vector<8x256xf32>
    %51 = arith.subf %26, %50 : vector<8x256xf32>
    %52 = arith.mulf %51, %51 : vector<8x256xf32>
    %cst_37 = arith.constant dense<0.000000e+00> : vector<8xf32>
    %53 = vector.multi_reduction <add>, %52, %cst_37 [1] : vector<8x256xf32> to vector<8xf32>
    %54 = vector.shape_cast %53 : vector<8xf32> to vector<8x1xf32>
    %cst_38 = arith.constant 2.560000e+02 : f32
    %55 = vector.broadcast %cst_38 : f32 to vector<8x1xf32>
    %56 = arith.divf %54, %55 : vector<8x1xf32>
    %cst_39 = arith.constant 9.99999974E-6 : f32
    %57 = vector.broadcast %cst_39 : f32 to vector<8x1xf32>
    %58 = arith.addf %56, %57 : vector<8x1xf32>
    %59 = math.rsqrt %58 : vector<8x1xf32>
    %60 = vector.broadcast %59 : vector<8x1xf32> to vector<8x256xf32>
    %61 = arith.mulf %51, %60 : vector<8x256xf32>
    %c0_40 = arith.constant 0 : index
    %c0_41 = arith.constant 0 : index
    %62 = vector.load %arg25[%c0_40, %c0_41] : memref<1x256xf32, #tpu.memory_space<vmem>>, vector<1x256xf32>
    %63 = vector.broadcast %62 : vector<1x256xf32> to vector<8x256xf32>
    %64 = arith.mulf %61, %63 : vector<8x256xf32>
    %c0_42 = arith.constant 0 : index
    %c0_43 = arith.constant 0 : index
    %65 = vector.load %arg26[%c0_42, %c0_43] : memref<1x256xf32, #tpu.memory_space<vmem>>, vector<1x256xf32>
    %66 = vector.broadcast %65 : vector<1x256xf32> to vector<8x256xf32>
    %67 = arith.addf %64, %66 : vector<8x256xf32>
    %68 = arith.truncf %67 : vector<8x256xf32> to vector<8x256xbf16>
    %c0_44 = arith.constant 0 : index
    %c0_45 = arith.constant 0 : index
    %69 = vector.load %arg10[%c0_44, %c0_45] : memref<256x768xbf16, #tpu.memory_space<vmem>>, vector<256x768xbf16>
    %cst_46 = arith.constant dense<0.000000e+00> : vector<8x768xf32>
    %70 = tpu.matmul %68, %69, %cst_46 {dimension_numbers = #tpu.dot_dimension_numbers<[1], [0], [0], [1], [0, 0, 1, 1], [], []>} : vector<8x256xbf16>, vector<256x768xbf16>, vector<8x768xf32> -> vector<8x768xf32>
    %c0_47 = arith.constant 0 : index
    %c0_48 = arith.constant 0 : index
    %71 = vector.load %arg11[%c0_47, %c0_48] : memref<1x768xf32, #tpu.memory_space<vmem>>, vector<1x768xf32>
    %72 = vector.broadcast %71 : vector<1x768xf32> to vector<8x768xf32>
    %73 = arith.addf %70, %72 : vector<8x768xf32>
    %74 = arith.truncf %73 : vector<8x768xf32> to vector<8x768xbf16>
    %75 = vector.extract_strided_slice %74 {offsets = [0, 0], sizes = [8, 256], strides = [1, 1]} : vector<8x768xbf16> to vector<8x256xbf16>
    %76 = vector.extract_strided_slice %73 {offsets = [0, 256], sizes = [8, 256], strides = [1, 1]} : vector<8x768xf32> to vector<8x256xf32>
    %77 = tpu.transpose %76, [1, 0] : vector<8x256xf32> -> vector<256x8xf32>
    %78 = arith.truncf %77 : vector<256x8xf32> to vector<256x8xbf16>
    %79 = vector.extract_strided_slice %74 {offsets = [0, 512], sizes = [8, 256], strides = [1, 1]} : vector<8x768xbf16> to vector<8x256xbf16>
    %80 = vector.extract_strided_slice %75 {offsets = [0, 0], sizes = [8, 32], strides = [1, 1]} : vector<8x256xbf16> to vector<8x32xbf16>
    %81 = vector.extract_strided_slice %78 {offsets = [0, 0], sizes = [32, 8], strides = [1, 1]} : vector<256x8xbf16> to vector<32x8xbf16>
    %cst_49 = arith.constant dense<0.000000e+00> : vector<8x8xf32>
    %82 = tpu.matmul %80, %81, %cst_49 {dimension_numbers = #tpu.dot_dimension_numbers<[1], [0], [0], [1], [0, 0, 1, 1], [], []>} : vector<8x32xbf16>, vector<32x8xbf16>, vector<8x8xf32> -> vector<8x8xf32>
    %cst_50 = arith.constant dense<0xFF800000> : vector<8xf32>
    %83 = vector.multi_reduction <maximumf>, %82, %cst_50 [1] : vector<8x8xf32> to vector<8xf32>
    %84 = vector.shape_cast %83 : vector<8xf32> to vector<8x1xf32>
    %85 = vector.broadcast %84 : vector<8x1xf32> to vector<8x8xf32>
    %86 = arith.subf %82, %85 : vector<8x8xf32>
    %87 = math.exp %86 : vector<8x8xf32>
    %cst_51 = arith.constant dense<0.000000e+00> : vector<8xf32>
    %88 = vector.multi_reduction <add>, %87, %cst_51 [1] : vector<8x8xf32> to vector<8xf32>
    %89 = vector.shape_cast %88 : vector<8xf32> to vector<8x1xf32>
    %90 = tpu.reciprocal %89 {approx = true} : vector<8x1xf32> -> vector<8x1xf32>
    %91 = arith.truncf %87 : vector<8x8xf32> to vector<8x8xbf16>
    %92 = vector.extract_strided_slice %79 {offsets = [0, 0], sizes = [8, 32], strides = [1, 1]} : vector<8x256xbf16> to vector<8x32xbf16>
    %cst_52 = arith.constant dense<0.000000e+00> : vector<8x32xf32>
    %93 = tpu.matmul %91, %92, %cst_52 {dimension_numbers = #tpu.dot_dimension_numbers<[1], [0], [0], [1], [0, 0, 1, 1], [], []>} : vector<8x8xbf16>, vector<8x32xbf16>, vector<8x32xf32> -> vector<8x32xf32>
    %94 = vector.broadcast %90 : vector<8x1xf32> to vector<8x32xf32>
    %95 = arith.mulf %93, %94 : vector<8x32xf32>
    %96 = arith.truncf %95 : vector<8x32xf32> to vector<8x32xbf16>
    %c0_53 = arith.constant 0 : index
    %c0_54 = arith.constant 0 : index
    %97 = vector.load %arg30[%c0_53, %c0_54] : memref<8x256xbf16, #tpu.memory_space<vmem>>, vector<8x32xbf16>
    tpu.vector_store %arg30[%c0_53, %c0_54], %96 {strides = array<i32>} : memref<8x256xbf16, #tpu.memory_space<vmem>>, vector<8x32xbf16>,
    %98 = vector.extract_strided_slice %75 {offsets = [0, 32], sizes = [8, 32], strides = [1, 1]} : vector<8x256xbf16> to vector<8x32xbf16>
    %99 = vector.extract_strided_slice %78 {offsets = [32, 0], sizes = [32, 8], strides = [1, 1]} : vector<256x8xbf16> to vector<32x8xbf16>
    %cst_55 = arith.constant dense<0.000000e+00> : vector<8x8xf32>
    %100 = tpu.matmul %98, %99, %cst_55 {dimension_numbers = #tpu.dot_dimension_numbers<[1], [0], [0], [1], [0, 0, 1, 1], [], []>} : vector<8x32xbf16>, vector<32x8xbf16>, vector<8x8xf32> -> vector<8x8xf32>
    %cst_56 = arith.constant dense<0xFF800000> : vector<8xf32>
    %101 = vector.multi_reduction <maximumf>, %100, %cst_56 [1] : vector<8x8xf32> to vector<8xf32>
    %102 = vector.shape_cast %101 : vector<8xf32> to vector<8x1xf32>
    %103 = vector.broadcast %102 : vector<8x1xf32> to vector<8x8xf32>
    %104 = arith.subf %100, %103 : vector<8x8xf32>
    %105 = math.exp %104 : vector<8x8xf32>
    %cst_57 = arith.constant dense<0.000000e+00> : vector<8xf32>
    %106 = vector.multi_reduction <add>, %105, %cst_57 [1] : vector<8x8xf32> to vector<8xf32>
    %107 = vector.shape_cast %106 : vector<8xf32> to vector<8x1xf32>
    %108 = tpu.reciprocal %107 {approx = true} : vector<8x1xf32> -> vector<8x1xf32>
    %109 = arith.truncf %105 : vector<8x8xf32> to vector<8x8xbf16>
    %110 = vector.extract_strided_slice %79 {offsets = [0, 32], sizes = [8, 32], strides = [1, 1]} : vector<8x256xbf16> to vector<8x32xbf16>
    %cst_58 = arith.constant dense<0.000000e+00> : vector<8x32xf32>
    %111 = tpu.matmul %109, %110, %cst_58 {dimension_numbers = #tpu.dot_dimension_numbers<[1], [0], [0], [1], [0, 0, 1, 1], [], []>} : vector<8x8xbf16>, vector<8x32xbf16>, vector<8x32xf32> -> vector<8x32xf32>
    %112 = vector.broadcast %108 : vector<8x1xf32> to vector<8x32xf32>
    %113 = arith.mulf %111, %112 : vector<8x32xf32>
    %114 = arith.truncf %113 : vector<8x32xf32> to vector<8x32xbf16>
    %c0_59 = arith.constant 0 : index
    %c32 = arith.constant 32 : index
    %115 = vector.load %arg30[%c0_59, %c32] : memref<8x256xbf16, #tpu.memory_space<vmem>>, vector<8x32xbf16>
    tpu.vector_store %arg30[%c0_59, %c32], %114 {strides = array<i32>} : memref<8x256xbf16, #tpu.memory_space<vmem>>, vector<8x32xbf16>,
    %116 = vector.extract_strided_slice %75 {offsets = [0, 64], sizes = [8, 32], strides = [1, 1]} : vector<8x256xbf16> to vector<8x32xbf16>
    %117 = vector.extract_strided_slice %78 {offsets = [64, 0], sizes = [32, 8], strides = [1, 1]} : vector<256x8xbf16> to vector<32x8xbf16>
    %cst_60 = arith.constant dense<0.000000e+00> : vector<8x8xf32>
    %118 = tpu.matmul %116, %117, %cst_60 {dimension_numbers = #tpu.dot_dimension_numbers<[1], [0], [0], [1], [0, 0, 1, 1], [], []>} : vector<8x32xbf16>, vector<32x8xbf16>, vector<8x8xf32> -> vector<8x8xf32>
    %cst_61 = arith.constant dense<0xFF800000> : vector<8xf32>
    %119 = vector.multi_reduction <maximumf>, %118, %cst_61 [1] : vector<8x8xf32> to vector<8xf32>
    %120 = vector.shape_cast %119 : vector<8xf32> to vector<8x1xf32>
    %121 = vector.broadcast %120 : vector<8x1xf32> to vector<8x8xf32>
    %122 = arith.subf %118, %121 : vector<8x8xf32>
    %123 = math.exp %122 : vector<8x8xf32>
    %cst_62 = arith.constant dense<0.000000e+00> : vector<8xf32>
    %124 = vector.multi_reduction <add>, %123, %cst_62 [1] : vector<8x8xf32> to vector<8xf32>
    %125 = vector.shape_cast %124 : vector<8xf32> to vector<8x1xf32>
    %126 = tpu.reciprocal %125 {approx = true} : vector<8x1xf32> -> vector<8x1xf32>
    %127 = arith.truncf %123 : vector<8x8xf32> to vector<8x8xbf16>
    %128 = vector.extract_strided_slice %79 {offsets = [0, 64], sizes = [8, 32], strides = [1, 1]} : vector<8x256xbf16> to vector<8x32xbf16>
    %cst_63 = arith.constant dense<0.000000e+00> : vector<8x32xf32>
    %129 = tpu.matmul %127, %128, %cst_63 {dimension_numbers = #tpu.dot_dimension_numbers<[1], [0], [0], [1], [0, 0, 1, 1], [], []>} : vector<8x8xbf16>, vector<8x32xbf16>, vector<8x32xf32> -> vector<8x32xf32>
    %130 = vector.broadcast %126 : vector<8x1xf32> to vector<8x32xf32>
    %131 = arith.mulf %129, %130 : vector<8x32xf32>
    %132 = arith.truncf %131 : vector<8x32xf32> to vector<8x32xbf16>
    %c0_64 = arith.constant 0 : index
    %c64 = arith.constant 64 : index
    %133 = vector.load %arg30[%c0_64, %c64] : memref<8x256xbf16, #tpu.memory_space<vmem>>, vector<8x32xbf16>
    tpu.vector_store %arg30[%c0_64, %c64], %132 {strides = array<i32>} : memref<8x256xbf16, #tpu.memory_space<vmem>>, vector<8x32xbf16>,
    %134 = vector.extract_strided_slice %75 {offsets = [0, 96], sizes = [8, 32], strides = [1, 1]} : vector<8x256xbf16> to vector<8x32xbf16>
    %135 = vector.extract_strided_slice %78 {offsets = [96, 0], sizes = [32, 8], strides = [1, 1]} : vector<256x8xbf16> to vector<32x8xbf16>
    %cst_65 = arith.constant dense<0.000000e+00> : vector<8x8xf32>
    %136 = tpu.matmul %134, %135, %cst_65 {dimension_numbers = #tpu.dot_dimension_numbers<[1], [0], [0], [1], [0, 0, 1, 1], [], []>} : vector<8x32xbf16>, vector<32x8xbf16>, vector<8x8xf32> -> vector<8x8xf32>
    %cst_66 = arith.constant dense<0xFF800000> : vector<8xf32>
    %137 = vector.multi_reduction <maximumf>, %136, %cst_66 [1] : vector<8x8xf32> to vector<8xf32>
    %138 = vector.shape_cast %137 : vector<8xf32> to vector<8x1xf32>
    %139 = vector.broadcast %138 : vector<8x1xf32> to vector<8x8xf32>
    %140 = arith.subf %136, %139 : vector<8x8xf32>
    %141 = math.exp %140 : vector<8x8xf32>
    %cst_67 = arith.constant dense<0.000000e+00> : vector<8xf32>
    %142 = vector.multi_reduction <add>, %141, %cst_67 [1] : vector<8x8xf32> to vector<8xf32>
    %143 = vector.shape_cast %142 : vector<8xf32> to vector<8x1xf32>
    %144 = tpu.reciprocal %143 {approx = true} : vector<8x1xf32> -> vector<8x1xf32>
    %145 = arith.truncf %141 : vector<8x8xf32> to vector<8x8xbf16>
    %146 = vector.extract_strided_slice %79 {offsets = [0, 96], sizes = [8, 32], strides = [1, 1]} : vector<8x256xbf16> to vector<8x32xbf16>
    %cst_68 = arith.constant dense<0.000000e+00> : vector<8x32xf32>
    %147 = tpu.matmul %145, %146, %cst_68 {dimension_numbers = #tpu.dot_dimension_numbers<[1], [0], [0], [1], [0, 0, 1, 1], [], []>} : vector<8x8xbf16>, vector<8x32xbf16>, vector<8x32xf32> -> vector<8x32xf32>
    %148 = vector.broadcast %144 : vector<8x1xf32> to vector<8x32xf32>
    %149 = arith.mulf %147, %148 : vector<8x32xf32>
    %150 = arith.truncf %149 : vector<8x32xf32> to vector<8x32xbf16>
    %c0_69 = arith.constant 0 : index
    %c96 = arith.constant 96 : index
    %151 = vector.load %arg30[%c0_69, %c96] : memref<8x256xbf16, #tpu.memory_space<vmem>>, vector<8x32xbf16>
    tpu.vector_store %arg30[%c0_69, %c96], %150 {strides = array<i32>} : memref<8x256xbf16, #tpu.memory_space<vmem>>, vector<8x32xbf16>,
    %152 = vector.extract_strided_slice %75 {offsets = [0, 128], sizes = [8, 32], strides = [1, 1]} : vector<8x256xbf16> to vector<8x32xbf16>
    %153 = vector.extract_strided_slice %78 {offsets = [128, 0], sizes = [32, 8], strides = [1, 1]} : vector<256x8xbf16> to vector<32x8xbf16>
    %cst_70 = arith.constant dense<0.000000e+00> : vector<8x8xf32>
    %154 = tpu.matmul %152, %153, %cst_70 {dimension_numbers = #tpu.dot_dimension_numbers<[1], [0], [0], [1], [0, 0, 1, 1], [], []>} : vector<8x32xbf16>, vector<32x8xbf16>, vector<8x8xf32> -> vector<8x8xf32>
    %cst_71 = arith.constant dense<0xFF800000> : vector<8xf32>
    %155 = vector.multi_reduction <maximumf>, %154, %cst_71 [1] : vector<8x8xf32> to vector<8xf32>
    %156 = vector.shape_cast %155 : vector<8xf32> to vector<8x1xf32>
    %157 = vector.broadcast %156 : vector<8x1xf32> to vector<8x8xf32>
    %158 = arith.subf %154, %157 : vector<8x8xf32>
    %159 = math.exp %158 : vector<8x8xf32>
    %cst_72 = arith.constant dense<0.000000e+00> : vector<8xf32>
    %160 = vector.multi_reduction <add>, %159, %cst_72 [1] : vector<8x8xf32> to vector<8xf32>
    %161 = vector.shape_cast %160 : vector<8xf32> to vector<8x1xf32>
    %162 = tpu.reciprocal %161 {approx = true} : vector<8x1xf32> -> vector<8x1xf32>
    %163 = arith.truncf %159 : vector<8x8xf32> to vector<8x8xbf16>
    %164 = vector.extract_strided_slice %79 {offsets = [0, 128], sizes = [8, 32], strides = [1, 1]} : vector<8x256xbf16> to vector<8x32xbf16>
    %cst_73 = arith.constant dense<0.000000e+00> : vector<8x32xf32>
    %165 = tpu.matmul %163, %164, %cst_73 {dimension_numbers = #tpu.dot_dimension_numbers<[1], [0], [0], [1], [0, 0, 1, 1], [], []>} : vector<8x8xbf16>, vector<8x32xbf16>, vector<8x32xf32> -> vector<8x32xf32>
    %166 = vector.broadcast %162 : vector<8x1xf32> to vector<8x32xf32>
    %167 = arith.mulf %165, %166 : vector<8x32xf32>
    %168 = arith.truncf %167 : vector<8x32xf32> to vector<8x32xbf16>
    %c0_74 = arith.constant 0 : index
    %c128 = arith.constant 128 : index
    %169 = vector.load %arg30[%c0_74, %c128] : memref<8x256xbf16, #tpu.memory_space<vmem>>, vector<8x32xbf16>
    tpu.vector_store %arg30[%c0_74, %c128], %168 {strides = array<i32>} : memref<8x256xbf16, #tpu.memory_space<vmem>>, vector<8x32xbf16>,
    %170 = vector.extract_strided_slice %75 {offsets = [0, 160], sizes = [8, 32], strides = [1, 1]} : vector<8x256xbf16> to vector<8x32xbf16>
    %171 = vector.extract_strided_slice %78 {offsets = [160, 0], sizes = [32, 8], strides = [1, 1]} : vector<256x8xbf16> to vector<32x8xbf16>
    %cst_75 = arith.constant dense<0.000000e+00> : vector<8x8xf32>
    %172 = tpu.matmul %170, %171, %cst_75 {dimension_numbers = #tpu.dot_dimension_numbers<[1], [0], [0], [1], [0, 0, 1, 1], [], []>} : vector<8x32xbf16>, vector<32x8xbf16>, vector<8x8xf32> -> vector<8x8xf32>
    %cst_76 = arith.constant dense<0xFF800000> : vector<8xf32>
    %173 = vector.multi_reduction <maximumf>, %172, %cst_76 [1] : vector<8x8xf32> to vector<8xf32>
    %174 = vector.shape_cast %173 : vector<8xf32> to vector<8x1xf32>
    %175 = vector.broadcast %174 : vector<8x1xf32> to vector<8x8xf32>
    %176 = arith.subf %172, %175 : vector<8x8xf32>
    %177 = math.exp %176 : vector<8x8xf32>
    %cst_77 = arith.constant dense<0.000000e+00> : vector<8xf32>
    %178 = vector.multi_reduction <add>, %177, %cst_77 [1] : vector<8x8xf32> to vector<8xf32>
    %179 = vector.shape_cast %178 : vector<8xf32> to vector<8x1xf32>
    %180 = tpu.reciprocal %179 {approx = true} : vector<8x1xf32> -> vector<8x1xf32>
    %181 = arith.truncf %177 : vector<8x8xf32> to vector<8x8xbf16>
    %182 = vector.extract_strided_slice %79 {offsets = [0, 160], sizes = [8, 32], strides = [1, 1]} : vector<8x256xbf16> to vector<8x32xbf16>
    %cst_78 = arith.constant dense<0.000000e+00> : vector<8x32xf32>
    %183 = tpu.matmul %181, %182, %cst_78 {dimension_numbers = #tpu.dot_dimension_numbers<[1], [0], [0], [1], [0, 0, 1, 1], [], []>} : vector<8x8xbf16>, vector<8x32xbf16>, vector<8x32xf32> -> vector<8x32xf32>
    %184 = vector.broadcast %180 : vector<8x1xf32> to vector<8x32xf32>
    %185 = arith.mulf %183, %184 : vector<8x32xf32>
    %186 = arith.truncf %185 : vector<8x32xf32> to vector<8x32xbf16>
    %c0_79 = arith.constant 0 : index
    %c160 = arith.constant 160 : index
    %187 = vector.load %arg30[%c0_79, %c160] : memref<8x256xbf16, #tpu.memory_space<vmem>>, vector<8x32xbf16>
    tpu.vector_store %arg30[%c0_79, %c160], %186 {strides = array<i32>} : memref<8x256xbf16, #tpu.memory_space<vmem>>, vector<8x32xbf16>,
    %188 = vector.extract_strided_slice %75 {offsets = [0, 192], sizes = [8, 32], strides = [1, 1]} : vector<8x256xbf16> to vector<8x32xbf16>
    %189 = vector.extract_strided_slice %78 {offsets = [192, 0], sizes = [32, 8], strides = [1, 1]} : vector<256x8xbf16> to vector<32x8xbf16>
    %cst_80 = arith.constant dense<0.000000e+00> : vector<8x8xf32>
    %190 = tpu.matmul %188, %189, %cst_80 {dimension_numbers = #tpu.dot_dimension_numbers<[1], [0], [0], [1], [0, 0, 1, 1], [], []>} : vector<8x32xbf16>, vector<32x8xbf16>, vector<8x8xf32> -> vector<8x8xf32>
    %cst_81 = arith.constant dense<0xFF800000> : vector<8xf32>
    %191 = vector.multi_reduction <maximumf>, %190, %cst_81 [1] : vector<8x8xf32> to vector<8xf32>
    %192 = vector.shape_cast %191 : vector<8xf32> to vector<8x1xf32>
    %193 = vector.broadcast %192 : vector<8x1xf32> to vector<8x8xf32>
    %194 = arith.subf %190, %193 : vector<8x8xf32>
    %195 = math.exp %194 : vector<8x8xf32>
    %cst_82 = arith.constant dense<0.000000e+00> : vector<8xf32>
    %196 = vector.multi_reduction <add>, %195, %cst_82 [1] : vector<8x8xf32> to vector<8xf32>
    %197 = vector.shape_cast %196 : vector<8xf32> to vector<8x1xf32>
    %198 = tpu.reciprocal %197 {approx = true} : vector<8x1xf32> -> vector<8x1xf32>
    %199 = arith.truncf %195 : vector<8x8xf32> to vector<8x8xbf16>
    %200 = vector.extract_strided_slice %79 {offsets = [0, 192], sizes = [8, 32], strides = [1, 1]} : vector<8x256xbf16> to vector<8x32xbf16>
    %cst_83 = arith.constant dense<0.000000e+00> : vector<8x32xf32>
    %201 = tpu.matmul %199, %200, %cst_83 {dimension_numbers = #tpu.dot_dimension_numbers<[1], [0], [0], [1], [0, 0, 1, 1], [], []>} : vector<8x8xbf16>, vector<8x32xbf16>, vector<8x32xf32> -> vector<8x32xf32>
    %202 = vector.broadcast %198 : vector<8x1xf32> to vector<8x32xf32>
    %203 = arith.mulf %201, %202 : vector<8x32xf32>
    %204 = arith.truncf %203 : vector<8x32xf32> to vector<8x32xbf16>
    %c0_84 = arith.constant 0 : index
    %c192 = arith.constant 192 : index
    %205 = vector.load %arg30[%c0_84, %c192] : memref<8x256xbf16, #tpu.memory_space<vmem>>, vector<8x32xbf16>
    tpu.vector_store %arg30[%c0_84, %c192], %204 {strides = array<i32>} : memref<8x256xbf16, #tpu.memory_space<vmem>>, vector<8x32xbf16>,
    %206 = vector.extract_strided_slice %75 {offsets = [0, 224], sizes = [8, 32], strides = [1, 1]} : vector<8x256xbf16> to vector<8x32xbf16>
    %207 = vector.extract_strided_slice %78 {offsets = [224, 0], sizes = [32, 8], strides = [1, 1]} : vector<256x8xbf16> to vector<32x8xbf16>
    %cst_85 = arith.constant dense<0.000000e+00> : vector<8x8xf32>
    %208 = tpu.matmul %206, %207, %cst_85 {dimension_numbers = #tpu.dot_dimension_numbers<[1], [0], [0], [1], [0, 0, 1, 1], [], []>} : vector<8x32xbf16>, vector<32x8xbf16>, vector<8x8xf32> -> vector<8x8xf32>
    %cst_86 = arith.constant dense<0xFF800000> : vector<8xf32>
    %209 = vector.multi_reduction <maximumf>, %208, %cst_86 [1] : vector<8x8xf32> to vector<8xf32>
    %210 = vector.shape_cast %209 : vector<8xf32> to vector<8x1xf32>
    %211 = vector.broadcast %210 : vector<8x1xf32> to vector<8x8xf32>
    %212 = arith.subf %208, %211 : vector<8x8xf32>
    %213 = math.exp %212 : vector<8x8xf32>
    %cst_87 = arith.constant dense<0.000000e+00> : vector<8xf32>
    %214 = vector.multi_reduction <add>, %213, %cst_87 [1] : vector<8x8xf32> to vector<8xf32>
    %215 = vector.shape_cast %214 : vector<8xf32> to vector<8x1xf32>
    %216 = tpu.reciprocal %215 {approx = true} : vector<8x1xf32> -> vector<8x1xf32>
    %217 = arith.truncf %213 : vector<8x8xf32> to vector<8x8xbf16>
    %218 = vector.extract_strided_slice %79 {offsets = [0, 224], sizes = [8, 32], strides = [1, 1]} : vector<8x256xbf16> to vector<8x32xbf16>
    %cst_88 = arith.constant dense<0.000000e+00> : vector<8x32xf32>
    %219 = tpu.matmul %217, %218, %cst_88 {dimension_numbers = #tpu.dot_dimension_numbers<[1], [0], [0], [1], [0, 0, 1, 1], [], []>} : vector<8x8xbf16>, vector<8x32xbf16>, vector<8x32xf32> -> vector<8x32xf32>
    %220 = vector.broadcast %216 : vector<8x1xf32> to vector<8x32xf32>
    %221 = arith.mulf %219, %220 : vector<8x32xf32>
    %222 = arith.truncf %221 : vector<8x32xf32> to vector<8x32xbf16>
    %c0_89 = arith.constant 0 : index
    %c224 = arith.constant 224 : index
    %223 = vector.load %arg30[%c0_89, %c224] : memref<8x256xbf16, #tpu.memory_space<vmem>>, vector<8x32xbf16>
    tpu.vector_store %arg30[%c0_89, %c224], %222 {strides = array<i32>} : memref<8x256xbf16, #tpu.memory_space<vmem>>, vector<8x32xbf16>,
    %c0_90 = arith.constant 0 : index
    %c0_91 = arith.constant 0 : index
    %224 = vector.load %arg30[%c0_90, %c0_91] : memref<8x256xbf16, #tpu.memory_space<vmem>>, vector<8x256xbf16>
    %c0_92 = arith.constant 0 : index
    %c0_93 = arith.constant 0 : index
    %225 = vector.load %arg12[%c0_92, %c0_93] : memref<256x256xbf16, #tpu.memory_space<vmem>>, vector<256x256xbf16>
    %cst_94 = arith.constant dense<0.000000e+00> : vector<8x256xf32>
    %226 = tpu.matmul %224, %225, %cst_94 {dimension_numbers = #tpu.dot_dimension_numbers<[1], [0], [0], [1], [0, 0, 1, 1], [], []>} : vector<8x256xbf16>, vector<256x256xbf16>, vector<8x256xf32> -> vector<8x256xf32>
    %c0_95 = arith.constant 0 : index
    %c0_96 = arith.constant 0 : index
    %227 = vector.load %arg13[%c0_95, %c0_96] : memref<1x256xf32, #tpu.memory_space<vmem>>, vector<1x256xf32>
    %228 = vector.broadcast %227 : vector<1x256xf32> to vector<8x256xf32>
    %229 = arith.addf %226, %228 : vector<8x256xf32>
    %230 = arith.addf %26, %229 : vector<8x256xf32>
    %cst_97 = arith.constant dense<0.000000e+00> : vector<8xf32>
    %231 = vector.multi_reduction <add>, %230, %cst_97 [1] : vector<8x256xf32> to vector<8xf32>
    %232 = vector.shape_cast %231 : vector<8xf32> to vector<8x1xf32>
    %cst_98 = arith.constant 2.560000e+02 : f32
    %233 = vector.broadcast %cst_98 : f32 to vector<8x1xf32>
    %234 = arith.divf %232, %233 : vector<8x1xf32>
    %235 = vector.broadcast %234 : vector<8x1xf32> to vector<8x256xf32>
    %236 = arith.subf %230, %235 : vector<8x256xf32>
    %237 = arith.mulf %236, %236 : vector<8x256xf32>
    %cst_99 = arith.constant dense<0.000000e+00> : vector<8xf32>
    %238 = vector.multi_reduction <add>, %237, %cst_99 [1] : vector<8x256xf32> to vector<8xf32>
    %239 = vector.shape_cast %238 : vector<8xf32> to vector<8x1xf32>
    %cst_100 = arith.constant 2.560000e+02 : f32
    %240 = vector.broadcast %cst_100 : f32 to vector<8x1xf32>
    %241 = arith.divf %239, %240 : vector<8x1xf32>
    %cst_101 = arith.constant 9.99999974E-6 : f32
    %242 = vector.broadcast %cst_101 : f32 to vector<8x1xf32>
    %243 = arith.addf %241, %242 : vector<8x1xf32>
    %244 = math.rsqrt %243 : vector<8x1xf32>
    %245 = vector.broadcast %244 : vector<8x1xf32> to vector<8x256xf32>
    %246 = arith.mulf %236, %245 : vector<8x256xf32>
    %c0_102 = arith.constant 0 : index
    %c0_103 = arith.constant 0 : index
    %247 = vector.load %arg27[%c0_102, %c0_103] : memref<1x256xf32, #tpu.memory_space<vmem>>, vector<1x256xf32>
    %248 = vector.broadcast %247 : vector<1x256xf32> to vector<8x256xf32>
    %249 = arith.mulf %246, %248 : vector<8x256xf32>
    %c0_104 = arith.constant 0 : index
    %c0_105 = arith.constant 0 : index
    %250 = vector.load %arg28[%c0_104, %c0_105] : memref<1x256xf32, #tpu.memory_space<vmem>>, vector<1x256xf32>
    %251 = vector.broadcast %250 : vector<1x256xf32> to vector<8x256xf32>
    %252 = arith.addf %249, %251 : vector<8x256xf32>
    %253 = arith.truncf %252 : vector<8x256xf32> to vector<8x256xbf16>
    %c0_106 = arith.constant 0 : index
    %c0_107 = arith.constant 0 : index
    %254 = vector.load %arg14[%c0_106, %c0_107] : memref<256x256xbf16, #tpu.memory_space<vmem>>, vector<256x256xbf16>
    %cst_108 = arith.constant dense<0.000000e+00> : vector<8x256xf32>
    %255 = tpu.matmul %253, %254, %cst_108 {dimension_numbers = #tpu.dot_dimension_numbers<[1], [0], [0], [1], [0, 0, 1, 1], [], []>} : vector<8x256xbf16>, vector<256x256xbf16>, vector<8x256xf32> -> vector<8x256xf32>
    %c0_109 = arith.constant 0 : index
    %c0_110 = arith.constant 0 : index
    %256 = vector.load %arg15[%c0_109, %c0_110] : memref<1x256xf32, #tpu.memory_space<vmem>>, vector<1x256xf32>
    %257 = vector.broadcast %256 : vector<1x256xf32> to vector<8x256xf32>
    %258 = arith.addf %255, %257 : vector<8x256xf32>
    %259 = arith.truncf %258 : vector<8x256xf32> to vector<8x256xbf16>
    %c0_111 = arith.constant 0 : index
    %c0_112 = arith.constant 0 : index
    %c0_113 = arith.constant 0 : index
    %260 = vector.load %arg31[%c0_111, %c0_112, %c0_113] : memref<1x256x64xbf16, #tpu.memory_space<vmem>>, vector<1x256x64xbf16>
    %261 = vector.shape_cast %260 : vector<1x256x64xbf16> to vector<256x64xbf16>
    %c0_114 = arith.constant 0 : index
    %c0_115 = arith.constant 0 : index
    %c0_116 = arith.constant 0 : index
    %262 = vector.load %arg32[%c0_114, %c0_115, %c0_116] : memref<1x64x256xbf16, #tpu.memory_space<vmem>>, vector<1x64x256xbf16>
    %263 = vector.shape_cast %262 : vector<1x64x256xbf16> to vector<64x256xbf16>
    %264 = vector.extract_strided_slice %259 {offsets = [0, 0], sizes = [8, 32], strides = [1, 1]} : vector<8x256xbf16> to vector<8x32xbf16>
    %265 = vector.extract_strided_slice %261 {offsets = [0, 0], sizes = [32, 64], strides = [1, 1]} : vector<256x64xbf16> to vector<32x64xbf16>
    %cst_117 = arith.constant dense<0.000000e+00> : vector<8x64xf32>
    %266 = tpu.matmul %264, %265, %cst_117 {dimension_numbers = #tpu.dot_dimension_numbers<[1], [0], [0], [1], [0, 0, 1, 1], [], []>} : vector<8x32xbf16>, vector<32x64xbf16>, vector<8x64xf32> -> vector<8x64xf32>
    %cst_118 = arith.constant dense<0xFF800000> : vector<8xf32>
    %267 = vector.multi_reduction <maximumf>, %266, %cst_118 [1] : vector<8x64xf32> to vector<8xf32>
    %268 = vector.shape_cast %267 : vector<8xf32> to vector<8x1xf32>
    %269 = vector.broadcast %268 : vector<8x1xf32> to vector<8x64xf32>
    %270 = arith.subf %266, %269 : vector<8x64xf32>
    %271 = math.exp %270 : vector<8x64xf32>
    %cst_119 = arith.constant dense<0.000000e+00> : vector<8xf32>
    %272 = vector.multi_reduction <add>, %271, %cst_119 [1] : vector<8x64xf32> to vector<8xf32>
    %273 = vector.shape_cast %272 : vector<8xf32> to vector<8x1xf32>
    %274 = tpu.reciprocal %273 {approx = true} : vector<8x1xf32> -> vector<8x1xf32>
    %275 = arith.truncf %271 : vector<8x64xf32> to vector<8x64xbf16>
    %276 = vector.extract_strided_slice %263 {offsets = [0, 0], sizes = [64, 32], strides = [1, 1]} : vector<64x256xbf16> to vector<64x32xbf16>
    %cst_120 = arith.constant dense<0.000000e+00> : vector<8x32xf32>
    %277 = tpu.matmul %275, %276, %cst_120 {dimension_numbers = #tpu.dot_dimension_numbers<[1], [0], [0], [1], [0, 0, 1, 1], [], []>} : vector<8x64xbf16>, vector<64x32xbf16>, vector<8x32xf32> -> vector<8x32xf32>
    %278 = vector.broadcast %274 : vector<8x1xf32> to vector<8x32xf32>
    %279 = arith.mulf %277, %278 : vector<8x32xf32>
    %280 = arith.truncf %279 : vector<8x32xf32> to vector<8x32xbf16>
    %c0_121 = arith.constant 0 : index
    %c0_122 = arith.constant 0 : index
    %281 = vector.load %arg30[%c0_121, %c0_122] : memref<8x256xbf16, #tpu.memory_space<vmem>>, vector<8x32xbf16>
    tpu.vector_store %arg30[%c0_121, %c0_122], %280 {strides = array<i32>} : memref<8x256xbf16, #tpu.memory_space<vmem>>, vector<8x32xbf16>,
    %282 = vector.extract_strided_slice %259 {offsets = [0, 32], sizes = [8, 32], strides = [1, 1]} : vector<8x256xbf16> to vector<8x32xbf16>
    %283 = vector.extract_strided_slice %261 {offsets = [32, 0], sizes = [32, 64], strides = [1, 1]} : vector<256x64xbf16> to vector<32x64xbf16>
    %cst_123 = arith.constant dense<0.000000e+00> : vector<8x64xf32>
    %284 = tpu.matmul %282, %283, %cst_123 {dimension_numbers = #tpu.dot_dimension_numbers<[1], [0], [0], [1], [0, 0, 1, 1], [], []>} : vector<8x32xbf16>, vector<32x64xbf16>, vector<8x64xf32> -> vector<8x64xf32>
    %cst_124 = arith.constant dense<0xFF800000> : vector<8xf32>
    %285 = vector.multi_reduction <maximumf>, %284, %cst_124 [1] : vector<8x64xf32> to vector<8xf32>
    %286 = vector.shape_cast %285 : vector<8xf32> to vector<8x1xf32>
    %287 = vector.broadcast %286 : vector<8x1xf32> to vector<8x64xf32>
    %288 = arith.subf %284, %287 : vector<8x64xf32>
    %289 = math.exp %288 : vector<8x64xf32>
    %cst_125 = arith.constant dense<0.000000e+00> : vector<8xf32>
    %290 = vector.multi_reduction <add>, %289, %cst_125 [1] : vector<8x64xf32> to vector<8xf32>
    %291 = vector.shape_cast %290 : vector<8xf32> to vector<8x1xf32>
    %292 = tpu.reciprocal %291 {approx = true} : vector<8x1xf32> -> vector<8x1xf32>
    %293 = arith.truncf %289 : vector<8x64xf32> to vector<8x64xbf16>
    %294 = vector.extract_strided_slice %263 {offsets = [0, 32], sizes = [64, 32], strides = [1, 1]} : vector<64x256xbf16> to vector<64x32xbf16>
    %cst_126 = arith.constant dense<0.000000e+00> : vector<8x32xf32>
    %295 = tpu.matmul %293, %294, %cst_126 {dimension_numbers = #tpu.dot_dimension_numbers<[1], [0], [0], [1], [0, 0, 1, 1], [], []>} : vector<8x64xbf16>, vector<64x32xbf16>, vector<8x32xf32> -> vector<8x32xf32>
    %296 = vector.broadcast %292 : vector<8x1xf32> to vector<8x32xf32>
    %297 = arith.mulf %295, %296 : vector<8x32xf32>
    %298 = arith.truncf %297 : vector<8x32xf32> to vector<8x32xbf16>
    %c0_127 = arith.constant 0 : index
    %c32_128 = arith.constant 32 : index
    %299 = vector.load %arg30[%c0_127, %c32_128] : memref<8x256xbf16, #tpu.memory_space<vmem>>, vector<8x32xbf16>
    tpu.vector_store %arg30[%c0_127, %c32_128], %298 {strides = array<i32>} : memref<8x256xbf16, #tpu.memory_space<vmem>>, vector<8x32xbf16>,
    %300 = vector.extract_strided_slice %259 {offsets = [0, 64], sizes = [8, 32], strides = [1, 1]} : vector<8x256xbf16> to vector<8x32xbf16>
    %301 = vector.extract_strided_slice %261 {offsets = [64, 0], sizes = [32, 64], strides = [1, 1]} : vector<256x64xbf16> to vector<32x64xbf16>
    %cst_129 = arith.constant dense<0.000000e+00> : vector<8x64xf32>
    %302 = tpu.matmul %300, %301, %cst_129 {dimension_numbers = #tpu.dot_dimension_numbers<[1], [0], [0], [1], [0, 0, 1, 1], [], []>} : vector<8x32xbf16>, vector<32x64xbf16>, vector<8x64xf32> -> vector<8x64xf32>
    %cst_130 = arith.constant dense<0xFF800000> : vector<8xf32>
    %303 = vector.multi_reduction <maximumf>, %302, %cst_130 [1] : vector<8x64xf32> to vector<8xf32>
    %304 = vector.shape_cast %303 : vector<8xf32> to vector<8x1xf32>
    %305 = vector.broadcast %304 : vector<8x1xf32> to vector<8x64xf32>
    %306 = arith.subf %302, %305 : vector<8x64xf32>
    %307 = math.exp %306 : vector<8x64xf32>
    %cst_131 = arith.constant dense<0.000000e+00> : vector<8xf32>
    %308 = vector.multi_reduction <add>, %307, %cst_131 [1] : vector<8x64xf32> to vector<8xf32>
    %309 = vector.shape_cast %308 : vector<8xf32> to vector<8x1xf32>
    %310 = tpu.reciprocal %309 {approx = true} : vector<8x1xf32> -> vector<8x1xf32>
    %311 = arith.truncf %307 : vector<8x64xf32> to vector<8x64xbf16>
    %312 = vector.extract_strided_slice %263 {offsets = [0, 64], sizes = [64, 32], strides = [1, 1]} : vector<64x256xbf16> to vector<64x32xbf16>
    %cst_132 = arith.constant dense<0.000000e+00> : vector<8x32xf32>
    %313 = tpu.matmul %311, %312, %cst_132 {dimension_numbers = #tpu.dot_dimension_numbers<[1], [0], [0], [1], [0, 0, 1, 1], [], []>} : vector<8x64xbf16>, vector<64x32xbf16>, vector<8x32xf32> -> vector<8x32xf32>
    %314 = vector.broadcast %310 : vector<8x1xf32> to vector<8x32xf32>
    %315 = arith.mulf %313, %314 : vector<8x32xf32>
    %316 = arith.truncf %315 : vector<8x32xf32> to vector<8x32xbf16>
    %c0_133 = arith.constant 0 : index
    %c64_134 = arith.constant 64 : index
    %317 = vector.load %arg30[%c0_133, %c64_134] : memref<8x256xbf16, #tpu.memory_space<vmem>>, vector<8x32xbf16>
    tpu.vector_store %arg30[%c0_133, %c64_134], %316 {strides = array<i32>} : memref<8x256xbf16, #tpu.memory_space<vmem>>, vector<8x32xbf16>,
    %318 = vector.extract_strided_slice %259 {offsets = [0, 96], sizes = [8, 32], strides = [1, 1]} : vector<8x256xbf16> to vector<8x32xbf16>
    %319 = vector.extract_strided_slice %261 {offsets = [96, 0], sizes = [32, 64], strides = [1, 1]} : vector<256x64xbf16> to vector<32x64xbf16>
    %cst_135 = arith.constant dense<0.000000e+00> : vector<8x64xf32>
    %320 = tpu.matmul %318, %319, %cst_135 {dimension_numbers = #tpu.dot_dimension_numbers<[1], [0], [0], [1], [0, 0, 1, 1], [], []>} : vector<8x32xbf16>, vector<32x64xbf16>, vector<8x64xf32> -> vector<8x64xf32>
    %cst_136 = arith.constant dense<0xFF800000> : vector<8xf32>
    %321 = vector.multi_reduction <maximumf>, %320, %cst_136 [1] : vector<8x64xf32> to vector<8xf32>
    %322 = vector.shape_cast %321 : vector<8xf32> to vector<8x1xf32>
    %323 = vector.broadcast %322 : vector<8x1xf32> to vector<8x64xf32>
    %324 = arith.subf %320, %323 : vector<8x64xf32>
    %325 = math.exp %324 : vector<8x64xf32>
    %cst_137 = arith.constant dense<0.000000e+00> : vector<8xf32>
    %326 = vector.multi_reduction <add>, %325, %cst_137 [1] : vector<8x64xf32> to vector<8xf32>
    %327 = vector.shape_cast %326 : vector<8xf32> to vector<8x1xf32>
    %328 = tpu.reciprocal %327 {approx = true} : vector<8x1xf32> -> vector<8x1xf32>
    %329 = arith.truncf %325 : vector<8x64xf32> to vector<8x64xbf16>
    %330 = vector.extract_strided_slice %263 {offsets = [0, 96], sizes = [64, 32], strides = [1, 1]} : vector<64x256xbf16> to vector<64x32xbf16>
    %cst_138 = arith.constant dense<0.000000e+00> : vector<8x32xf32>
    %331 = tpu.matmul %329, %330, %cst_138 {dimension_numbers = #tpu.dot_dimension_numbers<[1], [0], [0], [1], [0, 0, 1, 1], [], []>} : vector<8x64xbf16>, vector<64x32xbf16>, vector<8x32xf32> -> vector<8x32xf32>
    %332 = vector.broadcast %328 : vector<8x1xf32> to vector<8x32xf32>
    %333 = arith.mulf %331, %332 : vector<8x32xf32>
    %334 = arith.truncf %333 : vector<8x32xf32> to vector<8x32xbf16>
    %c0_139 = arith.constant 0 : index
    %c96_140 = arith.constant 96 : index
    %335 = vector.load %arg30[%c0_139, %c96_140] : memref<8x256xbf16, #tpu.memory_space<vmem>>, vector<8x32xbf16>
    tpu.vector_store %arg30[%c0_139, %c96_140], %334 {strides = array<i32>} : memref<8x256xbf16, #tpu.memory_space<vmem>>, vector<8x32xbf16>,
    %336 = vector.extract_strided_slice %259 {offsets = [0, 128], sizes = [8, 32], strides = [1, 1]} : vector<8x256xbf16> to vector<8x32xbf16>
    %337 = vector.extract_strided_slice %261 {offsets = [128, 0], sizes = [32, 64], strides = [1, 1]} : vector<256x64xbf16> to vector<32x64xbf16>
    %cst_141 = arith.constant dense<0.000000e+00> : vector<8x64xf32>
    %338 = tpu.matmul %336, %337, %cst_141 {dimension_numbers = #tpu.dot_dimension_numbers<[1], [0], [0], [1], [0, 0, 1, 1], [], []>} : vector<8x32xbf16>, vector<32x64xbf16>, vector<8x64xf32> -> vector<8x64xf32>
    %cst_142 = arith.constant dense<0xFF800000> : vector<8xf32>
    %339 = vector.multi_reduction <maximumf>, %338, %cst_142 [1] : vector<8x64xf32> to vector<8xf32>
    %340 = vector.shape_cast %339 : vector<8xf32> to vector<8x1xf32>
    %341 = vector.broadcast %340 : vector<8x1xf32> to vector<8x64xf32>
    %342 = arith.subf %338, %341 : vector<8x64xf32>
    %343 = math.exp %342 : vector<8x64xf32>
    %cst_143 = arith.constant dense<0.000000e+00> : vector<8xf32>
    %344 = vector.multi_reduction <add>, %343, %cst_143 [1] : vector<8x64xf32> to vector<8xf32>
    %345 = vector.shape_cast %344 : vector<8xf32> to vector<8x1xf32>
    %346 = tpu.reciprocal %345 {approx = true} : vector<8x1xf32> -> vector<8x1xf32>
    %347 = arith.truncf %343 : vector<8x64xf32> to vector<8x64xbf16>
    %348 = vector.extract_strided_slice %263 {offsets = [0, 128], sizes = [64, 32], strides = [1, 1]} : vector<64x256xbf16> to vector<64x32xbf16>
    %cst_144 = arith.constant dense<0.000000e+00> : vector<8x32xf32>
    %349 = tpu.matmul %347, %348, %cst_144 {dimension_numbers = #tpu.dot_dimension_numbers<[1], [0], [0], [1], [0, 0, 1, 1], [], []>} : vector<8x64xbf16>, vector<64x32xbf16>, vector<8x32xf32> -> vector<8x32xf32>
    %350 = vector.broadcast %346 : vector<8x1xf32> to vector<8x32xf32>
    %351 = arith.mulf %349, %350 : vector<8x32xf32>
    %352 = arith.truncf %351 : vector<8x32xf32> to vector<8x32xbf16>
    %c0_145 = arith.constant 0 : index
    %c128_146 = arith.constant 128 : index
    %353 = vector.load %arg30[%c0_145, %c128_146] : memref<8x256xbf16, #tpu.memory_space<vmem>>, vector<8x32xbf16>
    tpu.vector_store %arg30[%c0_145, %c128_146], %352 {strides = array<i32>} : memref<8x256xbf16, #tpu.memory_space<vmem>>, vector<8x32xbf16>,
    %354 = vector.extract_strided_slice %259 {offsets = [0, 160], sizes = [8, 32], strides = [1, 1]} : vector<8x256xbf16> to vector<8x32xbf16>
    %355 = vector.extract_strided_slice %261 {offsets = [160, 0], sizes = [32, 64], strides = [1, 1]} : vector<256x64xbf16> to vector<32x64xbf16>
    %cst_147 = arith.constant dense<0.000000e+00> : vector<8x64xf32>
    %356 = tpu.matmul %354, %355, %cst_147 {dimension_numbers = #tpu.dot_dimension_numbers<[1], [0], [0], [1], [0, 0, 1, 1], [], []>} : vector<8x32xbf16>, vector<32x64xbf16>, vector<8x64xf32> -> vector<8x64xf32>
    %cst_148 = arith.constant dense<0xFF800000> : vector<8xf32>
    %357 = vector.multi_reduction <maximumf>, %356, %cst_148 [1] : vector<8x64xf32> to vector<8xf32>
    %358 = vector.shape_cast %357 : vector<8xf32> to vector<8x1xf32>
    %359 = vector.broadcast %358 : vector<8x1xf32> to vector<8x64xf32>
    %360 = arith.subf %356, %359 : vector<8x64xf32>
    %361 = math.exp %360 : vector<8x64xf32>
    %cst_149 = arith.constant dense<0.000000e+00> : vector<8xf32>
    %362 = vector.multi_reduction <add>, %361, %cst_149 [1] : vector<8x64xf32> to vector<8xf32>
    %363 = vector.shape_cast %362 : vector<8xf32> to vector<8x1xf32>
    %364 = tpu.reciprocal %363 {approx = true} : vector<8x1xf32> -> vector<8x1xf32>
    %365 = arith.truncf %361 : vector<8x64xf32> to vector<8x64xbf16>
    %366 = vector.extract_strided_slice %263 {offsets = [0, 160], sizes = [64, 32], strides = [1, 1]} : vector<64x256xbf16> to vector<64x32xbf16>
    %cst_150 = arith.constant dense<0.000000e+00> : vector<8x32xf32>
    %367 = tpu.matmul %365, %366, %cst_150 {dimension_numbers = #tpu.dot_dimension_numbers<[1], [0], [0], [1], [0, 0, 1, 1], [], []>} : vector<8x64xbf16>, vector<64x32xbf16>, vector<8x32xf32> -> vector<8x32xf32>
    %368 = vector.broadcast %364 : vector<8x1xf32> to vector<8x32xf32>
    %369 = arith.mulf %367, %368 : vector<8x32xf32>
    %370 = arith.truncf %369 : vector<8x32xf32> to vector<8x32xbf16>
    %c0_151 = arith.constant 0 : index
    %c160_152 = arith.constant 160 : index
    %371 = vector.load %arg30[%c0_151, %c160_152] : memref<8x256xbf16, #tpu.memory_space<vmem>>, vector<8x32xbf16>
    tpu.vector_store %arg30[%c0_151, %c160_152], %370 {strides = array<i32>} : memref<8x256xbf16, #tpu.memory_space<vmem>>, vector<8x32xbf16>,
    %372 = vector.extract_strided_slice %259 {offsets = [0, 192], sizes = [8, 32], strides = [1, 1]} : vector<8x256xbf16> to vector<8x32xbf16>
    %373 = vector.extract_strided_slice %261 {offsets = [192, 0], sizes = [32, 64], strides = [1, 1]} : vector<256x64xbf16> to vector<32x64xbf16>
    %cst_153 = arith.constant dense<0.000000e+00> : vector<8x64xf32>
    %374 = tpu.matmul %372, %373, %cst_153 {dimension_numbers = #tpu.dot_dimension_numbers<[1], [0], [0], [1], [0, 0, 1, 1], [], []>} : vector<8x32xbf16>, vector<32x64xbf16>, vector<8x64xf32> -> vector<8x64xf32>
    %cst_154 = arith.constant dense<0xFF800000> : vector<8xf32>
    %375 = vector.multi_reduction <maximumf>, %374, %cst_154 [1] : vector<8x64xf32> to vector<8xf32>
    %376 = vector.shape_cast %375 : vector<8xf32> to vector<8x1xf32>
    %377 = vector.broadcast %376 : vector<8x1xf32> to vector<8x64xf32>
    %378 = arith.subf %374, %377 : vector<8x64xf32>
    %379 = math.exp %378 : vector<8x64xf32>
    %cst_155 = arith.constant dense<0.000000e+00> : vector<8xf32>
    %380 = vector.multi_reduction <add>, %379, %cst_155 [1] : vector<8x64xf32> to vector<8xf32>
    %381 = vector.shape_cast %380 : vector<8xf32> to vector<8x1xf32>
    %382 = tpu.reciprocal %381 {approx = true} : vector<8x1xf32> -> vector<8x1xf32>
    %383 = arith.truncf %379 : vector<8x64xf32> to vector<8x64xbf16>
    %384 = vector.extract_strided_slice %263 {offsets = [0, 192], sizes = [64, 32], strides = [1, 1]} : vector<64x256xbf16> to vector<64x32xbf16>
    %cst_156 = arith.constant dense<0.000000e+00> : vector<8x32xf32>
    %385 = tpu.matmul %383, %384, %cst_156 {dimension_numbers = #tpu.dot_dimension_numbers<[1], [0], [0], [1], [0, 0, 1, 1], [], []>} : vector<8x64xbf16>, vector<64x32xbf16>, vector<8x32xf32> -> vector<8x32xf32>
    %386 = vector.broadcast %382 : vector<8x1xf32> to vector<8x32xf32>
    %387 = arith.mulf %385, %386 : vector<8x32xf32>
    %388 = arith.truncf %387 : vector<8x32xf32> to vector<8x32xbf16>
    %c0_157 = arith.constant 0 : index
    %c192_158 = arith.constant 192 : index
    %389 = vector.load %arg30[%c0_157, %c192_158] : memref<8x256xbf16, #tpu.memory_space<vmem>>, vector<8x32xbf16>
    tpu.vector_store %arg30[%c0_157, %c192_158], %388 {strides = array<i32>} : memref<8x256xbf16, #tpu.memory_space<vmem>>, vector<8x32xbf16>,
    %390 = vector.extract_strided_slice %259 {offsets = [0, 224], sizes = [8, 32], strides = [1, 1]} : vector<8x256xbf16> to vector<8x32xbf16>
    %391 = vector.extract_strided_slice %261 {offsets = [224, 0], sizes = [32, 64], strides = [1, 1]} : vector<256x64xbf16> to vector<32x64xbf16>
    %cst_159 = arith.constant dense<0.000000e+00> : vector<8x64xf32>
    %392 = tpu.matmul %390, %391, %cst_159 {dimension_numbers = #tpu.dot_dimension_numbers<[1], [0], [0], [1], [0, 0, 1, 1], [], []>} : vector<8x32xbf16>, vector<32x64xbf16>, vector<8x64xf32> -> vector<8x64xf32>
    %cst_160 = arith.constant dense<0xFF800000> : vector<8xf32>
    %393 = vector.multi_reduction <maximumf>, %392, %cst_160 [1] : vector<8x64xf32> to vector<8xf32>
    %394 = vector.shape_cast %393 : vector<8xf32> to vector<8x1xf32>
    %395 = vector.broadcast %394 : vector<8x1xf32> to vector<8x64xf32>
    %396 = arith.subf %392, %395 : vector<8x64xf32>
    %397 = math.exp %396 : vector<8x64xf32>
    %cst_161 = arith.constant dense<0.000000e+00> : vector<8xf32>
    %398 = vector.multi_reduction <add>, %397, %cst_161 [1] : vector<8x64xf32> to vector<8xf32>
    %399 = vector.shape_cast %398 : vector<8xf32> to vector<8x1xf32>
    %400 = tpu.reciprocal %399 {approx = true} : vector<8x1xf32> -> vector<8x1xf32>
    %401 = arith.truncf %397 : vector<8x64xf32> to vector<8x64xbf16>
    %402 = vector.extract_strided_slice %263 {offsets = [0, 224], sizes = [64, 32], strides = [1, 1]} : vector<64x256xbf16> to vector<64x32xbf16>
    %cst_162 = arith.constant dense<0.000000e+00> : vector<8x32xf32>
    %403 = tpu.matmul %401, %402, %cst_162 {dimension_numbers = #tpu.dot_dimension_numbers<[1], [0], [0], [1], [0, 0, 1, 1], [], []>} : vector<8x64xbf16>, vector<64x32xbf16>, vector<8x32xf32> -> vector<8x32xf32>
    %404 = vector.broadcast %400 : vector<8x1xf32> to vector<8x32xf32>
    %405 = arith.mulf %403, %404 : vector<8x32xf32>
    %406 = arith.truncf %405 : vector<8x32xf32> to vector<8x32xbf16>
    %c0_163 = arith.constant 0 : index
    %c224_164 = arith.constant 224 : index
    %407 = vector.load %arg30[%c0_163, %c224_164] : memref<8x256xbf16, #tpu.memory_space<vmem>>, vector<8x32xbf16>
    tpu.vector_store %arg30[%c0_163, %c224_164], %406 {strides = array<i32>} : memref<8x256xbf16, #tpu.memory_space<vmem>>, vector<8x32xbf16>,
    %c0_165 = arith.constant 0 : index
    %c0_166 = arith.constant 0 : index
    %408 = vector.load %arg30[%c0_165, %c0_166] : memref<8x256xbf16, #tpu.memory_space<vmem>>, vector<8x256xbf16>
    %c0_167 = arith.constant 0 : index
    %c0_168 = arith.constant 0 : index
    %409 = vector.load %arg18[%c0_167, %c0_168] : memref<256x256xbf16, #tpu.memory_space<vmem>>, vector<256x256xbf16>
    %cst_169 = arith.constant dense<0.000000e+00> : vector<8x256xf32>
    %410 = tpu.matmul %408, %409, %cst_169 {dimension_numbers = #tpu.dot_dimension_numbers<[1], [0], [0], [1], [0, 0, 1, 1], [], []>} : vector<8x256xbf16>, vector<256x256xbf16>, vector<8x256xf32> -> vector<8x256xf32>
    %c0_170 = arith.constant 0 : index
    %c0_171 = arith.constant 0 : index
    %411 = vector.load %arg19[%c0_170, %c0_171] : memref<1x256xf32, #tpu.memory_space<vmem>>, vector<1x256xf32>
    %412 = vector.broadcast %411 : vector<1x256xf32> to vector<8x256xf32>
    %413 = arith.addf %410, %412 : vector<8x256xf32>
    %414 = arith.truncf %230 : vector<8x256xf32> to vector<8x256xbf16>
    %c0_172 = arith.constant 0 : index
    %c0_173 = arith.constant 0 : index
    %415 = vector.load %arg20[%c0_172, %c0_173] : memref<256x256xbf16, #tpu.memory_space<vmem>>, vector<256x256xbf16>
    %cst_174 = arith.constant dense<0.000000e+00> : vector<8x256xf32>
    %416 = tpu.matmul %414, %415, %cst_174 {dimension_numbers = #tpu.dot_dimension_numbers<[1], [0], [0], [1], [0, 0, 1, 1], [], []>} : vector<8x256xbf16>, vector<256x256xbf16>, vector<8x256xf32> -> vector<8x256xf32>
    %417 = arith.truncf %413 : vector<8x256xf32> to vector<8x256xbf16>
    %c0_175 = arith.constant 0 : index
    %c0_176 = arith.constant 0 : index
    %418 = vector.load %arg21[%c0_175, %c0_176] : memref<256x256xbf16, #tpu.memory_space<vmem>>, vector<256x256xbf16>
    %cst_177 = arith.constant dense<0.000000e+00> : vector<8x256xf32>
    %419 = tpu.matmul %417, %418, %cst_177 {dimension_numbers = #tpu.dot_dimension_numbers<[1], [0], [0], [1], [0, 0, 1, 1], [], []>} : vector<8x256xbf16>, vector<256x256xbf16>, vector<8x256xf32> -> vector<8x256xf32>
    %420 = arith.addf %416, %419 : vector<8x256xf32>
    %c0_178 = arith.constant 0 : index
    %c0_179 = arith.constant 0 : index
    %421 = vector.load %arg22[%c0_178, %c0_179] : memref<1x256xf32, #tpu.memory_space<vmem>>, vector<1x256xf32>
    %422 = vector.broadcast %421 : vector<1x256xf32> to vector<8x256xf32>
    %423 = arith.addf %420, %422 : vector<8x256xf32>
    %cst_180 = arith.constant 0.000000e+00 : f32
    %424 = vector.broadcast %cst_180 : f32 to vector<8x256xf32>
    %425 = arith.maximumf %423, %424 : vector<8x256xf32>
    %426 = arith.truncf %425 : vector<8x256xf32> to vector<8x256xbf16>
    %c0_181 = arith.constant 0 : index
    %c0_182 = arith.constant 0 : index
    %427 = vector.load %arg23[%c0_181, %c0_182] : memref<256x256xbf16, #tpu.memory_space<vmem>>, vector<256x256xbf16>
    %cst_183 = arith.constant dense<0.000000e+00> : vector<8x256xf32>
    %428 = tpu.matmul %426, %427, %cst_183 {dimension_numbers = #tpu.dot_dimension_numbers<[1], [0], [0], [1], [0, 0, 1, 1], [], []>} : vector<8x256xbf16>, vector<256x256xbf16>, vector<8x256xf32> -> vector<8x256xf32>
    %c0_184 = arith.constant 0 : index
    %c0_185 = arith.constant 0 : index
    %429 = vector.load %arg24[%c0_184, %c0_185] : memref<1x256xf32, #tpu.memory_space<vmem>>, vector<1x256xf32>
    %430 = vector.broadcast %429 : vector<1x256xf32> to vector<8x256xf32>
    %431 = arith.addf %428, %430 : vector<8x256xf32>
    %432 = arith.addf %230, %431 : vector<8x256xf32>
    %cst_186 = arith.constant dense<0.000000e+00> : vector<8xf32>
    %433 = vector.multi_reduction <add>, %432, %cst_186 [1] : vector<8x256xf32> to vector<8xf32>
    %434 = vector.shape_cast %433 : vector<8xf32> to vector<8x1xf32>
    %cst_187 = arith.constant 2.560000e+02 : f32
    %435 = vector.broadcast %cst_187 : f32 to vector<8x1xf32>
    %436 = arith.divf %434, %435 : vector<8x1xf32>
    %437 = vector.broadcast %436 : vector<8x1xf32> to vector<8x256xf32>
    %438 = arith.subf %432, %437 : vector<8x256xf32>
    %439 = arith.mulf %438, %438 : vector<8x256xf32>
    %cst_188 = arith.constant dense<0.000000e+00> : vector<8xf32>
    %440 = vector.multi_reduction <add>, %439, %cst_188 [1] : vector<8x256xf32> to vector<8xf32>
    %441 = vector.shape_cast %440 : vector<8xf32> to vector<8x1xf32>
    %cst_189 = arith.constant 2.560000e+02 : f32
    %442 = vector.broadcast %cst_189 : f32 to vector<8x1xf32>
    %443 = arith.divf %441, %442 : vector<8x1xf32>
    %cst_190 = arith.constant 9.99999974E-6 : f32
    %444 = vector.broadcast %cst_190 : f32 to vector<8x1xf32>
    %445 = arith.addf %443, %444 : vector<8x1xf32>
    %446 = math.rsqrt %445 : vector<8x1xf32>
    %447 = vector.broadcast %446 : vector<8x1xf32> to vector<8x256xf32>
    %448 = arith.mulf %438, %447 : vector<8x256xf32>
    %c0_191 = arith.constant 0 : index
    %c0_192 = arith.constant 0 : index
    %449 = vector.load %arg25[%c0_191, %c0_192] : memref<1x256xf32, #tpu.memory_space<vmem>>, vector<1x256xf32>
    %450 = vector.broadcast %449 : vector<1x256xf32> to vector<8x256xf32>
    %451 = arith.mulf %448, %450 : vector<8x256xf32>
    %c0_193 = arith.constant 0 : index
    %c0_194 = arith.constant 0 : index
    %452 = vector.load %arg26[%c0_193, %c0_194] : memref<1x256xf32, #tpu.memory_space<vmem>>, vector<1x256xf32>
    %453 = vector.broadcast %452 : vector<1x256xf32> to vector<8x256xf32>
    %454 = arith.addf %451, %453 : vector<8x256xf32>
    %455 = arith.truncf %454 : vector<8x256xf32> to vector<8x256xbf16>
    %c0_195 = arith.constant 0 : index
    %c0_196 = arith.constant 0 : index
    %456 = vector.load %arg10[%c0_195, %c0_196] : memref<256x768xbf16, #tpu.memory_space<vmem>>, vector<256x768xbf16>
    %cst_197 = arith.constant dense<0.000000e+00> : vector<8x768xf32>
    %457 = tpu.matmul %455, %456, %cst_197 {dimension_numbers = #tpu.dot_dimension_numbers<[1], [0], [0], [1], [0, 0, 1, 1], [], []>} : vector<8x256xbf16>, vector<256x768xbf16>, vector<8x768xf32> -> vector<8x768xf32>
    %c0_198 = arith.constant 0 : index
    %c0_199 = arith.constant 0 : index
    %458 = vector.load %arg11[%c0_198, %c0_199] : memref<1x768xf32, #tpu.memory_space<vmem>>, vector<1x768xf32>
    %459 = vector.broadcast %458 : vector<1x768xf32> to vector<8x768xf32>
    %460 = arith.addf %457, %459 : vector<8x768xf32>
    %461 = arith.truncf %460 : vector<8x768xf32> to vector<8x768xbf16>
    %462 = vector.extract_strided_slice %461 {offsets = [0, 0], sizes = [8, 256], strides = [1, 1]} : vector<8x768xbf16> to vector<8x256xbf16>
    %463 = vector.extract_strided_slice %460 {offsets = [0, 256], sizes = [8, 256], strides = [1, 1]} : vector<8x768xf32> to vector<8x256xf32>
    %464 = tpu.transpose %463, [1, 0] : vector<8x256xf32> -> vector<256x8xf32>
    %465 = arith.truncf %464 : vector<256x8xf32> to vector<256x8xbf16>
    %466 = vector.extract_strided_slice %461 {offsets = [0, 512], sizes = [8, 256], strides = [1, 1]} : vector<8x768xbf16> to vector<8x256xbf16>
    %467 = vector.extract_strided_slice %462 {offsets = [0, 0], sizes = [8, 32], strides = [1, 1]} : vector<8x256xbf16> to vector<8x32xbf16>
    %468 = vector.extract_strided_slice %465 {offsets = [0, 0], sizes = [32, 8], strides = [1, 1]} : vector<256x8xbf16> to vector<32x8xbf16>
    %cst_200 = arith.constant dense<0.000000e+00> : vector<8x8xf32>
    %469 = tpu.matmul %467, %468, %cst_200 {dimension_numbers = #tpu.dot_dimension_numbers<[1], [0], [0], [1], [0, 0, 1, 1], [], []>} : vector<8x32xbf16>, vector<32x8xbf16>, vector<8x8xf32> -> vector<8x8xf32>
    %cst_201 = arith.constant dense<0xFF800000> : vector<8xf32>
    %470 = vector.multi_reduction <maximumf>, %469, %cst_201 [1] : vector<8x8xf32> to vector<8xf32>
    %471 = vector.shape_cast %470 : vector<8xf32> to vector<8x1xf32>
    %472 = vector.broadcast %471 : vector<8x1xf32> to vector<8x8xf32>
    %473 = arith.subf %469, %472 : vector<8x8xf32>
    %474 = math.exp %473 : vector<8x8xf32>
    %cst_202 = arith.constant dense<0.000000e+00> : vector<8xf32>
    %475 = vector.multi_reduction <add>, %474, %cst_202 [1] : vector<8x8xf32> to vector<8xf32>
    %476 = vector.shape_cast %475 : vector<8xf32> to vector<8x1xf32>
    %477 = tpu.reciprocal %476 {approx = true} : vector<8x1xf32> -> vector<8x1xf32>
    %478 = arith.truncf %474 : vector<8x8xf32> to vector<8x8xbf16>
    %479 = vector.extract_strided_slice %466 {offsets = [0, 0], sizes = [8, 32], strides = [1, 1]} : vector<8x256xbf16> to vector<8x32xbf16>
    %cst_203 = arith.constant dense<0.000000e+00> : vector<8x32xf32>
    %480 = tpu.matmul %478, %479, %cst_203 {dimension_numbers = #tpu.dot_dimension_numbers<[1], [0], [0], [1], [0, 0, 1, 1], [], []>} : vector<8x8xbf16>, vector<8x32xbf16>, vector<8x32xf32> -> vector<8x32xf32>
    %481 = vector.broadcast %477 : vector<8x1xf32> to vector<8x32xf32>
    %482 = arith.mulf %480, %481 : vector<8x32xf32>
    %483 = arith.truncf %482 : vector<8x32xf32> to vector<8x32xbf16>
    %c0_204 = arith.constant 0 : index
    %c0_205 = arith.constant 0 : index
    %484 = vector.load %arg30[%c0_204, %c0_205] : memref<8x256xbf16, #tpu.memory_space<vmem>>, vector<8x32xbf16>
    tpu.vector_store %arg30[%c0_204, %c0_205], %483 {strides = array<i32>} : memref<8x256xbf16, #tpu.memory_space<vmem>>, vector<8x32xbf16>,
    %485 = vector.extract_strided_slice %462 {offsets = [0, 32], sizes = [8, 32], strides = [1, 1]} : vector<8x256xbf16> to vector<8x32xbf16>
    %486 = vector.extract_strided_slice %465 {offsets = [32, 0], sizes = [32, 8], strides = [1, 1]} : vector<256x8xbf16> to vector<32x8xbf16>
    %cst_206 = arith.constant dense<0.000000e+00> : vector<8x8xf32>
    %487 = tpu.matmul %485, %486, %cst_206 {dimension_numbers = #tpu.dot_dimension_numbers<[1], [0], [0], [1], [0, 0, 1, 1], [], []>} : vector<8x32xbf16>, vector<32x8xbf16>, vector<8x8xf32> -> vector<8x8xf32>
    %cst_207 = arith.constant dense<0xFF800000> : vector<8xf32>
    %488 = vector.multi_reduction <maximumf>, %487, %cst_207 [1] : vector<8x8xf32> to vector<8xf32>
    %489 = vector.shape_cast %488 : vector<8xf32> to vector<8x1xf32>
    %490 = vector.broadcast %489 : vector<8x1xf32> to vector<8x8xf32>
    %491 = arith.subf %487, %490 : vector<8x8xf32>
    %492 = math.exp %491 : vector<8x8xf32>
    %cst_208 = arith.constant dense<0.000000e+00> : vector<8xf32>
    %493 = vector.multi_reduction <add>, %492, %cst_208 [1] : vector<8x8xf32> to vector<8xf32>
    %494 = vector.shape_cast %493 : vector<8xf32> to vector<8x1xf32>
    %495 = tpu.reciprocal %494 {approx = true} : vector<8x1xf32> -> vector<8x1xf32>
    %496 = arith.truncf %492 : vector<8x8xf32> to vector<8x8xbf16>
    %497 = vector.extract_strided_slice %466 {offsets = [0, 32], sizes = [8, 32], strides = [1, 1]} : vector<8x256xbf16> to vector<8x32xbf16>
    %cst_209 = arith.constant dense<0.000000e+00> : vector<8x32xf32>
    %498 = tpu.matmul %496, %497, %cst_209 {dimension_numbers = #tpu.dot_dimension_numbers<[1], [0], [0], [1], [0, 0, 1, 1], [], []>} : vector<8x8xbf16>, vector<8x32xbf16>, vector<8x32xf32> -> vector<8x32xf32>
    %499 = vector.broadcast %495 : vector<8x1xf32> to vector<8x32xf32>
    %500 = arith.mulf %498, %499 : vector<8x32xf32>
    %501 = arith.truncf %500 : vector<8x32xf32> to vector<8x32xbf16>
    %c0_210 = arith.constant 0 : index
    %c32_211 = arith.constant 32 : index
    %502 = vector.load %arg30[%c0_210, %c32_211] : memref<8x256xbf16, #tpu.memory_space<vmem>>, vector<8x32xbf16>
    tpu.vector_store %arg30[%c0_210, %c32_211], %501 {strides = array<i32>} : memref<8x256xbf16, #tpu.memory_space<vmem>>, vector<8x32xbf16>,
    %503 = vector.extract_strided_slice %462 {offsets = [0, 64], sizes = [8, 32], strides = [1, 1]} : vector<8x256xbf16> to vector<8x32xbf16>
    %504 = vector.extract_strided_slice %465 {offsets = [64, 0], sizes = [32, 8], strides = [1, 1]} : vector<256x8xbf16> to vector<32x8xbf16>
    %cst_212 = arith.constant dense<0.000000e+00> : vector<8x8xf32>
    %505 = tpu.matmul %503, %504, %cst_212 {dimension_numbers = #tpu.dot_dimension_numbers<[1], [0], [0], [1], [0, 0, 1, 1], [], []>} : vector<8x32xbf16>, vector<32x8xbf16>, vector<8x8xf32> -> vector<8x8xf32>
    %cst_213 = arith.constant dense<0xFF800000> : vector<8xf32>
    %506 = vector.multi_reduction <maximumf>, %505, %cst_213 [1] : vector<8x8xf32> to vector<8xf32>
    %507 = vector.shape_cast %506 : vector<8xf32> to vector<8x1xf32>
    %508 = vector.broadcast %507 : vector<8x1xf32> to vector<8x8xf32>
    %509 = arith.subf %505, %508 : vector<8x8xf32>
    %510 = math.exp %509 : vector<8x8xf32>
    %cst_214 = arith.constant dense<0.000000e+00> : vector<8xf32>
    %511 = vector.multi_reduction <add>, %510, %cst_214 [1] : vector<8x8xf32> to vector<8xf32>
    %512 = vector.shape_cast %511 : vector<8xf32> to vector<8x1xf32>
    %513 = tpu.reciprocal %512 {approx = true} : vector<8x1xf32> -> vector<8x1xf32>
    %514 = arith.truncf %510 : vector<8x8xf32> to vector<8x8xbf16>
    %515 = vector.extract_strided_slice %466 {offsets = [0, 64], sizes = [8, 32], strides = [1, 1]} : vector<8x256xbf16> to vector<8x32xbf16>
    %cst_215 = arith.constant dense<0.000000e+00> : vector<8x32xf32>
    %516 = tpu.matmul %514, %515, %cst_215 {dimension_numbers = #tpu.dot_dimension_numbers<[1], [0], [0], [1], [0, 0, 1, 1], [], []>} : vector<8x8xbf16>, vector<8x32xbf16>, vector<8x32xf32> -> vector<8x32xf32>
    %517 = vector.broadcast %513 : vector<8x1xf32> to vector<8x32xf32>
    %518 = arith.mulf %516, %517 : vector<8x32xf32>
    %519 = arith.truncf %518 : vector<8x32xf32> to vector<8x32xbf16>
    %c0_216 = arith.constant 0 : index
    %c64_217 = arith.constant 64 : index
    %520 = vector.load %arg30[%c0_216, %c64_217] : memref<8x256xbf16, #tpu.memory_space<vmem>>, vector<8x32xbf16>
    tpu.vector_store %arg30[%c0_216, %c64_217], %519 {strides = array<i32>} : memref<8x256xbf16, #tpu.memory_space<vmem>>, vector<8x32xbf16>,
    %521 = vector.extract_strided_slice %462 {offsets = [0, 96], sizes = [8, 32], strides = [1, 1]} : vector<8x256xbf16> to vector<8x32xbf16>
    %522 = vector.extract_strided_slice %465 {offsets = [96, 0], sizes = [32, 8], strides = [1, 1]} : vector<256x8xbf16> to vector<32x8xbf16>
    %cst_218 = arith.constant dense<0.000000e+00> : vector<8x8xf32>
    %523 = tpu.matmul %521, %522, %cst_218 {dimension_numbers = #tpu.dot_dimension_numbers<[1], [0], [0], [1], [0, 0, 1, 1], [], []>} : vector<8x32xbf16>, vector<32x8xbf16>, vector<8x8xf32> -> vector<8x8xf32>
    %cst_219 = arith.constant dense<0xFF800000> : vector<8xf32>
    %524 = vector.multi_reduction <maximumf>, %523, %cst_219 [1] : vector<8x8xf32> to vector<8xf32>
    %525 = vector.shape_cast %524 : vector<8xf32> to vector<8x1xf32>
    %526 = vector.broadcast %525 : vector<8x1xf32> to vector<8x8xf32>
    %527 = arith.subf %523, %526 : vector<8x8xf32>
    %528 = math.exp %527 : vector<8x8xf32>
    %cst_220 = arith.constant dense<0.000000e+00> : vector<8xf32>
    %529 = vector.multi_reduction <add>, %528, %cst_220 [1] : vector<8x8xf32> to vector<8xf32>
    %530 = vector.shape_cast %529 : vector<8xf32> to vector<8x1xf32>
    %531 = tpu.reciprocal %530 {approx = true} : vector<8x1xf32> -> vector<8x1xf32>
    %532 = arith.truncf %528 : vector<8x8xf32> to vector<8x8xbf16>
    %533 = vector.extract_strided_slice %466 {offsets = [0, 96], sizes = [8, 32], strides = [1, 1]} : vector<8x256xbf16> to vector<8x32xbf16>
    %cst_221 = arith.constant dense<0.000000e+00> : vector<8x32xf32>
    %534 = tpu.matmul %532, %533, %cst_221 {dimension_numbers = #tpu.dot_dimension_numbers<[1], [0], [0], [1], [0, 0, 1, 1], [], []>} : vector<8x8xbf16>, vector<8x32xbf16>, vector<8x32xf32> -> vector<8x32xf32>
    %535 = vector.broadcast %531 : vector<8x1xf32> to vector<8x32xf32>
    %536 = arith.mulf %534, %535 : vector<8x32xf32>
    %537 = arith.truncf %536 : vector<8x32xf32> to vector<8x32xbf16>
    %c0_222 = arith.constant 0 : index
    %c96_223 = arith.constant 96 : index
    %538 = vector.load %arg30[%c0_222, %c96_223] : memref<8x256xbf16, #tpu.memory_space<vmem>>, vector<8x32xbf16>
    tpu.vector_store %arg30[%c0_222, %c96_223], %537 {strides = array<i32>} : memref<8x256xbf16, #tpu.memory_space<vmem>>, vector<8x32xbf16>,
    %539 = vector.extract_strided_slice %462 {offsets = [0, 128], sizes = [8, 32], strides = [1, 1]} : vector<8x256xbf16> to vector<8x32xbf16>
    %540 = vector.extract_strided_slice %465 {offsets = [128, 0], sizes = [32, 8], strides = [1, 1]} : vector<256x8xbf16> to vector<32x8xbf16>
    %cst_224 = arith.constant dense<0.000000e+00> : vector<8x8xf32>
    %541 = tpu.matmul %539, %540, %cst_224 {dimension_numbers = #tpu.dot_dimension_numbers<[1], [0], [0], [1], [0, 0, 1, 1], [], []>} : vector<8x32xbf16>, vector<32x8xbf16>, vector<8x8xf32> -> vector<8x8xf32>
    %cst_225 = arith.constant dense<0xFF800000> : vector<8xf32>
    %542 = vector.multi_reduction <maximumf>, %541, %cst_225 [1] : vector<8x8xf32> to vector<8xf32>
    %543 = vector.shape_cast %542 : vector<8xf32> to vector<8x1xf32>
    %544 = vector.broadcast %543 : vector<8x1xf32> to vector<8x8xf32>
    %545 = arith.subf %541, %544 : vector<8x8xf32>
    %546 = math.exp %545 : vector<8x8xf32>
    %cst_226 = arith.constant dense<0.000000e+00> : vector<8xf32>
    %547 = vector.multi_reduction <add>, %546, %cst_226 [1] : vector<8x8xf32> to vector<8xf32>
    %548 = vector.shape_cast %547 : vector<8xf32> to vector<8x1xf32>
    %549 = tpu.reciprocal %548 {approx = true} : vector<8x1xf32> -> vector<8x1xf32>
    %550 = arith.truncf %546 : vector<8x8xf32> to vector<8x8xbf16>
    %551 = vector.extract_strided_slice %466 {offsets = [0, 128], sizes = [8, 32], strides = [1, 1]} : vector<8x256xbf16> to vector<8x32xbf16>
    %cst_227 = arith.constant dense<0.000000e+00> : vector<8x32xf32>
    %552 = tpu.matmul %550, %551, %cst_227 {dimension_numbers = #tpu.dot_dimension_numbers<[1], [0], [0], [1], [0, 0, 1, 1], [], []>} : vector<8x8xbf16>, vector<8x32xbf16>, vector<8x32xf32> -> vector<8x32xf32>
    %553 = vector.broadcast %549 : vector<8x1xf32> to vector<8x32xf32>
    %554 = arith.mulf %552, %553 : vector<8x32xf32>
    %555 = arith.truncf %554 : vector<8x32xf32> to vector<8x32xbf16>
    %c0_228 = arith.constant 0 : index
    %c128_229 = arith.constant 128 : index
    %556 = vector.load %arg30[%c0_228, %c128_229] : memref<8x256xbf16, #tpu.memory_space<vmem>>, vector<8x32xbf16>
    tpu.vector_store %arg30[%c0_228, %c128_229], %555 {strides = array<i32>} : memref<8x256xbf16, #tpu.memory_space<vmem>>, vector<8x32xbf16>,
    %557 = vector.extract_strided_slice %462 {offsets = [0, 160], sizes = [8, 32], strides = [1, 1]} : vector<8x256xbf16> to vector<8x32xbf16>
    %558 = vector.extract_strided_slice %465 {offsets = [160, 0], sizes = [32, 8], strides = [1, 1]} : vector<256x8xbf16> to vector<32x8xbf16>
    %cst_230 = arith.constant dense<0.000000e+00> : vector<8x8xf32>
    %559 = tpu.matmul %557, %558, %cst_230 {dimension_numbers = #tpu.dot_dimension_numbers<[1], [0], [0], [1], [0, 0, 1, 1], [], []>} : vector<8x32xbf16>, vector<32x8xbf16>, vector<8x8xf32> -> vector<8x8xf32>
    %cst_231 = arith.constant dense<0xFF800000> : vector<8xf32>
    %560 = vector.multi_reduction <maximumf>, %559, %cst_231 [1] : vector<8x8xf32> to vector<8xf32>
    %561 = vector.shape_cast %560 : vector<8xf32> to vector<8x1xf32>
    %562 = vector.broadcast %561 : vector<8x1xf32> to vector<8x8xf32>
    %563 = arith.subf %559, %562 : vector<8x8xf32>
    %564 = math.exp %563 : vector<8x8xf32>
    %cst_232 = arith.constant dense<0.000000e+00> : vector<8xf32>
    %565 = vector.multi_reduction <add>, %564, %cst_232 [1] : vector<8x8xf32> to vector<8xf32>
    %566 = vector.shape_cast %565 : vector<8xf32> to vector<8x1xf32>
    %567 = tpu.reciprocal %566 {approx = true} : vector<8x1xf32> -> vector<8x1xf32>
    %568 = arith.truncf %564 : vector<8x8xf32> to vector<8x8xbf16>
    %569 = vector.extract_strided_slice %466 {offsets = [0, 160], sizes = [8, 32], strides = [1, 1]} : vector<8x256xbf16> to vector<8x32xbf16>
    %cst_233 = arith.constant dense<0.000000e+00> : vector<8x32xf32>
    %570 = tpu.matmul %568, %569, %cst_233 {dimension_numbers = #tpu.dot_dimension_numbers<[1], [0], [0], [1], [0, 0, 1, 1], [], []>} : vector<8x8xbf16>, vector<8x32xbf16>, vector<8x32xf32> -> vector<8x32xf32>
    %571 = vector.broadcast %567 : vector<8x1xf32> to vector<8x32xf32>
    %572 = arith.mulf %570, %571 : vector<8x32xf32>
    %573 = arith.truncf %572 : vector<8x32xf32> to vector<8x32xbf16>
    %c0_234 = arith.constant 0 : index
    %c160_235 = arith.constant 160 : index
    %574 = vector.load %arg30[%c0_234, %c160_235] : memref<8x256xbf16, #tpu.memory_space<vmem>>, vector<8x32xbf16>
    tpu.vector_store %arg30[%c0_234, %c160_235], %573 {strides = array<i32>} : memref<8x256xbf16, #tpu.memory_space<vmem>>, vector<8x32xbf16>,
    %575 = vector.extract_strided_slice %462 {offsets = [0, 192], sizes = [8, 32], strides = [1, 1]} : vector<8x256xbf16> to vector<8x32xbf16>
    %576 = vector.extract_strided_slice %465 {offsets = [192, 0], sizes = [32, 8], strides = [1, 1]} : vector<256x8xbf16> to vector<32x8xbf16>
    %cst_236 = arith.constant dense<0.000000e+00> : vector<8x8xf32>
    %577 = tpu.matmul %575, %576, %cst_236 {dimension_numbers = #tpu.dot_dimension_numbers<[1], [0], [0], [1], [0, 0, 1, 1], [], []>} : vector<8x32xbf16>, vector<32x8xbf16>, vector<8x8xf32> -> vector<8x8xf32>
    %cst_237 = arith.constant dense<0xFF800000> : vector<8xf32>
    %578 = vector.multi_reduction <maximumf>, %577, %cst_237 [1] : vector<8x8xf32> to vector<8xf32>
    %579 = vector.shape_cast %578 : vector<8xf32> to vector<8x1xf32>
    %580 = vector.broadcast %579 : vector<8x1xf32> to vector<8x8xf32>
    %581 = arith.subf %577, %580 : vector<8x8xf32>
    %582 = math.exp %581 : vector<8x8xf32>
    %cst_238 = arith.constant dense<0.000000e+00> : vector<8xf32>
    %583 = vector.multi_reduction <add>, %582, %cst_238 [1] : vector<8x8xf32> to vector<8xf32>
    %584 = vector.shape_cast %583 : vector<8xf32> to vector<8x1xf32>
    %585 = tpu.reciprocal %584 {approx = true} : vector<8x1xf32> -> vector<8x1xf32>
    %586 = arith.truncf %582 : vector<8x8xf32> to vector<8x8xbf16>
    %587 = vector.extract_strided_slice %466 {offsets = [0, 192], sizes = [8, 32], strides = [1, 1]} : vector<8x256xbf16> to vector<8x32xbf16>
    %cst_239 = arith.constant dense<0.000000e+00> : vector<8x32xf32>
    %588 = tpu.matmul %586, %587, %cst_239 {dimension_numbers = #tpu.dot_dimension_numbers<[1], [0], [0], [1], [0, 0, 1, 1], [], []>} : vector<8x8xbf16>, vector<8x32xbf16>, vector<8x32xf32> -> vector<8x32xf32>
    %589 = vector.broadcast %585 : vector<8x1xf32> to vector<8x32xf32>
    %590 = arith.mulf %588, %589 : vector<8x32xf32>
    %591 = arith.truncf %590 : vector<8x32xf32> to vector<8x32xbf16>
    %c0_240 = arith.constant 0 : index
    %c192_241 = arith.constant 192 : index
    %592 = vector.load %arg30[%c0_240, %c192_241] : memref<8x256xbf16, #tpu.memory_space<vmem>>, vector<8x32xbf16>
    tpu.vector_store %arg30[%c0_240, %c192_241], %591 {strides = array<i32>} : memref<8x256xbf16, #tpu.memory_space<vmem>>, vector<8x32xbf16>,
    %593 = vector.extract_strided_slice %462 {offsets = [0, 224], sizes = [8, 32], strides = [1, 1]} : vector<8x256xbf16> to vector<8x32xbf16>
    %594 = vector.extract_strided_slice %465 {offsets = [224, 0], sizes = [32, 8], strides = [1, 1]} : vector<256x8xbf16> to vector<32x8xbf16>
    %cst_242 = arith.constant dense<0.000000e+00> : vector<8x8xf32>
    %595 = tpu.matmul %593, %594, %cst_242 {dimension_numbers = #tpu.dot_dimension_numbers<[1], [0], [0], [1], [0, 0, 1, 1], [], []>} : vector<8x32xbf16>, vector<32x8xbf16>, vector<8x8xf32> -> vector<8x8xf32>
    %cst_243 = arith.constant dense<0xFF800000> : vector<8xf32>
    %596 = vector.multi_reduction <maximumf>, %595, %cst_243 [1] : vector<8x8xf32> to vector<8xf32>
    %597 = vector.shape_cast %596 : vector<8xf32> to vector<8x1xf32>
    %598 = vector.broadcast %597 : vector<8x1xf32> to vector<8x8xf32>
    %599 = arith.subf %595, %598 : vector<8x8xf32>
    %600 = math.exp %599 : vector<8x8xf32>
    %cst_244 = arith.constant dense<0.000000e+00> : vector<8xf32>
    %601 = vector.multi_reduction <add>, %600, %cst_244 [1] : vector<8x8xf32> to vector<8xf32>
    %602 = vector.shape_cast %601 : vector<8xf32> to vector<8x1xf32>
    %603 = tpu.reciprocal %602 {approx = true} : vector<8x1xf32> -> vector<8x1xf32>
    %604 = arith.truncf %600 : vector<8x8xf32> to vector<8x8xbf16>
    %605 = vector.extract_strided_slice %466 {offsets = [0, 224], sizes = [8, 32], strides = [1, 1]} : vector<8x256xbf16> to vector<8x32xbf16>
    %cst_245 = arith.constant dense<0.000000e+00> : vector<8x32xf32>
    %606 = tpu.matmul %604, %605, %cst_245 {dimension_numbers = #tpu.dot_dimension_numbers<[1], [0], [0], [1], [0, 0, 1, 1], [], []>} : vector<8x8xbf16>, vector<8x32xbf16>, vector<8x32xf32> -> vector<8x32xf32>
    %607 = vector.broadcast %603 : vector<8x1xf32> to vector<8x32xf32>
    %608 = arith.mulf %606, %607 : vector<8x32xf32>
    %609 = arith.truncf %608 : vector<8x32xf32> to vector<8x32xbf16>
    %c0_246 = arith.constant 0 : index
    %c224_247 = arith.constant 224 : index
    %610 = vector.load %arg30[%c0_246, %c224_247] : memref<8x256xbf16, #tpu.memory_space<vmem>>, vector<8x32xbf16>
    tpu.vector_store %arg30[%c0_246, %c224_247], %609 {strides = array<i32>} : memref<8x256xbf16, #tpu.memory_space<vmem>>, vector<8x32xbf16>,
    %c0_248 = arith.constant 0 : index
    %c0_249 = arith.constant 0 : index
    %611 = vector.load %arg30[%c0_248, %c0_249] : memref<8x256xbf16, #tpu.memory_space<vmem>>, vector<8x256xbf16>
    %c0_250 = arith.constant 0 : index
    %c0_251 = arith.constant 0 : index
    %612 = vector.load %arg12[%c0_250, %c0_251] : memref<256x256xbf16, #tpu.memory_space<vmem>>, vector<256x256xbf16>
    %cst_252 = arith.constant dense<0.000000e+00> : vector<8x256xf32>
    %613 = tpu.matmul %611, %612, %cst_252 {dimension_numbers = #tpu.dot_dimension_numbers<[1], [0], [0], [1], [0, 0, 1, 1], [], []>} : vector<8x256xbf16>, vector<256x256xbf16>, vector<8x256xf32> -> vector<8x256xf32>
    %c0_253 = arith.constant 0 : index
    %c0_254 = arith.constant 0 : index
    %614 = vector.load %arg13[%c0_253, %c0_254] : memref<1x256xf32, #tpu.memory_space<vmem>>, vector<1x256xf32>
    %615 = vector.broadcast %614 : vector<1x256xf32> to vector<8x256xf32>
    %616 = arith.addf %613, %615 : vector<8x256xf32>
    %617 = arith.addf %432, %616 : vector<8x256xf32>
    %cst_255 = arith.constant dense<0.000000e+00> : vector<8xf32>
    %618 = vector.multi_reduction <add>, %617, %cst_255 [1] : vector<8x256xf32> to vector<8xf32>
    %619 = vector.shape_cast %618 : vector<8xf32> to vector<8x1xf32>
    %cst_256 = arith.constant 2.560000e+02 : f32
    %620 = vector.broadcast %cst_256 : f32 to vector<8x1xf32>
    %621 = arith.divf %619, %620 : vector<8x1xf32>
    %622 = vector.broadcast %621 : vector<8x1xf32> to vector<8x256xf32>
    %623 = arith.subf %617, %622 : vector<8x256xf32>
    %624 = arith.mulf %623, %623 : vector<8x256xf32>
    %cst_257 = arith.constant dense<0.000000e+00> : vector<8xf32>
    %625 = vector.multi_reduction <add>, %624, %cst_257 [1] : vector<8x256xf32> to vector<8xf32>
    %626 = vector.shape_cast %625 : vector<8xf32> to vector<8x1xf32>
    %cst_258 = arith.constant 2.560000e+02 : f32
    %627 = vector.broadcast %cst_258 : f32 to vector<8x1xf32>
    %628 = arith.divf %626, %627 : vector<8x1xf32>
    %cst_259 = arith.constant 9.99999974E-6 : f32
    %629 = vector.broadcast %cst_259 : f32 to vector<8x1xf32>
    %630 = arith.addf %628, %629 : vector<8x1xf32>
    %631 = math.rsqrt %630 : vector<8x1xf32>
    %632 = vector.broadcast %631 : vector<8x1xf32> to vector<8x256xf32>
    %633 = arith.mulf %623, %632 : vector<8x256xf32>
    %c0_260 = arith.constant 0 : index
    %c0_261 = arith.constant 0 : index
    %634 = vector.load %arg27[%c0_260, %c0_261] : memref<1x256xf32, #tpu.memory_space<vmem>>, vector<1x256xf32>
    %635 = vector.broadcast %634 : vector<1x256xf32> to vector<8x256xf32>
    %636 = arith.mulf %633, %635 : vector<8x256xf32>
    %c0_262 = arith.constant 0 : index
    %c0_263 = arith.constant 0 : index
    %637 = vector.load %arg28[%c0_262, %c0_263] : memref<1x256xf32, #tpu.memory_space<vmem>>, vector<1x256xf32>
    %638 = vector.broadcast %637 : vector<1x256xf32> to vector<8x256xf32>
    %639 = arith.addf %636, %638 : vector<8x256xf32>
    %640 = arith.truncf %639 : vector<8x256xf32> to vector<8x256xbf16>
    %c0_264 = arith.constant 0 : index
    %c0_265 = arith.constant 0 : index
    %641 = vector.load %arg14[%c0_264, %c0_265] : memref<256x256xbf16, #tpu.memory_space<vmem>>, vector<256x256xbf16>
    %cst_266 = arith.constant dense<0.000000e+00> : vector<8x256xf32>
    %642 = tpu.matmul %640, %641, %cst_266 {dimension_numbers = #tpu.dot_dimension_numbers<[1], [0], [0], [1], [0, 0, 1, 1], [], []>} : vector<8x256xbf16>, vector<256x256xbf16>, vector<8x256xf32> -> vector<8x256xf32>
    %c0_267 = arith.constant 0 : index
    %c0_268 = arith.constant 0 : index
    %643 = vector.load %arg15[%c0_267, %c0_268] : memref<1x256xf32, #tpu.memory_space<vmem>>, vector<1x256xf32>
    %644 = vector.broadcast %643 : vector<1x256xf32> to vector<8x256xf32>
    %645 = arith.addf %642, %644 : vector<8x256xf32>
    %646 = arith.truncf %645 : vector<8x256xf32> to vector<8x256xbf16>
    %c0_269 = arith.constant 0 : index
    %c0_270 = arith.constant 0 : index
    %c0_271 = arith.constant 0 : index
    %647 = vector.load %arg31[%c0_269, %c0_270, %c0_271] : memref<1x256x64xbf16, #tpu.memory_space<vmem>>, vector<1x256x64xbf16>
    %648 = vector.shape_cast %647 : vector<1x256x64xbf16> to vector<256x64xbf16>
    %c0_272 = arith.constant 0 : index
    %c0_273 = arith.constant 0 : index
    %c0_274 = arith.constant 0 : index
    %649 = vector.load %arg32[%c0_272, %c0_273, %c0_274] : memref<1x64x256xbf16, #tpu.memory_space<vmem>>, vector<1x64x256xbf16>
    %650 = vector.shape_cast %649 : vector<1x64x256xbf16> to vector<64x256xbf16>
    %651 = vector.extract_strided_slice %646 {offsets = [0, 0], sizes = [8, 32], strides = [1, 1]} : vector<8x256xbf16> to vector<8x32xbf16>
    %652 = vector.extract_strided_slice %648 {offsets = [0, 0], sizes = [32, 64], strides = [1, 1]} : vector<256x64xbf16> to vector<32x64xbf16>
    %cst_275 = arith.constant dense<0.000000e+00> : vector<8x64xf32>
    %653 = tpu.matmul %651, %652, %cst_275 {dimension_numbers = #tpu.dot_dimension_numbers<[1], [0], [0], [1], [0, 0, 1, 1], [], []>} : vector<8x32xbf16>, vector<32x64xbf16>, vector<8x64xf32> -> vector<8x64xf32>
    %cst_276 = arith.constant dense<0xFF800000> : vector<8xf32>
    %654 = vector.multi_reduction <maximumf>, %653, %cst_276 [1] : vector<8x64xf32> to vector<8xf32>
    %655 = vector.shape_cast %654 : vector<8xf32> to vector<8x1xf32>
    %656 = vector.broadcast %655 : vector<8x1xf32> to vector<8x64xf32>
    %657 = arith.subf %653, %656 : vector<8x64xf32>
    %658 = math.exp %657 : vector<8x64xf32>
    %cst_277 = arith.constant dense<0.000000e+00> : vector<8xf32>
    %659 = vector.multi_reduction <add>, %658, %cst_277 [1] : vector<8x64xf32> to vector<8xf32>
    %660 = vector.shape_cast %659 : vector<8xf32> to vector<8x1xf32>
    %661 = tpu.reciprocal %660 {approx = true} : vector<8x1xf32> -> vector<8x1xf32>
    %662 = arith.truncf %658 : vector<8x64xf32> to vector<8x64xbf16>
    %663 = vector.extract_strided_slice %650 {offsets = [0, 0], sizes = [64, 32], strides = [1, 1]} : vector<64x256xbf16> to vector<64x32xbf16>
    %cst_278 = arith.constant dense<0.000000e+00> : vector<8x32xf32>
    %664 = tpu.matmul %662, %663, %cst_278 {dimension_numbers = #tpu.dot_dimension_numbers<[1], [0], [0], [1], [0, 0, 1, 1], [], []>} : vector<8x64xbf16>, vector<64x32xbf16>, vector<8x32xf32> -> vector<8x32xf32>
    %665 = vector.broadcast %661 : vector<8x1xf32> to vector<8x32xf32>
    %666 = arith.mulf %664, %665 : vector<8x32xf32>
    %667 = arith.truncf %666 : vector<8x32xf32> to vector<8x32xbf16>
    %c0_279 = arith.constant 0 : index
    %c0_280 = arith.constant 0 : index
    %668 = vector.load %arg30[%c0_279, %c0_280] : memref<8x256xbf16, #tpu.memory_space<vmem>>, vector<8x32xbf16>
    tpu.vector_store %arg30[%c0_279, %c0_280], %667 {strides = array<i32>} : memref<8x256xbf16, #tpu.memory_space<vmem>>, vector<8x32xbf16>,
    %669 = vector.extract_strided_slice %646 {offsets = [0, 32], sizes = [8, 32], strides = [1, 1]} : vector<8x256xbf16> to vector<8x32xbf16>
    %670 = vector.extract_strided_slice %648 {offsets = [32, 0], sizes = [32, 64], strides = [1, 1]} : vector<256x64xbf16> to vector<32x64xbf16>
    %cst_281 = arith.constant dense<0.000000e+00> : vector<8x64xf32>
    %671 = tpu.matmul %669, %670, %cst_281 {dimension_numbers = #tpu.dot_dimension_numbers<[1], [0], [0], [1], [0, 0, 1, 1], [], []>} : vector<8x32xbf16>, vector<32x64xbf16>, vector<8x64xf32> -> vector<8x64xf32>
    %cst_282 = arith.constant dense<0xFF800000> : vector<8xf32>
    %672 = vector.multi_reduction <maximumf>, %671, %cst_282 [1] : vector<8x64xf32> to vector<8xf32>
    %673 = vector.shape_cast %672 : vector<8xf32> to vector<8x1xf32>
    %674 = vector.broadcast %673 : vector<8x1xf32> to vector<8x64xf32>
    %675 = arith.subf %671, %674 : vector<8x64xf32>
    %676 = math.exp %675 : vector<8x64xf32>
    %cst_283 = arith.constant dense<0.000000e+00> : vector<8xf32>
    %677 = vector.multi_reduction <add>, %676, %cst_283 [1] : vector<8x64xf32> to vector<8xf32>
    %678 = vector.shape_cast %677 : vector<8xf32> to vector<8x1xf32>
    %679 = tpu.reciprocal %678 {approx = true} : vector<8x1xf32> -> vector<8x1xf32>
    %680 = arith.truncf %676 : vector<8x64xf32> to vector<8x64xbf16>
    %681 = vector.extract_strided_slice %650 {offsets = [0, 32], sizes = [64, 32], strides = [1, 1]} : vector<64x256xbf16> to vector<64x32xbf16>
    %cst_284 = arith.constant dense<0.000000e+00> : vector<8x32xf32>
    %682 = tpu.matmul %680, %681, %cst_284 {dimension_numbers = #tpu.dot_dimension_numbers<[1], [0], [0], [1], [0, 0, 1, 1], [], []>} : vector<8x64xbf16>, vector<64x32xbf16>, vector<8x32xf32> -> vector<8x32xf32>
    %683 = vector.broadcast %679 : vector<8x1xf32> to vector<8x32xf32>
    %684 = arith.mulf %682, %683 : vector<8x32xf32>
    %685 = arith.truncf %684 : vector<8x32xf32> to vector<8x32xbf16>
    %c0_285 = arith.constant 0 : index
    %c32_286 = arith.constant 32 : index
    %686 = vector.load %arg30[%c0_285, %c32_286] : memref<8x256xbf16, #tpu.memory_space<vmem>>, vector<8x32xbf16>
    tpu.vector_store %arg30[%c0_285, %c32_286], %685 {strides = array<i32>} : memref<8x256xbf16, #tpu.memory_space<vmem>>, vector<8x32xbf16>,
    %687 = vector.extract_strided_slice %646 {offsets = [0, 64], sizes = [8, 32], strides = [1, 1]} : vector<8x256xbf16> to vector<8x32xbf16>
    %688 = vector.extract_strided_slice %648 {offsets = [64, 0], sizes = [32, 64], strides = [1, 1]} : vector<256x64xbf16> to vector<32x64xbf16>
    %cst_287 = arith.constant dense<0.000000e+00> : vector<8x64xf32>
    %689 = tpu.matmul %687, %688, %cst_287 {dimension_numbers = #tpu.dot_dimension_numbers<[1], [0], [0], [1], [0, 0, 1, 1], [], []>} : vector<8x32xbf16>, vector<32x64xbf16>, vector<8x64xf32> -> vector<8x64xf32>
    %cst_288 = arith.constant dense<0xFF800000> : vector<8xf32>
    %690 = vector.multi_reduction <maximumf>, %689, %cst_288 [1] : vector<8x64xf32> to vector<8xf32>
    %691 = vector.shape_cast %690 : vector<8xf32> to vector<8x1xf32>
    %692 = vector.broadcast %691 : vector<8x1xf32> to vector<8x64xf32>
    %693 = arith.subf %689, %692 : vector<8x64xf32>
    %694 = math.exp %693 : vector<8x64xf32>
    %cst_289 = arith.constant dense<0.000000e+00> : vector<8xf32>
    %695 = vector.multi_reduction <add>, %694, %cst_289 [1] : vector<8x64xf32> to vector<8xf32>
    %696 = vector.shape_cast %695 : vector<8xf32> to vector<8x1xf32>
    %697 = tpu.reciprocal %696 {approx = true} : vector<8x1xf32> -> vector<8x1xf32>
    %698 = arith.truncf %694 : vector<8x64xf32> to vector<8x64xbf16>
    %699 = vector.extract_strided_slice %650 {offsets = [0, 64], sizes = [64, 32], strides = [1, 1]} : vector<64x256xbf16> to vector<64x32xbf16>
    %cst_290 = arith.constant dense<0.000000e+00> : vector<8x32xf32>
    %700 = tpu.matmul %698, %699, %cst_290 {dimension_numbers = #tpu.dot_dimension_numbers<[1], [0], [0], [1], [0, 0, 1, 1], [], []>} : vector<8x64xbf16>, vector<64x32xbf16>, vector<8x32xf32> -> vector<8x32xf32>
    %701 = vector.broadcast %697 : vector<8x1xf32> to vector<8x32xf32>
    %702 = arith.mulf %700, %701 : vector<8x32xf32>
    %703 = arith.truncf %702 : vector<8x32xf32> to vector<8x32xbf16>
    %c0_291 = arith.constant 0 : index
    %c64_292 = arith.constant 64 : index
    %704 = vector.load %arg30[%c0_291, %c64_292] : memref<8x256xbf16, #tpu.memory_space<vmem>>, vector<8x32xbf16>
    tpu.vector_store %arg30[%c0_291, %c64_292], %703 {strides = array<i32>} : memref<8x256xbf16, #tpu.memory_space<vmem>>, vector<8x32xbf16>,
    %705 = vector.extract_strided_slice %646 {offsets = [0, 96], sizes = [8, 32], strides = [1, 1]} : vector<8x256xbf16> to vector<8x32xbf16>
    %706 = vector.extract_strided_slice %648 {offsets = [96, 0], sizes = [32, 64], strides = [1, 1]} : vector<256x64xbf16> to vector<32x64xbf16>
    %cst_293 = arith.constant dense<0.000000e+00> : vector<8x64xf32>
    %707 = tpu.matmul %705, %706, %cst_293 {dimension_numbers = #tpu.dot_dimension_numbers<[1], [0], [0], [1], [0, 0, 1, 1], [], []>} : vector<8x32xbf16>, vector<32x64xbf16>, vector<8x64xf32> -> vector<8x64xf32>
    %cst_294 = arith.constant dense<0xFF800000> : vector<8xf32>
    %708 = vector.multi_reduction <maximumf>, %707, %cst_294 [1] : vector<8x64xf32> to vector<8xf32>
    %709 = vector.shape_cast %708 : vector<8xf32> to vector<8x1xf32>
    %710 = vector.broadcast %709 : vector<8x1xf32> to vector<8x64xf32>
    %711 = arith.subf %707, %710 : vector<8x64xf32>
    %712 = math.exp %711 : vector<8x64xf32>
    %cst_295 = arith.constant dense<0.000000e+00> : vector<8xf32>
    %713 = vector.multi_reduction <add>, %712, %cst_295 [1] : vector<8x64xf32> to vector<8xf32>
    %714 = vector.shape_cast %713 : vector<8xf32> to vector<8x1xf32>
    %715 = tpu.reciprocal %714 {approx = true} : vector<8x1xf32> -> vector<8x1xf32>
    %716 = arith.truncf %712 : vector<8x64xf32> to vector<8x64xbf16>
    %717 = vector.extract_strided_slice %650 {offsets = [0, 96], sizes = [64, 32], strides = [1, 1]} : vector<64x256xbf16> to vector<64x32xbf16>
    %cst_296 = arith.constant dense<0.000000e+00> : vector<8x32xf32>
    %718 = tpu.matmul %716, %717, %cst_296 {dimension_numbers = #tpu.dot_dimension_numbers<[1], [0], [0], [1], [0, 0, 1, 1], [], []>} : vector<8x64xbf16>, vector<64x32xbf16>, vector<8x32xf32> -> vector<8x32xf32>
    %719 = vector.broadcast %715 : vector<8x1xf32> to vector<8x32xf32>
    %720 = arith.mulf %718, %719 : vector<8x32xf32>
    %721 = arith.truncf %720 : vector<8x32xf32> to vector<8x32xbf16>
    %c0_297 = arith.constant 0 : index
    %c96_298 = arith.constant 96 : index
    %722 = vector.load %arg30[%c0_297, %c96_298] : memref<8x256xbf16, #tpu.memory_space<vmem>>, vector<8x32xbf16>
    tpu.vector_store %arg30[%c0_297, %c96_298], %721 {strides = array<i32>} : memref<8x256xbf16, #tpu.memory_space<vmem>>, vector<8x32xbf16>,
    %723 = vector.extract_strided_slice %646 {offsets = [0, 128], sizes = [8, 32], strides = [1, 1]} : vector<8x256xbf16> to vector<8x32xbf16>
    %724 = vector.extract_strided_slice %648 {offsets = [128, 0], sizes = [32, 64], strides = [1, 1]} : vector<256x64xbf16> to vector<32x64xbf16>
    %cst_299 = arith.constant dense<0.000000e+00> : vector<8x64xf32>
    %725 = tpu.matmul %723, %724, %cst_299 {dimension_numbers = #tpu.dot_dimension_numbers<[1], [0], [0], [1], [0, 0, 1, 1], [], []>} : vector<8x32xbf16>, vector<32x64xbf16>, vector<8x64xf32> -> vector<8x64xf32>
    %cst_300 = arith.constant dense<0xFF800000> : vector<8xf32>
    %726 = vector.multi_reduction <maximumf>, %725, %cst_300 [1] : vector<8x64xf32> to vector<8xf32>
    %727 = vector.shape_cast %726 : vector<8xf32> to vector<8x1xf32>
    %728 = vector.broadcast %727 : vector<8x1xf32> to vector<8x64xf32>
    %729 = arith.subf %725, %728 : vector<8x64xf32>
    %730 = math.exp %729 : vector<8x64xf32>
    %cst_301 = arith.constant dense<0.000000e+00> : vector<8xf32>
    %731 = vector.multi_reduction <add>, %730, %cst_301 [1] : vector<8x64xf32> to vector<8xf32>
    %732 = vector.shape_cast %731 : vector<8xf32> to vector<8x1xf32>
    %733 = tpu.reciprocal %732 {approx = true} : vector<8x1xf32> -> vector<8x1xf32>
    %734 = arith.truncf %730 : vector<8x64xf32> to vector<8x64xbf16>
    %735 = vector.extract_strided_slice %650 {offsets = [0, 128], sizes = [64, 32], strides = [1, 1]} : vector<64x256xbf16> to vector<64x32xbf16>
    %cst_302 = arith.constant dense<0.000000e+00> : vector<8x32xf32>
    %736 = tpu.matmul %734, %735, %cst_302 {dimension_numbers = #tpu.dot_dimension_numbers<[1], [0], [0], [1], [0, 0, 1, 1], [], []>} : vector<8x64xbf16>, vector<64x32xbf16>, vector<8x32xf32> -> vector<8x32xf32>
    %737 = vector.broadcast %733 : vector<8x1xf32> to vector<8x32xf32>
    %738 = arith.mulf %736, %737 : vector<8x32xf32>
    %739 = arith.truncf %738 : vector<8x32xf32> to vector<8x32xbf16>
    %c0_303 = arith.constant 0 : index
    %c128_304 = arith.constant 128 : index
    %740 = vector.load %arg30[%c0_303, %c128_304] : memref<8x256xbf16, #tpu.memory_space<vmem>>, vector<8x32xbf16>
    tpu.vector_store %arg30[%c0_303, %c128_304], %739 {strides = array<i32>} : memref<8x256xbf16, #tpu.memory_space<vmem>>, vector<8x32xbf16>,
    %741 = vector.extract_strided_slice %646 {offsets = [0, 160], sizes = [8, 32], strides = [1, 1]} : vector<8x256xbf16> to vector<8x32xbf16>
    %742 = vector.extract_strided_slice %648 {offsets = [160, 0], sizes = [32, 64], strides = [1, 1]} : vector<256x64xbf16> to vector<32x64xbf16>
    %cst_305 = arith.constant dense<0.000000e+00> : vector<8x64xf32>
    %743 = tpu.matmul %741, %742, %cst_305 {dimension_numbers = #tpu.dot_dimension_numbers<[1], [0], [0], [1], [0, 0, 1, 1], [], []>} : vector<8x32xbf16>, vector<32x64xbf16>, vector<8x64xf32> -> vector<8x64xf32>
    %cst_306 = arith.constant dense<0xFF800000> : vector<8xf32>
    %744 = vector.multi_reduction <maximumf>, %743, %cst_306 [1] : vector<8x64xf32> to vector<8xf32>
    %745 = vector.shape_cast %744 : vector<8xf32> to vector<8x1xf32>
    %746 = vector.broadcast %745 : vector<8x1xf32> to vector<8x64xf32>
    %747 = arith.subf %743, %746 : vector<8x64xf32>
    %748 = math.exp %747 : vector<8x64xf32>
    %cst_307 = arith.constant dense<0.000000e+00> : vector<8xf32>
    %749 = vector.multi_reduction <add>, %748, %cst_307 [1] : vector<8x64xf32> to vector<8xf32>
    %750 = vector.shape_cast %749 : vector<8xf32> to vector<8x1xf32>
    %751 = tpu.reciprocal %750 {approx = true} : vector<8x1xf32> -> vector<8x1xf32>
    %752 = arith.truncf %748 : vector<8x64xf32> to vector<8x64xbf16>
    %753 = vector.extract_strided_slice %650 {offsets = [0, 160], sizes = [64, 32], strides = [1, 1]} : vector<64x256xbf16> to vector<64x32xbf16>
    %cst_308 = arith.constant dense<0.000000e+00> : vector<8x32xf32>
    %754 = tpu.matmul %752, %753, %cst_308 {dimension_numbers = #tpu.dot_dimension_numbers<[1], [0], [0], [1], [0, 0, 1, 1], [], []>} : vector<8x64xbf16>, vector<64x32xbf16>, vector<8x32xf32> -> vector<8x32xf32>
    %755 = vector.broadcast %751 : vector<8x1xf32> to vector<8x32xf32>
    %756 = arith.mulf %754, %755 : vector<8x32xf32>
    %757 = arith.truncf %756 : vector<8x32xf32> to vector<8x32xbf16>
    %c0_309 = arith.constant 0 : index
    %c160_310 = arith.constant 160 : index
    %758 = vector.load %arg30[%c0_309, %c160_310] : memref<8x256xbf16, #tpu.memory_space<vmem>>, vector<8x32xbf16>
    tpu.vector_store %arg30[%c0_309, %c160_310], %757 {strides = array<i32>} : memref<8x256xbf16, #tpu.memory_space<vmem>>, vector<8x32xbf16>,
    %759 = vector.extract_strided_slice %646 {offsets = [0, 192], sizes = [8, 32], strides = [1, 1]} : vector<8x256xbf16> to vector<8x32xbf16>
    %760 = vector.extract_strided_slice %648 {offsets = [192, 0], sizes = [32, 64], strides = [1, 1]} : vector<256x64xbf16> to vector<32x64xbf16>
    %cst_311 = arith.constant dense<0.000000e+00> : vector<8x64xf32>
    %761 = tpu.matmul %759, %760, %cst_311 {dimension_numbers = #tpu.dot_dimension_numbers<[1], [0], [0], [1], [0, 0, 1, 1], [], []>} : vector<8x32xbf16>, vector<32x64xbf16>, vector<8x64xf32> -> vector<8x64xf32>
    %cst_312 = arith.constant dense<0xFF800000> : vector<8xf32>
    %762 = vector.multi_reduction <maximumf>, %761, %cst_312 [1] : vector<8x64xf32> to vector<8xf32>
    %763 = vector.shape_cast %762 : vector<8xf32> to vector<8x1xf32>
    %764 = vector.broadcast %763 : vector<8x1xf32> to vector<8x64xf32>
    %765 = arith.subf %761, %764 : vector<8x64xf32>
    %766 = math.exp %765 : vector<8x64xf32>
    %cst_313 = arith.constant dense<0.000000e+00> : vector<8xf32>
    %767 = vector.multi_reduction <add>, %766, %cst_313 [1] : vector<8x64xf32> to vector<8xf32>
    %768 = vector.shape_cast %767 : vector<8xf32> to vector<8x1xf32>
    %769 = tpu.reciprocal %768 {approx = true} : vector<8x1xf32> -> vector<8x1xf32>
    %770 = arith.truncf %766 : vector<8x64xf32> to vector<8x64xbf16>
    %771 = vector.extract_strided_slice %650 {offsets = [0, 192], sizes = [64, 32], strides = [1, 1]} : vector<64x256xbf16> to vector<64x32xbf16>
    %cst_314 = arith.constant dense<0.000000e+00> : vector<8x32xf32>
    %772 = tpu.matmul %770, %771, %cst_314 {dimension_numbers = #tpu.dot_dimension_numbers<[1], [0], [0], [1], [0, 0, 1, 1], [], []>} : vector<8x64xbf16>, vector<64x32xbf16>, vector<8x32xf32> -> vector<8x32xf32>
    %773 = vector.broadcast %769 : vector<8x1xf32> to vector<8x32xf32>
    %774 = arith.mulf %772, %773 : vector<8x32xf32>
    %775 = arith.truncf %774 : vector<8x32xf32> to vector<8x32xbf16>
    %c0_315 = arith.constant 0 : index
    %c192_316 = arith.constant 192 : index
    %776 = vector.load %arg30[%c0_315, %c192_316] : memref<8x256xbf16, #tpu.memory_space<vmem>>, vector<8x32xbf16>
    tpu.vector_store %arg30[%c0_315, %c192_316], %775 {strides = array<i32>} : memref<8x256xbf16, #tpu.memory_space<vmem>>, vector<8x32xbf16>,
    %777 = vector.extract_strided_slice %646 {offsets = [0, 224], sizes = [8, 32], strides = [1, 1]} : vector<8x256xbf16> to vector<8x32xbf16>
    %778 = vector.extract_strided_slice %648 {offsets = [224, 0], sizes = [32, 64], strides = [1, 1]} : vector<256x64xbf16> to vector<32x64xbf16>
    %cst_317 = arith.constant dense<0.000000e+00> : vector<8x64xf32>
    %779 = tpu.matmul %777, %778, %cst_317 {dimension_numbers = #tpu.dot_dimension_numbers<[1], [0], [0], [1], [0, 0, 1, 1], [], []>} : vector<8x32xbf16>, vector<32x64xbf16>, vector<8x64xf32> -> vector<8x64xf32>
    %cst_318 = arith.constant dense<0xFF800000> : vector<8xf32>
    %780 = vector.multi_reduction <maximumf>, %779, %cst_318 [1] : vector<8x64xf32> to vector<8xf32>
    %781 = vector.shape_cast %780 : vector<8xf32> to vector<8x1xf32>
    %782 = vector.broadcast %781 : vector<8x1xf32> to vector<8x64xf32>
    %783 = arith.subf %779, %782 : vector<8x64xf32>
    %784 = math.exp %783 : vector<8x64xf32>
    %cst_319 = arith.constant dense<0.000000e+00> : vector<8xf32>
    %785 = vector.multi_reduction <add>, %784, %cst_319 [1] : vector<8x64xf32> to vector<8xf32>
    %786 = vector.shape_cast %785 : vector<8xf32> to vector<8x1xf32>
    %787 = tpu.reciprocal %786 {approx = true} : vector<8x1xf32> -> vector<8x1xf32>
    %788 = arith.truncf %784 : vector<8x64xf32> to vector<8x64xbf16>
    %789 = vector.extract_strided_slice %650 {offsets = [0, 224], sizes = [64, 32], strides = [1, 1]} : vector<64x256xbf16> to vector<64x32xbf16>
    %cst_320 = arith.constant dense<0.000000e+00> : vector<8x32xf32>
    %790 = tpu.matmul %788, %789, %cst_320 {dimension_numbers = #tpu.dot_dimension_numbers<[1], [0], [0], [1], [0, 0, 1, 1], [], []>} : vector<8x64xbf16>, vector<64x32xbf16>, vector<8x32xf32> -> vector<8x32xf32>
    %791 = vector.broadcast %787 : vector<8x1xf32> to vector<8x32xf32>
    %792 = arith.mulf %790, %791 : vector<8x32xf32>
    %793 = arith.truncf %792 : vector<8x32xf32> to vector<8x32xbf16>
    %c0_321 = arith.constant 0 : index
    %c224_322 = arith.constant 224 : index
    %794 = vector.load %arg30[%c0_321, %c224_322] : memref<8x256xbf16, #tpu.memory_space<vmem>>, vector<8x32xbf16>
    tpu.vector_store %arg30[%c0_321, %c224_322], %793 {strides = array<i32>} : memref<8x256xbf16, #tpu.memory_space<vmem>>, vector<8x32xbf16>,
    %c0_323 = arith.constant 0 : index
    %c0_324 = arith.constant 0 : index
    %795 = vector.load %arg30[%c0_323, %c0_324] : memref<8x256xbf16, #tpu.memory_space<vmem>>, vector<8x256xbf16>
    %c0_325 = arith.constant 0 : index
    %c0_326 = arith.constant 0 : index
    %796 = vector.load %arg18[%c0_325, %c0_326] : memref<256x256xbf16, #tpu.memory_space<vmem>>, vector<256x256xbf16>
    %cst_327 = arith.constant dense<0.000000e+00> : vector<8x256xf32>
    %797 = tpu.matmul %795, %796, %cst_327 {dimension_numbers = #tpu.dot_dimension_numbers<[1], [0], [0], [1], [0, 0, 1, 1], [], []>} : vector<8x256xbf16>, vector<256x256xbf16>, vector<8x256xf32> -> vector<8x256xf32>
    %c0_328 = arith.constant 0 : index
    %c0_329 = arith.constant 0 : index
    %798 = vector.load %arg19[%c0_328, %c0_329] : memref<1x256xf32, #tpu.memory_space<vmem>>, vector<1x256xf32>
    %799 = vector.broadcast %798 : vector<1x256xf32> to vector<8x256xf32>
    %800 = arith.addf %797, %799 : vector<8x256xf32>
    %801 = arith.truncf %617 : vector<8x256xf32> to vector<8x256xbf16>
    %c0_330 = arith.constant 0 : index
    %c0_331 = arith.constant 0 : index
    %802 = vector.load %arg20[%c0_330, %c0_331] : memref<256x256xbf16, #tpu.memory_space<vmem>>, vector<256x256xbf16>
    %cst_332 = arith.constant dense<0.000000e+00> : vector<8x256xf32>
    %803 = tpu.matmul %801, %802, %cst_332 {dimension_numbers = #tpu.dot_dimension_numbers<[1], [0], [0], [1], [0, 0, 1, 1], [], []>} : vector<8x256xbf16>, vector<256x256xbf16>, vector<8x256xf32> -> vector<8x256xf32>
    %804 = arith.truncf %800 : vector<8x256xf32> to vector<8x256xbf16>
    %c0_333 = arith.constant 0 : index
    %c0_334 = arith.constant 0 : index
    %805 = vector.load %arg21[%c0_333, %c0_334] : memref<256x256xbf16, #tpu.memory_space<vmem>>, vector<256x256xbf16>
    %cst_335 = arith.constant dense<0.000000e+00> : vector<8x256xf32>
    %806 = tpu.matmul %804, %805, %cst_335 {dimension_numbers = #tpu.dot_dimension_numbers<[1], [0], [0], [1], [0, 0, 1, 1], [], []>} : vector<8x256xbf16>, vector<256x256xbf16>, vector<8x256xf32> -> vector<8x256xf32>
    %807 = arith.addf %803, %806 : vector<8x256xf32>
    %c0_336 = arith.constant 0 : index
    %c0_337 = arith.constant 0 : index
    %808 = vector.load %arg22[%c0_336, %c0_337] : memref<1x256xf32, #tpu.memory_space<vmem>>, vector<1x256xf32>
    %809 = vector.broadcast %808 : vector<1x256xf32> to vector<8x256xf32>
    %810 = arith.addf %807, %809 : vector<8x256xf32>
    %cst_338 = arith.constant 0.000000e+00 : f32
    %811 = vector.broadcast %cst_338 : f32 to vector<8x256xf32>
    %812 = arith.maximumf %810, %811 : vector<8x256xf32>
    %813 = arith.truncf %812 : vector<8x256xf32> to vector<8x256xbf16>
    %c0_339 = arith.constant 0 : index
    %c0_340 = arith.constant 0 : index
    %814 = vector.load %arg23[%c0_339, %c0_340] : memref<256x256xbf16, #tpu.memory_space<vmem>>, vector<256x256xbf16>
    %cst_341 = arith.constant dense<0.000000e+00> : vector<8x256xf32>
    %815 = tpu.matmul %813, %814, %cst_341 {dimension_numbers = #tpu.dot_dimension_numbers<[1], [0], [0], [1], [0, 0, 1, 1], [], []>} : vector<8x256xbf16>, vector<256x256xbf16>, vector<8x256xf32> -> vector<8x256xf32>
    %c0_342 = arith.constant 0 : index
    %c0_343 = arith.constant 0 : index
    %816 = vector.load %arg24[%c0_342, %c0_343] : memref<1x256xf32, #tpu.memory_space<vmem>>, vector<1x256xf32>
    %817 = vector.broadcast %816 : vector<1x256xf32> to vector<8x256xf32>
    %818 = arith.addf %815, %817 : vector<8x256xf32>
    %819 = arith.addf %617, %818 : vector<8x256xf32>
    %820 = vector.shape_cast %819 : vector<8x256xf32> to vector<1x8x256xf32>
    %c0_344 = arith.constant 0 : index
    %c0_345 = arith.constant 0 : index
    %c0_346 = arith.constant 0 : index
    %821 = vector.load %arg29[%c0_344, %c0_345, %c0_346] : memref<1x8x256xf32, #tpu.memory_space<vmem>>, vector<1x8x256xf32>
    tpu.vector_store %arg29[%c0_344, %c0_345, %c0_346], %820 {strides = array<i32>} : memref<1x8x256xf32, #tpu.memory_space<vmem>>, vector<1x8x256xf32>,
    return
  }
  func.func @transform_0(%arg0: i32) -> (i32, i32, i32) {
    %c0_i32 = arith.constant 0 : i32
    %c0_i32_0 = arith.constant 0 : i32
    %c0_i32_1 = arith.constant 0 : i32
    return %arg0, %c0_i32, %c0_i32_0 : i32, i32, i32
  }
  func.func @transform_1(%arg0: i32) -> (i32, i32, i32) {
    %c0_i32 = arith.constant 0 : i32
    %c0_i32_0 = arith.constant 0 : i32
    %c0_i32_1 = arith.constant 0 : i32
    return %arg0, %c0_i32, %c0_i32_0 : i32, i32, i32
  }
  func.func @transform_2(%arg0: i32) -> (i32, i32, i32) {
    %c0_i32 = arith.constant 0 : i32
    %c0_i32_0 = arith.constant 0 : i32
    %c0_i32_1 = arith.constant 0 : i32
    return %arg0, %c0_i32, %c0_i32_0 : i32, i32, i32
  }
  func.func @transform_3(%arg0: i32) -> (i32, i32) {
    %c0_i32 = arith.constant 0 : i32
    %c0_i32_0 = arith.constant 0 : i32
    %c0_i32_1 = arith.constant 0 : i32
    return %c0_i32, %c0_i32_0 : i32, i32
  }
  func.func @transform_4(%arg0: i32) -> (i32, i32) {
    %c0_i32 = arith.constant 0 : i32
    %c0_i32_0 = arith.constant 0 : i32
    %c0_i32_1 = arith.constant 0 : i32
    return %c0_i32, %c0_i32_0 : i32, i32
  }
  func.func @transform_5(%arg0: i32) -> (i32, i32) {
    %c0_i32 = arith.constant 0 : i32
    %c0_i32_0 = arith.constant 0 : i32
    %c0_i32_1 = arith.constant 0 : i32
    return %c0_i32, %c0_i32_0 : i32, i32
  }
  func.func @transform_6(%arg0: i32) -> (i32, i32) {
    %c0_i32 = arith.constant 0 : i32
    %c0_i32_0 = arith.constant 0 : i32
    %c0_i32_1 = arith.constant 0 : i32
    return %c0_i32, %c0_i32_0 : i32, i32
  }
  func.func @transform_7(%arg0: i32) -> (i32, i32) {
    %c0_i32 = arith.constant 0 : i32
    %c0_i32_0 = arith.constant 0 : i32
    %c0_i32_1 = arith.constant 0 : i32
    return %c0_i32, %c0_i32_0 : i32, i32
  }
  func.func @transform_8(%arg0: i32) -> (i32, i32) {
    %c0_i32 = arith.constant 0 : i32
    %c0_i32_0 = arith.constant 0 : i32
    %c0_i32_1 = arith.constant 0 : i32
    return %c0_i32, %c0_i32_0 : i32, i32
  }
  func.func @transform_9(%arg0: i32) -> (i32, i32) {
    %c0_i32 = arith.constant 0 : i32
    %c0_i32_0 = arith.constant 0 : i32
    %c0_i32_1 = arith.constant 0 : i32
    return %c0_i32, %c0_i32_0 : i32, i32
  }
  func.func @transform_10(%arg0: i32) -> (i32, i32) {
    %c0_i32 = arith.constant 0 : i32
    %c0_i32_0 = arith.constant 0 : i32
    %c0_i32_1 = arith.constant 0 : i32
    return %c0_i32, %c0_i32_0 : i32, i32
  }
  func.func @transform_11(%arg0: i32) -> (i32, i32) {
    %c0_i32 = arith.constant 0 : i32
    %c0_i32_0 = arith.constant 0 : i32
    %c0_i32_1 = arith.constant 0 : i32
    return %c0_i32, %c0_i32_0 : i32, i32
  }
  func.func @transform_12(%arg0: i32) -> (i32, i32) {
    %c0_i32 = arith.constant 0 : i32
    %c0_i32_0 = arith.constant 0 : i32
    %c0_i32_1 = arith.constant 0 : i32
    return %c0_i32, %c0_i32_0 : i32, i32
  }
  func.func @transform_13(%arg0: i32) -> (i32, i32) {
    %c0_i32 = arith.constant 0 : i32
    %c0_i32_0 = arith.constant 0 : i32
    %c0_i32_1 = arith.constant 0 : i32
    return %c0_i32, %c0_i32_0 : i32, i32
  }
  func.func @transform_14(%arg0: i32) -> (i32, i32) {
    %c0_i32 = arith.constant 0 : i32
    %c0_i32_0 = arith.constant 0 : i32
    %c0_i32_1 = arith.constant 0 : i32
    return %c0_i32, %c0_i32_0 : i32, i32
  }
  func.func @transform_15(%arg0: i32) -> (i32, i32) {
    %c0_i32 = arith.constant 0 : i32
    %c0_i32_0 = arith.constant 0 : i32
    %c0_i32_1 = arith.constant 0 : i32
    return %c0_i32, %c0_i32_0 : i32, i32
  }
  func.func @transform_16(%arg0: i32) -> (i32, i32) {
    %c0_i32 = arith.constant 0 : i32
    %c0_i32_0 = arith.constant 0 : i32
    %c0_i32_1 = arith.constant 0 : i32
    return %c0_i32, %c0_i32_0 : i32, i32
  }
  func.func @transform_17(%arg0: i32) -> (i32, i32) {
    %c0_i32 = arith.constant 0 : i32
    %c0_i32_0 = arith.constant 0 : i32
    %c0_i32_1 = arith.constant 0 : i32
    return %c0_i32, %c0_i32_0 : i32, i32
  }
  func.func @transform_18(%arg0: i32) -> (i32, i32) {
    %c0_i32 = arith.constant 0 : i32
    %c0_i32_0 = arith.constant 0 : i32
    %c0_i32_1 = arith.constant 0 : i32
    return %c0_i32, %c0_i32_0 : i32, i32
  }
  func.func @transform_19(%arg0: i32) -> (i32, i32) {
    %c0_i32 = arith.constant 0 : i32
    %c0_i32_0 = arith.constant 0 : i32
    %c0_i32_1 = arith.constant 0 : i32
    return %c0_i32, %c0_i32_0 : i32, i32
  }
  func.func @transform_20(%arg0: i32) -> (i32, i32) {
    %c0_i32 = arith.constant 0 : i32
    %c0_i32_0 = arith.constant 0 : i32
    %c0_i32_1 = arith.constant 0 : i32
    return %c0_i32, %c0_i32_0 : i32, i32
  }
  func.func @transform_21(%arg0: i32) -> (i32, i32) {
    %c0_i32 = arith.constant 0 : i32
    %c0_i32_0 = arith.constant 0 : i32
    %c0_i32_1 = arith.constant 0 : i32
    return %c0_i32, %c0_i32_0 : i32, i32
  }
  func.func @transform_22(%arg0: i32) -> (i32, i32) {
    %c0_i32 = arith.constant 0 : i32
    %c0_i32_0 = arith.constant 0 : i32
    %c0_i32_1 = arith.constant 0 : i32
    return %c0_i32, %c0_i32_0 : i32, i32
  }
  func.func @transform_23(%arg0: i32) -> (i32, i32) {
    %c0_i32 = arith.constant 0 : i32
    %c0_i32_0 = arith.constant 0 : i32
    %c0_i32_1 = arith.constant 0 : i32
    return %c0_i32, %c0_i32_0 : i32, i32
  }
  func.func @transform_24(%arg0: i32) -> (i32, i32) {
    %c0_i32 = arith.constant 0 : i32
    %c0_i32_0 = arith.constant 0 : i32
    %c0_i32_1 = arith.constant 0 : i32
    return %c0_i32, %c0_i32_0 : i32, i32
  }
  func.func @transform_25(%arg0: i32) -> (i32, i32) {
    %c0_i32 = arith.constant 0 : i32
    %c0_i32_0 = arith.constant 0 : i32
    %c0_i32_1 = arith.constant 0 : i32
    return %c0_i32, %c0_i32_0 : i32, i32
  }
  func.func @transform_26(%arg0: i32) -> (i32, i32) {
    %c0_i32 = arith.constant 0 : i32
    %c0_i32_0 = arith.constant 0 : i32
    %c0_i32_1 = arith.constant 0 : i32
    return %c0_i32, %c0_i32_0 : i32, i32
  }
  func.func @transform_27(%arg0: i32) -> (i32, i32) {
    %c0_i32 = arith.constant 0 : i32
    %c0_i32_0 = arith.constant 0 : i32
    %c0_i32_1 = arith.constant 0 : i32
    return %c0_i32, %c0_i32_0 : i32, i32
  }
  func.func @transform_28(%arg0: i32) -> (i32, i32, i32) {
    %c0_i32 = arith.constant 0 : i32
    %c0_i32_0 = arith.constant 0 : i32
    %c0_i32_1 = arith.constant 0 : i32
    return %arg0, %c0_i32, %c0_i32_0 : i32, i32, i32
  }
}

</mosaic_0001>

<bundles_post_ra>
// kernel: exemplar_feature_learning.1
= control target key start
LH: loop header
LB: loop body
LE: loop exit
PB: predicated region body
PF: predicated region fallthrough
CT: control target
= control target key end

     0   :  { %s17291_s0 = inlined_call_operand.vmem [shape: f32[2,64,256], index: 0, kind: input, shape index: {}]   ;;  %s17292_s1 = inlined_call_operand.vmem [shape: f32[2,8,256], index: 1, kind: input, shape index: {}]   ;;  %s17293_s2 = inlined_call_operand.vmem [shape: f32[2,8,4], index: 2, kind: input, shape index: {}]   ;;  %s17294_s3 = inlined_call_operand.vmem [shape: bf16[4,256], index: 3, kind: input, shape index: {}]   ;;  %s17295_s4 = inlined_call_operand.vmem [shape: f32[1,256], index: 4, kind: input, shape index: {}]   ;;  %s17296_s5 = inlined_call_operand.vmem [shape: bf16[256,256], index: 5, kind: input, shape index: {}]   ;;  %s17297_s6 = inlined_call_operand.vmem [shape: f32[1,256], index: 6, kind: input, shape index: {}]   ;;  %s17298_s7 = inlined_call_operand.vmem [shape: bf16[256,256], index: 7, kind: input, shape index: {}]   ;;  %s17299_s8 = inlined_call_operand.vmem [shape: f32[1,256], index: 8, kind: input, shape index: {}]   ;;  %s17300_s9 = inlined_call_operand.vmem [shape: bf16[256,768], index: 9, kind: input, shape index: {}]   ;;  %s17301_s10 = inlined_call_operand.vmem [shape: f32[1,768], index: 10, kind: input, shape index: {}]   ;;  %s17302_s11 = inlined_call_operand.vmem [shape: bf16[256,256], index: 11, kind: input, shape index: {}]   ;;  %s17303_s12 = inlined_call_operand.vmem [shape: f32[1,256], index: 12, kind: input, shape index: {}]   ;;  %s17304_s13 = inlined_call_operand.vmem [shape: bf16[256,256], index: 13, kind: input, shape index: {}]   ;;  %s17305_s14 = inlined_call_operand.vmem [shape: f32[1,256], index: 14, kind: input, shape index: {}]   ;;  %s17306_s15 = inlined_call_operand.vmem [shape: bf16[256,512], index: 15, kind: input, shape index: {}]   ;;  %s17307_s16 = inlined_call_operand.vmem [shape: f32[1,512], index: 16, kind: input, shape index: {}]   ;;  %s17308_s17 = inlined_call_operand.vmem [shape: bf16[256,256], index: 17, kind: input, shape index: {}]   ;;  %s17309_s18 = inlined_call_operand.vmem [shape: f32[1,256], index: 18, kind: input, shape index: {}]   ;;  %s17310_s19 = inlined_call_operand.vmem [shape: bf16[256,256], index: 19, kind: input, shape index: {}]   ;;  %s17311_s20 = inlined_call_operand.vmem [shape: bf16[256,256], index: 20, kind: input, shape index: {}]   ;;  %s17312_s21 = inlined_call_operand.vmem [shape: f32[1,256], index: 21, kind: input, shape index: {}]   ;;  %s17313_s22 = inlined_call_operand.vmem [shape: bf16[256,256], index: 22, kind: input, shape index: {}]   ;;  %s17314_s23 = inlined_call_operand.vmem [shape: f32[1,256], index: 23, kind: input, shape index: {}]   ;;  %s17315_s24 = inlined_call_operand.vmem [shape: f32[1,256], index: 24, kind: input, shape index: {}]   ;;  %s17316_s25 = inlined_call_operand.vmem [shape: f32[1,256], index: 25, kind: input, shape index: {}]   ;;  %s17317_s26 = inlined_call_operand.vmem [shape: f32[1,256], index: 26, kind: input, shape index: {}]   ;;  %s17318_s27 = inlined_call_operand.vmem [shape: f32[1,256], index: 27, kind: input, shape index: {}]   ;;  %s17319_s28 = inlined_call_operand.hbm [shape: f32[2,8,256], index: 28, kind: output, shape index: {}]  }
   0x1   :  { %17345 = sst [smem:[#allocation17_spill]] %s17291_s0 }
   0x2   :  { %17346 = sst [smem:[#allocation18_spill]] %s17292_s1 }
   0x3   :  { %17347 = sst [smem:[#allocation19_spill]] %s17293_s2 }
   0x4   :  { %17348 = sst [smem:[#allocation20_spill]] %s17294_s3 }
   0x5   :  { %17349 = sst [smem:[#allocation21_spill]] %s17295_s4 }
   0x6   :  { %17350 = sst [smem:[#allocation22_spill]] %s17296_s5 }
   0x7   :  { %17351 = sst [smem:[#allocation23_spill]] %s17297_s6 }
   0x8   :  { %17352 = sst [smem:[#allocation24_spill]] %s17298_s7 }
   0x9   :  { %17353 = sst [smem:[#allocation25_spill]] %s17299_s8 }
   0xa   :  { %17354 = sst [smem:[#allocation26_spill]] %s17300_s9 }
   0xb   :  { %17355 = sst [smem:[#allocation27_spill]] %s17301_s10 }
   0xc   :  { %17356 = sst [smem:[#allocation28_spill]] %s17302_s11 }
   0xd   :  { %17357 = sst [smem:[#allocation29_spill]] %s17303_s12 }
   0xe   :  { %17358 = sst [smem:[#allocation30_spill]] %s17306_s15 }
   0xf   :  { %17359 = sst [smem:[#allocation31_spill]] %s17307_s16 }
  0x10   :  { %17360 = sst [smem:[#allocation32_spill]] %s17319_s28 }
  0x11   :  { %33 = vsyncpa [#allocation6], 0 }
  0x12   :  { %35 = vsyncpa [#allocation6 + $0x1], 0  ;;  %s13794_s8 = smov 0   ;;  %s13796_s5 = smov 0  }
  0x13   :  { %s13798_s9 = smov 0   ;;  %s13800_s30 = smov 0  }
  0x14 LB: > { %17361 = sst [smem:[#allocation8_spill]] %s13628_s8  ;;  %s13815_s3 = sadd.s32 4294967295, %s13640_s30   ;;  %s13640_s30 = sphi %s13800_s30, %s17399_s30   ;;  %s13636_s9 = sphi %s13798_s9, %s17402_s9   ;;  %s13632_s5 = sphi %s13796_s5, %s17401_s5   ;;  %s13628_s8 = sphi %s13794_s8, %s17400_s8  }
  0x15   : > { %17362 = sst [smem:[#allocation9_spill]] %s13632_s5  ;;  %s10735_s6 = sadd.s32 4294967294, %s13640_s30  }
  0x16   : > { %17363 = sst [smem:[#allocation10_spill]] %s13636_s9  ;;  %s13819_s10 = sadd.s32 1, %s13640_s30  }
  0x17   : > { %17364 = sst [smem:[#allocation11_spill]] %s13640_s30  ;;  %s651_s0 = sadd.s32 1, %s13636_s9 }
  0x18   : > { %17365 = sst [smem:[#allocation12_spill]] %s13815_s3  ;;  %s648_s11 = ssub.s32 %s13640_s30, %s13819_s10 }
  0x19   : > { %17366 = sst [smem:[#allocation13_spill]] %s13819_s10  ;;  %p661_p0 = scmp.ne.s32.totalorder %s13636_s9, %s13632_s5 }
  0x1a   : > { %p649_p1 = scmp.eq.s32.totalorder %s648_s11, 0  ;;  %p662_p2 = scmp.eq.s32.totalorder %s13815_s3, 1 }
  0x1b   : > { %p667_p3 = scmp.ne.s32.totalorder %s13632_s5, %s13628_s8  ;;  %p668_p4 = scmp.eq.s32.totalorder %s10735_s6, 1 }
  0x1c   : > { %s13830_s29 = scalar_select %p649_p1, %s13636_s9, %s651_s0  }
  0x1d   : > { %p13832_p5 = por %p662_p2, %p661_p0  ;;  %p13836_p6 = por %p668_p4, %p667_p3 }
  0x1e   : > { %17367 = sst [smem:[#allocation14_spill]] %s13830_s29  ;;  %p10738_p7 = scmp.ge.s32.totalorder %s13640_s30, 1 }
  0x1f   : > { %s17368_s2 = scalar_select %p13832_p5, 1, 0 }
  0x20   : > { %s17370_s7 = scalar_select %p13836_p6, 1, 0 }
  0x21   : > { %17369 = sst [smem:[#allocation15_spill]] %s17368_s2  ;;  %p784_p8 = scmp.lt.s32.totalorder %s13640_s30, 3 }
  0x22   : > { %17371 = sst [smem:[#allocation16_spill]] %s17370_s7 }
  0x23   : > { %p785_p9 = pnand %p10738_p7, %p784_p8 }
  0x24   : > { %s17372_s4 = sld [smem:[#allocation20_spill]] (!%p785_p9)  ;;  %vm912_vm0 = vcmask (!%p785_p9), 1041408   ;;  %v13642_v3 = vmov (!%p785_p9), 0   ;;  %p867_p10 = scmp.lt.s32.totalorder (!%p785_p9), %s13815_s3, 1  ;;  %vm908_vm1 = vcmask (!%p785_p9), 31744   ;;  %vm13645_vm2 = vmmov (!%p785_p9), 0  }
  0x25   : > { %788 = sbr.rel (%p785_p9) target bundleno = 13064 (0x3308), region = 132  ;;  %951 = vmatprep.mubr.bf16.mxu0 (!%p785_p9), %v13642_v3  ;;  %s17373_s11 = sld [smem:[#allocation22_spill]] (!%p785_p9)  ;;  %vm3011_vm3 = vcmask (!%p785_p9), 261120   ;;  %vm3070_vm4 = vcmask (!%p785_p9), 1043456   ;;  %vm3055_vm5 = vcmask (!%p785_p9), 64512   ;;  %vm3116_vm6 = vcmask (!%p785_p9), 257024  }
  0x26   : > { %s17374_s9 = sld [smem:[#allocation19_spill]] (!%p785_p9)  ;;  %s17375_s1 = sld [smem:[#allocation24_spill]] (!%p785_p9)  ;;  %vm3232_vm7 = vcmask (!%p785_p9), 519424   ;;  %vm3346_vm8 = vcmask (!%p785_p9), 781824   ;;  %vm3460_vm9 = vcmask (!%p785_p9), 1044224   ;;  %vm2116_vm10 = vcmask (!%p785_p9), 523264  }
  0x27   : > { %s17376_s0 = sld [smem:[#allocation21_spill]] (!%p785_p9)  ;;  %s17378_s7 = sld [smem:[#allocation25_spill]] (!%p785_p9) }
  0x28   : > { %s17379_s28 = sld [smem:[#allocation18_spill]] (!%p785_p9)  ;;  %s17380_s15 = sld [smem:[#allocation30_spill]] (!%p785_p9) }
  0x29   : > { %s17384_s16 = sld [smem:[#allocation31_spill]] (!%p785_p9)  ;;  %s17334_s6 = smov (!%p785_p9), 64  }
  0x2a   : > { %v10745_v0 = vld.sshfl [vmem:[%s17372_s4] sm:$0x33 pattern:$0x76325410] (!%p785_p9) }
  0x2b   : > { %v907_v1 = vcombine.high (!%p785_p9), %v10745_v0, %v10745_v0  ;;  %v914_v2 = vsel (!%p785_p9), %vm912_vm0, %v10745_v0, 0  ;;  %v12377_v4 = vld [vmem:[%s17373_s11 + $0x4] ss:$8 sps:$4 sm:$0xff] (!%p785_p9)   ;;  %v12379_v5 = vld [vmem:[%s17373_s11] ss:$8 sps:$4 sm:$0xff] (!%p785_p9)  }
  0x2c   : > { %s13853_s10 = scalar_select %p867_p10, %s13815_s3, 1  ;;  %v12380_v6 = vld [vmem:[%s17373_s11 + $0x14] ss:$8 sps:$4 sm:$0xff]   ;;  %1168 = vmatprep.subr.bf16.mxu1 %v12377_v4  ;;  %v12382_v7 = vld [vmem:[%s17373_s11 + $0x10] ss:$8 sps:$4 sm:$0xff]  }
  0x2d   : > { %10746 = vmatprep.subr.msk.bf16.mxu0 %vm912_vm0, %v907_v1  ;;  %1169 = vmatpush1.bf16.msra.mxu1 %v12379_v5  ;;  %v12383_v8 = vld [vmem:[%s17373_s11 + $0x24] ss:$8 sps:$4 sm:$0xff]   ;;  %v12385_v11 = vld [vmem:[%s17373_s11 + $0x20] ss:$8 sps:$4 sm:$0xff]   ;;  %v12386_v12 = vld [vmem:[%s17373_s11 + $0x34] ss:$8 sps:$4 sm:$0xff]  }
  0x2e   : > { %920 = vmatpush1.bf16.msra.mxu0 %v914_v2  ;;  %s10744_s4 = sshll.u32 %s13853_s10, 3  ;;  %1170 = vmatprep.subr.bf16.mxu1 %v12380_v6  ;;  %v12388_v13 = vld [vmem:[%s17373_s11 + $0x30] ss:$8 sps:$4 sm:$0xff]   ;;  %v12389_v14 = vld [vmem:[%s17373_s11 + $0x44] ss:$8 sps:$4 sm:$0xff]   ;;  %v889_v2 = vlaneseq  ;;  %s11553_s12 = sshll.u32 %s13853_s10, 7 }
  0x2f   : > { %s880_s29 = scalar_lea.vmem %s17374_s9, %s10744_s4  ;;  %v12391_v15 = vld [vmem:[%s17373_s11 + $0x40] ss:$8 sps:$4 sm:$0xff]   ;;  %v12392_v16 = vld [vmem:[%s17373_s11 + $0x54] ss:$8 sps:$4 sm:$0xff]   ;;  %v12394_v17 = vld [vmem:[%s17373_s11 + $0x50] ss:$8 sps:$4 sm:$0xff]  }
  0x30   : > { %v884_v9 = vld [vmem:[%s880_s29] sm:$0xff]  ;;  %v12398_v20 = vld [vmem:[%s17373_s11 + $0x74] ss:$8 sps:$4 sm:$0xff]   ;;  %v12400_v21 = vld [vmem:[%s17373_s11 + $0x70] ss:$8 sps:$4 sm:$0xff]   ;;  %v14033_v3 = vshrl.u32 %v889_v2, 7 }
  0x31   : > { %v885_v10 = vpack.c.bf16 %v884_v9, %v884_v9  ;;  %1171 = vmatpush1.bf16.msra.mxu1 %v12382_v7  ;;  %v12395_v18 = vld [vmem:[%s17373_s11 + $0x64] ss:$8 sps:$4 sm:$0xff]   ;;  %v12397_v19 = vld [vmem:[%s17373_s11 + $0x60] ss:$8 sps:$4 sm:$0xff]   ;;  %v12404_v24 = vld [vmem:[%s17373_s11 + $0x94] ss:$8 sps:$4 sm:$0xff]  }
  0x32   : > { %1172 = vmatprep.subr.bf16.mxu1 %v12383_v8  ;;  %v12401_v22 = vld [vmem:[%s17373_s11 + $0x84] ss:$8 sps:$4 sm:$0xff]   ;;  %v12403_v23 = vld [vmem:[%s17373_s11 + $0x80] ss:$8 sps:$4 sm:$0xff]   ;;  %v12406_v25 = vld [vmem:[%s17373_s11 + $0x90] ss:$8 sps:$4 sm:$0xff]  }
  0x33   : > { %10747 = vmatmul.mubr.msk.bf16.vlgmr.msra.gmra.mrb[0].mxu0 %vm908_vm1, %v885_v10  ;;  %v12407_v26 = vld [vmem:[%s17373_s11 + $0xa4] ss:$8 sps:$4 sm:$0xff]   ;;  %v12409_v27 = vld [vmem:[%s17373_s11 + $0xa0] ss:$8 sps:$4 sm:$0xff]   ;;  %v12410_v28 = vld [vmem:[%s17373_s11 + $0xb4] ss:$8 sps:$4 sm:$0xff]  }
  0x34   : > { %v12412_v29 = vld [vmem:[%s17373_s11 + $0xb0] ss:$8 sps:$4 sm:$0xff]   ;;  %v12413_v30 = vld [vmem:[%s17373_s11 + $0xc4] ss:$8 sps:$4 sm:$0xff]   ;;  %v12415_v31 = vld [vmem:[%s17373_s11 + $0xc0] ss:$8 sps:$4 sm:$0xff]  }
  0x35   : > { %1173 = vmatpush1.bf16.msra.mxu1 %v12385_v11  ;;  %v12416_v32 = vld [vmem:[%s17373_s11 + $0xd4] ss:$8 sps:$4 sm:$0xff]   ;;  %v12418_v33 = vld [vmem:[%s17373_s11 + $0xd0] ss:$8 sps:$4 sm:$0xff]   ;;  %v12419_v34 = vld [vmem:[%s17373_s11 + $0xe4] ss:$8 sps:$4 sm:$0xff]  }
  0x36   : > { %1174 = vmatprep.subr.bf16.mxu1 %v12386_v12  ;;  %v12421_v35 = vld [vmem:[%s17373_s11 + $0xe0] ss:$8 sps:$4 sm:$0xff]   ;;  %v12422_v36 = vld [vmem:[%s17373_s11 + $0xf4] ss:$8 sps:$4 sm:$0xff]   ;;  %v12424_v37 = vld [vmem:[%s17373_s11 + $0xf0] ss:$8 sps:$4 sm:$0xff]  }
  0x37   : > { %v12425_v38 = vld [vmem:[%s17375_s1] ss:$8 sps:$4 sm:$0xff]   ;;  %v12427_v39 = vld [vmem:[%s17375_s1 + $0x4] ss:$8 sps:$4 sm:$0xff]   ;;  %v12430_v40 = vld [vmem:[%s17375_s1 + $0x14] ss:$8 sps:$4 sm:$0xff]  }
  0x38   : > { %1417 = vmatprep.subr.bf16.mxu0 %v12427_v39  ;;  %v12428_v41 = vld [vmem:[%s17375_s1 + $0x10] ss:$8 sps:$4 sm:$0xff]   ;;  %v12433_v42 = vld [vmem:[%s17375_s1 + $0x24] ss:$8 sps:$4 sm:$0xff]   ;;  %v12431_v43 = vld [vmem:[%s17375_s1 + $0x20] ss:$8 sps:$4 sm:$0xff]  }
  0x39   : > { %1175 = vmatpush1.bf16.msra.mxu1 %v12388_v13  ;;  %1418 = vmatpush1.bf16.msra.mxu0 %v12425_v38  ;;  %v12436_v44 = vld [vmem:[%s17375_s1 + $0x34] ss:$8 sps:$4 sm:$0xff]   ;;  %v12434_v45 = vld [vmem:[%s17375_s1 + $0x30] ss:$8 sps:$4 sm:$0xff]   ;;  %v12439_v46 = vld [vmem:[%s17375_s1 + $0x44] ss:$8 sps:$4 sm:$0xff]  }
  0x3a   : > { %1176 = vmatprep.subr.bf16.mxu1 %v12389_v14  ;;  %1419 = vmatprep.subr.bf16.mxu0 %v12430_v40  ;;  %v12437_v47 = vld [vmem:[%s17375_s1 + $0x40] ss:$8 sps:$4 sm:$0xff]   ;;  %v12442_v48 = vld [vmem:[%s17375_s1 + $0x54] ss:$8 sps:$4 sm:$0xff]   ;;  %v12440_v49 = vld [vmem:[%s17375_s1 + $0x50] ss:$8 sps:$4 sm:$0xff]  }
  0x3b   : > { %v12445_v50 = vld [vmem:[%s17375_s1 + $0x64] ss:$8 sps:$4 sm:$0xff]   ;;  %v12443_v51 = vld [vmem:[%s17375_s1 + $0x60] ss:$8 sps:$4 sm:$0xff]   ;;  %v12448_v52 = vld [vmem:[%s17375_s1 + $0x74] ss:$8 sps:$4 sm:$0xff]  }
  0x3c   : > { %v12446_v53 = vld [vmem:[%s17375_s1 + $0x70] ss:$8 sps:$4 sm:$0xff]   ;;  %v12451_v54 = vld [vmem:[%s17375_s1 + $0x84] ss:$8 sps:$4 sm:$0xff]   ;;  %v12449_v55 = vld [vmem:[%s17375_s1 + $0x80] ss:$8 sps:$4 sm:$0xff]  }
  0x3d   : > { %1177 = vmatpush1.bf16.msra.mxu1 %v12391_v15  ;;  %1420 = vmatpush1.bf16.msra.mxu0 %v12428_v41  ;;  %v12454_v56 = vld [vmem:[%s17375_s1 + $0x94] ss:$8 sps:$4 sm:$0xff]   ;;  %v12452_v57 = vld [vmem:[%s17375_s1 + $0x90] ss:$8 sps:$4 sm:$0xff]   ;;  %v12457_v58 = vld [vmem:[%s17375_s1 + $0xa4] ss:$8 sps:$4 sm:$0xff]  }
  0x3e   : > { %1178 = vmatprep.subr.bf16.mxu1 %v12392_v16  ;;  %1421 = vmatprep.subr.bf16.mxu0 %v12433_v42  ;;  %v12455_v59 = vld [vmem:[%s17375_s1 + $0xa0] ss:$8 sps:$4 sm:$0xff]   ;;  %v12460_v60 = vld [vmem:[%s17375_s1 + $0xb4] ss:$8 sps:$4 sm:$0xff]   ;;  %v12458_v61 = vld [vmem:[%s17375_s1 + $0xb0] ss:$8 sps:$4 sm:$0xff]  }
  0x3f   : > { %v12463_v62 = vld [vmem:[%s17375_s1 + $0xc4] ss:$8 sps:$4 sm:$0xff]   ;;  %v12461_v63 = vld [vmem:[%s17375_s1 + $0xc0] ss:$8 sps:$4 sm:$0xff]   ;;  %v12466_v0 = vld [vmem:[%s17375_s1 + $0xd4] ss:$8 sps:$4 sm:$0xff]  }
  0x40   : > { %v12464_v1 = vld [vmem:[%s17375_s1 + $0xd0] ss:$8 sps:$4 sm:$0xff]   ;;  %v887_v4 = vld [vmem:[%s17376_s0] sm:$0x3]  ;;  %v14039_v5 = vsub.s32 0, %v14033_v3  ;;  %v14042_v6 = vsub.s32 1, %v14033_v3 }
  0x41   : > { %1179 = vmatpush1.bf16.msra.mxu1 %v12394_v17  ;;  %1422 = vmatpush1.bf16.msra.mxu0 %v12431_v43  ;;  %s17377_s9 = sld [smem:[#allocation23_spill]]  ;;  %s11554_s29 = sshll.u32 %s13853_s10, 4  ;;  %v12499_v2 = vld [vmem:[%s17380_s15 + $0x8c] ss:$16 sps:$4 sm:$0xff]  }
  0x42   : > { %1180 = vmatprep.subr.bf16.mxu1 %v12395_v18  ;;  %1423 = vmatprep.subr.bf16.mxu0 %v12436_v44  ;;  %v892_v7 = vrot.slane %v887_v4, %v14039_v5  ;;  %v896_v8 = vrot.slane %v887_v4, %v14042_v6  ;;  %s876_s30 = scalar_lea.vmem %s17379_s28, %s11554_s29  ;;  %v12502_v4 = vld [vmem:[%s17380_s15 + $0x84] ss:$16 sps:$4 sm:$0xff]   ;;  %s17381_s29 = sld [smem:[#allocation17_spill]] }
  0x43   : > { %v882_v39 = vld [vmem:[%s876_s30] sm:$0xff]  ;;  %v883_v42 = vld [vmem:[%s876_s30 + $0x8] sm:$0xff]  ;;  %s17336_s4 = smov 96   ;;  %s17391_s11 = sld [smem:[#allocation29_spill]] }
  0x45   : > { %1181 = vmatpush1.bf16.msra.mxu1 %v12397_v19  ;;  %1424 = vmatpush1.bf16.msra.mxu0 %v12434_v45  ;;  %v12469_v19 = vld [vmem:[%s17375_s1 + $0xe4] ss:$8 sps:$4 sm:$0xff]  }
  0x46   : > { %1182 = vmatprep.subr.bf16.mxu1 %v12398_v20  ;;  %1425 = vmatprep.subr.bf16.mxu0 %v12439_v46  ;;  %v12467_v20 = vld [vmem:[%s17375_s1 + $0xe0] ss:$8 sps:$4 sm:$0xff]  }
  0x48   : > { %s14148_s8 = scalar_lea.vmem %s17381_s29, %s11553_s12 }
  0x49   : > { %1183 = vmatpush1.bf16.msra.mxu1 %v12400_v21  ;;  %1426 = vmatpush1.bf16.msra.mxu0 %v12437_v47  ;;  %v12472_v21 = vld [vmem:[%s17375_s1 + $0xf4] ss:$8 sps:$4 sm:$0xff]  }
  0x4a   : > { %1184 = vmatprep.subr.bf16.mxu1 %v12401_v22  ;;  %1427 = vmatprep.subr.bf16.mxu0 %v12442_v48  ;;  %v12470_v22 = vld [vmem:[%s17375_s1 + $0xf0] ss:$8 sps:$4 sm:$0xff]   ;;  %s17339_s1 = smov 32  }
  0x4d   : > { %1185 = vmatpush1.bf16.msra.mxu1 %v12403_v23  ;;  %1428 = vmatpush1.bf16.msra.mxu0 %v12440_v49  ;;  %v996_v23 = vld [vmem:[%s17377_s9] sm:$0x3]  ;;  %s17382_s9 = sld [smem:[#allocation26_spill]] }
  0x4e   : > { %1186 = vmatprep.subr.bf16.mxu1 %v12404_v24  ;;  %1429 = vmatprep.subr.bf16.mxu0 %v12445_v50  ;;  %v1001_v24 = vrot.slane %v996_v23, %v14039_v5  ;;  %v12473_v50 = vld [vmem:[%s17380_s15 + $0x8] ss:$16 sps:$4 sm:$0xff]  }
  0x51   : > { %1187 = vmatpush1.bf16.msra.mxu1 %v12406_v25  ;;  %1430 = vmatpush1.bf16.msra.mxu0 %v12443_v51  ;;  %v1005_v25 = vrot.slane %v996_v23, %v14042_v6  ;;  %v12475_v51 = vld [vmem:[%s17380_s15 + $0xc] ss:$16 sps:$4 sm:$0xff]   ;;  %v12518_v23 = vld [vmem:[%s17380_s15 + $0xe0] ss:$16 sps:$4 sm:$0xff]  }
  0x52   : > { %1188 = vmatprep.subr.bf16.mxu1 %v12407_v26  ;;  %1431 = vmatprep.subr.bf16.mxu0 %v12448_v52  ;;  %v12476_v52 = vld [vmem:[%s17380_s15] ss:$16 sps:$4 sm:$0xff]  }
  0x53   : > { %s17383_s29 = smov %s17382_s9 }
  0x55   : > { %1189 = vmatpush1.bf16.msra.mxu1 %v12409_v27  ;;  %1432 = vmatpush1.bf16.msra.mxu0 %v12446_v53  ;;  %v12478_v53 = vld [vmem:[%s17380_s15 + $0x4] ss:$16 sps:$4 sm:$0xff]  }
  0x56   : > { %1190 = vmatprep.subr.bf16.mxu1 %v12410_v28  ;;  %1433 = vmatprep.subr.bf16.mxu0 %v12451_v54  ;;  %v12481_v54 = vld [vmem:[%s17380_s15 + $0x2c] ss:$16 sps:$4 sm:$0xff]  }
  0x59   : > { %1191 = vmatpush1.bf16.msra.mxu1 %v12412_v29  ;;  %1434 = vmatpush1.bf16.msra.mxu0 %v12449_v55  ;;  %v12484_v55 = vld [vmem:[%s17380_s15 + $0x24] ss:$16 sps:$4 sm:$0xff]  }
  0x5a   : > { %1192 = vmatprep.subr.bf16.mxu1 %v12413_v30  ;;  %1435 = vmatprep.subr.bf16.mxu0 %v12454_v56  ;;  %v12479_v56 = vld [vmem:[%s17380_s15 + $0x28] ss:$16 sps:$4 sm:$0xff]  }
  0x5d   : > { %1193 = vmatpush1.bf16.msra.mxu1 %v12415_v31  ;;  %1436 = vmatpush1.bf16.msra.mxu0 %v12452_v57  ;;  %v12482_v57 = vld [vmem:[%s17380_s15 + $0x20] ss:$16 sps:$4 sm:$0xff]  }
  0x5e   : > { %1194 = vmatprep.subr.bf16.mxu1 %v12416_v32  ;;  %1437 = vmatprep.subr.bf16.mxu0 %v12457_v58  ;;  %v12487_v58 = vld [vmem:[%s17380_s15 + $0x4c] ss:$16 sps:$4 sm:$0xff]  }
  0x61   : > { %1195 = vmatpush1.bf16.msra.mxu1 %v12418_v33  ;;  %1438 = vmatpush1.bf16.msra.mxu0 %v12455_v59  ;;  %v12490_v59 = vld [vmem:[%s17380_s15 + $0x44] ss:$16 sps:$4 sm:$0xff]  }
  0x62   : > { %1196 = vmatprep.subr.bf16.mxu1 %v12419_v34  ;;  %1439 = vmatprep.subr.bf16.mxu0 %v12460_v60  ;;  %v12485_v60 = vld [vmem:[%s17380_s15 + $0x48] ss:$16 sps:$4 sm:$0xff]  }
  0x65   : > { %1197 = vmatpush1.bf16.msra.mxu1 %v12421_v35  ;;  %1440 = vmatpush1.bf16.msra.mxu0 %v12458_v61  ;;  %v12488_v61 = vld [vmem:[%s17380_s15 + $0x40] ss:$16 sps:$4 sm:$0xff]  }
  0x66   : > { %1198 = vmatprep.subr.bf16.mxu1 %v12422_v36  ;;  %1441 = vmatprep.subr.bf16.mxu0 %v12463_v62  ;;  %v1245_v36 = vld [vmem:[%s17378_s7] sm:$0x3]  ;;  %v12493_v62 = vld [vmem:[%s17380_s15 + $0x6c] ss:$16 sps:$4 sm:$0xff]   ;;  %s17385_s7 = sld [smem:[#allocation27_spill]] }
  0x67   : > { %v1254_v38 = vrot.slane %v1245_v36, %v14042_v6 }
  0x69   : > { %1199 = vmatpush1.bf16.msra.mxu1 %v12424_v37  ;;  %1442 = vmatpush1.bf16.msra.mxu0 %v12461_v63  ;;  %v1250_v37 = vrot.slane %v1245_v36, %v14039_v5  ;;  %v12496_v63 = vld [vmem:[%s17380_s15 + $0x64] ss:$16 sps:$4 sm:$0xff]   ;;  %v12541_v36 = vld [vmem:[%s17380_s15 + $0x16c] ss:$16 sps:$4 sm:$0xff]  }
  0x6a   : > { %1443 = vmatprep.subr.bf16.mxu0 %v12466_v0  ;;  %1890 = vmatprep.subr.bf16.mxu1 %v12478_v53  ;;  %v12491_v0 = vld [vmem:[%s17380_s15 + $0x68] ss:$16 sps:$4 sm:$0xff]   ;;  %v12560_v53 = vld [vmem:[%s17380_s15 + $0x1c0] ss:$16 sps:$4 sm:$0xff]  }
  0x6d   : > { %1444 = vmatpush1.bf16.msra.mxu0 %v12464_v1  ;;  %v12494_v1 = vld [vmem:[%s17380_s15 + $0x60] ss:$16 sps:$4 sm:$0xff]  }
  0x6e   : > { %1445 = vmatprep.subr.bf16.mxu0 %v12469_v19  ;;  %v12512_v19 = vld [vmem:[%s17380_s15 + $0xc0] ss:$16 sps:$4 sm:$0xff]  }
  0x71   : > { %1446 = vmatpush1.bf16.msra.mxu0 %v12467_v20  ;;  %v12517_v20 = vld [vmem:[%s17380_s15 + $0xec] ss:$16 sps:$4 sm:$0xff]  }
  0x72   : > { %1447 = vmatprep.subr.bf16.mxu0 %v12472_v21  ;;  %v12520_v21 = vld [vmem:[%s17380_s15 + $0xe4] ss:$16 sps:$4 sm:$0xff]  }
  0x75   : > { %1448 = vmatpush1.bf16.msra.mxu0 %v12470_v22  ;;  %v12515_v22 = vld [vmem:[%s17380_s15 + $0xe8] ss:$16 sps:$4 sm:$0xff]  }
  0x76   : > { %1963 = vmatprep.subr.bf16.mxu0 %v12475_v51  ;;  %v12562_v51 = vld [vmem:[%s17380_s15 + $0x1c4] ss:$16 sps:$4 sm:$0xff]  }
 0x106   : > { %v953_v9 = vpop.f32.mrb[0].mxu0 }
 0x107   : > { %v954_v10 = vadd.f32 %v953_v9, %v892_v7  ;;  %v955_v11 = vpop.f32.mrb[1].mxu0  ;;  %v12497_v7 = vld [vmem:[%s17380_s15 + $0x88] ss:$16 sps:$4 sm:$0xff]   ;;  %v12505_v9 = vld [vmem:[%s17380_s15 + $0xac] ss:$16 sps:$4 sm:$0xff]  }
 0x108   : > { %v956_v12 = vadd.f32 %v955_v11, %v896_v8  ;;  %v957_v13 = vpop.f32.mrb[2].mxu0  ;;  %v12500_v8 = vld [vmem:[%s17380_s15 + $0x80] ss:$16 sps:$4 sm:$0xff]   ;;  %v12503_v11 = vld [vmem:[%s17380_s15 + $0xa8] ss:$16 sps:$4 sm:$0xff]  }
 0x109   : > { %v960_v14 = vmax.f32 %v954_v10, 0.0  ;;  %v958_v15 = vpop.f32.mrb[3].mxu0  ;;  %v12508_v10 = vld [vmem:[%s17380_s15 + $0xa4] ss:$16 sps:$4 sm:$0xff]   ;;  %v12511_v13 = vld [vmem:[%s17380_s15 + $0xcc] ss:$16 sps:$4 sm:$0xff]  }
 0x10a   : > { %v961_v16 = vmax.f32 %v956_v12, 0.0  ;;  %v12506_v12 = vld [vmem:[%s17380_s15 + $0xa0] ss:$16 sps:$4 sm:$0xff]   ;;  %v1461_v15 = vld [vmem:[%s14148_s8 + $0x8] sm:$0xff] }
 0x10b   : > { %v962_v18 = vpack.c.bf16 %v960_v14, %v960_v14  ;;  %v12514_v14 = vld [vmem:[%s17380_s15 + $0xc4] ss:$16 sps:$4 sm:$0xff]  }
 0x10c   : > { %v963_v17 = vpack.c.bf16 %v961_v16, %v961_v16  ;;  %v1463_v16 = vld [vmem:[%s14148_s8 + $0x18] sm:$0xff] }
 0x10e   : > { %1200 = vmatprep.mubr.bf16.mxu1 %v963_v17  ;;  %v1477_v17 = vpack.c.bf16 %v1463_v16, %v1461_v15  ;;  %v12584_v16 = vld [vmem:[%s17383_s29 + $0x68] ss:$24 sps:$4 sm:$0xff]  }
 0x10f   : > { %1201 = vmatmul.mubr.bf16.vlgmr.msra.gmra.mrb[0].mxu1 %v962_v18  ;;  %v12509_v18 = vld [vmem:[%s17380_s15 + $0xc8] ss:$16 sps:$4 sm:$0xff]  }
 0x110   : > { %1891 = vmatpush1.bf16.msra.mxu1 %v12476_v52  ;;  %1922 = vmatprep.mubr.bf16.mxu1 %v1477_v17  ;;  %v12557_v52 = vld [vmem:[%s17380_s15 + $0x1c8] ss:$16 sps:$4 sm:$0xff]  }
 0x111   : > { %1892 = vmatprep.subr.bf16.mxu1 %v12484_v55  ;;  %v12568_v55 = vld [vmem:[%s17380_s15 + $0x1e4] ss:$16 sps:$4 sm:$0xff]  }
 0x114   : > { %1893 = vmatpush1.bf16.msra.mxu1 %v12482_v57  ;;  %v1460_v57 = vld [vmem:[%s14148_s8] sm:$0xff] }
 0x115   : > { %1894 = vmatprep.subr.bf16.mxu1 %v12490_v59  ;;  %v12566_v59 = vld [vmem:[%s17380_s15 + $0x1e0] ss:$16 sps:$4 sm:$0xff]  }
 0x118   : > { %1895 = vmatpush1.bf16.msra.mxu1 %v12488_v61  ;;  %v12571_v61 = vld [vmem:[%s17383_s29 + $0x4] ss:$24 sps:$4 sm:$0xff]  }
 0x119   : > { %1896 = vmatprep.subr.bf16.mxu1 %v12496_v63  ;;  %v1465_v63 = vld [vmem:[%s14148_s8 + $0x28] sm:$0xff] }
 0x11c   : > { %1897 = vmatpush1.bf16.msra.mxu1 %v12494_v1  ;;  %v12572_v1 = vld [vmem:[%s17383_s29 + $0x8] ss:$24 sps:$4 sm:$0xff]  }
 0x11d   : > { %1898 = vmatprep.subr.bf16.mxu1 %v12502_v4  ;;  %v12580_v4 = vld [vmem:[%s17383_s29 + $0x3c] ss:$24 sps:$4 sm:$0xff]  }
 0x120   : > { %1899 = vmatpush1.bf16.msra.mxu1 %v12500_v8 }
 0x121   : > { %1900 = vmatprep.subr.bf16.mxu1 %v12508_v10  ;;  %v1464_v10 = vld [vmem:[%s14148_s8 + $0x20] sm:$0xff] }
 0x124   : > { %1901 = vmatpush1.bf16.msra.mxu1 %v12506_v12  ;;  %v12575_v12 = vld [vmem:[%s17383_s29 + $0x30] ss:$24 sps:$4 sm:$0xff]  }
 0x125   : > { %1902 = vmatprep.subr.bf16.mxu1 %v12514_v14  ;;  %v12583_v14 = vld [vmem:[%s17383_s29 + $0x64] ss:$24 sps:$4 sm:$0xff]  }
 0x128   : > { %1903 = vmatpush1.bf16.msra.mxu1 %v12512_v19  ;;  %v12589_v19 = vld [vmem:[%s17383_s29 + $0x94] ss:$24 sps:$4 sm:$0xff]  }
 0x129   : > { %1904 = vmatprep.subr.bf16.mxu1 %v12520_v21  ;;  %v12587_v21 = vld [vmem:[%s17383_s29 + $0x90] ss:$24 sps:$4 sm:$0xff]  }
 0x12c   : > { %1905 = vmatpush1.bf16.msra.mxu1 %v12518_v23  ;;  %v12595_v23 = vld [vmem:[%s17383_s29 + $0xc4] ss:$24 sps:$4 sm:$0xff]  }
 0x1e2   : > { %v1202_v26 = vpop.f32.mrb[0].mxu1 }
 0x1e3   : > { %v1203_v27 = vadd.f32 %v1202_v26, %v1001_v24  ;;  %v1204_v28 = vpop.f32.mrb[1].mxu1  ;;  %v12523_v24 = vld [vmem:[%s17380_s15 + $0x10c] ss:$16 sps:$4 sm:$0xff]   ;;  %v12521_v26 = vld [vmem:[%s17380_s15 + $0x108] ss:$16 sps:$4 sm:$0xff]  }
 0x1e4   : > { %v1205_v29 = vadd.f32 %v1204_v28, %v1005_v25  ;;  %v1206_v30 = vpop.f32.mrb[2].mxu1  ;;  %v12526_v25 = vld [vmem:[%s17380_s15 + $0x104] ss:$16 sps:$4 sm:$0xff]   ;;  %v12529_v28 = vld [vmem:[%s17380_s15 + $0x12c] ss:$16 sps:$4 sm:$0xff]  }
 0x1e5   : > { %v1209_v31 = vmax.f32 %v1203_v27, 0.0  ;;  %v1207_v32 = vpop.f32.mrb[3].mxu1  ;;  %v12524_v27 = vld [vmem:[%s17380_s15 + $0x100] ss:$16 sps:$4 sm:$0xff]   ;;  %1906 = vmatprep.subr.bf16.mxu1 %v12526_v25  ;;  %v12527_v30 = vld [vmem:[%s17380_s15 + $0x128] ss:$16 sps:$4 sm:$0xff]  }
 0x1e6   : > { %v1210_v33 = vmax.f32 %v1205_v29, 0.0  ;;  %v12532_v29 = vld [vmem:[%s17380_s15 + $0x124] ss:$16 sps:$4 sm:$0xff]   ;;  %1907 = vmatpush1.bf16.msra.mxu1 %v12524_v27  ;;  %v12535_v32 = vld [vmem:[%s17380_s15 + $0x14c] ss:$16 sps:$4 sm:$0xff]  }
 0x1e7   : > { %v1211_v35 = vpack.c.bf16 %v1209_v31, %v1209_v31  ;;  %v12530_v31 = vld [vmem:[%s17380_s15 + $0x120] ss:$16 sps:$4 sm:$0xff]   ;;  %1908 = vmatprep.subr.bf16.mxu1 %v12532_v29  ;;  %v12601_v27 = vld [vmem:[%s17383_s29 + $0xf4] ss:$24 sps:$4 sm:$0xff]  }
 0x1e8   : > { %v1212_v34 = vpack.c.bf16 %v1210_v33, %v1210_v33  ;;  %v12538_v33 = vld [vmem:[%s17380_s15 + $0x144] ss:$16 sps:$4 sm:$0xff]   ;;  %v12593_v25 = vld [vmem:[%s17383_s29 + $0xc0] ss:$24 sps:$4 sm:$0xff]   ;;  %v12599_v29 = vld [vmem:[%s17383_s29 + $0xf0] ss:$24 sps:$4 sm:$0xff]  }
 0x1ea   : > { %1449 = vmatprep.mubr.bf16.mxu0 %v1212_v34  ;;  %v12533_v34 = vld [vmem:[%s17380_s15 + $0x148] ss:$16 sps:$4 sm:$0xff]   ;;  %1909 = vmatpush1.bf16.msra.mxu1 %v12530_v31  ;;  %v12607_v31 = vld [vmem:[%s17383_s29 + $0x124] ss:$24 sps:$4 sm:$0xff]  }
 0x1eb   : > { %1450 = vmatmul.mubr.bf16.vlgmr.msra.gmra.mrb[4].mxu0 %v1211_v35  ;;  %v12536_v35 = vld [vmem:[%s17380_s15 + $0x140] ss:$16 sps:$4 sm:$0xff]   ;;  %1910 = vmatprep.subr.bf16.mxu1 %v12538_v33 }
 0x1ec   : > { %1964 = vmatpush1.bf16.msra.mxu0 %v12473_v50  ;;  %1995 = vmatprep.mubr.bf16.mxu0 %v1477_v17  ;;  %v12559_v50 = vld [vmem:[%s17380_s15 + $0x1cc] ss:$16 sps:$4 sm:$0xff]   ;;  %v12581_v17 = vld [vmem:[%s17383_s29 + $0x60] ss:$24 sps:$4 sm:$0xff]  }
 0x1ed   : > { %1965 = vmatprep.subr.bf16.mxu0 %v12481_v54  ;;  %v12565_v54 = vld [vmem:[%s17380_s15 + $0x1ec] ss:$16 sps:$4 sm:$0xff]   ;;  %v12605_v33 = vld [vmem:[%s17383_s29 + $0x120] ss:$24 sps:$4 sm:$0xff]  }
 0x1ee   : > { %1911 = vmatpush1.bf16.msra.mxu1 %v12536_v35  ;;  %v12613_v35 = vld [vmem:[%s17383_s29 + $0x154] ss:$24 sps:$4 sm:$0xff]  }
 0x1f0   : > { %1966 = vmatpush1.bf16.msra.mxu0 %v12479_v56  ;;  %v12563_v56 = vld [vmem:[%s17380_s15 + $0x1e8] ss:$16 sps:$4 sm:$0xff]  }
 0x1f1   : > { %1967 = vmatprep.subr.bf16.mxu0 %v12487_v58  ;;  %v1462_v58 = vld [vmem:[%s14148_s8 + $0x10] sm:$0xff] }
 0x1f4   : > { %1968 = vmatpush1.bf16.msra.mxu0 %v12485_v60  ;;  %v12574_v60 = vld [vmem:[%s17382_s9 + $0xc] ss:$24 sps:$4 sm:$0xff]  }
 0x1f5   : > { %1969 = vmatprep.subr.bf16.mxu0 %v12493_v62  ;;  %v1476_v62 = vpack.c.bf16 %v1462_v58, %v1460_v57  ;;  %v12634_v57 = vld [vmem:[%s17383_s29 + $0x1ec] ss:$24 sps:$4 sm:$0xff]   ;;  %v12632_v58 = vld [vmem:[%s17383_s29 + $0x1e8] ss:$24 sps:$4 sm:$0xff]  }
 0x1f8   : > { %1970 = vmatpush1.bf16.msra.mxu0 %v12491_v0  ;;  %v1467_v0 = vld [vmem:[%s14148_s8 + $0x38] sm:$0xff] }
 0x1f9   : > { %1971 = vmatprep.subr.bf16.mxu0 %v12499_v2  ;;  %v12569_v2 = vld [vmem:[%s17383_s29] ss:$24 sps:$4 sm:$0xff]   ;;  %v1479_v8 = vpack.c.bf16 %v1467_v0, %v1465_v63  ;;  %v12640_v0 = vld [vmem:[%s17383_s29 + $0x21c] ss:$24 sps:$4 sm:$0xff]  }
 0x1fc   : > { %1972 = vmatpush1.bf16.msra.mxu0 %v12497_v7  ;;  %v12577_v7 = vld [vmem:[%s17383_s29 + $0x34] ss:$24 sps:$4 sm:$0xff]  }
 0x1fd   : > { %1973 = vmatprep.subr.bf16.mxu0 %v12505_v9  ;;  %v12578_v9 = vld [vmem:[%s17383_s29 + $0x38] ss:$24 sps:$4 sm:$0xff]  }
 0x200   : > { %1974 = vmatpush1.bf16.msra.mxu0 %v12503_v11  ;;  %v1466_v11 = vld [vmem:[%s14148_s8 + $0x30] sm:$0xff] }
 0x201   : > { %1975 = vmatprep.subr.bf16.mxu0 %v12511_v13  ;;  %v12586_v13 = vld [vmem:[%s17383_s29 + $0x6c] ss:$24 sps:$4 sm:$0xff]   ;;  %v1478_v15 = vpack.c.bf16 %v1466_v11, %v1464_v10  ;;  %v12644_v11 = vld [vmem:[%s17383_s29 + $0x248] ss:$24 sps:$4 sm:$0xff]  }
 0x202   : > { %v12646_v10 = vld [vmem:[%s17383_s29 + $0x24c] ss:$24 sps:$4 sm:$0xff]  }
 0x204   : > { %1976 = vmatpush1.bf16.msra.mxu0 %v12509_v18  ;;  %v12592_v18 = vld [vmem:[%s17383_s29 + $0x9c] ss:$24 sps:$4 sm:$0xff]  }
 0x205   : > { %1977 = vmatprep.subr.bf16.mxu0 %v12517_v20  ;;  %v12590_v20 = vld [vmem:[%s17383_s29 + $0x98] ss:$24 sps:$4 sm:$0xff]  }
 0x208   : > { %1978 = vmatpush1.bf16.msra.mxu0 %v12515_v22  ;;  %v12598_v22 = vld [vmem:[%s17383_s29 + $0xcc] ss:$24 sps:$4 sm:$0xff]  }
 0x209   : > { %1979 = vmatprep.subr.bf16.mxu0 %v12523_v24  ;;  %v12596_v24 = vld [vmem:[%s17383_s29 + $0xc8] ss:$24 sps:$4 sm:$0xff]  }
 0x20c   : > { %1980 = vmatpush1.bf16.msra.mxu0 %v12521_v26  ;;  %v12604_v26 = vld [vmem:[%s17383_s29 + $0xfc] ss:$24 sps:$4 sm:$0xff]  }
 0x20d   : > { %1981 = vmatprep.subr.bf16.mxu0 %v12529_v28  ;;  %v12602_v28 = vld [vmem:[%s17383_s29 + $0xf8] ss:$24 sps:$4 sm:$0xff]  }
 0x210   : > { %1982 = vmatpush1.bf16.msra.mxu0 %v12527_v30  ;;  %v12610_v30 = vld [vmem:[%s17383_s29 + $0x12c] ss:$24 sps:$4 sm:$0xff]  }
 0x211   : > { %1983 = vmatprep.subr.bf16.mxu0 %v12535_v32  ;;  %v12608_v32 = vld [vmem:[%s17383_s29 + $0x128] ss:$24 sps:$4 sm:$0xff]  }
 0x214   : > { %1984 = vmatpush1.bf16.msra.mxu0 %v12533_v34  ;;  %v12616_v34 = vld [vmem:[%s17383_s29 + $0x15c] ss:$24 sps:$4 sm:$0xff]  }
 0x215   : > { %1985 = vmatprep.subr.bf16.mxu0 %v12541_v36  ;;  %v12614_v36 = vld [vmem:[%s17383_s29 + $0x158] ss:$24 sps:$4 sm:$0xff]  }
 0x2be   : > { %v1451_v40 = vpop.f32.mrb[4].mxu0 }
 0x2bf   : > { %v1452_v41 = vadd.f32 %v1451_v40, %v1250_v37  ;;  %v1453_v43 = vpop.f32.mrb[5].mxu0  ;;  %v12544_v37 = vld [vmem:[%s17380_s15 + $0x164] ss:$16 sps:$4 sm:$0xff]   ;;  %v12547_v40 = vld [vmem:[%s17380_s15 + $0x18c] ss:$16 sps:$4 sm:$0xff]  }
 0x2c0   : > { %v1454_v44 = vadd.f32 %v1453_v43, %v1254_v38  ;;  %v1455_v45 = vpop.f32.mrb[6].mxu0  ;;  %v12539_v38 = vld [vmem:[%s17380_s15 + $0x168] ss:$16 sps:$4 sm:$0xff]   ;;  %1912 = vmatprep.subr.bf16.mxu1 %v12544_v37  ;;  %v12548_v43 = vld [vmem:[%s17380_s15 + $0x180] ss:$16 sps:$4 sm:$0xff]  }
 0x2c1   : > { %v14072_v46 = vadd.f32 %v1452_v41, %v882_v39  ;;  %v1456_v47 = vpop.f32.mrb[7].mxu0  ;;  %v12542_v39 = vld [vmem:[%s17380_s15 + $0x160] ss:$16 sps:$4 sm:$0xff]   ;;  %v12550_v41 = vld [vmem:[%s17380_s15 + $0x184] ss:$16 sps:$4 sm:$0xff]   ;;  %1986 = vmatpush1.bf16.msra.mxu0 %v12539_v38 }
 0x2c2   : > { %v14074_v48 = vadd.f32 %v1454_v44, %v883_v42  ;;  %v12545_v42 = vld [vmem:[%s17380_s15 + $0x188] ss:$16 sps:$4 sm:$0xff]   ;;  %1913 = vmatpush1.bf16.msra.mxu1 %v12542_v39  ;;  %1987 = vmatprep.subr.bf16.mxu0 %v12547_v40  ;;  %v12553_v44 = vld [vmem:[%s17380_s15 + $0x1ac] ss:$16 sps:$4 sm:$0xff]   ;;  %v12556_v45 = vld [vmem:[%s17380_s15 + $0x1a4] ss:$16 sps:$4 sm:$0xff]  }
 0x2c3   : > { %1914 = vmatprep.subr.bf16.mxu1 %v12550_v41  ;;  %v12551_v47 = vld [vmem:[%s17380_s15 + $0x1a8] ss:$16 sps:$4 sm:$0xff]   ;;  %v12622_v38 = vld [vmem:[%s17383_s29 + $0x18c] ss:$24 sps:$4 sm:$0xff]  }
 0x2c4   : > { %v2149_v49 = vadd.f32 %v14074_v48, %v14072_v46  ;;  %v12611_v37 = vld [vmem:[%s17383_s29 + $0x150] ss:$24 sps:$4 sm:$0xff]   ;;  %v12619_v39 = vld [vmem:[%s17383_s29 + $0x184] ss:$24 sps:$4 sm:$0xff]   ;;  %v12617_v41 = vld [vmem:[%s17383_s29 + $0x180] ss:$24 sps:$4 sm:$0xff]  }
 0x2c5   : > { %1988 = vmatpush1.bf16.msra.mxu0 %v12545_v42  ;;  %v12620_v40 = vld [vmem:[%s17383_s29 + $0x188] ss:$24 sps:$4 sm:$0xff]   ;;  %v12628_v42 = vld [vmem:[%s17383_s29 + $0x1bc] ss:$24 sps:$4 sm:$0xff]  }
 0x2c6   : > { %2150 = vadd.xlane.f32.xlu0 %v2149_v49  ;;  %1915 = vmatpush1.bf16.msra.mxu1 %v12548_v43  ;;  %v12554_v49 = vld [vmem:[%s17380_s15 + $0x1a0] ss:$16 sps:$4 sm:$0xff]   ;;  %v12625_v43 = vld [vmem:[%s17383_s29 + $0x1b4] ss:$24 sps:$4 sm:$0xff]   ;;  %s17390_s15 = smov 64  }
 0x2c7   : > { %1989 = vmatprep.subr.bf16.mxu0 %v12553_v44  ;;  %1916 = vmatprep.subr.bf16.mxu1 %v12556_v45  ;;  %v12626_v44 = vld [vmem:[%s17383_s29 + $0x1b8] ss:$24 sps:$4 sm:$0xff]  }
 0x2c8   : > { %v12623_v45 = vld [vmem:[%s17383_s29 + $0x1b0] ss:$24 sps:$4 sm:$0xff]  }
 0x2c9   : > { %1990 = vmatpush1.bf16.msra.mxu0 %v12551_v47 }
 0x2ca   : > { %1917 = vmatpush1.bf16.msra.mxu1 %v12554_v49  ;;  %1991 = vmatprep.subr.bf16.mxu0 %v12559_v50 }
 0x2cb   : > { %1918 = vmatprep.subr.bf16.mxu1 %v12562_v51 }
 0x2cd   : > { %1992 = vmatpush1.bf16.msra.mxu0 %v12557_v52 }
 0x2ce   : > { %1919 = vmatpush1.bf16.msra.mxu1 %v12560_v53  ;;  %1993 = vmatprep.subr.bf16.mxu0 %v12565_v54 }
 0x2cf   : > { %1920 = vmatprep.subr.bf16.mxu1 %v12568_v55  ;;  %v12631_v55 = vld [vmem:[%s17383_s29 + $0x1e4] ss:$24 sps:$4 sm:$0xff]  }
 0x2d1   : > { %1994 = vmatpush1.bf16.msra.mxu0 %v12563_v56  ;;  %v12629_v56 = vld [vmem:[%s17383_s29 + $0x1e0] ss:$24 sps:$4 sm:$0xff]  }
 0x2d2   : > { %1921 = vmatpush1.bf16.msra.mxu1 %v12566_v59  ;;  %2845 = vmatprep.subr.bf16.mxu0 %v12574_v60  ;;  %v12637_v59 = vld [vmem:[%s17383_s29 + $0x214] ss:$24 sps:$4 sm:$0xff]  }
 0x2d3   : > { %2804 = vmatprep.subr.bf16.mxu1 %v12571_v61  ;;  %v1469_v60 = vld [vmem:[%s14148_s8 + $0x48] sm:$0xff]  ;;  %v1471_v61 = vld [vmem:[%s14148_s8 + $0x58] sm:$0xff] }
 0x2d4   : > { %1996 = vmatmul.mubr.bf16.vlgmr.msra.gmra.mrb[8].mxu0 %v1476_v62  ;;  %v1481_v63 = vpack.c.bf16 %v1471_v61, %v1469_v60 }
 0x2d5   : > { %1923 = vmatmul.mubr.bf16.vlgmr.msra.gmra.mrb[4].mxu1 %v1476_v62  ;;  %2846 = vmatpush1.bf16.msra.mxu0 %v12572_v1  ;;  %v12635_v62 = vld [vmem:[%s17383_s29 + $0x210] ss:$24 sps:$4 sm:$0xff]   ;;  %v1468_v1 = vld [vmem:[%s14148_s8 + $0x40] sm:$0xff] }
 0x2d6   : > { %2805 = vmatpush1.bf16.msra.mxu1 %v12569_v2  ;;  %2847 = vmatprep.subr.bf16.mxu0 %v12580_v4  ;;  %v12638_v2 = vld [vmem:[%s17383_s29 + $0x218] ss:$24 sps:$4 sm:$0xff]  }
 0x2d7   : > { %2806 = vmatprep.subr.bf16.mxu1 %v12577_v7  ;;  %2005 = vmatprep.mubr.bf16.mxu0 %v1479_v8  ;;  %v1470_v4 = vld [vmem:[%s14148_s8 + $0x50] sm:$0xff] }
 0x2d8   : > { %1932 = vmatprep.mubr.bf16.mxu1 %v1479_v8  ;;  %v1480_v7 = vpack.c.bf16 %v1470_v4, %v1468_v1  ;;  %v12643_v8 = vld [vmem:[%s17383_s29 + $0x244] ss:$24 sps:$4 sm:$0xff]  }
 0x2d9   : > { %2848 = vmatpush1.bf16.msra.mxu0 %v12578_v9  ;;  %v12641_v9 = vld [vmem:[%s17383_s29 + $0x240] ss:$24 sps:$4 sm:$0xff]  }
 0x2da   : > { %2807 = vmatpush1.bf16.msra.mxu1 %v12575_v12  ;;  %2849 = vmatprep.subr.bf16.mxu0 %v12586_v13  ;;  %v12649_v12 = vld [vmem:[%s17383_s29 + $0x274] ss:$24 sps:$4 sm:$0xff]  }
 0x2db   : > { %2808 = vmatprep.subr.bf16.mxu1 %v12583_v14  ;;  %v1473_v13 = vld [vmem:[%s14148_s8 + $0x68] sm:$0xff]  ;;  %v1475_v14 = vld [vmem:[%s14148_s8 + $0x78] sm:$0xff] }
 0x2dc   : > { %2006 = vmatmul.mubr.bf16.gmra.mrb[12].mxu0 %v1478_v15 }
 0x2dd   : > { %2850 = vmatpush1.bf16.msra.mxu0 %v12584_v16  ;;  %1933 = vmatmul.mubr.bf16.gmra.mrb[8].mxu1 %v1478_v15  ;;  %v12647_v15 = vld [vmem:[%s17383_s29 + $0x270] ss:$24 sps:$4 sm:$0xff]   ;;  %v1483_v16 = vpack.c.bf16 %v1475_v14, %v1473_v13 }
 0x2de   : > { %2809 = vmatpush1.bf16.msra.mxu1 %v12581_v17  ;;  %2851 = vmatprep.subr.bf16.mxu0 %v12592_v18  ;;  %v12652_v17 = vld [vmem:[%s17383_s29 + $0x27c] ss:$24 sps:$4 sm:$0xff]   ;;  %v1472_v18 = vld [vmem:[%s14148_s8 + $0x60] sm:$0xff] }
 0x2df   : > { %2810 = vmatprep.subr.bf16.mxu1 %v12589_v19  ;;  %2015 = vmatprep.mubr.bf16.mxu0 %v1481_v63  ;;  %v12650_v19 = vld [vmem:[%s17383_s29 + $0x278] ss:$24 sps:$4 sm:$0xff]  }
 0x2e0   : > { %1942 = vmatprep.mubr.bf16.mxu1 %v1481_v63 }
 0x2e1   : > { %2852 = vmatpush1.bf16.msra.mxu0 %v12590_v20  ;;  %v1474_v20 = vld [vmem:[%s14148_s8 + $0x70] sm:$0xff]  ;;  %s17386_s8 = sld [smem:[#allocation28_spill]] }
 0x2e2   : > { %2811 = vmatpush1.bf16.msra.mxu1 %v12587_v21  ;;  %2853 = vmatprep.subr.bf16.mxu0 %v12598_v22  ;;  %v1482_v21 = vpack.c.bf16 %v1474_v20, %v1472_v18  ;;  %v12655_v22 = vld [vmem:[%s17383_s29 + $0x2a4] ss:$24 sps:$4 sm:$0xff]  }
 0x2e3   : > { %2812 = vmatprep.subr.bf16.mxu1 %v12595_v23  ;;  %v12653_v23 = vld [vmem:[%s17383_s29 + $0x2a0] ss:$24 sps:$4 sm:$0xff]  }
 0x2e4   : > { %2016 = vmatmul.mubr.bf16.gmra.mrb[16].mxu0 %v1480_v7 }
 0x2e5   : > { %2854 = vmatpush1.bf16.msra.mxu0 %v12596_v24  ;;  %1943 = vmatmul.mubr.bf16.gmra.mrb[12].mxu1 %v1480_v7  ;;  %v12658_v24 = vld [vmem:[%s17383_s29 + $0x2ac] ss:$24 sps:$4 sm:$0xff]  }
 0x2e6   : > { %2813 = vmatpush1.bf16.msra.mxu1 %v12593_v25  ;;  %2855 = vmatprep.subr.bf16.mxu0 %v12604_v26  ;;  %v12656_v25 = vld [vmem:[%s17383_s29 + $0x2a8] ss:$24 sps:$4 sm:$0xff]   ;;  %v12661_v26 = vld [vmem:[%s17383_s29 + $0x2d4] ss:$24 sps:$4 sm:$0xff]  }
 0x2e7   : > { %2814 = vmatprep.subr.bf16.mxu1 %v12601_v27  ;;  %2025 = vmatprep.mubr.bf16.mxu0 %v1483_v16  ;;  %v12659_v27 = vld [vmem:[%s17383_s29 + $0x2d0] ss:$24 sps:$4 sm:$0xff]   ;;  %s17387_s12 = smov %s17386_s8 }
 0x2e8   : > { %1952 = vmatprep.mubr.bf16.mxu1 %v1483_v16 }
 0x2e9   : > { %2856 = vmatpush1.bf16.msra.mxu0 %v12602_v28  ;;  %v12664_v28 = vld [vmem:[%s17383_s29 + $0x2dc] ss:$24 sps:$4 sm:$0xff]  }
 0x2ea   : > { %2815 = vmatpush1.bf16.msra.mxu1 %v12599_v29  ;;  %2857 = vmatprep.subr.bf16.mxu0 %v12610_v30  ;;  %v12662_v29 = vld [vmem:[%s17383_s29 + $0x2d8] ss:$24 sps:$4 sm:$0xff]   ;;  %v12667_v30 = vld [vmem:[%s17383_s29 + $0x14] ss:$24 sps:$4 sm:$0xff]  }
 0x2eb   : > { %2816 = vmatprep.subr.bf16.mxu1 %v12607_v31 }
 0x2ec   : > { %2026 = vmatmul.mubr.bf16.gmra.mrb[20].mxu0 %v1482_v21 }
 0x2ed   : > { %2858 = vmatpush1.bf16.msra.mxu0 %v12608_v32  ;;  %1953 = vmatmul.mubr.bf16.gmra.mrb[16].mxu1 %v1482_v21 }
 0x2ee   : > { %2817 = vmatpush1.bf16.msra.mxu1 %v12605_v33  ;;  %2859 = vmatprep.subr.bf16.mxu0 %v12616_v34  ;;  %v14498_v33 = vsub.s32 2, %v14033_v3  ;;  %v1548_v34 = vld [vmem:[%s17384_s16] sm:$0xf] }
 0x2ef   : > { %2818 = vmatprep.subr.bf16.mxu1 %v12613_v35  ;;  %v14504_v35 = vsub.s32 3, %v14033_v3 }
 0x2f1   : > { %2860 = vmatpush1.bf16.msra.mxu0 %v12614_v36 }
 0x2f2   : > { %2819 = vmatpush1.bf16.msra.mxu1 %v12611_v37  ;;  %2861 = vmatprep.subr.bf16.mxu0 %v12622_v38  ;;  %v14507_v37 = vrot.slane %v1548_v34, %v14498_v33  ;;  %v14510_v38 = vrot.slane %v1548_v34, %v14504_v35 }
 0x2f3   : > { %2820 = vmatprep.subr.bf16.mxu1 %v12619_v39  ;;  %v14513_v39 = vrot.slane %v1548_v34, %v14042_v6  ;;  %v12676_v34 = vld [vmem:[%s17383_s29 + $0xa4] ss:$24 sps:$4 sm:$0xff]  }
 0x2f5   : > { %2862 = vmatpush1.bf16.msra.mxu0 %v12620_v40 }
 0x2f6   : > { %2821 = vmatpush1.bf16.msra.mxu1 %v12617_v41  ;;  %2863 = vmatprep.subr.bf16.mxu0 %v12628_v42 }
 0x2f7   : > { %2822 = vmatprep.subr.bf16.mxu1 %v12625_v43 }
 0x2f9   : > { %2864 = vmatpush1.bf16.msra.mxu0 %v12626_v44 }
 0x2fa   : > { %2823 = vmatpush1.bf16.msra.mxu1 %v12623_v45  ;;  %2865 = vmatprep.subr.bf16.mxu0 %v12634_v57 }
 0x2fb   : > { %2824 = vmatprep.subr.bf16.mxu1 %v12631_v55 }
 0x2fd   : > { %2866 = vmatpush1.bf16.msra.mxu0 %v12632_v58  ;;  %v2180_v58 = vld [vmem:[%s17316_s25] sm:$0x3] }
 0x2fe   : > { %2825 = vmatpush1.bf16.msra.mxu1 %v12629_v56  ;;  %2867 = vmatprep.subr.bf16.mxu0 %v12640_v0  ;;  %v2185_v4 = vrot.slane %v2180_v58, %v14039_v5  ;;  %v2189_v7 = vrot.slane %v2180_v58, %v14042_v6  ;;  %v12692_v58 = vld [vmem:[%s17383_s29 + $0x1c0] ss:$24 sps:$4 sm:$0xff]  }
 0x2ff   : > { %2826 = vmatprep.subr.bf16.mxu1 %v12637_v59 }
 0x301   : > { %2868 = vmatpush1.bf16.msra.mxu0 %v12638_v2 }
 0x302   : > { %2827 = vmatpush1.bf16.msra.mxu1 %v12635_v62  ;;  %2869 = vmatprep.subr.bf16.mxu0 %v12646_v10 }
 0x303   : > { %2828 = vmatprep.subr.bf16.mxu1 %v12643_v8 }
 0x305   : > { %2870 = vmatpush1.bf16.msra.mxu0 %v12644_v11 }
 0x306   : > { %2829 = vmatpush1.bf16.msra.mxu1 %v12641_v9  ;;  %2871 = vmatprep.subr.bf16.mxu0 %v12652_v17 }
 0x307   : > { %2830 = vmatprep.subr.bf16.mxu1 %v12649_v12 }
 0x309   : > { %2872 = vmatpush1.bf16.msra.mxu0 %v12650_v19 }
 0x30a   : > { %2831 = vmatpush1.bf16.msra.mxu1 %v12647_v15  ;;  %2873 = vmatprep.subr.bf16.mxu0 %v12658_v24 }
 0x30b   : > { %2832 = vmatprep.subr.bf16.mxu1 %v12655_v22 }
 0x30d   : > { %2874 = vmatpush1.bf16.msra.mxu0 %v12656_v25 }
 0x30e   : > { %2833 = vmatpush1.bf16.msra.mxu1 %v12653_v23  ;;  %2875 = vmatprep.subr.bf16.mxu0 %v12664_v28 }
 0x30f   : > { %2834 = vmatprep.subr.bf16.mxu1 %v12661_v26 }
 0x311   : > { %2876 = vmatpush1.bf16.msra.mxu0 %v12662_v29  ;;  %v12670_v29 = vld [vmem:[%s17383_s29 + $0x44] ss:$24 sps:$4 sm:$0xff]  }
 0x312   : > { %2835 = vmatpush1.bf16.msra.mxu1 %v12659_v27  ;;  %v12665_v27 = vld [vmem:[%s17383_s29 + $0x10] ss:$24 sps:$4 sm:$0xff]  }
 0x313   : > { %2886 = vmatprep.subr.bf16.mxu1 %v12667_v30  ;;  %v12668_v30 = vld [vmem:[%s17383_s29 + $0x40] ss:$24 sps:$4 sm:$0xff]  }
 0x353   : > { %v2151_v47 = vpop.xlane.xlu0 %2150 }
 0x354   : > { %v2153_v49 = vmul.f32 0.00390625, %v2151_v47 }
 0x356   : > { %v14405_v50 = vsub.f32 %v14072_v46, %v2153_v49  ;;  %v14408_v51 = vsub.f32 %v14074_v48, %v2153_v49  ;;  %v2166_v49 = vld [vmem:[%s17315_s24] sm:$0x3] }
 0x357   : > { %v2171_v61 = vrot.slane %v2166_v49, %v14039_v5  ;;  %v2175_v62 = vrot.slane %v2166_v49, %v14042_v6  ;;  %v12688_v49 = vld [vmem:[%s17383_s29 + $0x164] ss:$24 sps:$4 sm:$0xff]  }
 0x358   : > { %v2156_v52 = vmul.f32 %v14405_v50, %v14405_v50  ;;  %v2157_v53 = vmul.f32 %v14408_v51, %v14408_v51 }
 0x35a   : > { %v2158_v54 = vadd.f32 %v2157_v53, %v2156_v52 }
 0x35c   : > { %2159 = vadd.xlane.f32.xlu0 %v2158_v54 }
 0x3a7   : > { %v1997_v40 = vpop.f32.mrb[8].mxu0 }
 0x3a8   : > { %v1998_v41 = vadd.f32 %v1997_v40, %v14507_v37  ;;  %v1999_v42 = vpop.f32.mrb[9].mxu0  ;;  %v14516_v43 = vpop.f32.mrb[4].mxu1  ;;  %v12679_v40 = vld [vmem:[%s17383_s29 + $0xd4] ss:$24 sps:$4 sm:$0xff]  }
 0x3a9   : > { %v2000_v44 = vadd.f32 %v1999_v42, %v14510_v38  ;;  %v2001_v45 = vpop.f32.mrb[10].mxu0  ;;  %v1926_v47 = vpop.f32.mrb[5].mxu1  ;;  %v12682_v42 = vld [vmem:[%s17383_s29 + $0x104] ss:$24 sps:$4 sm:$0xff]  }
 0x3aa   : > { %v2002_v52 = vadd.f32 %v2001_v45, %v14507_v37  ;;  %v2003_v53 = vpop.f32.mrb[11].mxu0  ;;  %v14524_v54 = vadd.f32 %v1926_v47, %v14513_v39  ;;  %v14526_v55 = vpop.f32.mrb[6].mxu1  ;;  %v12685_v45 = vld [vmem:[%s17383_s29 + $0x134] ss:$24 sps:$4 sm:$0xff]   ;;  %v12683_v47 = vld [vmem:[%s17383_s29 + $0x130] ss:$24 sps:$4 sm:$0xff]  }
 0x3ab   : > { %v2004_v56 = vadd.f32 %v2003_v53, %v14510_v38  ;;  %v1930_v57 = vpop.f32.mrb[7].mxu1  ;;  %v12691_v53 = vld [vmem:[%s17383_s29 + $0x194] ss:$24 sps:$4 sm:$0xff]  }
 0x3ac   : > { %v14532_v59 = vpack.c.bf16 %v2002_v52, %v1998_v41  ;;  %v14535_v60 = vadd.f32 %v1930_v57, %v14513_v39  ;;  %v12677_v41 = vld [vmem:[%s17383_s29 + $0xd0] ss:$24 sps:$4 sm:$0xff]   ;;  %v12686_v52 = vld [vmem:[%s17383_s29 + $0x160] ss:$24 sps:$4 sm:$0xff]   ;;  %v12694_v57 = vld [vmem:[%s17383_s29 + $0x1c4] ss:$24 sps:$4 sm:$0xff]  }
 0x3ad   : > { %v14539_v63 = vpack.c.bf16 %v2004_v56, %v2000_v44  ;;  %v12680_v44 = vld [vmem:[%s17383_s29 + $0x100] ss:$24 sps:$4 sm:$0xff]   ;;  %v12689_v56 = vld [vmem:[%s17383_s29 + $0x190] ss:$24 sps:$4 sm:$0xff]  }
 0x3af   : > { %v2007_v8 = vpop.f32.mrb[12].mxu0 }
 0x3b0   : > { %v2008_v9 = vadd.f32 %v2007_v8, %v14507_v37  ;;  %v2009_v10 = vpop.f32.mrb[13].mxu0  ;;  %v14546_v11 = vpop.f32.mrb[8].mxu1  ;;  %v12704_v8 = vld [vmem:[%s17383_s29 + $0x280] ss:$24 sps:$4 sm:$0xff]  }
 0x3b1   : > { %v2010_v14 = vadd.f32 %v2009_v10, %v14510_v38  ;;  %v2011_v15 = vpop.f32.mrb[14].mxu0  ;;  %v1936_v16 = vpop.f32.mrb[9].mxu1  ;;  %v12707_v10 = vld [vmem:[%s17383_s29 + $0x2b0] ss:$24 sps:$4 sm:$0xff]  }
 0x3b2   : > { %v2013_v17 = vpop.f32.mrb[15].mxu0  ;;  %v14553_v18 = vpop.f32.mrb[10].mxu1 }
 0x3b3   : > { %v2014_v21 = vadd.f32 %v2013_v17, %v14510_v38  ;;  %v1940_v22 = vpop.f32.mrb[11].mxu1 }
 0x3b4   : > { %v14559_v24 = vadd.f32 %v1940_v22, %v14513_v39 }
 0x3b5   : > { %v14566_v28 = vpack.c.bf16 %v2014_v21, %v2010_v14 }
 0x3b7   : > { %v2017_v14 = vpop.f32.mrb[16].mxu0 }
 0x3e9   : > { %v2160_v31 = vpop.xlane.xlu0 %2159 }
 0x3ea   : > { %v2161_v32 = vmul.f32 0.00390625, %v2160_v31  ;;  %v12673_v31 = vld [vmem:[%s17383_s29 + $0x74] ss:$24 sps:$4 sm:$0xff]  }
 0x3ec   : > { %v2162_v36 = vadd.f32 1e-05, %v2161_v32  ;;  %v12671_v32 = vld [vmem:[%s17383_s29 + $0x70] ss:$24 sps:$4 sm:$0xff]  }
 0x3ee   : > { %13441 = vrsqrt.f32 %v2162_v36  ;;  %v12674_v36 = vld [vmem:[%s17383_s29 + $0xa0] ss:$24 sps:$4 sm:$0xff]  }
 0x3f8   : > { %v13442_v0 = vpop.eup %13441 }
 0x3f9   : > { %v2164_v1 = vmul.f32 %v13442_v0, %v14405_v50  ;;  %v2165_v2 = vmul.f32 %v13442_v0, %v14408_v51  ;;  %v2012_v50 = vadd.f32 %v2011_v15, %v14507_v37  ;;  %v14551_v51 = vadd.f32 %v1936_v16, %v14513_v39  ;;  %v12700_v0 = vld [vmem:[%s17383_s29 + $0x224] ss:$24 sps:$4 sm:$0xff]   ;;  %v14661_v15 = vpop.f32.mrb[12].mxu1 }
 0x3fa   : > { %v2018_v16 = vadd.f32 %v2017_v14, %v14507_v37  ;;  %v1946_v17 = vpop.f32.mrb[13].mxu1 }
 0x3fb   : > { %v2178_v12 = vmul.f32 %v2171_v61, %v2164_v1  ;;  %v2179_v13 = vmul.f32 %v2175_v62, %v2165_v2  ;;  %v14556_v23 = vpack.c.bf16 %v2012_v50, %v2008_v9  ;;  %v12697_v61 = vld [vmem:[%s17383_s29 + $0x1f4] ss:$24 sps:$4 sm:$0xff]   ;;  %v12695_v62 = vld [vmem:[%s17383_s29 + $0x1f0] ss:$24 sps:$4 sm:$0xff]   ;;  %v12698_v1 = vld [vmem:[%s17383_s29 + $0x220] ss:$24 sps:$4 sm:$0xff]   ;;  %v14666_v21 = vadd.f32 %v1946_v17, %v14513_v39 }
 0x3fc   : > { %v12703_v2 = vld [vmem:[%s17383_s29 + $0x254] ss:$24 sps:$4 sm:$0xff]   ;;  %v2019_v50 = vpop.f32.mrb[17].mxu0  ;;  %v14668_v22 = vpop.f32.mrb[14].mxu1 }
 0x3fd   : > { %v2192_v19 = vadd.f32 %v2185_v4, %v2178_v12  ;;  %v2193_v20 = vadd.f32 %v2189_v7, %v2179_v13  ;;  %v12701_v4 = vld [vmem:[%s17383_s29 + $0x250] ss:$24 sps:$4 sm:$0xff]   ;;  %v12706_v7 = vld [vmem:[%s17383_s29 + $0x284] ss:$24 sps:$4 sm:$0xff]   ;;  %v12709_v9 = vld [vmem:[%s17383_s29 + $0x2b4] ss:$24 sps:$4 sm:$0xff]  }
 0x3fe   : > { %v12712_v12 = vld [vmem:[%s17383_s29 + $0x2e4] ss:$24 sps:$4 sm:$0xff]   ;;  %v12710_v13 = vld [vmem:[%s17383_s29 + $0x2e0] ss:$24 sps:$4 sm:$0xff]  }
 0x3ff   : > { %v14561_v25 = vpack.c.bf16 %v2192_v19, %v2192_v19  ;;  %v2195_v26 = vpack.c.bf16 %v2193_v20, %v2193_v20  ;;  %v2020_v19 = vadd.f32 %v2019_v50, %v14510_v38  ;;  %v2021_v20 = vpop.f32.mrb[18].mxu0 }
 0x401   : > { %2836 = vmatprep.mubr.bf16.mxu1 %v2195_v26  ;;  %2877 = vmatprep.mubr.bf16.mxu0 %v2195_v26 }
 0x402   : > { %2837 = vmatmul.mubr.bf16.vlgmr.msra.gmra.mrb[20].mxu1 %v14561_v25  ;;  %2878 = vmatmul.mubr.bf16.vlgmr.msra.gmra.mrb[24].mxu0 %v14561_v25 }
 0x403   : > { %2887 = vmatpush1.bf16.msra.mxu1 %v12665_v27  ;;  %2918 = vmatprep.mubr.bf16.mxu1 %v2195_v26  ;;  %v2022_v26 = vadd.f32 %v2021_v20, %v14507_v37  ;;  %v2023_v27 = vpop.f32.mrb[19].mxu0 }
 0x404   : > { %2888 = vmatprep.subr.bf16.mxu1 %v12670_v29  ;;  %v1950_v29 = vpop.f32.mrb[15].mxu1 }
 0x407   : > { %2889 = vmatpush1.bf16.msra.mxu1 %v12668_v30  ;;  %v14673_v30 = vadd.f32 %v1950_v29, %v14513_v39 }
 0x408   : > { %2890 = vmatprep.subr.bf16.mxu1 %v12673_v31  ;;  %v14675_v31 = vpack.c.bf16 %v2022_v26, %v2018_v16  ;;  %v13644_v16 = vmov 0.0  }
 0x409   : > { %11788 = vmatprep.subr.bf16.mxu0 %v13644_v16  ;;  %11792 = vmatprep.mubr.msk.bf16.mxu0 %vm13645_vm2, %v13644_v16 }
 0x40b   : > { %2891 = vmatpush1.bf16.msra.mxu1 %v12671_v32 }
 0x40c   : > { %2892 = vmatprep.subr.bf16.mxu1 %v12676_v34  ;;  %v2027_v34 = vpop.f32.mrb[20].mxu0 }
 0x40f   : > { %2893 = vmatpush1.bf16.msra.mxu1 %v12674_v36  ;;  %v14679_v36 = vpop.f32.mrb[16].mxu1 }
 0x410   : > { %2894 = vmatprep.subr.bf16.mxu1 %v12679_v40  ;;  %v2028_v40 = vadd.f32 %v2027_v34, %v14507_v37 }
 0x413   : > { %2895 = vmatpush1.bf16.msra.mxu1 %v12677_v41  ;;  %v2029_v41 = vpop.f32.mrb[21].mxu0 }
 0x414   : > { %2896 = vmatprep.subr.bf16.mxu1 %v12682_v42  ;;  %v1956_v42 = vpop.f32.mrb[17].mxu1 }
 0x417   : > { %2897 = vmatpush1.bf16.msra.mxu1 %v12680_v44  ;;  %v2030_v44 = vadd.f32 %v2029_v41, %v14510_v38 }
 0x418   : > { %2898 = vmatprep.subr.bf16.mxu1 %v12685_v45  ;;  %v2031_v45 = vpop.f32.mrb[22].mxu0 }
 0x41b   : > { %2899 = vmatpush1.bf16.msra.mxu1 %v12683_v47  ;;  %v14684_v47 = vadd.f32 %v1956_v42, %v14513_v39 }
 0x41c   : > { %2900 = vmatprep.subr.bf16.mxu1 %v12688_v49  ;;  %v14686_v49 = vpop.f32.mrb[18].mxu1 }
 0x41f   : > { %2901 = vmatpush1.bf16.msra.mxu1 %v12686_v52  ;;  %v2032_v52 = vadd.f32 %v2031_v45, %v14507_v37 }
 0x420   : > { %2902 = vmatprep.subr.bf16.mxu1 %v12691_v53  ;;  %v2033_v53 = vpop.f32.mrb[23].mxu0 }
 0x423   : > { %2903 = vmatpush1.bf16.msra.mxu1 %v12689_v56  ;;  %v1960_v56 = vpop.f32.mrb[19].mxu1 }
 0x424   : > { %2904 = vmatprep.subr.bf16.mxu1 %v12694_v57  ;;  %v2034_v57 = vadd.f32 %v2033_v53, %v14510_v38 }
 0x427   : > { %2905 = vmatpush1.bf16.msra.mxu1 %v12692_v58  ;;  %v14691_v58 = vadd.f32 %v1960_v56, %v14513_v39 }
 0x428   : > { %2906 = vmatprep.subr.bf16.mxu1 %v12697_v61  ;;  %v14693_v61 = vpack.c.bf16 %v2032_v52, %v2028_v40 }
 0x42b   : > { %2907 = vmatpush1.bf16.msra.mxu1 %v12695_v62  ;;  %v14695_v62 = vpack.c.bf16 %v2034_v57, %v2030_v44 }
 0x42c   : > { %2908 = vmatprep.subr.bf16.mxu1 %v12700_v0  ;;  %v14700_v0 = vld [vmem:[%s17385_s7] sm:$0x3f] }
 0x42d   : > { %v2305_v37 = vrot.slane %v14700_v0, %v14498_v33 }
 0x42f   : > { %2909 = vmatpush1.bf16.msra.mxu1 %v12698_v1  ;;  %v2297_v1 = vrot.slane %v14700_v0, %v14039_v5 }
 0x430   : > { %2910 = vmatprep.subr.bf16.mxu1 %v12703_v2 }
 0x433   : > { %2911 = vmatpush1.bf16.msra.mxu1 %v12701_v4 }
 0x434   : > { %2912 = vmatprep.subr.bf16.mxu1 %v12706_v7 }
 0x437   : > { %2913 = vmatpush1.bf16.msra.mxu1 %v12704_v8 }
 0x438   : > { %2914 = vmatprep.subr.bf16.mxu1 %v12709_v9 }
 0x43b   : > { %2915 = vmatpush1.bf16.msra.mxu1 %v12707_v10 }
 0x43c   : > { %2916 = vmatprep.subr.bf16.mxu1 %v12712_v12 }
 0x43f   : > { %2917 = vmatpush1.bf16.msra.mxu1 %v12710_v13 }
 0x440   : > { %11858 = vmatprep.subr.bf16.mxu1 %v13644_v16 }
 0x442   : > { %2919 = vmatmul.mubr.bf16.vlgmr.msra.gmra.mrb[24].mxu1 %v14561_v25  ;;  %v2024_v25 = vadd.f32 %v2023_v27, %v14510_v38  ;;  %v2312_v27 = vsub.s32 4, %v14033_v3 }
 0x443   : > { %11862 = vmatprep.mubr.msk.bf16.mxu1 %vm13645_vm2, %v13644_v16 }
 0x444   : > { %v14677_v32 = vpack.c.bf16 %v2024_v25, %v2020_v19  ;;  %v2313_v34 = vrot.slane %v14700_v0, %v2312_v27 }
 0x4d5   : > { %v2838_v2 = vpop.f32.mrb[20].mxu1  ;;  %v2879_v38 = vpop.f32.mrb[24].mxu0 }
 0x4d6   : > { %v2839_v4 = vadd.f32 %v2838_v2, %v2297_v1  ;;  %v14706_v39 = vpop.f32.mrb[21].mxu1  ;;  %v14708_v7 = vpop.f32.mrb[25].mxu0  ;;  %v2880_v8 = vadd.f32 %v2879_v38, %v2305_v37 }
 0x4d7   : > { %v2842_v9 = vpop.f32.mrb[22].mxu1  ;;  %v2883_v10 = vpop.f32.mrb[26].mxu0 }
 0x4d8   : > { %v14710_v12 = vpack.c.bf16 %v2839_v4, %v2839_v4  ;;  %v2884_v13 = vpop.f32.mrb[27].mxu0  ;;  %2931 = vxpose.xlu1.b32.start.end [1/1] (short) %v2880_v8, 128  ;;  %v2843_v14 = vpop.f32.mrb[23].mxu1 }
 0x4da   : > { %3119 = vrot.lane.b32.xlu0 %v14710_v12, %s17336_s4 }
 0x515   : > { %v2920_v50 = vpop.f32.mrb[24].mxu1 }
 0x516   : > { %v14720_v17 = vpop.f32.mrb[25].mxu1  ;;  %v2921_v41 = vadd.f32 %v2920_v50, %v2313_v34 }
 0x517   : > { %v2924_v19 = vpop.f32.mrb[26].mxu1 }
 0x518   : > { %v2925_v20 = vpop.f32.mrb[27].mxu1  ;;  %v14727_v45 = vpack.c.bf16 %v2921_v41, %v2921_v41 }
 0x51a   : > { %v3072_v52 = vsel %vm3070_vm4, %v14727_v45, 0 }
 0x558   : > { %v2947_v26 = vpop.trf.xlu1 }
 0x55c   : > { %v2948_v29 = vpop.trf.xlu1 }
 0x55d   : > { %v2995_v25 = vpack.c.bf16 %v2948_v29, %v2947_v26 }
 0x55f   : > { %11789 = vmatpush3.bf16.msra.mxu0 %v2995_v25 }
 0x560   : > { %v2949_v40 = vpop.trf.xlu1  ;;  %11790 = vmatprep.subr.bf16.mxu0 %v13644_v16 }
 0x564   : > { %v2950_v42 = vpop.trf.xlu1 }
 0x565   : > { %v2996_v44 = vpack.c.bf16 %v2950_v42, %v2949_v40 }
 0x567   : > { %11791 = vmatpush3.bf16.msra.mxu0 %v2996_v44 }
 0x568   : > { %11796 = vmatprep.subr.bf16.mxu0 %v13644_v16  ;;  %v2951_v2 = vpop.trf.xlu1 }
 0x56a   : > { %11793 = vmatmul.mubr.msk.bf16.vlgmr.msra.gmra.mrb[28].mxu0 %vm3011_vm3, %v14710_v12 }
 0x56b   : > { %11797 = vmatpush3.bf16.msra.mxu0 %v3072_v52  ;;  %11798 = vmatprep.mubr.msk.bf16.mxu0 %vm13645_vm2, %v13644_v16  ;;  %v3120_v52 = vpop.permute.xlu0 %3119 }
 0x56c   : > { %11802 = vmatprep.subr.bf16.mxu0 %v13644_v16  ;;  %v2952_v38 = vpop.trf.xlu1 }
 0x56d   : > { %v2997_v42 = vpack.c.bf16 %v2952_v38, %v2951_v2 }
 0x570   : > { %v2953_v4 = vpop.trf.xlu1 }
 0x574   : > { %v2954_v8 = vpop.trf.xlu1 }
 0x575   : > { %v2998_v44 = vpack.c.bf16 %v2954_v8, %v2953_v4 }
 0x578   : > { %v2955_v9 = vpop.trf.xlu1 }
 0x57c   : > { %v2956_v10 = vpop.trf.xlu1 }
 0x580   : > { %v2957_v13 = vpop.trf.xlu1 }
 0x584   : > { %v2958_v14 = vpop.trf.xlu1 }
 0x588   : > { %v14740_v50 = vpop.trf.xlu1 }
 0x58c   : > { %v14742_v19 = vpop.trf.xlu1 }
 0x590   : > { %v14744_v20 = vpop.trf.xlu1 }
 0x594   : > { %v14746_v26 = vpop.trf.xlu1 }
 0x63d   : > { %v3049_v53 = vpop.f32.mrb[28].mxu0 }
 0x63e   : > { %v11794_v56 = vpop.f32.mrb[29].mxu0  ;;  %v3056_v57 = vsel %vm3055_vm5, %v3049_v53, -inf }
 0x63f   : > { %3057 = vmax.xlane.f32.xlu1 %v3056_v57  ;;  %v3052_v1 = vpop.f32.mrb[30].mxu0 }
 0x640   : > { %v11795_v37 = vpop.f32.mrb[31].mxu0 }
 0x650   : > { %3290 = vrot.lane.b32.xlu1 %v14727_v45, %s17334_s6 }
 0x6cc   : > { %v3058_v29 = vpop.xlane.xlu1 %3057 }
 0x6cd   : > { %v3059_v25 = vsub.f32 %v3049_v53, %v3058_v29 }
 0x6cf   : > { %v3060_v34 = vmul.f32 1.442695, %v3059_v25 }
 0x6d1   : > { %13443 = vpow2.f32 %v3060_v34 }
 0x6db   : > { %v14748_v40 = vpop.eup %13443 }
 0x6dc   : > { %v3066_v41 = vpack.c.bf16 %v14748_v40, %v14748_v40 }
 0x6de   : > { %11799 = vmatmul.mubr.msk.bf16.vlgmr.msra.gmra.mrb[32].mxu0 %vm3055_vm5, %v3066_v41 }
 0x6df   : > { %11803 = vmatpush3.bf16.msra.mxu0 %v2997_v42  ;;  %11806 = vmatprep.mubr.msk.bf16.mxu0 %vm13645_vm2, %v13644_v16 }
 0x6e0   : > { %11804 = vmatprep.subr.bf16.mxu0 %v13644_v16 }
 0x6e3   : > { %11805 = vmatpush3.bf16.msra.mxu0 %v2998_v44 }
 0x6e4   : > { %11810 = vmatprep.subr.bf16.mxu0 %v13644_v16 }
 0x6e6   : > { %11807 = vmatmul.mubr.msk.bf16.vlgmr.msra.gmra.mrb[36].mxu0 %vm3011_vm3, %v3120_v52 }
 0x6e7   : > { %11812 = vmatprep.mubr.msk.bf16.mxu0 %vm13645_vm2, %v13644_v16 }
 0x7b1   : > { %v14760_v53 = vpop.f32.mrb[32].mxu0 }
 0x7b2   : > { %v11800_v56 = vpop.f32.mrb[33].mxu0 }
 0x7b3   : > { %v3111_v57 = vpop.f32.mrb[34].mxu0  ;;  %v2999_v56 = vpack.c.bf16 %v2956_v10, %v2955_v9 }
 0x7b4   : > { %v11801_v1 = vpop.f32.mrb[35].mxu0  ;;  %v3000_v57 = vpack.c.bf16 %v2958_v14, %v2957_v13 }
 0x7b5   : > { %v3291_v1 = vpop.permute.xlu1 %3290 }
 0x7b9   : > { %v3158_v37 = vpop.f32.mrb[36].mxu0 }
 0x7ba   : > { %v11808_v2 = vpop.f32.mrb[37].mxu0  ;;  %v3164_v38 = vsel %vm3055_vm5, %v3158_v37, -inf }
 0x7bb   : > { %3165 = vmax.xlane.f32.xlu0 %v3164_v38  ;;  %v3161_v4 = vpop.f32.mrb[38].mxu0  ;;  %v3296_v2 = vsel %vm3070_vm4, %v3291_v1, 0 }
 0x7bc   : > { %v11809_v8 = vpop.f32.mrb[39].mxu0 }
 0x7d1   : > { %3176 = vrot.lane.b32.xlu0 %v14727_v45, %s17336_s4 }
 0x7d5   : > { %3234 = vrot.lane.b32.xlu0 %v14710_v12, %s17334_s6 }
 0x848   : > { %v3166_v29 = vpop.xlane.xlu0 %3165 }
 0x849   : > { %v3167_v25 = vsub.f32 %v3158_v37, %v3166_v29 }
 0x84b   : > { %v3168_v34 = vmul.f32 1.442695, %v3167_v25 }
 0x84c   : > { %v3177_v41 = vpop.permute.xlu0 %3176 }
 0x84d   : > { %13445 = vpow2.f32 %v3168_v34  ;;  %v3182_v42 = vsel %vm3070_vm4, %v3177_v41, 0  ;;  %v2301_v34 = vrot.slane %v14700_v0, %v14042_v6 }
 0x84e   : > { %11811 = vmatpush3.bf16.msra.mxu0 %v3182_v42 }
 0x84f   : > { %11816 = vmatprep.subr.bf16.mxu0 %v13644_v16  ;;  %v2841_v41 = vadd.f32 %v14706_v39, %v2301_v34 }
 0x850   : > { %v3235_v37 = vpop.permute.xlu0 %3234 }
 0x851   : > { %v14793_v42 = vpack.c.bf16 %v2841_v41, %v2841_v41 }
 0x857   : > { %v14769_v44 = vpop.eup %13445 }
 0x858   : > { %v3174_v52 = vpack.c.bf16 %v14769_v44, %v14769_v44 }
 0x85a   : > { %11813 = vmatmul.mubr.msk.bf16.vlgmr.msra.gmra.mrb[40].mxu0 %vm3055_vm5, %v3174_v52  ;;  %v2309_v52 = vrot.slane %v14700_v0, %v14504_v35 }
 0x85b   : > { %11817 = vmatpush3.bf16.msra.mxu0 %v2999_v56  ;;  %11820 = vmatprep.mubr.msk.bf16.mxu0 %vm13645_vm2, %v13644_v16 }
 0x85c   : > { %11818 = vmatprep.subr.bf16.mxu0 %v13644_v16  ;;  %v2882_v56 = vadd.f32 %v14708_v7, %v2309_v52  ;;  %v3002_v7 = vpack.c.bf16 %v14746_v26, %v14744_v20 }
 0x85f   : > { %11819 = vmatpush3.bf16.msra.mxu0 %v3000_v57 }
 0x860   : > { %11824 = vmatprep.subr.bf16.mxu0 %v13644_v16 }
 0x862   : > { %11821 = vmatmul.mubr.msk.bf16.vlgmr.msra.gmra.mrb[44].mxu0 %vm3011_vm3, %v3235_v37 }
 0x863   : > { %11825 = vmatpush3.bf16.msra.mxu0 %v3296_v2  ;;  %11826 = vmatprep.mubr.msk.bf16.mxu0 %vm13645_vm2, %v13644_v16 }
 0x864   : > { %11830 = vmatprep.subr.bf16.mxu0 %v13644_v16 }
 0x92d   : > { %v14783_v9 = vpop.f32.mrb[40].mxu0 }
 0x92e   : > { %v11814_v10 = vpop.f32.mrb[41].mxu0 }
 0x92f   : > { %v3221_v38 = vpop.f32.mrb[42].mxu0 }
 0x930   : > { %v11815_v13 = vpop.f32.mrb[43].mxu0 }
 0x935   : > { %v3273_v14 = vpop.f32.mrb[44].mxu0 }
 0x936   : > { %v11822_v4 = vpop.f32.mrb[45].mxu0  ;;  %v3279_v8 = vsel %vm3055_vm5, %v3273_v14, -inf }
 0x937   : > { %3280 = vmax.xlane.f32.xlu0 %v3279_v8  ;;  %v3276_v29 = vpop.f32.mrb[46].mxu0 }
 0x938   : > { %v11823_v25 = vpop.f32.mrb[47].mxu0 }
 0x94d   : > { %3348 = vrot.lane.b32.xlu0 %v14710_v12, %s17339_s1 }
 0x951   : > { %3404 = vrot.lane.b32.xlu0 %v14727_v45, %s17339_s1  ;;  %v3001_v45 = vpack.c.bf16 %v14742_v19, %v14740_v50 }
 0x955   : > { %3566 = vrot.lane.b32.xlu0 %v14793_v42, %s17336_s4 }
 0x973   : > { %2963 = vxpose.xlu0.b32.start.end [1/1] (short) %v2882_v56, 128 }
 0x9c4   : > { %v3281_v57 = vpop.xlane.xlu0 %3280 }
 0x9c5   : > { %v3282_v1 = vsub.f32 %v3273_v14, %v3281_v57 }
 0x9c7   : > { %v3283_v37 = vmul.f32 1.442695, %v3282_v1 }
 0x9c8   : > { %v3349_v2 = vpop.permute.xlu0 %3348 }
 0x9c9   : > { %13447 = vpow2.f32 %v3283_v37 }
 0x9cc   : > { %v3405_v10 = vpop.permute.xlu0 %3404 }
 0x9cd   : > { %v3410_v38 = vsel %vm3070_vm4, %v3405_v10, 0 }
 0x9d0   : > { %v3567_v50 = vpop.permute.xlu0 %3566 }
 0x9d3   : > { %v14800_v12 = vpop.eup %13447 }
 0x9d4   : > { %v3289_v39 = vpack.c.bf16 %v14800_v12, %v14800_v12 }
 0x9d6   : > { %11827 = vmatmul.mubr.msk.bf16.vlgmr.msra.gmra.mrb[48].mxu0 %vm3055_vm5, %v3289_v39 }
 0x9d7   : > { %11831 = vmatpush3.bf16.msra.mxu0 %v3001_v45  ;;  %11834 = vmatprep.mubr.msk.bf16.mxu0 %vm13645_vm2, %v13644_v16 }
 0x9d8   : > { %11832 = vmatprep.subr.bf16.mxu0 %v13644_v16 }
 0x9db   : > { %11833 = vmatpush3.bf16.msra.mxu0 %v3002_v7 }
 0x9dc   : > { %11838 = vmatprep.subr.bf16.mxu0 %v13644_v16 }
 0x9de   : > { %11835 = vmatmul.mubr.msk.bf16.vlgmr.msra.gmra.mrb[52].mxu0 %vm3011_vm3, %v3349_v2 }
 0x9df   : > { %11839 = vmatpush3.bf16.msra.mxu0 %v3410_v38  ;;  %11840 = vmatprep.mubr.msk.bf16.mxu0 %vm13645_vm2, %v13644_v16 }
 0x9e0   : > { %11844 = vmatprep.subr.bf16.mxu0 %v13644_v16 }
 0x9f3   : > { %v14818_v19 = vpop.trf.xlu0 }
 0x9f7   : > { %v14820_v13 = vpop.trf.xlu0 }
 0x9f8   : > { %v3003_v20 = vpack.c.bf16 %v14820_v13, %v14818_v19 }
 0x9fb   : > { %v14824_v26 = vpop.trf.xlu0 }
 0x9ff   : > { %v14826_v14 = vpop.trf.xlu0 }
 0xa00   : > { %v3004_v4 = vpack.c.bf16 %v14826_v14, %v14824_v26 }
 0xa03   : > { %v2983_v8 = vpop.trf.xlu0 }
 0xa07   : > { %v2984_v29 = vpop.trf.xlu0 }
 0xa08   : > { %v3005_v25 = vpack.c.bf16 %v2984_v29, %v2983_v8 }
 0xa0a   : > { %11859 = vmatpush3.bf16.msra.mxu1 %v3005_v25 }
 0xa0b   : > { %v2985_v34 = vpop.trf.xlu0  ;;  %11860 = vmatprep.subr.bf16.mxu1 %v13644_v16 }
 0xa0f   : > { %v2986_v41 = vpop.trf.xlu0 }
 0xa10   : > { %v3006_v52 = vpack.c.bf16 %v2986_v41, %v2985_v34 }
 0xa12   : > { %11861 = vmatpush3.bf16.msra.mxu1 %v3006_v52 }
 0xa13   : > { %11872 = vmatprep.subr.bf16.mxu1 %v13644_v16  ;;  %v2987_v56 = vpop.trf.xlu0 }
 0xa15   : > { %11863 = vmatmul.mubr.msk.bf16.vlgmr.msra.gmra.mrb[28].mxu1 %vm3011_vm3, %v3567_v50 }
 0xa16   : > { %11876 = vmatprep.mubr.msk.bf16.mxu1 %vm13645_vm2, %v13644_v16 }
 0xa17   : > { %v2988_v57 = vpop.trf.xlu0 }
 0xa18   : > { %v3007_v1 = vpack.c.bf16 %v2988_v57, %v2987_v56 }
 0xa1a   : > { %11873 = vmatpush3.bf16.msra.mxu1 %v3007_v1 }
 0xa1b   : > { %v2989_v37 = vpop.trf.xlu0  ;;  %11874 = vmatprep.subr.bf16.mxu1 %v13644_v16 }
 0xa1f   : > { %v2990_v39 = vpop.trf.xlu0 }
 0xa20   : > { %v3008_v45 = vpack.c.bf16 %v2990_v39, %v2989_v37  ;;  %v3285_v37 = vsel %vm3055_vm5, %v14800_v12, 0.0  ;;  %v2316_v12 = vsub.s32 5, %v14033_v3 }
 0xa22   : > { %11875 = vmatpush3.bf16.msra.mxu1 %v3008_v45 }
 0xa23   : > { %11886 = vmatprep.subr.bf16.mxu1 %v13644_v16  ;;  %v2991_v39 = vpop.trf.xlu0 }
 0xa27   : > { %v2992_v45 = vpop.trf.xlu0 }
 0xaa9   : > { %v14837_v2 = vpop.f32.mrb[48].mxu0 }
 0xaaa   : > { %v11828_v7 = vpop.f32.mrb[49].mxu0 }
 0xaab   : > { %v3335_v10 = vpop.f32.mrb[50].mxu0  ;;  %v2993_v7 = vpop.trf.xlu0 }
 0xaac   : > { %v11829_v38 = vpop.f32.mrb[51].mxu0 }
 0xab1   : > { %v3387_v50 = vpop.f32.mrb[52].mxu0 }
 0xab2   : > { %v11836_v8 = vpop.f32.mrb[53].mxu0  ;;  %v3393_v29 = vsel %vm3055_vm5, %v3387_v50, -inf }
 0xab3   : > { %3394 = vmax.xlane.f32.xlu1 %v3393_v29  ;;  %v3390_v25 = vpop.f32.mrb[54].mxu0  ;;  %v3009_v8 = vpack.c.bf16 %v2992_v45, %v2991_v39 }
 0xab4   : > { %v11837_v34 = vpop.f32.mrb[55].mxu0  ;;  %v2994_v25 = vpop.trf.xlu0 }
 0xac4   : > { %3680 = vrot.lane.b32.xlu1 %v14793_v42, %s17334_s6 }
 0xac8   : > { %3793 = vrot.lane.b32.xlu1 %v14793_v42, %s17339_s1 }
 0xae8   : > { %v14844_v41 = vpop.f32.mrb[28].mxu1 }
 0xae9   : > { %v11864_v52 = vpop.f32.mrb[29].mxu1  ;;  %v3611_v56 = vsel %vm3055_vm5, %v14844_v41, -inf }
 0xaea   : > { %3612 = vmax.xlane.f32.xlu0 %v3611_v56  ;;  %v3608_v57 = vpop.f32.mrb[30].mxu1  ;;  %v3010_v52 = vpack.c.bf16 %v2994_v25, %v2993_v7 }
 0xaeb   : > { %v11865_v1 = vpop.f32.mrb[31].mxu1 }
 0xaee   : > { %3286 = vadd.xlane.f32.xlu0 %v3285_v37 }
 0xb40   : > { %v3395_v10 = vpop.xlane.xlu1 %3394 }
 0xb41   : > { %v3396_v38 = vsub.f32 %v3387_v50, %v3395_v10  ;;  %v2317_v50 = vrot.slane %v14700_v0, %v2316_v12  ;;  %v3062_v0 = vsel %vm3055_vm5, %v14748_v40, 0.0 }
 0xb43   : > { %v3397_v29 = vmul.f32 1.442695, %v3396_v38  ;;  %v2923_v39 = vadd.f32 %v14720_v17, %v2317_v50 }
 0xb44   : > { %v3681_v34 = vpop.permute.xlu1 %3680 }
 0xb45   : > { %13449 = vpow2.f32 %v3397_v29  ;;  %11877 = vmatmul.mubr.msk.bf16.vlgmr.msra.gmra.mrb[32].mxu1 %vm3011_vm3, %v3681_v34  ;;  %v2930_v45 = vpack.c.bf16 %v2923_v39, %v2923_v39 }
 0xb46   : > { %11887 = vmatpush3.bf16.msra.mxu1 %v3009_v8  ;;  %11890 = vmatprep.mubr.msk.bf16.mxu1 %vm13645_vm2, %v13644_v16 }
 0xb47   : > { %11888 = vmatprep.subr.bf16.mxu1 %v13644_v16  ;;  %v3520_v17 = vsel %vm3070_vm4, %v2930_v45, 0 }
 0xb48   : > { %v3794_v56 = vpop.permute.xlu1 %3793 }
 0xb4a   : > { %11889 = vmatpush3.bf16.msra.mxu1 %v3010_v52 }
 0xb4d   : > { %11891 = vmatmul.mubr.msk.bf16.vlgmr.msra.gmra.mrb[36].mxu1 %vm3011_vm3, %v3794_v56 }
 0xb4f   : > { %v13450_v57 = vpop.eup %13449 }
 0xb50   : > { %v3399_v1 = vsel %vm3055_vm5, %v13450_v57, 0.0  ;;  %v3403_v37 = vpack.c.bf16 %v13450_v57, %v13450_v57 }
 0xb51   : > { %3400 = vadd.xlane.f32.xlu0 %v3399_v1 }
 0xb52   : > { %11841 = vmatmul.mubr.msk.bf16.vlgmr.msra.gmra.mrb[56].mxu0 %vm3055_vm5, %v3403_v37 }
 0xb53   : > { %11845 = vmatpush3.bf16.msra.mxu0 %v3003_v20  ;;  %11848 = vmatprep.mubr.msk.bf16.mxu0 %vm13645_vm2, %v13644_v16 }
 0xb54   : > { %11846 = vmatprep.subr.bf16.mxu0 %v13644_v16 }
 0xb55   : > { %3063 = vadd.xlane.f32.xlu0 %v3062_v0 }
 0xb57   : > { %11847 = vmatpush3.bf16.msra.mxu0 %v3004_v4 }
 0xb58   : > { %11852 = vmatprep.subr.bf16.mxu0 %v13644_v16 }
 0xb5a   : > { %11849 = vmatmul.mubr.msk.bf16.vlgmr.msra.gmra.mrb[60].mxu0 %vm3011_vm3, %v14793_v42 }
 0xb5b   : > { %11853 = vmatpush3.bf16.msra.mxu0 %v3520_v17  ;;  %11854 = vmatprep.mubr.msk.bf16.mxu0 %vm13645_vm2, %v13644_v16 }
 0xb5c   : > { %11866 = vmatprep.subr.bf16.mxu0 %v13644_v16 }
 0xb77   : > { %v3613_v40 = vpop.xlane.xlu0 %3612 }
 0xb7b   : > { %v3287_v19 = vpop.xlane.xlu0 %3286 }
 0xbde   : > { %v14880_v13 = vpop.xlane.xlu0 %3400 }
 0xbe2   : > { %v3064_v20 = vpop.xlane.xlu0 %3063 }
 0xbe3   : > { %13451 = vrcp.f32 %v3064_v20 }
 0xbed   : > { %v13452_v26 = vpop.eup %13451 }
 0xbee   : > { %v3114_v14 = vmul.f32 %v13452_v26, %v14760_v53  ;;  %v3614_v26 = vsub.f32 %v14844_v41, %v3613_v40 }
 0xbf0   : > { %v3115_v4 = vpack.c.bf16 %v3114_v14, %v3114_v14  ;;  %v3615_v14 = vmul.f32 1.442695, %v3614_v26 }
 0xbf2   : > { %3117 = vst.msk [vmem:[#allocation2] sm:$0xf] %vm3116_vm6, %v3115_v4  ;;  %13453 = vpow2.f32 %v3615_v14  ;;  %v3170_v4 = vsel %vm3055_vm5, %v14769_v44, 0.0 }
 0xc18   : > { %v3719_v42 = vpop.f32.mrb[32].mxu1 }
 0xc19   : > { %v11878_v7 = vpop.f32.mrb[33].mxu1  ;;  %v3725_v10 = vsel %vm3055_vm5, %v3719_v42, -inf }
 0xc1a   : > { %3726 = vmax.xlane.f32.xlu1 %v3725_v10  ;;  %v3722_v38 = vpop.f32.mrb[34].mxu1  ;;  %v13454_v7 = vpop.eup %13453 }
 0xc1b   : > { %v11879_v8 = vpop.f32.mrb[35].mxu1  ;;  %v3617_v10 = vsel %vm3055_vm5, %v13454_v7, 0.0 }
 0xc20   : > { %v3832_v29 = vpop.f32.mrb[36].mxu1 }
 0xc21   : > { %v11892_v25 = vpop.f32.mrb[37].mxu1  ;;  %v3838_v34 = vsel %vm3055_vm5, %v3832_v29, -inf }
 0xc22   : > { %3839 = vmax.xlane.f32.xlu1 %v3838_v34  ;;  %v3835_v52 = vpop.f32.mrb[38].mxu1 }
 0xc23   : > { %v11893_v56 = vpop.f32.mrb[39].mxu1 }
 0xc25   : > { %v14886_v50 = vpop.f32.mrb[56].mxu0 }
 0xc26   : > { %v11842_v53 = vpop.f32.mrb[57].mxu0 }
 0xc27   : > { %v3449_v57 = vpop.f32.mrb[58].mxu0 }
 0xc28   : > { %v11843_v1 = vpop.f32.mrb[59].mxu0 }
 0xc2d   : > { %v3499_v37 = vpop.f32.mrb[60].mxu0 }
 0xc2e   : > { %v11850_v39 = vpop.f32.mrb[61].mxu0  ;;  %v3505_v0 = vsel %vm3055_vm5, %v3499_v37, -inf }
 0xc2f   : > { %3506 = vmax.xlane.f32.xlu1 %v3505_v0  ;;  %v3502_v17 = vpop.f32.mrb[62].mxu0 }
 0xc30   : > { %v11851_v20 = vpop.f32.mrb[63].mxu0 }
 0xc40   : > { %3623 = vrot.lane.b32.xlu1 %v2930_v45, %s17336_s4 }
 0xc44   : > { %3736 = vrot.lane.b32.xlu1 %v2930_v45, %s17334_s6 }
 0xc48   : > { %3849 = vrot.lane.b32.xlu1 %v2930_v45, %s17339_s1 }
 0xc6c   : > { %3171 = vadd.xlane.f32.xlu1 %v3170_v4 }
 0xc70   : > { %3618 = vadd.xlane.f32.xlu1 %v3617_v10 }
 0xca7   : > { %v3727_v38 = vpop.xlane.xlu1 %3726 }
 0xca8   : > { %v3728_v8 = vsub.f32 %v3719_v42, %v3727_v38 }
 0xcaa   : > { %v3729_v25 = vmul.f32 1.442695, %v3728_v8 }
 0xcac   : > { %13455 = vpow2.f32 %v3729_v25 }
 0xcaf   : > { %v3840_v34 = vpop.xlane.xlu1 %3839 }
 0xcb0   : > { %v3841_v52 = vsub.f32 %v3832_v29, %v3840_v34 }
 0xcb2   : > { %v3842_v56 = vmul.f32 1.442695, %v3841_v52 }
 0xcb4   : > { %13457 = vpow2.f32 %v3842_v56  ;;  %v12713_v56 = vld [vmem:[%s17386_s8] ss:$8 sps:$4 sm:$0xff]   ;;  %s17388_s8 = smov 32  }
 0xcb5   : > { %13459 = vrcp.f32 %v3287_v19 }
 0xcb6   : > { %v13456_v45 = vpop.eup %13455 }
 0xcb7   : > { %v3731_v41 = vsel %vm3055_vm5, %v13456_v45, 0.0  ;;  %v3735_v4 = vpack.c.bf16 %v13456_v45, %v13456_v45  ;;  %v12715_v45 = vld [vmem:[%s17387_s12 + $0x4] ss:$8 sps:$4 sm:$0xff]  }
 0xcb8   : > { %3732 = vadd.xlane.f32.xlu1 %v3731_v41  ;;  %v12718_v41 = vld [vmem:[%s17387_s12 + $0x14] ss:$8 sps:$4 sm:$0xff]   ;;  %4118 = vmatprep.subr.bf16.mxu1 %v12715_v45  ;;  %v12745_v45 = vld [vmem:[%s17387_s12 + $0xa4] ss:$8 sps:$4 sm:$0xff]  }
 0xcb9   : > { %4119 = vmatpush1.bf16.msra.mxu1 %v12713_v56  ;;  %v12743_v56 = vld [vmem:[%s17387_s12 + $0xa0] ss:$8 sps:$4 sm:$0xff]  }
 0xcba   : > { %4120 = vmatprep.subr.bf16.mxu1 %v12718_v41 }
 0xcbc   : > { %v3507_v40 = vpop.xlane.xlu1 %3506 }
 0xcbd   : > { %v3508_v53 = vsub.f32 %v3499_v37, %v3507_v40  ;;  %v3621_v37 = vpack.c.bf16 %v13454_v7, %v13454_v7  ;;  %v12721_v40 = vld [vmem:[%s17387_s12 + $0x24] ss:$8 sps:$4 sm:$0xff]  }
 0xcbe   : > { %v13458_v44 = vpop.eup %13457 }
 0xcbf   : > { %v3509_v57 = vmul.f32 1.442695, %v3508_v53  ;;  %v3844_v1 = vsel %vm3055_vm5, %v13458_v44, 0.0  ;;  %v13460_v42 = vpop.eup %13459  ;;  %v3848_v7 = vpack.c.bf16 %v13458_v44, %v13458_v44  ;;  %v12719_v53 = vld [vmem:[%s17387_s12 + $0x20] ss:$8 sps:$4 sm:$0xff]  }
 0xcc0   : > { %3845 = vadd.xlane.f32.xlu1 %v3844_v1  ;;  %v3624_v0 = vpop.permute.xlu1 %3623  ;;  %v3338_v29 = vmul.f32 %v13460_v42, %v14837_v2  ;;  %v12724_v44 = vld [vmem:[%s17387_s12 + $0x34] ss:$8 sps:$4 sm:$0xff]   ;;  %v12727_v1 = vld [vmem:[%s17387_s12 + $0x44] ss:$8 sps:$4 sm:$0xff]   ;;  %v12725_v42 = vld [vmem:[%s17387_s12 + $0x40] ss:$8 sps:$4 sm:$0xff]  }
 0xcc1   : > { %13461 = vpow2.f32 %v3509_v57  ;;  %v3629_v20 = vsel %vm3070_vm4, %v3624_v0, 0  ;;  %v12722_v57 = vld [vmem:[%s17387_s12 + $0x30] ss:$8 sps:$4 sm:$0xff]  }
 0xcc2   : > { %v11556_v26 = vpack.c.bf16 %v3338_v29, %v3338_v29  ;;  %v12728_v0 = vld [vmem:[%s17387_s12 + $0x50] ss:$8 sps:$4 sm:$0xff]   ;;  %v12733_v29 = vld [vmem:[%s17387_s12 + $0x64] ss:$8 sps:$4 sm:$0xff]  }
 0xcc4   : > { %v3737_v19 = vpop.permute.xlu1 %3736 }
 0xcc5   : > { %v3742_v14 = vsel %vm3070_vm4, %v3737_v19, 0  ;;  %v12739_v19 = vld [vmem:[%s17387_s12 + $0x84] ss:$8 sps:$4 sm:$0xff]  }
 0xcc8   : > { %v3850_v2 = vpop.permute.xlu1 %3849 }
 0xcc9   : > { %v3855_v10 = vsel %vm3070_vm4, %v3850_v2, 0  ;;  %v12740_v2 = vld [vmem:[%s17387_s12 + $0x90] ss:$8 sps:$4 sm:$0xff]  }
 0xccb   : > { %v13462_v39 = vpop.eup %13461 }
 0xccc   : > { %v3515_v17 = vpack.c.bf16 %v13462_v39, %v13462_v39  ;;  %v3511_v38 = vsel %vm3055_vm5, %v13462_v39, 0.0  ;;  %v12730_v39 = vld [vmem:[%s17387_s12 + $0x54] ss:$8 sps:$4 sm:$0xff]  }
 0xcce   : > { %11855 = vmatmul.mubr.msk.bf16.vlgmr.msra.gmra.mrb[64].mxu0 %vm3055_vm5, %v3515_v17  ;;  %v12731_v17 = vld [vmem:[%s17387_s12 + $0x60] ss:$8 sps:$4 sm:$0xff]  }
 0xccf   : > { %11867 = vmatpush3.bf16.msra.mxu0 %v3629_v20  ;;  %11868 = vmatprep.mubr.msk.bf16.mxu0 %vm13645_vm2, %v13644_v16  ;;  %v12736_v20 = vld [vmem:[%s17387_s12 + $0x74] ss:$8 sps:$4 sm:$0xff]  }
 0xcd0   : > { %11880 = vmatprep.subr.bf16.mxu0 %v13644_v16 }
 0xcd1   : > { %3343 = vrot.lane.b32.xlu1 %v11556_v26, %s17334_s6  ;;  %v12734_v26 = vld [vmem:[%s17387_s12 + $0x70] ss:$8 sps:$4 sm:$0xff]   ;;  %s17389_s6 = smov 96  }
 0xcd6   : > { %11869 = vmatmul.mubr.msk.bf16.vlgmr.msra.gmra.mrb[68].mxu0 %vm3055_vm5, %v3621_v37  ;;  %v12737_v37 = vld [vmem:[%s17387_s12 + $0x80] ss:$8 sps:$4 sm:$0xff]  }
 0xcd7   : > { %11881 = vmatpush3.bf16.msra.mxu0 %v3742_v14  ;;  %11882 = vmatprep.mubr.msk.bf16.mxu0 %vm13645_vm2, %v13644_v16  ;;  %v12742_v14 = vld [vmem:[%s17387_s12 + $0x94] ss:$8 sps:$4 sm:$0xff]  }
 0xcd8   : > { %11894 = vmatprep.subr.bf16.mxu0 %v13644_v16 }
 0xcde   : > { %11883 = vmatmul.mubr.msk.bf16.vlgmr.msra.gmra.mrb[72].mxu0 %vm3055_vm5, %v3735_v4 }
 0xcdf   : > { %11895 = vmatpush3.bf16.msra.mxu0 %v3855_v10  ;;  %11896 = vmatprep.mubr.msk.bf16.mxu0 %vm13645_vm2, %v13644_v16 }
 0xce6   : > { %11897 = vmatmul.mubr.msk.bf16.vlgmr.msra.gmra.mrb[76].mxu0 %vm3055_vm5, %v3848_v7 }
 0xcf5   : > { %3512 = vadd.xlane.f32.xlu1 %v3511_v38 }
 0xcf9   : > { %v3172_v8 = vpop.xlane.xlu1 %3171 }
 0xcfa   : > { %13463 = vrcp.f32 %v3172_v8 }
 0xcfd   : > { %v3619_v4 = vpop.xlane.xlu1 %3618 }
 0xd04   : > { %v13464_v25 = vpop.eup %13463 }
 0xd05   : > { %v3224_v34 = vmul.f32 %v13464_v25, %v14783_v9  ;;  %v12716_v9 = vld [vmem:[%s17387_s12 + $0x10] ss:$8 sps:$4 sm:$0xff]  }
 0xd06   : > { %4121 = vmatpush1.bf16.msra.mxu1 %v12716_v9 }
 0xd07   : > { %v11555_v52 = vpack.c.bf16 %v3224_v34, %v3224_v34  ;;  %4122 = vmatprep.subr.bf16.mxu1 %v12721_v40 }
 0xd09   : > { %3229 = vrot.lane.b32.xlu0 %v11555_v52, %s17339_s1  ;;  %s17392_s1 = sld [smem:[#allocation9_spill]] }
 0xd0a   : > { %4123 = vmatpush1.bf16.msra.mxu1 %v12719_v53 }
 0xd0b   : > { %4124 = vmatprep.subr.bf16.mxu1 %v12724_v44 }
 0xd0e   : > { %4125 = vmatpush1.bf16.msra.mxu1 %v12722_v57  ;;  %v12748_v57 = vld [vmem:[%s17387_s12 + $0xb4] ss:$8 sps:$4 sm:$0xff]  }
 0xd0f   : > { %4126 = vmatprep.subr.bf16.mxu1 %v12727_v1  ;;  %s864_s9 = sand.u32 1, %s17392_s1  }
 0xd10   : > { %s10739_s30 = sshll.u32 %s864_s9, 4  ;;  %s10638_s1 = scalar_lea.sflag [#allocation6], %s864_s9 }
 0xd11   : > { %s866_s10 = scalar_lea.vmem [#allocation5], %s10739_s30 }
 0xd12   : > { %4127 = vmatpush1.bf16.msra.mxu1 %v12725_v42  ;;  %s10652_s5 = sshll.u32 %s866_s10, 4  ;;  %s17251_s5 = int_to_ptr.vmem [resolvable:$true] %s10652_s5 }
 0xd13   : > { %4128 = vmatprep.subr.bf16.mxu1 %v12730_v39  ;;  %v12749_v39 = vld [vmem:[%s17387_s12 + $0xc0] ss:$8 sps:$4 sm:$0xff]  }
 0xd16   : > { %4129 = vmatpush1.bf16.msra.mxu1 %v12728_v0  ;;  %v12751_v0 = vld [vmem:[%s17387_s12 + $0xc4] ss:$8 sps:$4 sm:$0xff]  }
 0xd17   : > { %4130 = vmatprep.subr.bf16.mxu1 %v12733_v29 }
 0xd1a   : > { %4131 = vmatpush1.bf16.msra.mxu1 %v12731_v17 }
 0xd1b   : > { %4132 = vmatprep.subr.bf16.mxu1 %v12736_v20  ;;  %v12754_v20 = vld [vmem:[%s17387_s12 + $0xd4] ss:$8 sps:$4 sm:$0xff]  }
 0xd1e   : > { %4133 = vmatpush1.bf16.msra.mxu1 %v12734_v26 }
 0xd1f   : > { %4134 = vmatprep.subr.bf16.mxu1 %v12739_v19 }
 0xd22   : > { %4135 = vmatpush1.bf16.msra.mxu1 %v12737_v37 }
 0xd23   : > { %4136 = vmatprep.subr.bf16.mxu1 %v12742_v14 }
 0xd26   : > { %4137 = vmatpush1.bf16.msra.mxu1 %v12740_v2 }
 0xd27   : > { %4138 = vmatprep.subr.bf16.mxu1 %v12745_v45 }
 0xd2a   : > { %4139 = vmatpush1.bf16.msra.mxu1 %v12743_v56 }
 0xd2b   : > { %4140 = vmatprep.subr.bf16.mxu1 %v12748_v57 }
 0xd45   : > { %v3733_v10 = vpop.xlane.xlu1 %3732 }
 0xd4d   : > { %v3846_v7 = vpop.xlane.xlu1 %3845 }
 0xd51   : > { %v3344_v8 = vpop.permute.xlu1 %3343 }
 0xd7b   : > { %v3230_v38 = vpop.permute.xlu0 %3229 }
 0xd7c   : > { %3233 = vst.msk [vmem:[#allocation2] sm:$0xf] %vm3232_vm7, %v3230_v38 }
 0xd7d   : > { %3347 = vst.msk [vmem:[#allocation2] sm:$0xf] %vm3346_vm8, %v3344_v8 }
 0xd82   : > { %v3513_v25 = vpop.xlane.xlu1 %3512 }
 0xd83   : > { %13465 = vrcp.f32 %v3513_v25 }
 0xd84   : > { %13467 = vrcp.f32 %v3619_v4  ;;  %v12752_v4 = vld [vmem:[%s17387_s12 + $0xd0] ss:$8 sps:$4 sm:$0xff]  }
 0xd85   : > { %13469 = vrcp.f32 %v14880_v13  ;;  %v12746_v13 = vld [vmem:[%s17387_s12 + $0xb0] ss:$8 sps:$4 sm:$0xff]  }
 0xd86   : > { %13471 = vrcp.f32 %v3733_v10  ;;  %4141 = vmatpush1.bf16.msra.mxu1 %v12746_v13 }
 0xd87   : > { %4142 = vmatprep.subr.bf16.mxu1 %v12751_v0  ;;  %13473 = vrcp.f32 %v3846_v7  ;;  %v12760_v7 = vld [vmem:[%s17387_s12 + $0xf4] ss:$8 sps:$4 sm:$0xff]  }
 0xd8a   : > { %4143 = vmatpush1.bf16.msra.mxu1 %v12749_v39 }
 0xd8b   : > { %4144 = vmatprep.subr.bf16.mxu1 %v12754_v20 }
 0xd8d   : > { %v13466_v34 = vpop.eup %13465 }
 0xd8e   : > { %v13468_v1 = vpop.eup %13467  ;;  %4145 = vmatpush1.bf16.msra.mxu1 %v12752_v4 }
 0xd8f   : > { %v13470_v26 = vpop.eup %13469 }
 0xd90   : > { %v3452_v37 = vmul.f32 %v13470_v26, %v14886_v50  ;;  %v13472_v38 = vpop.eup %13471 }
 0xd92   : > { %v11557_v10 = vpack.c.bf16 %v3452_v37, %v3452_v37  ;;  %v3939_v37 = vld [vmem:[%s17391_s11] sm:$0x3] }
 0xda1   : > { %v3556_v52 = vpop.f32.mrb[64].mxu0 }
 0xda2   : > { %v3562_v41 = vmul.f32 %v13466_v34, %v3556_v52  ;;  %v11856_v9 = vpop.f32.mrb[65].mxu0  ;;  %v12757_v52 = vld [vmem:[%s17387_s12 + $0xe4] ss:$8 sps:$4 sm:$0xff]  }
 0xda3   : > { %v3559_v40 = vpop.f32.mrb[66].mxu0  ;;  %4146 = vmatprep.subr.bf16.mxu1 %v12757_v52  ;;  %v12758_v9 = vld [vmem:[%s17387_s12 + $0xf0] ss:$8 sps:$4 sm:$0xff]  }
 0xda4   : > { %v3563_v53 = vpack.c.bf16 %v3562_v41, %v3562_v41  ;;  %v11857_v44 = vpop.f32.mrb[67].mxu0  ;;  %v12755_v41 = vld [vmem:[%s17387_s12 + $0xe0] ss:$8 sps:$4 sm:$0xff]   ;;  %v13474_v40 = vpop.eup %13473 }
 0xda5   : > { %4147 = vmatpush1.bf16.msra.mxu1 %v12755_v41  ;;  %v12765_v41 = vld [vmem:[%s17304_s13 + $0x4] ss:$8 sps:$4 sm:$0xff]  }
 0xda6   : > { %3564 = vst.msk [vmem:[#allocation2 + $0x4] sm:$0xf] %vm3116_vm6, %v3563_v53  ;;  %4148 = vmatprep.subr.bf16.mxu1 %v12760_v7  ;;  %4411 = vmatprep.subr.bf16.mxu0 %v12765_v41  ;;  %v12771_v7 = vld [vmem:[%s17304_s13 + $0x24] ss:$8 sps:$4 sm:$0xff]  }
 0xda7   : > { %v12801_v41 = vld [vmem:[%s17304_s13 + $0xc4] ss:$8 sps:$4 sm:$0xff]  }
 0xda9   : > { %v3665_v42 = vpop.f32.mrb[68].mxu0  ;;  %4149 = vmatpush1.bf16.msra.mxu1 %v12758_v9  ;;  %v12769_v9 = vld [vmem:[%s17304_s13 + $0x20] ss:$8 sps:$4 sm:$0xff]  }
 0xdaa   : > { %v3671_v29 = vmul.f32 %v13468_v1, %v3665_v42  ;;  %v11870_v17 = vpop.f32.mrb[69].mxu0  ;;  %11900 = vmatprep.subr.bf16.mxu1 %v13644_v16 }
 0xdab   : > { %v3668_v19 = vpop.f32.mrb[70].mxu0 }
 0xdac   : > { %v11558_v14 = vpack.c.bf16 %v3671_v29, %v3671_v29  ;;  %v11871_v2 = vpop.f32.mrb[71].mxu0 }
 0xdad   : > { %v3948_v2 = vrot.slane %v3939_v37, %v14042_v6 }
 0xdae   : > { %3676 = vrot.lane.b32.xlu1 %v11558_v14, %s17388_s8  ;;  %v3944_v14 = vrot.slane %v3939_v37, %v14039_v5  ;;  %v12795_v37 = vld [vmem:[%s17304_s13 + $0xa4] ss:$8 sps:$4 sm:$0xff]  }
 0xdb1   : > { %v3778_v8 = vpop.f32.mrb[72].mxu0 }
 0xdb2   : > { %v3784_v25 = vmul.f32 %v13472_v38, %v3778_v8  ;;  %3457 = vrot.lane.b32.xlu1 %v11557_v10, %s17389_s6  ;;  %v11884_v34 = vpop.f32.mrb[73].mxu0 }
 0xdb3   : > { %v3781_v50 = vpop.f32.mrb[74].mxu0 }
 0xdb4   : > { %v11559_v56 = vpack.c.bf16 %v3784_v25, %v3784_v25  ;;  %v11885_v45 = vpop.f32.mrb[75].mxu0 }
 0xdb5   : > { %v12763_v45 = vld [vmem:[%s17304_s13] ss:$8 sps:$4 sm:$0xff]  }
 0xdb6   : > { %3789 = vrot.lane.b32.xlu0 %v11559_v56, %s17390_s15  ;;  %4412 = vmatpush1.bf16.msra.mxu0 %v12763_v45  ;;  %v12796_v45 = vld [vmem:[%s17304_s13 + $0xb0] ss:$8 sps:$4 sm:$0xff]  }
 0xdb9   : > { %v3891_v53 = vpop.f32.mrb[76].mxu0 }
 0xdba   : > { %v3897_v44 = vmul.f32 %v13474_v40, %v3891_v53  ;;  %v11898_v13 = vpop.f32.mrb[77].mxu0  ;;  %v12774_v40 = vld [vmem:[%s17304_s13 + $0x34] ss:$8 sps:$4 sm:$0xff]   ;;  %v12772_v53 = vld [vmem:[%s17304_s13 + $0x30] ss:$8 sps:$4 sm:$0xff]  }
 0xdbb   : > { %v3894_v57 = vpop.f32.mrb[78].mxu0  ;;  %v12775_v13 = vld [vmem:[%s17304_s13 + $0x40] ss:$8 sps:$4 sm:$0xff]  }
 0xdbc   : > { %v11560_v1 = vpack.c.bf16 %v3897_v44, %v3897_v44  ;;  %v11899_v42 = vpop.f32.mrb[79].mxu0  ;;  %v12777_v44 = vld [vmem:[%s17304_s13 + $0x44] ss:$8 sps:$4 sm:$0xff]   ;;  %v12780_v57 = vld [vmem:[%s17304_s13 + $0x54] ss:$8 sps:$4 sm:$0xff]  }
 0xdbd   : > { %v12783_v42 = vld [vmem:[%s17304_s13 + $0x64] ss:$8 sps:$4 sm:$0xff]  }
 0xdbe   : > { %3902 = vrot.lane.b32.xlu0 %v11560_v1, %s17389_s6  ;;  %v12778_v1 = vld [vmem:[%s17304_s13 + $0x50] ss:$8 sps:$4 sm:$0xff]  }
 0xe20   : > { %v3677_v39 = vpop.permute.xlu1 %3676 }
 0xe21   : > { %3679 = vst.msk [vmem:[#allocation2 + $0x4] sm:$0xf] %vm3232_vm7, %v3677_v39  ;;  %v12781_v39 = vld [vmem:[%s17304_s13 + $0x60] ss:$8 sps:$4 sm:$0xff]  }
 0xe24   : > { %v3458_v0 = vpop.permute.xlu1 %3457 }
 0xe25   : > { %3461 = vst.msk [vmem:[#allocation2] sm:$0xf] %vm3460_vm9, %v3458_v0  ;;  %v12786_v0 = vld [vmem:[%s17304_s13 + $0x74] ss:$8 sps:$4 sm:$0xff]  }
 0xe28   : > { %v3790_v29 = vpop.permute.xlu0 %3789 }
 0xe29   : > { %3792 = vst.msk [vmem:[#allocation2 + $0x4] sm:$0xf] %vm3346_vm8, %v3790_v29  ;;  %v12784_v29 = vld [vmem:[%s17304_s13 + $0x70] ss:$8 sps:$4 sm:$0xff]  }
 0xe30   : > { %v3903_v17 = vpop.permute.xlu0 %3902 }
 0xe31   : > { %3905 = vst.msk [vmem:[#allocation2 + $0x4] sm:$0xf] %vm3460_vm9, %v3903_v17  ;;  %v12789_v17 = vld [vmem:[%s17304_s13 + $0x84] ss:$8 sps:$4 sm:$0xff]  }
 0xe38   : > { %v3906_v20 = vld [vmem:[#allocation2] sm:$0xff] }
 0xe39   : > { %v10995_v26 = vcombine.high %v3906_v20, %v3906_v20  ;;  %v10994_v19 = vcombine.low %v3906_v20, %v3906_v20  ;;  %v12787_v20 = vld [vmem:[%s17304_s13 + $0x80] ss:$8 sps:$4 sm:$0xff]  }
 0xe3b   : > { %4150 = vmatprep.mubr.bf16.mxu1 %v10995_v26  ;;  %v12792_v26 = vld [vmem:[%s17304_s13 + $0x94] ss:$8 sps:$4 sm:$0xff]  }
 0xe3c   : > { %4151 = vmatmul.mubr.bf16.vlgmr.msra.gmra.mrb[40].mxu1 %v10994_v19  ;;  %v12790_v19 = vld [vmem:[%s17304_s13 + $0x90] ss:$8 sps:$4 sm:$0xff]  }
 0xe3d   : > { %11904 = vmatprep.mubr.msk.bf16.mxu1 %vm13645_vm2, %v13644_v16 }
 0xf0f   : > { %v4152_v4 = vpop.f32.mrb[40].mxu1 }
 0xf10   : > { %v4153_v10 = vadd.f32 %v4152_v4, %v3944_v14  ;;  %v4154_v38 = vpop.f32.mrb[41].mxu1  ;;  %v12793_v14 = vld [vmem:[%s17304_s13 + $0xa0] ss:$8 sps:$4 sm:$0xff]  }
 0xf11   : > { %v4155_v8 = vadd.f32 %v4154_v38, %v3948_v2  ;;  %v4156_v25 = vpop.f32.mrb[42].mxu1 }
 0xf12   : > { %v15036_v34 = vadd.f32 %v4153_v10, %v14072_v46  ;;  %v4157_v50 = vpop.f32.mrb[43].mxu1  ;;  %v12768_v46 = vld [vmem:[%s17304_s13 + $0x14] ss:$8 sps:$4 sm:$0xff]  }
 0xf13   : > { %v15039_v52 = vadd.f32 %v4155_v8, %v14074_v48  ;;  %v12766_v48 = vld [vmem:[%s17304_s13 + $0x10] ss:$8 sps:$4 sm:$0xff]   ;;  %4413 = vmatprep.subr.bf16.mxu0 %v12768_v46  ;;  %v12799_v46 = vld [vmem:[%s17304_s13 + $0xc0] ss:$8 sps:$4 sm:$0xff]  }
 0xf14   : > { %4414 = vmatpush1.bf16.msra.mxu0 %v12766_v48  ;;  %v12804_v48 = vld [vmem:[%s17304_s13 + $0xd4] ss:$8 sps:$4 sm:$0xff]  }
 0xf15   : > { %v4161_v56 = vadd.f32 %v15039_v52, %v15036_v34  ;;  %4415 = vmatprep.subr.bf16.mxu0 %v12771_v7  ;;  %v12802_v7 = vld [vmem:[%s17304_s13 + $0xd0] ss:$8 sps:$4 sm:$0xff]  }
 0xf17   : > { %4162 = vadd.xlane.f32.xlu1 %v4161_v56  ;;  %v12798_v56 = vld [vmem:[%s17304_s13 + $0xb4] ss:$8 sps:$4 sm:$0xff]  }
 0xf18   : > { %4416 = vmatpush1.bf16.msra.mxu0 %v12769_v9  ;;  %v12807_v9 = vld [vmem:[%s17304_s13 + $0xe4] ss:$8 sps:$4 sm:$0xff]  }
 0xf19   : > { %4417 = vmatprep.subr.bf16.mxu0 %v12774_v40  ;;  %v12805_v40 = vld [vmem:[%s17304_s13 + $0xe0] ss:$8 sps:$4 sm:$0xff]  }
 0xf1c   : > { %4418 = vmatpush1.bf16.msra.mxu0 %v12772_v53  ;;  %v12810_v53 = vld [vmem:[%s17304_s13 + $0xf4] ss:$8 sps:$4 sm:$0xff]  }
 0xf1d   : > { %4419 = vmatprep.subr.bf16.mxu0 %v12777_v44  ;;  %v12808_v44 = vld [vmem:[%s17304_s13 + $0xf0] ss:$8 sps:$4 sm:$0xff]  }
 0xf20   : > { %4420 = vmatpush1.bf16.msra.mxu0 %v12775_v13  ;;  %v13577_v13 = vld [vmem:[%s17384_s16] sm:$0xf]  ;;  %s17393_s16 = sld [smem:[#allocation12_spill]] }
 0xf21   : > { %4421 = vmatprep.subr.bf16.mxu0 %v12780_v57  ;;  %v1553_v57 = vrot.slane %v13577_v13, %v14039_v5 }
 0xf24   : > { %4422 = vmatpush1.bf16.msra.mxu0 %v12778_v1  ;;  %v1925_v1 = vadd.f32 %v14516_v43, %v1553_v57  ;;  %v1959_v43 = vadd.f32 %v14686_v49, %v1553_v57 }
 0xf25   : > { %4423 = vmatprep.subr.bf16.mxu0 %v12783_v42  ;;  %v1929_v42 = vadd.f32 %v14526_v55, %v1553_v57 }
 0xf26   : > { %s11579_s2 = sshll.u32 %s17393_s16, 8  ;;  %s13578_s16 = scalar_lea.vmem %s17251_s5, 256 }
 0xf27   : > { %p13579_p11 = scmp.ne.s32.totalorder %s17251_s5, %s13578_s16 }
 0xf28   : > { %4424 = vmatpush1.bf16.msra.mxu0 %v12781_v39  ;;  %v1935_v39 = vadd.f32 %v14546_v11, %v1553_v57  ;;  %v4177_v11 = vld [vmem:[%s17317_s26] sm:$0x3] }
 0xf29   : > { %4425 = vmatprep.subr.bf16.mxu0 %v12786_v0  ;;  %v1939_v0 = vadd.f32 %v14553_v18, %v1553_v57  ;;  %v4191_v18 = vld [vmem:[%s17318_s27] sm:$0x3]  ;;  %p13580_p12 = pnand %p13579_p11, %p13832_p5 }
 0xf2b   : > { %p13581_p13 = pneg %p13580_p12 }
 0xf2c   : > { %4426 = vmatpush1.bf16.msra.mxu0 %v12784_v29  ;;  %v1945_v29 = vadd.f32 %v14661_v15, %v1553_v57  ;;  %v4182_v15 = vrot.slane %v4177_v11, %v14039_v5 }
 0xf2d   : > { %4427 = vmatprep.subr.bf16.mxu0 %v12789_v17  ;;  %v1949_v17 = vadd.f32 %v14668_v22, %v1553_v57  ;;  %v4186_v22 = vrot.slane %v4177_v11, %v14042_v6 }
 0xf30   : > { %4428 = vmatpush1.bf16.msra.mxu0 %v12787_v20  ;;  %v1955_v20 = vadd.f32 %v14679_v36, %v1553_v57 }
 0xf31   : > { %4429 = vmatprep.subr.bf16.mxu0 %v12792_v26 }
 0xf34   : > { %4430 = vmatpush1.bf16.msra.mxu0 %v12790_v19 }
 0xf35   : > { %4431 = vmatprep.subr.bf16.mxu0 %v12795_v37  ;;  %v4196_v37 = vrot.slane %v4191_v18, %v14039_v5 }
 0xf38   : > { %4432 = vmatpush1.bf16.msra.mxu0 %v12793_v14  ;;  %v4200_v14 = vrot.slane %v4191_v18, %v14042_v6 }
 0xf39   : > { %4433 = vmatprep.subr.bf16.mxu0 %v12798_v56 }
 0xf3c   : > { %4434 = vmatpush1.bf16.msra.mxu0 %v12796_v45 }
 0xf3d   : > { %4435 = vmatprep.subr.bf16.mxu0 %v12801_v41 }
 0xf40   : > { %4436 = vmatpush1.bf16.msra.mxu0 %v12799_v46 }
 0xf41   : > { %4437 = vmatprep.subr.bf16.mxu0 %v12804_v48 }
 0xf44   : > { %4438 = vmatpush1.bf16.msra.mxu0 %v12802_v7 }
 0xf45   : > { %4439 = vmatprep.subr.bf16.mxu0 %v12807_v9 }
 0xf48   : > { %4440 = vmatpush1.bf16.msra.mxu0 %v12805_v40 }
 0xf49   : > { %4441 = vmatprep.subr.bf16.mxu0 %v12810_v53 }
 0xf4c   : > { %4442 = vmatpush1.bf16.msra.mxu0 %v12808_v44 }
 0xf4d   : > { %11908 = vmatprep.subr.bf16.mxu0 %v13644_v16 }
 0xfa4   : > { %v4163_v2 = vpop.xlane.xlu1 %4162 }
 0xfa5   : > { %v4164_v4 = vmul.f32 0.00390625, %v4163_v2 }
 0xfa7   : > { %v4165_v10 = vsub.f32 %v15036_v34, %v4164_v4  ;;  %v4166_v38 = vsub.f32 %v15039_v52, %v4164_v4 }
 0xfa9   : > { %v4167_v8 = vmul.f32 %v4165_v10, %v4165_v10  ;;  %v4168_v25 = vmul.f32 %v4166_v38, %v4166_v38 }
 0xfab   : > { %v4169_v50 = vadd.f32 %v4168_v25, %v4167_v8 }
 0xfad   : > { %4170 = vadd.xlane.f32.xlu0 %v4169_v50 }
 0xfda   : > { %2036 = vxpose.xlu0.b32.start [1/8] (short) %v1925_v1, 128 }
 0xfde   : > { %2037 = vxpose.xlu0.b32.cont [2/8] (short) %v1929_v42, 128 }
 0xfe2   : > { %2038 = vxpose.xlu0.b32.cont [3/8] (short) %v1935_v39, 128 }
 0xfe6   : > { %2039 = vxpose.xlu0.b32.cont [4/8] (short) %v1939_v0, 128 }
 0xfea   : > { %2040 = vxpose.xlu0.b32.cont [5/8] (short) %v1945_v29, 128 }
 0xfee   : > { %2041 = vxpose.xlu0.b32.cont [6/8] (short) %v1949_v17, 128 }
 0xff2   : > { %2042 = vxpose.xlu0.b32.cont [7/8] (short) %v1955_v20, 128 }
 0xff6   : > { %2043 = vxpose.xlu0.b32.end [8/8] (short) %v1959_v43, 128 }
0x103a   : > { %v4171_v55 = vpop.xlane.xlu0 %4170 }
0x103b   : > { %v4172_v26 = vmul.f32 0.00390625, %v4171_v55 }
0x103d   : > { %v4173_v19 = vadd.f32 1e-05, %v4172_v26 }
0x103f   : > { %13475 = vrsqrt.f32 %v4173_v19  ;;  %4641 = vrot.lane.b32.xlu0 %v14556_v23, %s17389_s6 }
0x1043   : > { %4879 = vrot.lane.b32.xlu0 %v14532_v59, %s17388_s8 }
0x1047   : > { %4761 = vrot.lane.b32.xlu0 %v14556_v23, %s17390_s15 }
0x1049   : > { %v13476_v36 = vpop.eup %13475 }
0x104a   : > { %v4176_v49 = vmul.f32 %v13476_v36, %v4166_v38  ;;  %v4175_v2 = vmul.f32 %v13476_v36, %v4165_v10 }
0x104b   : > { %4763 = vrot.lane.b32.xlu0 %v14675_v31, %s17390_s15 }
0x104c   : > { %v4190_v4 = vmul.f32 %v4186_v22, %v4176_v49  ;;  %v4189_v8 = vmul.f32 %v4182_v15, %v4175_v2 }
0x104e   : > { %v4204_v25 = vadd.f32 %v4200_v14, %v4190_v4  ;;  %v4203_v50 = vadd.f32 %v4196_v37, %v4189_v8 }
0x104f   : > { %4765 = vrot.lane.b32.xlu0 %v14693_v61, %s17390_s15 }
0x1050   : > { %v4206_v56 = vpack.c.bf16 %v4204_v25, %v4204_v25  ;;  %v4205_v45 = vpack.c.bf16 %v4203_v50, %v4203_v50 }
0x1052   : > { %4443 = vmatprep.mubr.bf16.mxu0 %v4206_v56 }
0x1053   : > { %4444 = vmatmul.mubr.bf16.vlgmr.msra.gmra.mrb[80].mxu0 %v4205_v45 }
0x1054   : > { %11909 = vmatpush3.bf16.msra.mxu0 %v14532_v59  ;;  %11916 = vmatprep.mubr.msk.bf16.mxu0 %vm13645_vm2, %v13644_v16 }
0x1055   : > { %11910 = vmatprep.subr.bf16.mxu0 %v13644_v16 }
0x1058   : > { %11911 = vmatpush3.bf16.msra.mxu0 %v14556_v23 }
0x1059   : > { %11912 = vmatprep.subr.bf16.mxu0 %v13644_v16 }
0x105a   : > { %v2052_v10 = vpop.trf.xlu0 }
0x105c   : > { %11913 = vmatpush3.bf16.msra.mxu0 %v14675_v31 }
0x105d   : > { %11914 = vmatprep.subr.bf16.mxu0 %v13644_v16 }
0x105e   : > { %v2053_v38 = vpop.trf.xlu0 }
0x105f   : > { %v2100_v41 = vpack.c.bf16 %v2053_v38, %v2052_v10 }
0x1060   : > { %11915 = vmatpush3.bf16.msra.mxu0 %v14693_v61 }
0x1061   : > { %2117 = vst.msk [vmem:[#allocation3] sm:$0xff] %vm2116_vm10, %v2100_v41  ;;  %11940 = vmatprep.subr.bf16.mxu0 %v13644_v16 }
0x1062   : > { %v2054_v46 = vpop.trf.xlu0 }
0x1066   : > { %v2055_v48 = vpop.trf.xlu0 }
0x1067   : > { %v2101_v7 = vpack.c.bf16 %v2055_v48, %v2054_v46  ;;  %v4239_v48 = vld [vmem:[%s17305_s14] sm:$0x3] }
0x1068   : > { %v4454_v0 = vld [vmem:[#allocation3] sm:$0xff] }
0x1069   : > { %2118 = vst.msk [vmem:[#allocation3 + $0x8] sm:$0xff] %vm2116_vm10, %v2101_v7  ;;  %11901 = vmatpush3.bf16.msra.mxu1 %v4454_v0 }
0x106a   : > { %v2056_v9 = vpop.trf.xlu0  ;;  %11902 = vmatprep.subr.bf16.mxu1 %v13644_v16 }
0x106d   : > { %2068 = vxpose.xlu0.b32.start [1/8] (short) %v14524_v54, 128 }
0x106e   : > { %v2057_v40 = vpop.trf.xlu0 }
0x106f   : > { %v2102_v53 = vpack.c.bf16 %v2057_v40, %v2056_v9  ;;  %v4244_v40 = vrot.slane %v4239_v48, %v14039_v5 }
0x1071   : > { %2069 = vxpose.xlu0.b32.cont [2/8] (short) %v14535_v60, 128  ;;  %2119 = vst.msk [vmem:[#allocation3 + $0x10] sm:$0xff] %vm2116_vm10, %v2102_v53  ;;  %v4248_v53 = vrot.slane %v4239_v48, %v14042_v6 }
0x1072   : > { %v2058_v44 = vpop.trf.xlu0 }
0x1075   : > { %2070 = vxpose.xlu0.b32.cont [3/8] (short) %v14551_v51, 128 }
0x1076   : > { %v2059_v13 = vpop.trf.xlu0 }
0x1077   : > { %v2103_v57 = vpack.c.bf16 %v2059_v13, %v2058_v44 }
0x1079   : > { %2071 = vxpose.xlu0.b32.cont [4/8] (short) %v14559_v24, 128  ;;  %2120 = vst.msk [vmem:[#allocation3 + $0x18] sm:$0xff] %vm2116_vm10, %v2103_v57 }
0x107a   : > { %v2060_v1 = vpop.trf.xlu0 }
0x107d   : > { %2072 = vxpose.xlu0.b32.cont [5/8] (short) %v14666_v21, 128 }
0x107e   : > { %v2061_v42 = vpop.trf.xlu0 }
0x107f   : > { %v2104_v54 = vpack.c.bf16 %v2061_v42, %v2060_v1 }
0x1081   : > { %2073 = vxpose.xlu0.b32.cont [6/8] (short) %v14673_v30, 128  ;;  %2121 = vst.msk [vmem:[#allocation3 + $0x20] sm:$0xff] %vm2116_vm10, %v2104_v54 }
0x1082   : > { %v2062_v60 = vpop.trf.xlu0 }
0x1085   : > { %2074 = vxpose.xlu0.b32.cont [7/8] (short) %v14684_v47, 128  ;;  %v4455_v47 = vld [vmem:[#allocation3 + $0x8] sm:$0xff] }
0x1086   : > { %v2063_v39 = vpop.trf.xlu0  ;;  %11903 = vmatpush3.bf16.msra.mxu1 %v4455_v47 }
0x1087   : > { %v2105_v51 = vpack.c.bf16 %v2063_v39, %v2062_v60  ;;  %11920 = vmatprep.subr.bf16.mxu1 %v13644_v16 }
0x1089   : > { %2075 = vxpose.xlu0.b32.end [8/8] (short) %v14691_v58, 128  ;;  %2122 = vst.msk [vmem:[#allocation3 + $0x28] sm:$0xff] %vm2116_vm10, %v2105_v51 }
0x108a   : > { %v2064_v24 = vpop.trf.xlu0 }
0x108e   : > { %v2065_v29 = vpop.trf.xlu0 }
0x108f   : > { %v2106_v21 = vpack.c.bf16 %v2065_v29, %v2064_v24  ;;  %v4456_v24 = vld [vmem:[#allocation3 + $0x10] sm:$0xff]  ;;  %v4457_v29 = vld [vmem:[#allocation3 + $0x18] sm:$0xff] }
0x1091   : > { %2123 = vst.msk [vmem:[#allocation3 + $0x30] sm:$0xff] %vm2116_vm10, %v2106_v21 }
0x1092   : > { %v2066_v30 = vpop.trf.xlu0 }
0x1096   : > { %v2067_v17 = vpop.trf.xlu0 }
0x1097   : > { %v2107_v20 = vpack.c.bf16 %v2067_v17, %v2066_v30 }
0x1099   : > { %2124 = vst.msk [vmem:[#allocation3 + $0x38] sm:$0xff] %vm2116_vm10, %v2107_v20 }
0x10b1   : > { %v15202_v58 = vpop.permute.xlu0 %4641 }
0x10b5   : > { %v15208_v43 = vpop.permute.xlu0 %4879 }
0x10b9   : > { %v15212_v55 = vpop.permute.xlu0 %4761 }
0x10bd   : > { %v15218_v26 = vpop.permute.xlu0 %4763 }
0x10c1   : > { %v15220_v19 = vpop.permute.xlu0 %4765 }
0x10d2   : > { %5106 = vrot.lane.b32.xlu0 %v14566_v28, %s17389_s6 }
0x10d6   : > { %5344 = vrot.lane.b32.xlu0 %v14539_v63, %s17388_s8 }
0x10da   : > { %5346 = vrot.lane.b32.xlu0 %v14566_v28, %s17388_s8 }
0x10de   : > { %5348 = vrot.lane.b32.xlu0 %v14677_v32, %s17388_s8 }
0x10e2   : > { %5350 = vrot.lane.b32.xlu0 %v14695_v62, %s17388_s8 }
0x10ed   : > { %v2084_v11 = vpop.trf.xlu0 }
0x10f1   : > { %v2085_v18 = vpop.trf.xlu0 }
0x10f2   : > { %v2108_v15 = vpack.c.bf16 %v2085_v18, %v2084_v11 }
0x10f4   : > { %2125 = vst.msk [vmem:[#allocation3 + $0x40] sm:$0xff] %vm2116_vm10, %v2108_v15 }
0x10f5   : > { %v2086_v22 = vpop.trf.xlu0 }
0x10f9   : > { %v2087_v36 = vpop.trf.xlu0 }
0x10fa   : > { %v2109_v49 = vpack.c.bf16 %v2087_v36, %v2086_v22 }
0x10fc   : > { %2126 = vst.msk [vmem:[#allocation3 + $0x48] sm:$0xff] %vm2116_vm10, %v2109_v49 }
0x10fd   : > { %v2088_v37 = vpop.trf.xlu0 }
0x1101   : > { %v2089_v14 = vpop.trf.xlu0 }
0x1102   : > { %v2110_v2 = vpack.c.bf16 %v2089_v14, %v2088_v37 }
0x1104   : > { %2127 = vst.msk [vmem:[#allocation3 + $0x50] sm:$0xff] %vm2116_vm10, %v2110_v2 }
0x1105   : > { %v2090_v4 = vpop.trf.xlu0 }
0x1109   : > { %v2091_v8 = vpop.trf.xlu0 }
0x110a   : > { %v2111_v25 = vpack.c.bf16 %v2091_v8, %v2090_v4 }
0x110c   : > { %2128 = vst.msk [vmem:[#allocation3 + $0x58] sm:$0xff] %vm2116_vm10, %v2111_v25 }
0x110d   : > { %v2092_v50 = vpop.trf.xlu0 }
0x1111   : > { %v2093_v56 = vpop.trf.xlu0 }
0x1112   : > { %v2112_v45 = vpack.c.bf16 %v2093_v56, %v2092_v50  ;;  %v4458_v56 = vld [vmem:[#allocation3 + $0x20] sm:$0xff] }
0x1114   : > { %2129 = vst.msk [vmem:[#allocation3 + $0x60] sm:$0xff] %vm2116_vm10, %v2112_v45  ;;  %v4459_v45 = vld [vmem:[#allocation3 + $0x28] sm:$0xff] }
0x1115   : > { %v2094_v10 = vpop.trf.xlu0 }
0x1119   : > { %v2095_v38 = vpop.trf.xlu0 }
0x111a   : > { %v2113_v41 = vpack.c.bf16 %v2095_v38, %v2094_v10 }
0x111c   : > { %2130 = vst.msk [vmem:[#allocation3 + $0x68] sm:$0xff] %vm2116_vm10, %v2113_v41 }
0x111d   : > { %v2096_v46 = vpop.trf.xlu0 }
0x1121   : > { %v2097_v7 = vpop.trf.xlu0 }
0x1122   : > { %v2114_v9 = vpack.c.bf16 %v2097_v7, %v2096_v46 }
0x1124   : > { %2131 = vst.msk [vmem:[#allocation3 + $0x70] sm:$0xff] %vm2116_vm10, %v2114_v9 }
0x1125   : > { %v2098_v44 = vpop.trf.xlu0 }
0x1126   : > { %v4445_v13 = vpop.f32.mrb[80].mxu0 }
0x1127   : > { %v4446_v57 = vadd.f32 %v4445_v13, %v4244_v40  ;;  %v4447_v1 = vpop.f32.mrb[81].mxu0 }
0x1128   : > { %v15234_v42 = vadd.f32 %v4447_v1, %v4248_v53  ;;  %v4449_v54 = vpop.f32.mrb[82].mxu0  ;;  %v4460_v53 = vld [vmem:[#allocation3 + $0x30] sm:$0xff] }
0x1129   : > { %v4452_v60 = vpack.c.bf16 %v4446_v57, %v4446_v57  ;;  %v4450_v39 = vpop.f32.mrb[83].mxu0  ;;  %v2099_v51 = vpop.trf.xlu0 }
0x112a   : > { %v2115_v0 = vpack.c.bf16 %v2099_v51, %v2098_v44  ;;  %v4461_v44 = vld [vmem:[#allocation3 + $0x38] sm:$0xff] }
0x112b   : > { %4579 = vrot.lane.b32.xlu1 %v4452_v60, %s17389_s6  ;;  %11905 = vmatmul.mubr.msk.bf16.vlgmr.msra.gmra.mrb[44].mxu1 %vm3011_vm3, %v4452_v60 }
0x112c   : > { %2132 = vst.msk [vmem:[#allocation3 + $0x78] sm:$0xff] %vm2116_vm10, %v2115_v0  ;;  %11921 = vmatpush3.bf16.msra.mxu1 %v4456_v24  ;;  %11924 = vmatprep.mubr.msk.bf16.mxu1 %vm13645_vm2, %v13644_v16 }
0x112d   : > { %11922 = vmatprep.subr.bf16.mxu1 %v13644_v16 }
0x112f   : > { %4639 = vrot.lane.b32.xlu1 %v14532_v59, %s17389_s6 }
0x1130   : > { %11923 = vmatpush3.bf16.msra.mxu1 %v4457_v29 }
0x1131   : > { %11928 = vmatprep.subr.bf16.mxu1 %v13644_v16 }
0x1133   : > { %4643 = vrot.lane.b32.xlu1 %v14675_v31, %s17389_s6 }
0x1137   : > { %4645 = vrot.lane.b32.xlu1 %v14693_v61, %s17389_s6 }
0x119d   : > { %v4580_v21 = vpop.permute.xlu1 %4579 }
0x119e   : > { %11925 = vmatmul.mubr.msk.bf16.vlgmr.msra.gmra.mrb[48].mxu1 %vm3011_vm3, %v4580_v21 }
0x119f   : > { %11936 = vmatprep.mubr.msk.bf16.mxu1 %vm13645_vm2, %v13644_v16 }
0x11a1   : > { %v4640_v30 = vpop.permute.xlu1 %4639 }
0x11a2   : > { %11929 = vmatpush3.bf16.msra.mxu1 %v4640_v30 }
0x11a3   : > { %11930 = vmatprep.subr.bf16.mxu1 %v13644_v16 }
0x11a5   : > { %v4644_v17 = vpop.permute.xlu1 %4643 }
0x11a6   : > { %11931 = vmatpush3.bf16.msra.mxu1 %v15202_v58 }
0x11a7   : > { %11932 = vmatprep.subr.bf16.mxu1 %v13644_v16 }
0x11a9   : > { %v4646_v20 = vpop.permute.xlu1 %4645 }
0x11aa   : > { %11933 = vmatpush3.bf16.msra.mxu1 %v4644_v17 }
0x11ab   : > { %11934 = vmatprep.subr.bf16.mxu1 %v13644_v16 }
0x11ae   : > { %11935 = vmatpush3.bf16.msra.mxu1 %v4646_v20 }
0x11af   : > { %11960 = vmatprep.subr.bf16.mxu1 %v13644_v16 }
0x11fe   : > { %v4515_v47 = vpop.f32.mrb[44].mxu1 }
0x11ff   : > { %v11906_v11 = vpop.f32.mrb[45].mxu1  ;;  %v4521_v18 = vsel %vm2116_vm10, %v4515_v47, -inf }
0x1200   : > { %4522 = vmax.xlane.f32.xlu1 %v4521_v18  ;;  %v4518_v15 = vpop.f32.mrb[46].mxu1  ;;  %v15312_v18 = vpack.c.bf16 %v15234_v42, %v15234_v42 }
0x1201   : > { %v11907_v22 = vpop.f32.mrb[47].mxu1 }
0x1271   : > { %v4618_v36 = vpop.f32.mrb[48].mxu1 }
0x1272   : > { %v11926_v49 = vpop.f32.mrb[49].mxu1  ;;  %v4624_v58 = vsel %vm2116_vm10, %v4618_v36, -inf }
0x1273   : > { %4625 = vmax.xlane.f32.xlu1 %v4624_v58  ;;  %v4621_v37 = vpop.f32.mrb[50].mxu1  ;;  %v4462_v58 = vld [vmem:[#allocation3 + $0x40] sm:$0xff] }
0x1274   : > { %v11927_v14 = vpop.f32.mrb[51].mxu1  ;;  %v4463_v37 = vld [vmem:[#allocation3 + $0x48] sm:$0xff] }
0x1284   : > { %4703 = vrot.lane.b32.xlu1 %v4452_v60, %s17390_s15 }
0x1288   : > { %4823 = vrot.lane.b32.xlu1 %v4452_v60, %s17388_s8 }
0x128c   : > { %4759 = vrot.lane.b32.xlu1 %v14532_v59, %s17390_s15 }
0x128d   : > { %v4523_v2 = vpop.xlane.xlu1 %4522 }
0x128e   : > { %v4524_v4 = vsub.f32 %v4515_v47, %v4523_v2 }
0x1290   : > { %v4525_v8 = vmul.f32 1.442695, %v4524_v4  ;;  %4881 = vrot.lane.b32.xlu1 %v14556_v23, %s17388_s8 }
0x1292   : > { %13477 = vpow2.f32 %v4525_v8 }
0x1294   : > { %4883 = vrot.lane.b32.xlu1 %v14675_v31, %s17388_s8 }
0x129c   : > { %v15267_v25 = vpop.eup %13477 }
0x129d   : > { %v4531_v50 = vpack.c.bf16 %v15267_v25, %v15267_v25 }
0x129f   : > { %11917 = vmatmul.mubr.msk.bf16.vlgmr.msra.gmra.mrb[84].mxu0 %vm2116_vm10, %v4531_v50 }
0x12a0   : > { %11941 = vmatpush3.bf16.msra.mxu0 %v4458_v56  ;;  %11944 = vmatprep.mubr.msk.bf16.mxu0 %vm13645_vm2, %v13644_v16 }
0x12a1   : > { %11942 = vmatprep.subr.bf16.mxu0 %v13644_v16 }
0x12a4   : > { %11943 = vmatpush3.bf16.msra.mxu0 %v4459_v45  ;;  %v4464_v45 = vld [vmem:[#allocation3 + $0x50] sm:$0xff] }
0x12a5   : > { %11948 = vmatprep.subr.bf16.mxu0 %v13644_v16 }
0x1300   : > { %v4626_v10 = vpop.xlane.xlu1 %4625 }
0x1301   : > { %v4627_v38 = vsub.f32 %v4618_v36, %v4626_v10 }
0x1303   : > { %v4628_v41 = vmul.f32 1.442695, %v4627_v38  ;;  %v4465_v38 = vld [vmem:[#allocation3 + $0x58] sm:$0xff] }
0x1304   : > { %v4704_v46 = vpop.permute.xlu1 %4703 }
0x1305   : > { %13479 = vpow2.f32 %v4628_v41  ;;  %11945 = vmatmul.mubr.msk.bf16.vlgmr.msra.gmra.mrb[88].mxu0 %vm3011_vm3, %v4704_v46  ;;  %v5107_v46 = vpop.permute.xlu0 %5106 }
0x1306   : > { %11956 = vmatprep.mubr.msk.bf16.mxu0 %vm13645_vm2, %v13644_v16 }
0x1308   : > { %v4824_v48 = vpop.permute.xlu1 %4823 }
0x130c   : > { %v4760_v7 = vpop.permute.xlu1 %4759 }
0x130d   : > { %11949 = vmatpush3.bf16.msra.mxu0 %v4760_v7 }
0x130e   : > { %11950 = vmatprep.subr.bf16.mxu0 %v13644_v16 }
0x130f   : > { %v15280_v9 = vpop.eup %13479 }
0x1310   : > { %v4634_v40 = vpack.c.bf16 %v15280_v9, %v15280_v9 }
0x1311   : > { %11951 = vmatpush3.bf16.msra.mxu0 %v15212_v55  ;;  %v4882_v55 = vpop.permute.xlu1 %4881 }
0x1312   : > { %11937 = vmatmul.mubr.msk.bf16.vlgmr.msra.gmra.mrb[52].mxu1 %vm2116_vm10, %v4634_v40  ;;  %11952 = vmatprep.subr.bf16.mxu0 %v13644_v16 }
0x1313   : > { %11961 = vmatpush3.bf16.msra.mxu1 %v4460_v53  ;;  %11964 = vmatprep.mubr.msk.bf16.mxu1 %vm13645_vm2, %v13644_v16 }
0x1314   : > { %11962 = vmatprep.subr.bf16.mxu1 %v13644_v16 }
0x1315   : > { %11953 = vmatpush3.bf16.msra.mxu0 %v15218_v26  ;;  %v4884_v26 = vpop.permute.xlu1 %4883 }
0x1316   : > { %11954 = vmatprep.subr.bf16.mxu0 %v13644_v16 }
0x1317   : > { %11963 = vmatpush3.bf16.msra.mxu1 %v4461_v44 }
0x1318   : > { %11968 = vmatprep.subr.bf16.mxu1 %v13644_v16 }
0x1319   : > { %11955 = vmatpush3.bf16.msra.mxu0 %v15220_v19 }
0x131a   : > { %11965 = vmatmul.mubr.msk.bf16.vlgmr.msra.gmra.mrb[56].mxu1 %vm3011_vm3, %v4824_v48  ;;  %11980 = vmatprep.subr.bf16.mxu0 %v13644_v16 }
0x131b   : > { %11969 = vmatpush3.bf16.msra.mxu1 %v15208_v43  ;;  %11976 = vmatprep.mubr.msk.bf16.mxu1 %vm13645_vm2, %v13644_v16 }
0x131c   : > { %11970 = vmatprep.subr.bf16.mxu1 %v13644_v16 }
0x131f   : > { %11971 = vmatpush3.bf16.msra.mxu1 %v4882_v55 }
0x1320   : > { %11972 = vmatprep.subr.bf16.mxu1 %v13644_v16 }
0x1323   : > { %11973 = vmatpush3.bf16.msra.mxu1 %v4884_v26 }
0x1324   : > { %11974 = vmatprep.subr.bf16.mxu1 %v13644_v16 }
0x1372   : > { %v15302_v19 = vpop.f32.mrb[84].mxu0 }
0x1373   : > { %v11918_v13 = vpop.f32.mrb[85].mxu0 }
0x1374   : > { %v4572_v57 = vpop.f32.mrb[86].mxu0 }
0x1375   : > { %v11919_v1 = vpop.f32.mrb[87].mxu0 }
0x13d8   : > { %v4742_v54 = vpop.f32.mrb[88].mxu0 }
0x13d9   : > { %v11946_v43 = vpop.f32.mrb[89].mxu0  ;;  %v4748_v60 = vsel %vm2116_vm10, %v4742_v54, -inf }
0x13da   : > { %4749 = vmax.xlane.f32.xlu1 %v4748_v60  ;;  %v4745_v39 = vpop.f32.mrb[90].mxu0 }
0x13db   : > { %v11947_v51 = vpop.f32.mrb[91].mxu0 }
0x13e5   : > { %v15305_v24 = vpop.f32.mrb[52].mxu1 }
0x13e6   : > { %v11938_v0 = vpop.f32.mrb[53].mxu1 }
0x13e7   : > { %v4691_v29 = vpop.f32.mrb[54].mxu1 }
0x13e8   : > { %v11939_v21 = vpop.f32.mrb[55].mxu1 }
0x13ed   : > { %v4862_v30 = vpop.f32.mrb[56].mxu1 }
0x13ee   : > { %v11966_v17 = vpop.f32.mrb[57].mxu1  ;;  %v4868_v20 = vsel %vm2116_vm10, %v4862_v30, -inf }
0x13ef   : > { %4869 = vmax.xlane.f32.xlu1 %v4868_v20  ;;  %v4865_v47 = vpop.f32.mrb[58].mxu1 }
0x13f0   : > { %v11967_v11 = vpop.f32.mrb[59].mxu1 }
0x1400   : > { %4885 = vrot.lane.b32.xlu1 %v14693_v61, %s17388_s8 }
0x1404   : > { %5044 = vrot.lane.b32.xlu1 %v15312_v18, %s17389_s6 }
0x1408   : > { %5104 = vrot.lane.b32.xlu1 %v14539_v63, %s17389_s6 }
0x140c   : > { %5108 = vrot.lane.b32.xlu1 %v14677_v32, %s17389_s6 }
0x1410   : > { %5110 = vrot.lane.b32.xlu1 %v14695_v62, %s17389_s6 }
0x1467   : > { %v4750_v15 = vpop.xlane.xlu1 %4749 }
0x1468   : > { %v4751_v22 = vsub.f32 %v4742_v54, %v4750_v15 }
0x146a   : > { %v4752_v36 = vmul.f32 1.442695, %v4751_v22 }
0x146c   : > { %13481 = vpow2.f32 %v4752_v36 }
0x1476   : > { %v15322_v49 = vpop.eup %13481 }
0x1477   : > { %v4758_v42 = vpack.c.bf16 %v15322_v49, %v15322_v49 }
0x1479   : > { %11957 = vmatmul.mubr.msk.bf16.vlgmr.msra.gmra.mrb[92].mxu0 %vm2116_vm10, %v4758_v42 }
0x147a   : > { %11981 = vmatpush3.bf16.msra.mxu0 %v4462_v58  ;;  %11984 = vmatprep.mubr.msk.bf16.mxu0 %vm13645_vm2, %v13644_v16  ;;  %v4467_v58 = vld [vmem:[#allocation3 + $0x68] sm:$0xff] }
0x147b   : > { %11982 = vmatprep.subr.bf16.mxu0 %v13644_v16 }
0x147c   : > { %v4870_v14 = vpop.xlane.xlu1 %4869 }
0x147d   : > { %v4871_v2 = vsub.f32 %v4862_v30, %v4870_v14 }
0x147e   : > { %11983 = vmatpush3.bf16.msra.mxu0 %v4463_v37 }
0x147f   : > { %v4872_v4 = vmul.f32 1.442695, %v4871_v2  ;;  %11988 = vmatprep.subr.bf16.mxu0 %v13644_v16 }
0x1480   : > { %v4886_v8 = vpop.permute.xlu1 %4885 }
0x1481   : > { %13483 = vpow2.f32 %v4872_v4  ;;  %11975 = vmatpush3.bf16.msra.mxu1 %v4886_v8  ;;  %11985 = vmatmul.mubr.msk.bf16.vlgmr.msra.gmra.mrb[96].mxu0 %vm3011_vm3, %v15312_v18 }
0x1482   : > { %11989 = vmatpush3.bf16.msra.mxu0 %v14539_v63  ;;  %12000 = vmatprep.subr.bf16.mxu1 %v13644_v16 }
0x1483   : > { %11990 = vmatprep.subr.bf16.mxu0 %v13644_v16  ;;  %11996 = vmatprep.mubr.msk.bf16.mxu0 %vm13645_vm2, %v13644_v16 }
0x1484   : > { %v5045_v10 = vpop.permute.xlu1 %5044 }
0x1486   : > { %11991 = vmatpush3.bf16.msra.mxu0 %v14566_v28 }
0x1487   : > { %11992 = vmatprep.subr.bf16.mxu0 %v13644_v16 }
0x1488   : > { %v5105_v41 = vpop.permute.xlu1 %5104 }
0x148a   : > { %11993 = vmatpush3.bf16.msra.mxu0 %v14677_v32 }
0x148b   : > { %v15341_v50 = vpop.eup %13483  ;;  %11994 = vmatprep.subr.bf16.mxu0 %v13644_v16 }
0x148c   : > { %v4878_v56 = vpack.c.bf16 %v15341_v50, %v15341_v50  ;;  %v5109_v48 = vpop.permute.xlu1 %5108 }
0x148e   : > { %11995 = vmatpush3.bf16.msra.mxu0 %v14695_v62  ;;  %11977 = vmatmul.mubr.msk.bf16.vlgmr.msra.gmra.mrb[60].mxu1 %vm2116_vm10, %v4878_v56 }
0x148f   : > { %12001 = vmatpush3.bf16.msra.mxu1 %v4464_v45  ;;  %12004 = vmatprep.mubr.msk.bf16.mxu1 %vm13645_vm2, %v13644_v16 }
0x1490   : > { %12002 = vmatprep.subr.bf16.mxu1 %v13644_v16  ;;  %12020 = vmatprep.subr.bf16.mxu0 %v13644_v16  ;;  %v5111_v7 = vpop.permute.xlu1 %5110 }
0x1493   : > { %12003 = vmatpush3.bf16.msra.mxu1 %v4465_v38  ;;  %v4468_v38 = vld [vmem:[#allocation3 + $0x70] sm:$0xff] }
0x1494   : > { %12008 = vmatprep.subr.bf16.mxu1 %v13644_v16 }
0x1496   : > { %12005 = vmatmul.mubr.msk.bf16.vlgmr.msra.gmra.mrb[64].mxu1 %vm3011_vm3, %v5045_v10 }
0x1497   : > { %12009 = vmatpush3.bf16.msra.mxu1 %v5105_v41  ;;  %12016 = vmatprep.mubr.msk.bf16.mxu1 %vm13645_vm2, %v13644_v16  ;;  %v5345_v41 = vpop.permute.xlu0 %5344 }
0x1498   : > { %12010 = vmatprep.subr.bf16.mxu1 %v13644_v16 }
0x149b   : > { %12011 = vmatpush3.bf16.msra.mxu1 %v5107_v46 }
0x149c   : > { %12012 = vmatprep.subr.bf16.mxu1 %v13644_v16 }
0x149f   : > { %12013 = vmatpush3.bf16.msra.mxu1 %v5109_v48  ;;  %v4754_v48 = vsel %vm2116_vm10, %v15322_v49, 0.0 }
0x14a0   : > { %12014 = vmatprep.subr.bf16.mxu1 %v13644_v16 }
0x14a3   : > { %12015 = vmatpush3.bf16.msra.mxu1 %v5111_v7  ;;  %v4469_v7 = vld [vmem:[#allocation3 + $0x78] sm:$0xff] }
0x14a4   : > { %12040 = vmatprep.subr.bf16.mxu1 %v13644_v16 }
0x154c   : > { %v15360_v40 = vpop.f32.mrb[92].mxu0 }
0x154d   : > { %v11958_v53 = vpop.f32.mrb[93].mxu0 }
0x154e   : > { %v4811_v44 = vpop.f32.mrb[94].mxu0  ;;  %v5347_v53 = vpop.permute.xlu0 %5346 }
0x154f   : > { %v11959_v55 = vpop.f32.mrb[95].mxu0 }
0x1552   : > { %v5349_v49 = vpop.permute.xlu0 %5348 }
0x1554   : > { %v4980_v26 = vpop.f32.mrb[96].mxu0 }
0x1555   : > { %v11986_v13 = vpop.f32.mrb[97].mxu0  ;;  %v4986_v57 = vsel %vm2116_vm10, %v4980_v26, -inf }
0x1556   : > { %4987 = vmax.xlane.f32.xlu1 %v4986_v57  ;;  %v4983_v1 = vpop.f32.mrb[98].mxu0  ;;  %v5351_v44 = vpop.permute.xlu0 %5350 }
0x1557   : > { %v11987_v54 = vpop.f32.mrb[99].mxu0 }
0x1561   : > { %v15363_v43 = vpop.f32.mrb[60].mxu1 }
0x1562   : > { %v11978_v60 = vpop.f32.mrb[61].mxu1 }
0x1563   : > { %v4931_v39 = vpop.f32.mrb[62].mxu1 }
0x1564   : > { %v11979_v51 = vpop.f32.mrb[63].mxu1 }
0x1569   : > { %v5083_v0 = vpop.f32.mrb[64].mxu1 }
0x156a   : > { %v12006_v29 = vpop.f32.mrb[65].mxu1  ;;  %v5089_v21 = vsel %vm2116_vm10, %v5083_v0, -inf }
0x156b   : > { %5090 = vmax.xlane.f32.xlu1 %v5089_v21  ;;  %v5086_v30 = vpop.f32.mrb[66].mxu1 }
0x156c   : > { %v12007_v17 = vpop.f32.mrb[67].mxu1 }
0x157c   : > { %5168 = vrot.lane.b32.xlu1 %v15312_v18, %s17390_s15 }
0x1580   : > { %5288 = vrot.lane.b32.xlu1 %v15312_v18, %s17388_s8  ;;  %v4466_v18 = vld [vmem:[#allocation3 + $0x60] sm:$0xff] }
0x1584   : > { %5224 = vrot.lane.b32.xlu1 %v14539_v63, %s17390_s15 }
0x1588   : > { %5226 = vrot.lane.b32.xlu1 %v14566_v28, %s17390_s15 }
0x158c   : > { %5228 = vrot.lane.b32.xlu1 %v14677_v32, %s17390_s15 }
0x15e3   : > { %v4988_v20 = vpop.xlane.xlu1 %4987 }
0x15e4   : > { %v4989_v47 = vsub.f32 %v4980_v26, %v4988_v20 }
0x15e6   : > { %v4990_v11 = vmul.f32 1.442695, %v4989_v47 }
0x15e8   : > { %13485 = vpow2.f32 %v4990_v11 }
0x15f2   : > { %v15376_v15 = vpop.eup %13485 }
0x15f3   : > { %v4996_v22 = vpack.c.bf16 %v15376_v15, %v15376_v15 }
0x15f5   : > { %11997 = vmatmul.mubr.msk.bf16.vlgmr.msra.gmra.mrb[100].mxu0 %vm2116_vm10, %v4996_v22 }
0x15f6   : > { %12021 = vmatpush3.bf16.msra.mxu0 %v4466_v18  ;;  %12024 = vmatprep.mubr.msk.bf16.mxu0 %vm13645_vm2, %v13644_v16  ;;  %v4630_v18 = vsel %vm2116_vm10, %v15280_v9, 0.0 }
0x15f7   : > { %12022 = vmatprep.subr.bf16.mxu0 %v13644_v16 }
0x15f8   : > { %v5091_v36 = vpop.xlane.xlu1 %5090 }
0x15f9   : > { %v5092_v42 = vsub.f32 %v5083_v0, %v5091_v36  ;;  %v4874_v36 = vsel %vm2116_vm10, %v15341_v50, 0.0 }
0x15fa   : > { %12023 = vmatpush3.bf16.msra.mxu0 %v4467_v58 }
0x15fb   : > { %v5093_v37 = vmul.f32 1.442695, %v5092_v42  ;;  %12028 = vmatprep.subr.bf16.mxu0 %v13644_v16  ;;  %v4527_v42 = vsel %vm2116_vm10, %v15267_v25, 0.0 }
0x15fc   : > { %v5169_v14 = vpop.permute.xlu1 %5168 }
0x15fd   : > { %13487 = vpow2.f32 %v5093_v37  ;;  %12025 = vmatmul.mubr.msk.bf16.vlgmr.msra.gmra.mrb[104].mxu0 %vm3011_vm3, %v5169_v14 }
0x15fe   : > { %12036 = vmatprep.mubr.msk.bf16.mxu0 %vm13645_vm2, %v13644_v16 }
0x1600   : > { %v5289_v2 = vpop.permute.xlu1 %5288 }
0x1604   : > { %v5225_v4 = vpop.permute.xlu1 %5224 }
0x1605   : > { %12029 = vmatpush3.bf16.msra.mxu0 %v5225_v4 }
0x1606   : > { %12030 = vmatprep.subr.bf16.mxu0 %v13644_v16 }
0x1607   : > { %v13488_v8 = vpop.eup %13487 }
0x1608   : > { %v5227_v56 = vpop.permute.xlu1 %5226  ;;  %v5095_v45 = vsel %vm2116_vm10, %v13488_v8, 0.0  ;;  %v5099_v10 = vpack.c.bf16 %v13488_v8, %v13488_v8 }
0x1609   : > { %5096 = vadd.xlane.f32.xlu0 %v5095_v45  ;;  %12031 = vmatpush3.bf16.msra.mxu0 %v5227_v56 }
0x160a   : > { %12017 = vmatmul.mubr.msk.bf16.vlgmr.msra.gmra.mrb[68].mxu1 %vm2116_vm10, %v5099_v10  ;;  %12032 = vmatprep.subr.bf16.mxu0 %v13644_v16 }
0x160b   : > { %12041 = vmatpush3.bf16.msra.mxu1 %v4468_v38  ;;  %12044 = vmatprep.mubr.msk.bf16.mxu1 %vm13645_vm2, %v13644_v16 }
0x160c   : > { %v5229_v46 = vpop.permute.xlu1 %5228  ;;  %12042 = vmatprep.subr.bf16.mxu1 %v13644_v16 }
0x160d   : > { %4755 = vadd.xlane.f32.xlu0 %v4754_v48  ;;  %12033 = vmatpush3.bf16.msra.mxu0 %v5229_v46 }
0x160e   : > { %12034 = vmatprep.subr.bf16.mxu0 %v13644_v16 }
0x160f   : > { %12043 = vmatpush3.bf16.msra.mxu1 %v4469_v7 }
0x1610   : > { %12048 = vmatprep.subr.bf16.mxu1 %v13644_v16 }
0x1612   : > { %12045 = vmatmul.mubr.msk.bf16.vlgmr.msra.gmra.mrb[72].mxu1 %vm3011_vm3, %v5289_v2 }
0x1613   : > { %12049 = vmatpush3.bf16.msra.mxu1 %v5345_v41  ;;  %12056 = vmatprep.mubr.msk.bf16.mxu1 %vm13645_vm2, %v13644_v16  ;;  %v4992_v41 = vsel %vm2116_vm10, %v15376_v15, 0.0 }
0x1614   : > { %12050 = vmatprep.subr.bf16.mxu1 %v13644_v16 }
0x1617   : > { %12051 = vmatpush3.bf16.msra.mxu1 %v5347_v53 }
0x1618   : > { %12052 = vmatprep.subr.bf16.mxu1 %v13644_v16 }
0x161b   : > { %12053 = vmatpush3.bf16.msra.mxu1 %v5349_v49 }
0x161c   : > { %12054 = vmatprep.subr.bf16.mxu1 %v13644_v16 }
0x161f   : > { %12055 = vmatpush3.bf16.msra.mxu1 %v5351_v44 }
0x1696   : > { %v5097_v46 = vpop.xlane.xlu0 %5096 }
0x169a   : > { %v4756_v49 = vpop.xlane.xlu0 %4755 }
0x16c8   : > { %v15405_v55 = vpop.f32.mrb[100].mxu0 }
0x16c9   : > { %v11998_v26 = vpop.f32.mrb[101].mxu0 }
0x16ca   : > { %v5037_v13 = vpop.f32.mrb[102].mxu0 }
0x16cb   : > { %v11999_v57 = vpop.f32.mrb[103].mxu0 }
0x16d0   : > { %v5207_v1 = vpop.f32.mrb[104].mxu0 }
0x16d1   : > { %v12026_v54 = vpop.f32.mrb[105].mxu0  ;;  %v5213_v60 = vsel %vm2116_vm10, %v5207_v1, -inf }
0x16d2   : > { %5214 = vmax.xlane.f32.xlu1 %v5213_v60  ;;  %v5210_v39 = vpop.f32.mrb[106].mxu0 }
0x16d3   : > { %v12027_v51 = vpop.f32.mrb[107].mxu0 }
0x16dd   : > { %v5153_v0 = vpop.f32.mrb[68].mxu1 }
0x16de   : > { %v12018_v29 = vpop.f32.mrb[69].mxu1 }
0x16df   : > { %v5156_v21 = vpop.f32.mrb[70].mxu1 }
0x16e0   : > { %v12019_v30 = vpop.f32.mrb[71].mxu1  ;;  %v12811_v21 = vld [vmem:[%s17308_s17] ss:$8 sps:$4 sm:$0xff]  }
0x16e1   : > { %v12819_v30 = vld [vmem:[%s17308_s17 + $0x24] ss:$8 sps:$4 sm:$0xff]  }
0x16e5   : > { %v5327_v17 = vpop.f32.mrb[72].mxu1 }
0x16e6   : > { %v12046_v20 = vpop.f32.mrb[73].mxu1  ;;  %v5333_v47 = vsel %vm2116_vm10, %v5327_v17, -inf }
0x16e7   : > { %5334 = vmax.xlane.f32.xlu1 %v5333_v47  ;;  %v5330_v11 = vpop.f32.mrb[74].mxu1  ;;  %v12822_v20 = vld [vmem:[%s17308_s17 + $0x34] ss:$8 sps:$4 sm:$0xff]   ;;  %v12820_v47 = vld [vmem:[%s17308_s17 + $0x30] ss:$8 sps:$4 sm:$0xff]  }
0x16e8   : > { %v12047_v22 = vpop.f32.mrb[75].mxu1  ;;  %v12825_v11 = vld [vmem:[%s17308_s17 + $0x44] ss:$8 sps:$4 sm:$0xff]  }
0x16e9   : > { %v12823_v22 = vld [vmem:[%s17308_s17 + $0x40] ss:$8 sps:$4 sm:$0xff]  }
0x16f8   : > { %5230 = vrot.lane.b32.xlu1 %v14695_v62, %s17390_s15 }
0x171c   : > { %4631 = vadd.xlane.f32.xlu1 %v4630_v18  ;;  %v12828_v18 = vld [vmem:[%s17308_s17 + $0x54] ss:$8 sps:$4 sm:$0xff]  }
0x1720   : > { %4875 = vadd.xlane.f32.xlu1 %v4874_v36  ;;  %v12826_v36 = vld [vmem:[%s17308_s17 + $0x50] ss:$8 sps:$4 sm:$0xff]  }
0x1724   : > { %4528 = vadd.xlane.f32.xlu1 %v4527_v42  ;;  %v12831_v42 = vld [vmem:[%s17308_s17 + $0x64] ss:$8 sps:$4 sm:$0xff]  }
0x175f   : > { %v5215_v58 = vpop.xlane.xlu1 %5214 }
0x1760   : > { %v5216_v37 = vsub.f32 %v5207_v1, %v5215_v58  ;;  %v12829_v58 = vld [vmem:[%s17308_s17 + $0x60] ss:$8 sps:$4 sm:$0xff]  }
0x1762   : > { %v5217_v14 = vmul.f32 1.442695, %v5216_v37  ;;  %v12834_v37 = vld [vmem:[%s17308_s17 + $0x74] ss:$8 sps:$4 sm:$0xff]  }
0x1764   : > { %13489 = vpow2.f32 %v5217_v14  ;;  %v12832_v14 = vld [vmem:[%s17308_s17 + $0x70] ss:$8 sps:$4 sm:$0xff]  }
0x176e   : > { %v13490_v2 = vpop.eup %13489 }
0x176f   : > { %v5219_v4 = vsel %vm2116_vm10, %v13490_v2, 0.0  ;;  %v5223_v50 = vpack.c.bf16 %v13490_v2, %v13490_v2  ;;  %v12837_v2 = vld [vmem:[%s17308_s17 + $0x84] ss:$8 sps:$4 sm:$0xff]  }
0x1770   : > { %5220 = vadd.xlane.f32.xlu0 %v5219_v4  ;;  %v12835_v4 = vld [vmem:[%s17308_s17 + $0x80] ss:$8 sps:$4 sm:$0xff]  }
0x1774   : > { %v5335_v8 = vpop.xlane.xlu1 %5334 }
0x1775   : > { %v5336_v56 = vsub.f32 %v5327_v17, %v5335_v8  ;;  %v12817_v17 = vld [vmem:[%s17308_s17 + $0x20] ss:$8 sps:$4 sm:$0xff]   ;;  %v12840_v8 = vld [vmem:[%s17308_s17 + $0x94] ss:$8 sps:$4 sm:$0xff]  }
0x1777   : > { %v5337_v9 = vmul.f32 1.442695, %v5336_v56  ;;  %v12838_v56 = vld [vmem:[%s17308_s17 + $0x90] ss:$8 sps:$4 sm:$0xff]  }
0x1778   : > { %v5231_v45 = vpop.permute.xlu1 %5230 }
0x1779   : > { %13491 = vpow2.f32 %v5337_v9  ;;  %12035 = vmatpush3.bf16.msra.mxu0 %v5231_v45  ;;  %v12843_v9 = vld [vmem:[%s17308_s17 + $0xa4] ss:$8 sps:$4 sm:$0xff]   ;;  %v12841_v45 = vld [vmem:[%s17308_s17 + $0xa0] ss:$8 sps:$4 sm:$0xff]  }
0x177a   : > { %13493 = vrcp.f32 %v5097_v46 }
0x177b   : > { %13495 = vrcp.f32 %v4756_v49  ;;  %v12846_v49 = vld [vmem:[%s17308_s17 + $0xb4] ss:$8 sps:$4 sm:$0xff]  }
0x177c   : > { %12037 = vmatmul.mubr.msk.bf16.vlgmr.msra.gmra.mrb[108].mxu0 %vm2116_vm10, %v5223_v50 }
0x1783   : > { %v13492_v10 = vpop.eup %13491 }
0x1784   : > { %v5339_v25 = vsel %vm2116_vm10, %v13492_v10, 0.0  ;;  %v5343_v38 = vpack.c.bf16 %v13492_v10, %v13492_v10  ;;  %v13494_v48 = vpop.eup %13493 }
0x1785   : > { %5340 = vadd.xlane.f32.xlu0 %v5339_v25  ;;  %v5159_v7 = vmul.f32 %v13494_v48, %v5153_v0  ;;  %v13496_v57 = vpop.eup %13495 }
0x1786   : > { %12057 = vmatmul.mubr.msk.bf16.vlgmr.msra.gmra.mrb[76].mxu1 %vm2116_vm10, %v5343_v38  ;;  %v4814_v60 = vmul.f32 %v13496_v57, %v15360_v40  ;;  %v12816_v40 = vld [vmem:[%s17308_s17 + $0x14] ss:$8 sps:$4 sm:$0xff]   ;;  %v12850_v57 = vld [vmem:[%s17308_s17 + $0xd0] ss:$8 sps:$4 sm:$0xff]  }
0x1787   : > { %v11564_v53 = vpack.c.bf16 %v5159_v7, %v5159_v7 }
0x1788   : > { %v11562_v39 = vpack.c.bf16 %v4814_v60, %v4814_v60 }
0x1789   : > { %4993 = vadd.xlane.f32.xlu0 %v4992_v41 }
0x179f   : > { %5164 = vrot.lane.b32.xlu0 %v11564_v53, %s17388_s8 }
0x17a9   : > { %v4632_v44 = vpop.xlane.xlu1 %4631 }
0x17aa   : > { %13497 = vrcp.f32 %v4632_v44  ;;  %v12849_v44 = vld [vmem:[%s17308_s17 + $0xc4] ss:$8 sps:$4 sm:$0xff]  }
0x17ad   : > { %v15424_v26 = vpop.xlane.xlu1 %4875 }
0x17b1   : > { %v4529_v13 = vpop.xlane.xlu1 %4528 }
0x17b2   : > { %13499 = vrcp.f32 %v4529_v13  ;;  %v12847_v13 = vld [vmem:[%s17308_s17 + $0xc0] ss:$8 sps:$4 sm:$0xff]  }
0x17b4   : > { %v13498_v1 = vpop.eup %13497 }
0x17b5   : > { %v4694_v15 = vmul.f32 %v13498_v1, %v15305_v24  ;;  %v12813_v24 = vld [vmem:[%s17308_s17 + $0x4] ss:$8 sps:$4 sm:$0xff]  }
0x17b6   : > { %5620 = vmatprep.subr.bf16.mxu0 %v12813_v24  ;;  %v12855_v24 = vld [vmem:[%s17308_s17 + $0xe4] ss:$8 sps:$4 sm:$0xff]  }
0x17b7   : > { %v11561_v54 = vpack.c.bf16 %v4694_v15, %v4694_v15  ;;  %5621 = vmatpush1.bf16.msra.mxu0 %v12811_v21 }
0x17b8   : > { %5622 = vmatprep.subr.bf16.mxu0 %v12816_v40  ;;  %v12853_v40 = vld [vmem:[%s17308_s17 + $0xe0] ss:$8 sps:$4 sm:$0xff]  }
0x17b9   : > { %4699 = vrot.lane.b32.xlu1 %v11561_v54, %s17388_s8 }
0x17bc   : > { %v13500_v51 = vpop.eup %13499 }
0x17bd   : > { %v4575_v0 = vmul.f32 %v13500_v51, %v15302_v19  ;;  %4819 = vrot.lane.b32.xlu1 %v11562_v39, %s17390_s15  ;;  %v12814_v19 = vld [vmem:[%s17308_s17 + $0x10] ss:$8 sps:$4 sm:$0xff]  }
0x17be   : > { %5623 = vmatpush1.bf16.msra.mxu0 %v12814_v19 }
0x17bf   : > { %v4576_v29 = vpack.c.bf16 %v4575_v0, %v4575_v0  ;;  %5624 = vmatprep.subr.bf16.mxu0 %v12819_v30  ;;  %v12858_v30 = vld [vmem:[%s17308_s17 + $0xf4] ss:$8 sps:$4 sm:$0xff]  }
0x17c1   : > { %4577 = vst.msk [vmem:[#allocation2] sm:$0xf] %vm3116_vm6, %v4576_v29 }
0x17c2   : > { %5625 = vmatpush1.bf16.msra.mxu0 %v12817_v17 }
0x17c3   : > { %5626 = vmatprep.subr.bf16.mxu0 %v12822_v20 }
0x17c6   : > { %5627 = vmatpush1.bf16.msra.mxu0 %v12820_v47 }
0x17c7   : > { %5628 = vmatprep.subr.bf16.mxu0 %v12825_v11 }
0x17ca   : > { %5629 = vmatpush1.bf16.msra.mxu0 %v12823_v22  ;;  %v12862_v22 = vld [vmem:[%s17310_s19 + $0x4] ss:$8 sps:$4 sm:$0xff]  }
0x17cb   : > { %5630 = vmatprep.subr.bf16.mxu0 %v12828_v18 }
0x17ce   : > { %5631 = vmatpush1.bf16.msra.mxu0 %v12826_v36 }
0x17cf   : > { %5632 = vmatprep.subr.bf16.mxu0 %v12831_v42 }
0x17d2   : > { %5633 = vmatpush1.bf16.msra.mxu0 %v12829_v58  ;;  %v12909_v58 = vld [vmem:[%s17311_s20] ss:$8 sps:$4 sm:$0xff]  }
0x17d3   : > { %5634 = vmatprep.subr.bf16.mxu0 %v12834_v37  ;;  %v12911_v37 = vld [vmem:[%s17311_s20 + $0x4] ss:$8 sps:$4 sm:$0xff]  }
0x17d4   : > { %5889 = vmatprep.subr.bf16.mxu1 %v12911_v37  ;;  %v12876_v37 = vld [vmem:[%s17310_s19 + $0x50] ss:$8 sps:$4 sm:$0xff]  }
0x17d5   : > { %5890 = vmatpush1.bf16.msra.mxu1 %v12909_v58  ;;  %v12878_v58 = vld [vmem:[%s17310_s19 + $0x54] ss:$8 sps:$4 sm:$0xff]  }
0x17d6   : > { %5635 = vmatpush1.bf16.msra.mxu0 %v12832_v14  ;;  %v12914_v14 = vld [vmem:[%s17311_s20 + $0x14] ss:$8 sps:$4 sm:$0xff]  }
0x17d7   : > { %5636 = vmatprep.subr.bf16.mxu0 %v12837_v2  ;;  %v12912_v2 = vld [vmem:[%s17311_s20 + $0x10] ss:$8 sps:$4 sm:$0xff]   ;;  %5891 = vmatprep.subr.bf16.mxu1 %v12914_v14  ;;  %v12881_v14 = vld [vmem:[%s17310_s19 + $0x64] ss:$8 sps:$4 sm:$0xff]  }
0x17d9   : > { %5892 = vmatpush1.bf16.msra.mxu1 %v12912_v2  ;;  %v12879_v2 = vld [vmem:[%s17310_s19 + $0x60] ss:$8 sps:$4 sm:$0xff]  }
0x17da   : > { %5637 = vmatpush1.bf16.msra.mxu0 %v12835_v4  ;;  %v12917_v4 = vld [vmem:[%s17311_s20 + $0x24] ss:$8 sps:$4 sm:$0xff]  }
0x17db   : > { %5638 = vmatprep.subr.bf16.mxu0 %v12840_v8  ;;  %v12915_v8 = vld [vmem:[%s17311_s20 + $0x20] ss:$8 sps:$4 sm:$0xff]   ;;  %5893 = vmatprep.subr.bf16.mxu1 %v12917_v4  ;;  %v12884_v4 = vld [vmem:[%s17310_s19 + $0x74] ss:$8 sps:$4 sm:$0xff]  }
0x17dd   : > { %5894 = vmatpush1.bf16.msra.mxu1 %v12915_v8  ;;  %v12882_v8 = vld [vmem:[%s17310_s19 + $0x70] ss:$8 sps:$4 sm:$0xff]  }
0x17de   : > { %5639 = vmatpush1.bf16.msra.mxu0 %v12838_v56  ;;  %v12920_v56 = vld [vmem:[%s17311_s20 + $0x34] ss:$8 sps:$4 sm:$0xff]  }
0x17df   : > { %5640 = vmatprep.subr.bf16.mxu0 %v12843_v9  ;;  %v12918_v9 = vld [vmem:[%s17311_s20 + $0x30] ss:$8 sps:$4 sm:$0xff]   ;;  %5895 = vmatprep.subr.bf16.mxu1 %v12920_v56  ;;  %v12887_v56 = vld [vmem:[%s17310_s19 + $0x84] ss:$8 sps:$4 sm:$0xff]  }
0x17e1   : > { %5896 = vmatpush1.bf16.msra.mxu1 %v12918_v9  ;;  %v12885_v9 = vld [vmem:[%s17310_s19 + $0x80] ss:$8 sps:$4 sm:$0xff]  }
0x17e2   : > { %5641 = vmatpush1.bf16.msra.mxu0 %v12841_v45  ;;  %v12923_v45 = vld [vmem:[%s17311_s20 + $0x44] ss:$8 sps:$4 sm:$0xff]  }
0x17e3   : > { %5642 = vmatprep.subr.bf16.mxu0 %v12846_v49  ;;  %5897 = vmatprep.subr.bf16.mxu1 %v12923_v45  ;;  %v12938_v49 = vld [vmem:[%s17311_s20 + $0x94] ss:$8 sps:$4 sm:$0xff]  }
0x17e4   : > { %v12890_v45 = vld [vmem:[%s17310_s19 + $0x94] ss:$8 sps:$4 sm:$0xff]  }
0x17fd   : > { %v5221_v50 = vpop.xlane.xlu0 %5220 }
0x1812   : > { %v5341_v10 = vpop.xlane.xlu0 %5340 }
0x1816   : > { %v4994_v25 = vpop.xlane.xlu0 %4993 }
0x1817   : > { %13501 = vrcp.f32 %v4994_v25  ;;  %v12924_v25 = vld [vmem:[%s17311_s20 + $0x50] ss:$8 sps:$4 sm:$0xff]  }
0x1818   : > { %13503 = vrcp.f32 %v15424_v26  ;;  %v12852_v26 = vld [vmem:[%s17308_s17 + $0xd4] ss:$8 sps:$4 sm:$0xff]  }
0x1819   : > { %13505 = vrcp.f32 %v5221_v50  ;;  %v12921_v50 = vld [vmem:[%s17311_s20 + $0x40] ss:$8 sps:$4 sm:$0xff]  }
0x181a   : > { %v5165_v48 = vpop.permute.xlu0 %5164  ;;  %13507 = vrcp.f32 %v5341_v10  ;;  %v12926_v10 = vld [vmem:[%s17311_s20 + $0x54] ss:$8 sps:$4 sm:$0xff]   ;;  %5898 = vmatpush1.bf16.msra.mxu1 %v12921_v50  ;;  %v12888_v50 = vld [vmem:[%s17310_s19 + $0x90] ss:$8 sps:$4 sm:$0xff]  }
0x181b   : > { %5899 = vmatprep.subr.bf16.mxu1 %v12926_v10  ;;  %v12893_v10 = vld [vmem:[%s17310_s19 + $0xa4] ss:$8 sps:$4 sm:$0xff]  }
0x181e   : > { %5900 = vmatpush1.bf16.msra.mxu1 %v12924_v25  ;;  %v12891_v25 = vld [vmem:[%s17310_s19 + $0xa0] ss:$8 sps:$4 sm:$0xff]  }
0x1821   : > { %v13502_v38 = vpop.eup %13501 }
0x1822   : > { %v5040_v41 = vmul.f32 %v13502_v38, %v15405_v55  ;;  %v12844_v55 = vld [vmem:[%s17308_s17 + $0xb0] ss:$8 sps:$4 sm:$0xff]   ;;  %v13504_v1 = vpop.eup %13503  ;;  %v12929_v38 = vld [vmem:[%s17311_s20 + $0x64] ss:$8 sps:$4 sm:$0xff]  }
0x1823   : > { %5643 = vmatpush1.bf16.msra.mxu0 %v12844_v55  ;;  %v13506_v15 = vpop.eup %13505  ;;  %v4934_v21 = vmul.f32 %v13504_v1, %v15363_v43  ;;  %v12856_v43 = vld [vmem:[%s17308_s17 + $0xf0] ss:$8 sps:$4 sm:$0xff]   ;;  %5901 = vmatprep.subr.bf16.mxu1 %v12929_v38  ;;  %v12896_v38 = vld [vmem:[%s17310_s19 + $0xb4] ss:$8 sps:$4 sm:$0xff]  }
0x1824   : > { %v5041_v46 = vpack.c.bf16 %v5040_v41, %v5040_v41  ;;  %5644 = vmatprep.subr.bf16.mxu0 %v12849_v44  ;;  %v13508_v17 = vpop.eup %13507  ;;  %v12927_v41 = vld [vmem:[%s17311_s20 + $0x60] ss:$8 sps:$4 sm:$0xff]   ;;  %v12936_v55 = vld [vmem:[%s17311_s20 + $0x90] ss:$8 sps:$4 sm:$0xff]   ;;  %v12941_v44 = vld [vmem:[%s17311_s20 + $0xa4] ss:$8 sps:$4 sm:$0xff]  }
0x1825   : > { %v11563_v19 = vpack.c.bf16 %v4934_v21, %v4934_v21  ;;  %5902 = vmatpush1.bf16.msra.mxu1 %v12927_v41  ;;  %v12942_v1 = vld [vmem:[%s17311_s20 + $0xb0] ss:$8 sps:$4 sm:$0xff]   ;;  %v12951_v21 = vld [vmem:[%s17311_s20 + $0xe0] ss:$8 sps:$4 sm:$0xff]  }
0x1826   : > { %5042 = vst.msk [vmem:[#allocation2 + $0x4] sm:$0xf] %vm3116_vm6, %v5041_v46  ;;  %v12932_v46 = vld [vmem:[%s17311_s20 + $0x74] ss:$8 sps:$4 sm:$0xff]   ;;  %v12894_v41 = vld [vmem:[%s17310_s19 + $0xb0] ss:$8 sps:$4 sm:$0xff]  }
0x1827   : > { %5167 = vst.msk [vmem:[#allocation2 + $0x4] sm:$0xf] %vm3232_vm7, %v5165_v48  ;;  %5645 = vmatpush1.bf16.msra.mxu0 %v12847_v13  ;;  %v12930_v48 = vld [vmem:[%s17311_s20 + $0x70] ss:$8 sps:$4 sm:$0xff]   ;;  %5903 = vmatprep.subr.bf16.mxu1 %v12932_v46  ;;  %v12939_v13 = vld [vmem:[%s17311_s20 + $0xa0] ss:$8 sps:$4 sm:$0xff]  }
0x1828   : > { %5646 = vmatprep.subr.bf16.mxu0 %v12852_v26  ;;  %v12944_v26 = vld [vmem:[%s17311_s20 + $0xb4] ss:$8 sps:$4 sm:$0xff]   ;;  %v12899_v46 = vld [vmem:[%s17310_s19 + $0xc4] ss:$8 sps:$4 sm:$0xff]  }
0x1829   : > { %5904 = vmatpush1.bf16.msra.mxu1 %v12930_v48  ;;  %v12897_v48 = vld [vmem:[%s17310_s19 + $0xc0] ss:$8 sps:$4 sm:$0xff]  }
0x182b   : > { %v4700_v7 = vpop.permute.xlu1 %4699  ;;  %5647 = vmatpush1.bf16.msra.mxu0 %v12850_v57 }
0x182c   : > { %4702 = vst.msk [vmem:[#allocation2] sm:$0xf] %vm3232_vm7, %v4700_v7  ;;  %5648 = vmatprep.subr.bf16.mxu0 %v12855_v24  ;;  %v12935_v7 = vld [vmem:[%s17311_s20 + $0x84] ss:$8 sps:$4 sm:$0xff]  }
0x182d   : > { %5905 = vmatprep.subr.bf16.mxu1 %v12935_v7  ;;  %v12902_v7 = vld [vmem:[%s17310_s19 + $0xd4] ss:$8 sps:$4 sm:$0xff]  }
0x182f   : > { %v4820_v53 = vpop.permute.xlu1 %4819  ;;  %5649 = vmatpush1.bf16.msra.mxu0 %v12853_v40 }
0x1830   : > { %4822 = vst.msk [vmem:[#allocation2] sm:$0xf] %vm3346_vm8, %v4820_v53  ;;  %5650 = vmatprep.subr.bf16.mxu0 %v12858_v30  ;;  %v12933_v53 = vld [vmem:[%s17311_s20 + $0x80] ss:$8 sps:$4 sm:$0xff]  }
0x1831   : > { %5906 = vmatpush1.bf16.msra.mxu1 %v12933_v53  ;;  %v12900_v53 = vld [vmem:[%s17310_s19 + $0xd0] ss:$8 sps:$4 sm:$0xff]  }
0x1832   : > { %5907 = vmatprep.subr.bf16.mxu1 %v12938_v49  ;;  %v12905_v49 = vld [vmem:[%s17310_s19 + $0xe4] ss:$8 sps:$4 sm:$0xff]  }
0x1833   : > { %5651 = vmatpush1.bf16.msra.mxu0 %v12856_v43  ;;  %v12866_v43 = vld [vmem:[%s17310_s19 + $0x14] ss:$8 sps:$4 sm:$0xff]  }
0x1834   : > { %6090 = vmatprep.subr.bf16.mxu0 %v12862_v22  ;;  %v12872_v22 = vld [vmem:[%s17310_s19 + $0x34] ss:$8 sps:$4 sm:$0xff]  }
0x1835   : > { %5908 = vmatpush1.bf16.msra.mxu1 %v12936_v55  ;;  %v12903_v55 = vld [vmem:[%s17310_s19 + $0xe0] ss:$8 sps:$4 sm:$0xff]  }
0x1836   : > { %5909 = vmatprep.subr.bf16.mxu1 %v12941_v44  ;;  %v12908_v44 = vld [vmem:[%s17310_s19 + $0xf4] ss:$8 sps:$4 sm:$0xff]  }
0x1839   : > { %5910 = vmatpush1.bf16.msra.mxu1 %v12939_v13  ;;  %v12906_v13 = vld [vmem:[%s17310_s19 + $0xf0] ss:$8 sps:$4 sm:$0xff]  }
0x183a   : > { %5911 = vmatprep.subr.bf16.mxu1 %v12944_v26  ;;  %v5661_v26 = vpack.c.bf16 %v15036_v34, %v15036_v34 }
0x183d   : > { %5912 = vmatpush1.bf16.msra.mxu1 %v12942_v1  ;;  %v12954_v1 = vld [vmem:[%s17311_s20 + $0xf0] ss:$8 sps:$4 sm:$0xff]  }
0x184f   : > { %v5273_v54 = vpop.f32.mrb[108].mxu0 }
0x1850   : > { %v5279_v60 = vmul.f32 %v13506_v15, %v5273_v54  ;;  %v12038_v39 = vpop.f32.mrb[109].mxu0  ;;  %v12947_v15 = vld [vmem:[%s17311_s20 + $0xc4] ss:$8 sps:$4 sm:$0xff]  }
0x1851   : > { %v5276_v51 = vpop.f32.mrb[110].mxu0  ;;  %5913 = vmatprep.subr.bf16.mxu1 %v12947_v15  ;;  %v12950_v39 = vld [vmem:[%s17311_s20 + $0xd4] ss:$8 sps:$4 sm:$0xff]   ;;  %v12959_v15 = vld [vmem:[%s17313_s22 + $0x4] ss:$8 sps:$4 sm:$0xff]  }
0x1852   : > { %v11565_v0 = vpack.c.bf16 %v5279_v60, %v5279_v60  ;;  %v12039_v29 = vpop.f32.mrb[111].mxu0  ;;  %v12945_v60 = vld [vmem:[%s17311_s20 + $0xc0] ss:$8 sps:$4 sm:$0xff]   ;;  %v12948_v51 = vld [vmem:[%s17311_s20 + $0xd0] ss:$8 sps:$4 sm:$0xff]  }
0x1853   : > { %5914 = vmatpush1.bf16.msra.mxu1 %v12945_v60  ;;  %v12953_v29 = vld [vmem:[%s17311_s20 + $0xe4] ss:$8 sps:$4 sm:$0xff]  }
0x1854   : > { %5284 = vrot.lane.b32.xlu1 %v11565_v0, %s17390_s15  ;;  %5915 = vmatprep.subr.bf16.mxu1 %v12950_v39 }
0x1857   : > { %5916 = vmatpush1.bf16.msra.mxu1 %v12948_v51 }
0x1858   : > { %4939 = vrot.lane.b32.xlu1 %v11563_v19, %s17389_s6  ;;  %5917 = vmatprep.subr.bf16.mxu1 %v12953_v29  ;;  %v12860_v19 = vld [vmem:[%s17310_s19] ss:$8 sps:$4 sm:$0xff]  }
0x1859   : > { %v5393_v20 = vpop.f32.mrb[76].mxu1 }
0x185a   : > { %v5399_v47 = vmul.f32 %v13508_v17, %v5393_v20  ;;  %v12058_v11 = vpop.f32.mrb[77].mxu1  ;;  %v5662_v17 = vpack.c.bf16 %v15039_v52, %v15039_v52  ;;  %v12864_v20 = vld [vmem:[%s17310_s19 + $0x10] ss:$8 sps:$4 sm:$0xff]  }
0x185b   : > { %v5396_v18 = vpop.f32.mrb[78].mxu1  ;;  %5918 = vmatpush1.bf16.msra.mxu1 %v12951_v21  ;;  %v12867_v11 = vld [vmem:[%s17310_s19 + $0x20] ss:$8 sps:$4 sm:$0xff]  }
0x185c   : > { %v11566_v36 = vpack.c.bf16 %v5399_v47, %v5399_v47  ;;  %v12059_v42 = vpop.f32.mrb[79].mxu1  ;;  %v12869_v47 = vld [vmem:[%s17310_s19 + $0x24] ss:$8 sps:$4 sm:$0xff]   ;;  %v12870_v18 = vld [vmem:[%s17310_s19 + $0x30] ss:$8 sps:$4 sm:$0xff]  }
0x185d   : > { %v12873_v42 = vld [vmem:[%s17310_s19 + $0x40] ss:$8 sps:$4 sm:$0xff]  }
0x185e   : > { %5404 = vrot.lane.b32.xlu0 %v11566_v36, %s17389_s6  ;;  %v12875_v36 = vld [vmem:[%s17310_s19 + $0x44] ss:$8 sps:$4 sm:$0xff]  }
0x18c6   : > { %v5285_v57 = vpop.permute.xlu1 %5284 }
0x18c7   : > { %5287 = vst.msk [vmem:[#allocation2 + $0x4] sm:$0xf] %vm3346_vm8, %v5285_v57  ;;  %v12956_v57 = vld [vmem:[%s17311_s20 + $0xf4] ss:$8 sps:$4 sm:$0xff]  }
0x18c8   : > { %5919 = vmatprep.subr.bf16.mxu1 %v12956_v57  ;;  %v12999_v57 = vld [vmem:[%s17313_s22 + $0xe0] ss:$8 sps:$4 sm:$0xff]  }
0x18c9   : > { %5920 = vmatpush1.bf16.msra.mxu1 %v12954_v1  ;;  %v13004_v1 = vld [vmem:[%s17313_s22 + $0xf4] ss:$8 sps:$4 sm:$0xff]  }
0x18ca   : > { %v4940_v54 = vpop.permute.xlu1 %4939  ;;  %6353 = vmatprep.subr.bf16.mxu1 %v12959_v15  ;;  %v13002_v15 = vld [vmem:[%s17313_s22 + $0xf0] ss:$8 sps:$4 sm:$0xff]  }
0x18cb   : > { %4942 = vst.msk [vmem:[#allocation2] sm:$0xf] %vm3460_vm9, %v4940_v54  ;;  %v5441_v54 = vld [vmem:[%s17309_s18] sm:$0x3] }
0x18cc   : > { %v5446_v60 = vrot.slane %v5441_v54, %v14039_v5  ;;  %v5450_v39 = vrot.slane %v5441_v54, %v14042_v6  ;;  %v6131_v54 = vld [vmem:[%s17312_s21] sm:$0x3] }
0x18d0   : > { %v5405_v0 = vpop.permute.xlu0 %5404 }
0x18d1   : > { %5407 = vst.msk [vmem:[#allocation2 + $0x4] sm:$0xf] %vm3460_vm9, %v5405_v0 }
0x18d8   : > { %v5408_v24 = vld [vmem:[#allocation2] sm:$0xff] }
0x18d9   : > { %v11083_v40 = vcombine.high %v5408_v24, %v5408_v24  ;;  %v11082_v30 = vcombine.low %v5408_v24, %v5408_v24 }
0x18db   : > { %5652 = vmatprep.mubr.bf16.mxu0 %v11083_v40 }
0x18dc   : > { %5653 = vmatmul.mubr.bf16.vlgmr.msra.gmra.mrb[112].mxu0 %v11082_v30  ;;  %v12957_v30 = vld [vmem:[%s17313_s22] ss:$8 sps:$4 sm:$0xff]  }
0x18dd   : > { %6091 = vmatpush1.bf16.msra.mxu0 %v12860_v19  ;;  %6122 = vmatprep.mubr.bf16.mxu0 %v5662_v17  ;;  %v12962_v17 = vld [vmem:[%s17313_s22 + $0x14] ss:$8 sps:$4 sm:$0xff]  }
0x18de   : > { %6092 = vmatprep.subr.bf16.mxu0 %v12866_v43 }
0x18e1   : > { %6093 = vmatpush1.bf16.msra.mxu0 %v12864_v20  ;;  %v12960_v20 = vld [vmem:[%s17313_s22 + $0x10] ss:$8 sps:$4 sm:$0xff]  }
0x18e2   : > { %6094 = vmatprep.subr.bf16.mxu0 %v12869_v47  ;;  %v12965_v47 = vld [vmem:[%s17313_s22 + $0x24] ss:$8 sps:$4 sm:$0xff]  }
0x18e5   : > { %6095 = vmatpush1.bf16.msra.mxu0 %v12867_v11  ;;  %v12963_v11 = vld [vmem:[%s17313_s22 + $0x20] ss:$8 sps:$4 sm:$0xff]  }
0x18e6   : > { %6096 = vmatprep.subr.bf16.mxu0 %v12872_v22  ;;  %v12968_v22 = vld [vmem:[%s17313_s22 + $0x34] ss:$8 sps:$4 sm:$0xff]  }
0x18e9   : > { %6097 = vmatpush1.bf16.msra.mxu0 %v12870_v18  ;;  %v12966_v18 = vld [vmem:[%s17313_s22 + $0x30] ss:$8 sps:$4 sm:$0xff]  }
0x18ea   : > { %6098 = vmatprep.subr.bf16.mxu0 %v12875_v36  ;;  %v12971_v36 = vld [vmem:[%s17313_s22 + $0x44] ss:$8 sps:$4 sm:$0xff]  }
0x18ed   : > { %6099 = vmatpush1.bf16.msra.mxu0 %v12873_v42  ;;  %v12969_v42 = vld [vmem:[%s17313_s22 + $0x40] ss:$8 sps:$4 sm:$0xff]  }
0x18ee   : > { %6100 = vmatprep.subr.bf16.mxu0 %v12878_v58  ;;  %v12974_v58 = vld [vmem:[%s17313_s22 + $0x54] ss:$8 sps:$4 sm:$0xff]  }
0x18f1   : > { %6101 = vmatpush1.bf16.msra.mxu0 %v12876_v37  ;;  %v12972_v37 = vld [vmem:[%s17313_s22 + $0x50] ss:$8 sps:$4 sm:$0xff]  }
0x18f2   : > { %6102 = vmatprep.subr.bf16.mxu0 %v12881_v14  ;;  %v12977_v14 = vld [vmem:[%s17313_s22 + $0x64] ss:$8 sps:$4 sm:$0xff]  }
0x18f5   : > { %6103 = vmatpush1.bf16.msra.mxu0 %v12879_v2  ;;  %v12975_v2 = vld [vmem:[%s17313_s22 + $0x60] ss:$8 sps:$4 sm:$0xff]  }
0x18f6   : > { %6104 = vmatprep.subr.bf16.mxu0 %v12884_v4  ;;  %v12980_v4 = vld [vmem:[%s17313_s22 + $0x74] ss:$8 sps:$4 sm:$0xff]  }
0x18f9   : > { %6105 = vmatpush1.bf16.msra.mxu0 %v12882_v8  ;;  %v12978_v8 = vld [vmem:[%s17313_s22 + $0x70] ss:$8 sps:$4 sm:$0xff]  }
0x18fa   : > { %6106 = vmatprep.subr.bf16.mxu0 %v12887_v56  ;;  %v12983_v56 = vld [vmem:[%s17313_s22 + $0x84] ss:$8 sps:$4 sm:$0xff]  }
0x18fd   : > { %6107 = vmatpush1.bf16.msra.mxu0 %v12885_v9  ;;  %v12981_v9 = vld [vmem:[%s17313_s22 + $0x80] ss:$8 sps:$4 sm:$0xff]  }
0x18fe   : > { %6108 = vmatprep.subr.bf16.mxu0 %v12890_v45  ;;  %v12986_v45 = vld [vmem:[%s17313_s22 + $0x94] ss:$8 sps:$4 sm:$0xff]  }
0x1901   : > { %6109 = vmatpush1.bf16.msra.mxu0 %v12888_v50  ;;  %v12984_v50 = vld [vmem:[%s17313_s22 + $0x90] ss:$8 sps:$4 sm:$0xff]  }
0x1902   : > { %6110 = vmatprep.subr.bf16.mxu0 %v12893_v10  ;;  %v12989_v10 = vld [vmem:[%s17313_s22 + $0xa4] ss:$8 sps:$4 sm:$0xff]  }
0x1905   : > { %6111 = vmatpush1.bf16.msra.mxu0 %v12891_v25  ;;  %v12987_v25 = vld [vmem:[%s17313_s22 + $0xa0] ss:$8 sps:$4 sm:$0xff]  }
0x1906   : > { %6112 = vmatprep.subr.bf16.mxu0 %v12896_v38  ;;  %v12992_v38 = vld [vmem:[%s17313_s22 + $0xb4] ss:$8 sps:$4 sm:$0xff]  }
0x1909   : > { %6113 = vmatpush1.bf16.msra.mxu0 %v12894_v41  ;;  %v12990_v41 = vld [vmem:[%s17313_s22 + $0xb0] ss:$8 sps:$4 sm:$0xff]  }
0x190a   : > { %6114 = vmatprep.subr.bf16.mxu0 %v12899_v46  ;;  %v12995_v46 = vld [vmem:[%s17313_s22 + $0xc4] ss:$8 sps:$4 sm:$0xff]  }
0x190d   : > { %6115 = vmatpush1.bf16.msra.mxu0 %v12897_v48  ;;  %v12993_v48 = vld [vmem:[%s17313_s22 + $0xc0] ss:$8 sps:$4 sm:$0xff]  }
0x190e   : > { %6116 = vmatprep.subr.bf16.mxu0 %v12902_v7  ;;  %v12998_v7 = vld [vmem:[%s17313_s22 + $0xd4] ss:$8 sps:$4 sm:$0xff]  }
0x1911   : > { %6117 = vmatpush1.bf16.msra.mxu0 %v12900_v53  ;;  %v12996_v53 = vld [vmem:[%s17313_s22 + $0xd0] ss:$8 sps:$4 sm:$0xff]  }
0x1912   : > { %6118 = vmatprep.subr.bf16.mxu0 %v12905_v49 }
0x1915   : > { %6119 = vmatpush1.bf16.msra.mxu0 %v12903_v55 }
0x1916   : > { %6120 = vmatprep.subr.bf16.mxu0 %v12908_v44 }
0x1919   : > { %6121 = vmatpush1.bf16.msra.mxu0 %v12906_v13 }
0x191c   : > { %6123 = vmatmul.mubr.bf16.vlgmr.msra.gmra.mrb[116].mxu0 %v5661_v26  ;;  %v13001_v26 = vld [vmem:[%s17313_s22 + $0xe4] ss:$8 sps:$4 sm:$0xff]  }
0x19af   : > { %v5654_v51 = vpop.f32.mrb[112].mxu0 }
0x19b0   : > { %v5655_v0 = vadd.f32 %v5654_v51, %v5446_v60  ;;  %v5656_v29 = vpop.f32.mrb[113].mxu0  ;;  %v6136_v60 = vrot.slane %v6131_v54, %v14039_v5  ;;  %v6140_v51 = vrot.slane %v6131_v54, %v14042_v6  ;;  %v13040_v54 = vld [vmem:[%s17383_s29 + $0xfc] ss:$24 sps:$4 sm:$0xff]  }
0x19b1   : > { %v5657_v21 = vadd.f32 %v5656_v29, %v5450_v39  ;;  %v5658_v24 = vpop.f32.mrb[114].mxu0 }
0x19b2   : > { %v5659_v40 = vpop.f32.mrb[115].mxu0  ;;  %v5695_v43 = vpack.c.bf16 %v5655_v0, %v5655_v0 }
0x19b3   : > { %v5696_v19 = vpack.c.bf16 %v5657_v21, %v5657_v21 }
0x19b5   : > { %5921 = vmatprep.mubr.bf16.mxu1 %v5696_v19 }
0x19b6   : > { %5922 = vmatmul.mubr.bf16.vlgmr.msra.gmra.mrb[80].mxu1 %v5695_v43 }
0x19b7   : > { %6354 = vmatpush1.bf16.msra.mxu1 %v12957_v30 }
0x19b8   : > { %6355 = vmatprep.subr.bf16.mxu1 %v12962_v17 }
0x19bb   : > { %6356 = vmatpush1.bf16.msra.mxu1 %v12960_v20 }
0x19bc   : > { %6357 = vmatprep.subr.bf16.mxu1 %v12965_v47 }
0x19bf   : > { %6358 = vmatpush1.bf16.msra.mxu1 %v12963_v11  ;;  %v6181_v11 = vld [vmem:[%s17314_s23] sm:$0x3] }
0x19c0   : > { %6359 = vmatprep.subr.bf16.mxu1 %v12968_v22  ;;  %v6186_v22 = vrot.slane %v6181_v11, %v14039_v5 }
0x19c3   : > { %6360 = vmatpush1.bf16.msra.mxu1 %v12966_v18  ;;  %v6190_v18 = vrot.slane %v6181_v11, %v14042_v6  ;;  %v13061_v11 = vld [vmem:[%s17383_s29 + $0x1b4] ss:$24 sps:$4 sm:$0xff]  }
0x19c4   : > { %6361 = vmatprep.subr.bf16.mxu1 %v12971_v36 }
0x19c7   : > { %6362 = vmatpush1.bf16.msra.mxu1 %v12969_v42 }
0x19c8   : > { %6363 = vmatprep.subr.bf16.mxu1 %v12974_v58 }
0x19cb   : > { %6364 = vmatpush1.bf16.msra.mxu1 %v12972_v37 }
0x19cc   : > { %6365 = vmatprep.subr.bf16.mxu1 %v12977_v14 }
0x19cf   : > { %6366 = vmatpush1.bf16.msra.mxu1 %v12975_v2 }
0x19d0   : > { %6367 = vmatprep.subr.bf16.mxu1 %v12980_v4 }
0x19d3   : > { %6368 = vmatpush1.bf16.msra.mxu1 %v12978_v8 }
0x19d4   : > { %6369 = vmatprep.subr.bf16.mxu1 %v12983_v56 }
0x19d7   : > { %6370 = vmatpush1.bf16.msra.mxu1 %v12981_v9  ;;  %v13005_v9 = vld [vmem:[%s17383_s29] ss:$24 sps:$4 sm:$0xff]  }
0x19d8   : > { %6371 = vmatprep.subr.bf16.mxu1 %v12986_v45  ;;  %v13007_v45 = vld [vmem:[%s17383_s29 + $0x4] ss:$24 sps:$4 sm:$0xff]  }
0x19d9   : > { %7050 = vmatprep.subr.bf16.mxu0 %v13007_v45 }
0x19da   : > { %7051 = vmatpush1.bf16.msra.mxu0 %v13005_v9 }
0x19db   : > { %6372 = vmatpush1.bf16.msra.mxu1 %v12984_v50  ;;  %v13013_v50 = vld [vmem:[%s17383_s29 + $0x34] ss:$24 sps:$4 sm:$0xff]  }
0x19dc   : > { %6373 = vmatprep.subr.bf16.mxu1 %v12989_v10  ;;  %v13016_v10 = vld [vmem:[%s17383_s29 + $0x3c] ss:$24 sps:$4 sm:$0xff]   ;;  %7052 = vmatprep.subr.bf16.mxu0 %v13013_v50  ;;  %v13068_v50 = vld [vmem:[%s17383_s29 + $0x1e8] ss:$24 sps:$4 sm:$0xff]  }
0x19df   : > { %6374 = vmatpush1.bf16.msra.mxu1 %v12987_v25  ;;  %v13011_v25 = vld [vmem:[%s17383_s29 + $0x30] ss:$24 sps:$4 sm:$0xff]  }
0x19e0   : > { %6375 = vmatprep.subr.bf16.mxu1 %v12992_v38  ;;  %v13014_v38 = vld [vmem:[%s17383_s29 + $0x38] ss:$24 sps:$4 sm:$0xff]   ;;  %7053 = vmatpush1.bf16.msra.mxu0 %v13011_v25 }
0x19e1   : > { %v13071_v25 = vld [vmem:[%s17383_s29 + $0x210] ss:$24 sps:$4 sm:$0xff]  }
0x19e3   : > { %6376 = vmatpush1.bf16.msra.mxu1 %v12990_v41  ;;  %v13019_v41 = vld [vmem:[%s17383_s29 + $0x64] ss:$24 sps:$4 sm:$0xff]  }
0x19e4   : > { %6377 = vmatprep.subr.bf16.mxu1 %v12995_v46  ;;  %v13022_v46 = vld [vmem:[%s17383_s29 + $0x6c] ss:$24 sps:$4 sm:$0xff]   ;;  %7054 = vmatprep.subr.bf16.mxu0 %v13019_v41  ;;  %v13074_v41 = vld [vmem:[%s17383_s29 + $0x218] ss:$24 sps:$4 sm:$0xff]  }
0x19e7   : > { %6378 = vmatpush1.bf16.msra.mxu1 %v12993_v48  ;;  %v13017_v48 = vld [vmem:[%s17383_s29 + $0x60] ss:$24 sps:$4 sm:$0xff]  }
0x19e8   : > { %6379 = vmatprep.subr.bf16.mxu1 %v12998_v7  ;;  %v13020_v7 = vld [vmem:[%s17383_s29 + $0x68] ss:$24 sps:$4 sm:$0xff]   ;;  %7055 = vmatpush1.bf16.msra.mxu0 %v13017_v48 }
0x19e9   : > { %v13077_v48 = vld [vmem:[%s17383_s29 + $0x240] ss:$24 sps:$4 sm:$0xff]  }
0x19eb   : > { %6380 = vmatpush1.bf16.msra.mxu1 %v12996_v53  ;;  %v13025_v53 = vld [vmem:[%s17383_s29 + $0x94] ss:$24 sps:$4 sm:$0xff]  }
0x19ec   : > { %6381 = vmatprep.subr.bf16.mxu1 %v13001_v26  ;;  %7056 = vmatprep.subr.bf16.mxu0 %v13025_v53  ;;  %v13034_v26 = vld [vmem:[%s17383_s29 + $0xcc] ss:$24 sps:$4 sm:$0xff]   ;;  %v13080_v53 = vld [vmem:[%s17383_s29 + $0x248] ss:$24 sps:$4 sm:$0xff]  }
0x19ef   : > { %v6124_v49 = vpop.f32.mrb[116].mxu0  ;;  %6382 = vmatpush1.bf16.msra.mxu1 %v12999_v57  ;;  %v13029_v57 = vld [vmem:[%s17383_s29 + $0xc0] ss:$24 sps:$4 sm:$0xff]  }
0x19f0   : > { %v6126_v55 = vpop.f32.mrb[117].mxu0  ;;  %6383 = vmatprep.subr.bf16.mxu1 %v13004_v1  ;;  %v13032_v1 = vld [vmem:[%s17383_s29 + $0xc8] ss:$24 sps:$4 sm:$0xff]  }
0x19f1   : > { %v6128_v44 = vpop.f32.mrb[118].mxu0 }
0x19f2   : > { %v6129_v13 = vpop.f32.mrb[119].mxu0  ;;  %v13026_v44 = vld [vmem:[%s17383_s29 + $0x98] ss:$24 sps:$4 sm:$0xff]  }
0x19f3   : > { %6384 = vmatpush1.bf16.msra.mxu1 %v13002_v15  ;;  %v13031_v13 = vld [vmem:[%s17383_s29 + $0xc4] ss:$24 sps:$4 sm:$0xff]   ;;  %v13037_v15 = vld [vmem:[%s17383_s29 + $0xf4] ss:$24 sps:$4 sm:$0xff]  }
0x1a89   : > { %v5923_v39 = vpop.f32.mrb[80].mxu1 }
0x1a8a   : > { %v6125_v0 = vadd.f32 %v6124_v49, %v5923_v39  ;;  %v5925_v29 = vpop.f32.mrb[81].mxu1  ;;  %v13028_v49 = vld [vmem:[%s17383_s29 + $0x9c] ss:$24 sps:$4 sm:$0xff]   ;;  %v13038_v39 = vld [vmem:[%s17383_s29 + $0xf8] ss:$24 sps:$4 sm:$0xff]  }
0x1a8b   : > { %v6127_v21 = vadd.f32 %v6126_v55, %v5925_v29  ;;  %v5927_v24 = vpop.f32.mrb[82].mxu1  ;;  %v13023_v55 = vld [vmem:[%s17383_s29 + $0x90] ss:$24 sps:$4 sm:$0xff]   ;;  %v13041_v29 = vld [vmem:[%s17383_s29 + $0x120] ss:$24 sps:$4 sm:$0xff]  }
0x1a8c   : > { %v6143_v40 = vadd.f32 %v6136_v60, %v6125_v0  ;;  %v5928_v19 = vpop.f32.mrb[83].mxu1  ;;  %7057 = vmatpush1.bf16.msra.mxu0 %v13023_v55  ;;  %v13035_v60 = vld [vmem:[%s17383_s29 + $0xf0] ss:$24 sps:$4 sm:$0xff]   ;;  %v13046_v0 = vld [vmem:[%s17383_s29 + $0x12c] ss:$24 sps:$4 sm:$0xff]  }
0x1a8d   : > { %v6144_v30 = vadd.f32 %v6140_v51, %v6127_v21  ;;  %7058 = vmatprep.subr.bf16.mxu0 %v13031_v13  ;;  %v13043_v51 = vld [vmem:[%s17383_s29 + $0x124] ss:$24 sps:$4 sm:$0xff]   ;;  %v13044_v21 = vld [vmem:[%s17383_s29 + $0x128] ss:$24 sps:$4 sm:$0xff]   ;;  %v13049_v24 = vld [vmem:[%s17383_s29 + $0x154] ss:$24 sps:$4 sm:$0xff]  }
0x1a8e   : > { %v6145_v43 = vmax.f32 %v6143_v40, 0.0  ;;  %v13052_v40 = vld [vmem:[%s17383_s29 + $0x15c] ss:$24 sps:$4 sm:$0xff]   ;;  %v13047_v19 = vld [vmem:[%s17383_s29 + $0x150] ss:$24 sps:$4 sm:$0xff]  }
0x1a8f   : > { %v6146_v17 = vmax.f32 %v6144_v30, 0.0  ;;  %v13050_v30 = vld [vmem:[%s17383_s29 + $0x158] ss:$24 sps:$4 sm:$0xff]   ;;  %v13088_v55 = vld [vmem:[%s17383_s29 + $0x27c] ss:$24 sps:$4 sm:$0xff]  }
0x1a90   : > { %v6147_v47 = vpack.c.bf16 %v6145_v43, %v6145_v43  ;;  %7059 = vmatpush1.bf16.msra.mxu0 %v13029_v57  ;;  %v13055_v43 = vld [vmem:[%s17383_s29 + $0x184] ss:$24 sps:$4 sm:$0xff]   ;;  %v13086_v13 = vld [vmem:[%s17383_s29 + $0x278] ss:$24 sps:$4 sm:$0xff]  }
0x1a91   : > { %v6148_v20 = vpack.c.bf16 %v6146_v17, %v6146_v17  ;;  %7060 = vmatprep.subr.bf16.mxu0 %v13037_v15  ;;  %v13058_v17 = vld [vmem:[%s17383_s29 + $0x18c] ss:$24 sps:$4 sm:$0xff]   ;;  %v13092_v15 = vld [vmem:[%s17383_s29 + $0x2a8] ss:$24 sps:$4 sm:$0xff]  }
0x1a92   : > { %v13094_v57 = vld [vmem:[%s17383_s29 + $0x2ac] ss:$24 sps:$4 sm:$0xff]  }
0x1a93   : > { %6385 = vmatprep.mubr.bf16.mxu1 %v6148_v20  ;;  %v13053_v20 = vld [vmem:[%s17383_s29 + $0x180] ss:$24 sps:$4 sm:$0xff]  }
0x1a94   : > { %6386 = vmatmul.mubr.bf16.vlgmr.msra.gmra.mrb[84].mxu1 %v6147_v47  ;;  %7061 = vmatpush1.bf16.msra.mxu0 %v13035_v60  ;;  %v13056_v47 = vld [vmem:[%s17383_s29 + $0x188] ss:$24 sps:$4 sm:$0xff]   ;;  %v13100_v60 = vld [vmem:[%s17383_s29 + $0x2dc] ss:$24 sps:$4 sm:$0xff]  }
0x1a95   : > { %7062 = vmatprep.subr.bf16.mxu0 %v13043_v51  ;;  %v13098_v51 = vld [vmem:[%s17383_s29 + $0x2d8] ss:$24 sps:$4 sm:$0xff]  }
0x1a98   : > { %7063 = vmatpush1.bf16.msra.mxu0 %v13041_v29 }
0x1a99   : > { %7064 = vmatprep.subr.bf16.mxu0 %v13049_v24 }
0x1a9c   : > { %7065 = vmatpush1.bf16.msra.mxu0 %v13047_v19  ;;  %v6426_v19 = vld [vmem:[%s17316_s25] sm:$0x3] }
0x1a9d   : > { %7066 = vmatprep.subr.bf16.mxu0 %v13055_v43 }
0x1aa0   : > { %7067 = vmatpush1.bf16.msra.mxu0 %v13053_v20 }
0x1aa1   : > { %7068 = vmatprep.subr.bf16.mxu0 %v13061_v11  ;;  %v6435_v11 = vrot.slane %v6426_v19, %v14042_v6 }
0x1b67   : > { %v6387_v36 = vpop.f32.mrb[84].mxu1 }
0x1b68   : > { %v6388_v42 = vadd.f32 %v6387_v36, %v6186_v22  ;;  %v6389_v58 = vpop.f32.mrb[85].mxu1  ;;  %v13064_v22 = vld [vmem:[%s17383_s29 + $0x1bc] ss:$24 sps:$4 sm:$0xff]   ;;  %v13062_v36 = vld [vmem:[%s17383_s29 + $0x1b8] ss:$24 sps:$4 sm:$0xff]  }
0x1b69   : > { %v6390_v37 = vadd.f32 %v6389_v58, %v6190_v18  ;;  %v6391_v14 = vpop.f32.mrb[86].mxu1  ;;  %v13059_v18 = vld [vmem:[%s17383_s29 + $0x1b0] ss:$24 sps:$4 sm:$0xff]   ;;  %v13065_v58 = vld [vmem:[%s17383_s29 + $0x1e0] ss:$24 sps:$4 sm:$0xff]  }
0x1b6a   : > { %v15849_v2 = vadd.f32 %v6388_v42, %v15036_v34  ;;  %v6392_v4 = vpop.f32.mrb[87].mxu1  ;;  %v13008_v34 = vld [vmem:[%s17383_s29 + $0x8] ss:$24 sps:$4 sm:$0xff]   ;;  %v13067_v42 = vld [vmem:[%s17383_s29 + $0x1e4] ss:$24 sps:$4 sm:$0xff]   ;;  %7069 = vmatpush1.bf16.msra.mxu0 %v13059_v18 }
0x1b6b   : > { %v15852_v8 = vadd.f32 %v6390_v37, %v15039_v52  ;;  %v13010_v52 = vld [vmem:[%s17383_s29 + $0xc] ss:$24 sps:$4 sm:$0xff]   ;;  %7070 = vmatprep.subr.bf16.mxu0 %v13067_v42 }
0x1b6c   : > { %7091 = vmatprep.subr.bf16.mxu1 %v13010_v52  ;;  %v13070_v52 = vld [vmem:[%s17383_s29 + $0x1ec] ss:$24 sps:$4 sm:$0xff]  }
0x1b6d   : > { %v6396_v56 = vadd.f32 %v15852_v8, %v15849_v2  ;;  %7092 = vmatpush1.bf16.msra.mxu1 %v13008_v34 }
0x1b6e   : > { %7093 = vmatprep.subr.bf16.mxu1 %v13016_v10  ;;  %7071 = vmatpush1.bf16.msra.mxu0 %v13065_v58  ;;  %v13073_v10 = vld [vmem:[%s17383_s29 + $0x214] ss:$24 sps:$4 sm:$0xff]  }
0x1b6f   : > { %6397 = vadd.xlane.f32.xlu1 %v6396_v56  ;;  %7072 = vmatprep.subr.bf16.mxu0 %v13073_v10  ;;  %v13115_v10 = vld [vmem:[%s17383_s29 + $0xd4] ss:$24 sps:$4 sm:$0xff]  }
0x1b71   : > { %7094 = vmatpush1.bf16.msra.mxu1 %v13014_v38  ;;  %v13076_v38 = vld [vmem:[%s17383_s29 + $0x21c] ss:$24 sps:$4 sm:$0xff]  }
0x1b72   : > { %7095 = vmatprep.subr.bf16.mxu1 %v13022_v46  ;;  %v13079_v46 = vld [vmem:[%s17383_s29 + $0x244] ss:$24 sps:$4 sm:$0xff]   ;;  %7073 = vmatpush1.bf16.msra.mxu0 %v13071_v25  ;;  %v13113_v25 = vld [vmem:[%s17383_s29 + $0xd0] ss:$24 sps:$4 sm:$0xff]  }
0x1b73   : > { %7074 = vmatprep.subr.bf16.mxu0 %v13079_v46  ;;  %v13121_v46 = vld [vmem:[%s17383_s29 + $0x134] ss:$24 sps:$4 sm:$0xff]  }
0x1b75   : > { %7096 = vmatpush1.bf16.msra.mxu1 %v13020_v7  ;;  %v13082_v7 = vld [vmem:[%s17383_s29 + $0x24c] ss:$24 sps:$4 sm:$0xff]  }
0x1b76   : > { %7097 = vmatprep.subr.bf16.mxu1 %v13028_v49  ;;  %v13085_v49 = vld [vmem:[%s17383_s29 + $0x274] ss:$24 sps:$4 sm:$0xff]   ;;  %7075 = vmatpush1.bf16.msra.mxu0 %v13077_v48  ;;  %v13119_v48 = vld [vmem:[%s17383_s29 + $0x130] ss:$24 sps:$4 sm:$0xff]  }
0x1b77   : > { %7076 = vmatprep.subr.bf16.mxu0 %v13085_v49  ;;  %v13127_v49 = vld [vmem:[%s17383_s29 + $0x194] ss:$24 sps:$4 sm:$0xff]  }
0x1b79   : > { %7098 = vmatpush1.bf16.msra.mxu1 %v13026_v44  ;;  %v13083_v44 = vld [vmem:[%s17383_s29 + $0x270] ss:$24 sps:$4 sm:$0xff]  }
0x1b7a   : > { %7099 = vmatprep.subr.bf16.mxu1 %v13034_v26  ;;  %v13091_v26 = vld [vmem:[%s17383_s29 + $0x2a4] ss:$24 sps:$4 sm:$0xff]   ;;  %7077 = vmatpush1.bf16.msra.mxu0 %v13083_v44 }
0x1b7b   : > { %7078 = vmatprep.subr.bf16.mxu0 %v13091_v26  ;;  %v13130_v44 = vld [vmem:[%s17383_s29 + $0x1c4] ss:$24 sps:$4 sm:$0xff]   ;;  %v13133_v26 = vld [vmem:[%s17383_s29 + $0x1f4] ss:$24 sps:$4 sm:$0xff]  }
0x1b7d   : > { %7100 = vmatpush1.bf16.msra.mxu1 %v13032_v1  ;;  %v13089_v1 = vld [vmem:[%s17383_s29 + $0x2a0] ss:$24 sps:$4 sm:$0xff]  }
0x1b7e   : > { %7101 = vmatprep.subr.bf16.mxu1 %v13040_v54  ;;  %v13097_v54 = vld [vmem:[%s17383_s29 + $0x2d4] ss:$24 sps:$4 sm:$0xff]   ;;  %7079 = vmatpush1.bf16.msra.mxu0 %v13089_v1  ;;  %v13136_v1 = vld [vmem:[%s17383_s29 + $0x224] ss:$24 sps:$4 sm:$0xff]  }
0x1b7f   : > { %7080 = vmatprep.subr.bf16.mxu0 %v13097_v54  ;;  %v13139_v54 = vld [vmem:[%s17383_s29 + $0x254] ss:$24 sps:$4 sm:$0xff]  }
0x1b81   : > { %7102 = vmatpush1.bf16.msra.mxu1 %v13038_v39  ;;  %v13095_v39 = vld [vmem:[%s17383_s29 + $0x2d0] ss:$24 sps:$4 sm:$0xff]  }
0x1b82   : > { %7103 = vmatprep.subr.bf16.mxu1 %v13046_v0  ;;  %7081 = vmatpush1.bf16.msra.mxu0 %v13095_v39  ;;  %v13103_v0 = vld [vmem:[%s17383_s29 + $0x14] ss:$24 sps:$4 sm:$0xff]   ;;  %v13142_v39 = vld [vmem:[%s17383_s29 + $0x284] ss:$24 sps:$4 sm:$0xff]  }
0x1b83   : > { %7132 = vmatprep.subr.bf16.mxu0 %v13103_v0  ;;  %v13145_v0 = vld [vmem:[%s17383_s29 + $0x2b4] ss:$24 sps:$4 sm:$0xff]  }
0x1b85   : > { %7104 = vmatpush1.bf16.msra.mxu1 %v13044_v21 }
0x1b86   : > { %7105 = vmatprep.subr.bf16.mxu1 %v13052_v40  ;;  %v6412_v40 = vld [vmem:[%s17315_s24] sm:$0x3] }
0x1b87   : > { %v6421_v43 = vrot.slane %v6412_v40, %v14042_v6 }
0x1b89   : > { %7106 = vmatpush1.bf16.msra.mxu1 %v13050_v30  ;;  %v6417_v30 = vrot.slane %v6412_v40, %v14039_v5  ;;  %v16175_v40 = vld [vmem:[%s17385_s7] sm:$0x3f] }
0x1b8a   : > { %7107 = vmatprep.subr.bf16.mxu1 %v13058_v17 }
0x1b8d   : > { %7108 = vmatpush1.bf16.msra.mxu1 %v13056_v47  ;;  %v6431_v47 = vrot.slane %v6426_v19, %v14039_v5  ;;  %v6551_v19 = vrot.slane %v16175_v40, %v14498_v33  ;;  %v6559_v33 = vrot.slane %v16175_v40, %v2312_v27 }
0x1b8e   : > { %7109 = vmatprep.subr.bf16.mxu1 %v13064_v22 }
0x1b91   : > { %7110 = vmatpush1.bf16.msra.mxu1 %v13062_v36 }
0x1b92   : > { %7111 = vmatprep.subr.bf16.mxu1 %v13070_v52  ;;  %v13112_v52 = vld [vmem:[%s17383_s29 + $0xa4] ss:$24 sps:$4 sm:$0xff]  }
0x1b95   : > { %7112 = vmatpush1.bf16.msra.mxu1 %v13068_v50  ;;  %v13110_v50 = vld [vmem:[%s17383_s29 + $0xa0] ss:$24 sps:$4 sm:$0xff]  }
0x1b96   : > { %7113 = vmatprep.subr.bf16.mxu1 %v13076_v38  ;;  %v13118_v38 = vld [vmem:[%s17383_s29 + $0x104] ss:$24 sps:$4 sm:$0xff]  }
0x1b99   : > { %7114 = vmatpush1.bf16.msra.mxu1 %v13074_v41  ;;  %v13116_v41 = vld [vmem:[%s17383_s29 + $0x100] ss:$24 sps:$4 sm:$0xff]  }
0x1b9a   : > { %7115 = vmatprep.subr.bf16.mxu1 %v13082_v7  ;;  %v13124_v7 = vld [vmem:[%s17383_s29 + $0x164] ss:$24 sps:$4 sm:$0xff]  }
0x1b9d   : > { %7116 = vmatpush1.bf16.msra.mxu1 %v13080_v53  ;;  %v13122_v53 = vld [vmem:[%s17383_s29 + $0x160] ss:$24 sps:$4 sm:$0xff]  }
0x1b9e   : > { %7117 = vmatprep.subr.bf16.mxu1 %v13088_v55  ;;  %v13125_v55 = vld [vmem:[%s17383_s29 + $0x190] ss:$24 sps:$4 sm:$0xff]  }
0x1ba1   : > { %7118 = vmatpush1.bf16.msra.mxu1 %v13086_v13  ;;  %v13128_v13 = vld [vmem:[%s17383_s29 + $0x1c0] ss:$24 sps:$4 sm:$0xff]  }
0x1ba2   : > { %7119 = vmatprep.subr.bf16.mxu1 %v13094_v57  ;;  %v13131_v57 = vld [vmem:[%s17383_s29 + $0x1f0] ss:$24 sps:$4 sm:$0xff]  }
0x1ba5   : > { %7120 = vmatpush1.bf16.msra.mxu1 %v13092_v15  ;;  %v13134_v15 = vld [vmem:[%s17383_s29 + $0x220] ss:$24 sps:$4 sm:$0xff]  }
0x1ba6   : > { %7121 = vmatprep.subr.bf16.mxu1 %v13100_v60  ;;  %v13137_v60 = vld [vmem:[%s17383_s29 + $0x250] ss:$24 sps:$4 sm:$0xff]  }
0x1ba9   : > { %7122 = vmatpush1.bf16.msra.mxu1 %v13098_v51  ;;  %v13140_v51 = vld [vmem:[%s17383_s29 + $0x280] ss:$24 sps:$4 sm:$0xff]  }
0x1baa   : > { %12060 = vmatprep.subr.bf16.mxu1 %v13644_v16 }
0x1bfc   : > { %v6398_v37 = vpop.xlane.xlu1 %6397 }
0x1bfd   : > { %v6399_v14 = vmul.f32 0.00390625, %v6398_v37 }
0x1bff   : > { %v15983_v4 = vsub.f32 %v15849_v2, %v6399_v14  ;;  %v6401_v56 = vsub.f32 %v15852_v8, %v6399_v14  ;;  %v13101_v14 = vld [vmem:[%s17383_s29 + $0x10] ss:$24 sps:$4 sm:$0xff]  }
0x1c01   : > { %v6402_v9 = vmul.f32 %v15983_v4, %v15983_v4  ;;  %v6403_v45 = vmul.f32 %v6401_v56, %v6401_v56 }
0x1c03   : > { %v6404_v34 = vadd.f32 %v6403_v45, %v6402_v9  ;;  %v13109_v45 = vld [vmem:[%s17383_s29 + $0x74] ss:$24 sps:$4 sm:$0xff]  }
0x1c05   : > { %6405 = vadd.xlane.f32.xlu0 %v6404_v34  ;;  %v13107_v34 = vld [vmem:[%s17383_s29 + $0x70] ss:$24 sps:$4 sm:$0xff]  }
0x1c92   : > { %v6406_v29 = vpop.xlane.xlu0 %6405 }
0x1c93   : > { %v6407_v21 = vmul.f32 0.00390625, %v6406_v29  ;;  %v13143_v29 = vld [vmem:[%s17383_s29 + $0x2b0] ss:$24 sps:$4 sm:$0xff]  }
0x1c95   : > { %v6408_v24 = vadd.f32 1e-05, %v6407_v21  ;;  %v13148_v21 = vld [vmem:[%s17383_s29 + $0x2e4] ss:$24 sps:$4 sm:$0xff]  }
0x1c97   : > { %13509 = vrsqrt.f32 %v6408_v24  ;;  %v13146_v24 = vld [vmem:[%s17383_s29 + $0x2e0] ss:$24 sps:$4 sm:$0xff]  }
0x1ca1   : > { %v13510_v17 = vpop.eup %13509 }
0x1ca2   : > { %v6411_v20 = vmul.f32 %v13510_v17, %v6401_v56  ;;  %v6410_v22 = vmul.f32 %v13510_v17, %v15983_v4  ;;  %v13106_v56 = vld [vmem:[%s17383_s29 + $0x44] ss:$24 sps:$4 sm:$0xff]   ;;  %v13104_v4 = vld [vmem:[%s17383_s29 + $0x40] ss:$24 sps:$4 sm:$0xff]  }
0x1ca4   : > { %v6425_v18 = vmul.f32 %v6421_v43, %v6411_v20  ;;  %v6424_v36 = vmul.f32 %v6417_v30, %v6410_v22 }
0x1ca6   : > { %v6439_v42 = vadd.f32 %v6435_v11, %v6425_v18  ;;  %v6438_v58 = vadd.f32 %v6431_v47, %v6424_v36 }
0x1ca8   : > { %v6441_v37 = vpack.c.bf16 %v6439_v42, %v6439_v42  ;;  %v16072_v9 = vpack.c.bf16 %v6438_v58, %v6438_v58 }
0x1caa   : > { %7082 = vmatprep.mubr.bf16.mxu0 %v6441_v37  ;;  %7123 = vmatprep.mubr.bf16.mxu1 %v6441_v37 }
0x1cab   : > { %7083 = vmatmul.mubr.bf16.vlgmr.msra.gmra.mrb[120].mxu0 %v16072_v9  ;;  %7124 = vmatmul.mubr.bf16.vlgmr.msra.gmra.mrb[88].mxu1 %v16072_v9 }
0x1cac   : > { %7133 = vmatpush1.bf16.msra.mxu0 %v13101_v14  ;;  %7164 = vmatprep.mubr.bf16.mxu0 %v6441_v37 }
0x1cad   : > { %7134 = vmatprep.subr.bf16.mxu0 %v13106_v56  ;;  %12064 = vmatprep.mubr.msk.bf16.mxu1 %vm13645_vm2, %v13644_v16 }
0x1cb0   : > { %7135 = vmatpush1.bf16.msra.mxu0 %v13104_v4 }
0x1cb1   : > { %7136 = vmatprep.subr.bf16.mxu0 %v13109_v45 }
0x1cb4   : > { %7137 = vmatpush1.bf16.msra.mxu0 %v13107_v34 }
0x1cb5   : > { %7138 = vmatprep.subr.bf16.mxu0 %v13112_v52 }
0x1cb8   : > { %7139 = vmatpush1.bf16.msra.mxu0 %v13110_v50 }
0x1cb9   : > { %7140 = vmatprep.subr.bf16.mxu0 %v13115_v10  ;;  %v6543_v10 = vrot.slane %v16175_v40, %v14039_v5 }
0x1cbc   : > { %7141 = vmatpush1.bf16.msra.mxu0 %v13113_v25 }
0x1cbd   : > { %7142 = vmatprep.subr.bf16.mxu0 %v13118_v38 }
0x1cc0   : > { %7143 = vmatpush1.bf16.msra.mxu0 %v13116_v41 }
0x1cc1   : > { %7144 = vmatprep.subr.bf16.mxu0 %v13121_v46 }
0x1cc4   : > { %7145 = vmatpush1.bf16.msra.mxu0 %v13119_v48 }
0x1cc5   : > { %7146 = vmatprep.subr.bf16.mxu0 %v13124_v7 }
0x1cc8   : > { %7147 = vmatpush1.bf16.msra.mxu0 %v13122_v53 }
0x1cc9   : > { %7148 = vmatprep.subr.bf16.mxu0 %v13127_v49 }
0x1ccc   : > { %7149 = vmatpush1.bf16.msra.mxu0 %v13125_v55 }
0x1ccd   : > { %7150 = vmatprep.subr.bf16.mxu0 %v13130_v44 }
0x1cd0   : > { %7151 = vmatpush1.bf16.msra.mxu0 %v13128_v13 }
0x1cd1   : > { %7152 = vmatprep.subr.bf16.mxu0 %v13133_v26 }
0x1cd4   : > { %7153 = vmatpush1.bf16.msra.mxu0 %v13131_v57 }
0x1cd5   : > { %7154 = vmatprep.subr.bf16.mxu0 %v13136_v1 }
0x1cd8   : > { %7155 = vmatpush1.bf16.msra.mxu0 %v13134_v15 }
0x1cd9   : > { %7156 = vmatprep.subr.bf16.mxu0 %v13139_v54 }
0x1cdc   : > { %7157 = vmatpush1.bf16.msra.mxu0 %v13137_v60 }
0x1cdd   : > { %7158 = vmatprep.subr.bf16.mxu0 %v13142_v39 }
0x1ce0   : > { %7159 = vmatpush1.bf16.msra.mxu0 %v13140_v51 }
0x1ce1   : > { %7160 = vmatprep.subr.bf16.mxu0 %v13145_v0 }
0x1ce4   : > { %7161 = vmatpush1.bf16.msra.mxu0 %v13143_v29 }
0x1ce5   : > { %7162 = vmatprep.subr.bf16.mxu0 %v13148_v21 }
0x1ce8   : > { %7163 = vmatpush1.bf16.msra.mxu0 %v13146_v24 }
0x1ce9   : > { %12110 = vmatprep.subr.bf16.mxu0 %v13644_v16 }
0x1ceb   : > { %7165 = vmatmul.mubr.bf16.vlgmr.msra.gmra.mrb[124].mxu0 %v16072_v9  ;;  %v6547_v9 = vrot.slane %v16175_v40, %v14042_v6 }
0x1cec   : > { %12112 = vmatprep.mubr.msk.bf16.mxu0 %vm13645_vm2, %v13644_v16 }
0x1d7e   : > { %v7084_v30 = vpop.f32.mrb[120].mxu0  ;;  %v7125_v43 = vpop.f32.mrb[88].mxu1 }
0x1d7f   : > { %v7126_v17 = vadd.f32 %v7125_v43, %v6551_v19  ;;  %v7086_v20 = vpop.f32.mrb[121].mxu0  ;;  %v16179_v47 = vpop.f32.mrb[89].mxu1  ;;  %v7085_v38 = vadd.f32 %v7084_v30, %v6543_v10 }
0x1d80   : > { %v7088_v11 = vpop.f32.mrb[122].mxu0  ;;  %v7129_v22 = vpop.f32.mrb[90].mxu1  ;;  %v7087_v4 = vadd.f32 %v7086_v20, %v6547_v9 }
0x1d81   : > { %v7130_v18 = vpop.f32.mrb[91].mxu1  ;;  %7177 = vxpose.xlu0.b32.start.end [1/1] (short) %v7126_v17, 128  ;;  %v7089_v36 = vpop.f32.mrb[123].mxu0  ;;  %v7173_v48 = vpack.c.bf16 %v7085_v38, %v7085_v38 }
0x1d82   : > { %v16192_v34 = vpack.c.bf16 %v7087_v4, %v7087_v4 }
0x1dbe   : > { %v7166_v42 = vpop.f32.mrb[124].mxu0 }
0x1dbf   : > { %v16181_v58 = vpop.f32.mrb[125].mxu0  ;;  %v7167_v56 = vadd.f32 %v7166_v42, %v6559_v33 }
0x1dc0   : > { %v7170_v37 = vpop.f32.mrb[126].mxu0 }
0x1dc1   : > { %v7171_v14 = vpop.f32.mrb[127].mxu0  ;;  %v16188_v45 = vpack.c.bf16 %v7167_v56, %v7167_v56 }
0x1dc3   : > { %v7315_v53 = vsel %vm3070_vm4, %v16188_v45, 0 }
0x1de6   : > { %7418 = vrot.lane.b32.xlu0 %v16188_v45, %s17389_s6 }
0x1dea   : > { %7919 = vrot.lane.b32.xlu0 %v16192_v34, %s17390_s15 }
0x1dee   : > { %8032 = vrot.lane.b32.xlu0 %v16192_v34, %s17388_s8 }
0x1e01   : > { %v7193_v52 = vpop.trf.xlu0 }
0x1e05   : > { %v7194_v27 = vpop.trf.xlu0 }
0x1e06   : > { %v7241_v50 = vpack.c.bf16 %v7194_v27, %v7193_v52 }
0x1e08   : > { %12061 = vmatpush3.bf16.msra.mxu1 %v7241_v50 }
0x1e09   : > { %v7195_v25 = vpop.trf.xlu0  ;;  %12062 = vmatprep.subr.bf16.mxu1 %v13644_v16 }
0x1e0d   : > { %v7196_v41 = vpop.trf.xlu0 }
0x1e0e   : > { %v7242_v46 = vpack.c.bf16 %v7196_v41, %v7195_v25 }
0x1e10   : > { %12063 = vmatpush3.bf16.msra.mxu1 %v7242_v46 }
0x1e11   : > { %12068 = vmatprep.subr.bf16.mxu1 %v13644_v16  ;;  %v7197_v7 = vpop.trf.xlu0 }
0x1e13   : > { %12065 = vmatmul.mubr.msk.bf16.vlgmr.msra.gmra.mrb[92].mxu1 %vm3011_vm3, %v7173_v48 }
0x1e14   : > { %12069 = vmatpush3.bf16.msra.mxu1 %v7315_v53  ;;  %12070 = vmatprep.mubr.msk.bf16.mxu1 %vm13645_vm2, %v13644_v16 }
0x1e15   : > { %v7198_v49 = vpop.trf.xlu0  ;;  %12074 = vmatprep.subr.bf16.mxu1 %v13644_v16 }
0x1e16   : > { %v7243_v42 = vpack.c.bf16 %v7198_v49, %v7197_v7 }
0x1e19   : > { %v7199_v55 = vpop.trf.xlu0 }
0x1e1d   : > { %v7200_v44 = vpop.trf.xlu0 }
0x1e1e   : > { %v7244_v37 = vpack.c.bf16 %v7200_v44, %v7199_v55 }
0x1e21   : > { %v7201_v13 = vpop.trf.xlu0 }
0x1e25   : > { %v7202_v26 = vpop.trf.xlu0 }
0x1e26   : > { %v7245_v57 = vpack.c.bf16 %v7202_v26, %v7201_v13 }
0x1e29   : > { %v7203_v1 = vpop.trf.xlu0 }
0x1e2d   : > { %v7204_v15 = vpop.trf.xlu0 }
0x1e2e   : > { %v7246_v54 = vpack.c.bf16 %v7204_v15, %v7203_v1 }
0x1e31   : > { %v16208_v60 = vpop.trf.xlu0 }
0x1e35   : > { %v16210_v39 = vpop.trf.xlu0 }
0x1e36   : > { %v7247_v51 = vpack.c.bf16 %v16210_v39, %v16208_v60 }
0x1e39   : > { %v16214_v0 = vpop.trf.xlu0 }
0x1e3d   : > { %v16216_v29 = vpop.trf.xlu0 }
0x1e3e   : > { %v7248_v21 = vpack.c.bf16 %v16216_v29, %v16214_v0 }
0x1e58   : > { %v7419_v14 = vpop.permute.xlu0 %7418 }
0x1e59   : > { %v7424_v9 = vsel %vm3070_vm4, %v7419_v14, 0 }
0x1ee6   : > { %v7294_v24 = vpop.f32.mrb[92].mxu1 }
0x1ee7   : > { %v12066_v19 = vpop.f32.mrb[93].mxu1  ;;  %v7300_v30 = vsel %vm3055_vm5, %v7294_v24, -inf }
0x1ee8   : > { %7301 = vmax.xlane.f32.xlu1 %v7300_v30  ;;  %v7297_v43 = vpop.f32.mrb[94].mxu1 }
0x1ee9   : > { %v12067_v17 = vpop.f32.mrb[95].mxu1 }
0x1eea   : > { %v6555_v17 = vrot.slane %v16175_v40, %v14504_v35 }
0x1ef9   : > { %7361 = vrot.lane.b32.xlu1 %v7173_v48, %s17389_s6 }
0x1f75   : > { %v7302_v20 = vpop.xlane.xlu1 %7301 }
0x1f76   : > { %v7303_v11 = vsub.f32 %v7294_v24, %v7302_v20  ;;  %v7128_v20 = vadd.f32 %v16179_v47, %v6555_v17 }
0x1f78   : > { %v7304_v22 = vmul.f32 1.442695, %v7303_v11 }
0x1f79   : > { %v7362_v33 = vpop.permute.xlu1 %7361 }
0x1f7a   : > { %13511 = vpow2.f32 %v7304_v22 }
0x1f84   : > { %v16222_v18 = vpop.eup %13511 }
0x1f85   : > { %v7310_v36 = vpack.c.bf16 %v16222_v18, %v16222_v18 }
0x1f87   : > { %12071 = vmatmul.mubr.msk.bf16.vlgmr.msra.gmra.mrb[96].mxu1 %vm3055_vm5, %v7310_v36 }
0x1f88   : > { %12075 = vmatpush3.bf16.msra.mxu1 %v7243_v42  ;;  %12078 = vmatprep.mubr.msk.bf16.mxu1 %vm13645_vm2, %v13644_v16 }
0x1f89   : > { %12076 = vmatprep.subr.bf16.mxu1 %v13644_v16 }
0x1f8c   : > { %12077 = vmatpush3.bf16.msra.mxu1 %v7244_v37 }
0x1f8d   : > { %12082 = vmatprep.subr.bf16.mxu1 %v13644_v16 }
0x1f8f   : > { %12079 = vmatmul.mubr.msk.bf16.vlgmr.msra.gmra.mrb[100].mxu1 %vm3011_vm3, %v7362_v33 }
0x1f90   : > { %12083 = vmatpush3.bf16.msra.mxu1 %v7424_v9  ;;  %12084 = vmatprep.mubr.msk.bf16.mxu1 %vm13645_vm2, %v13644_v16 }
0x1f91   : > { %12088 = vmatprep.subr.bf16.mxu1 %v13644_v16 }
0x205a   : > { %v16236_v56 = vpop.f32.mrb[96].mxu1 }
0x205b   : > { %v12072_v4 = vpop.f32.mrb[97].mxu1 }
0x205c   : > { %v7354_v52 = vpop.f32.mrb[98].mxu1 }
0x205d   : > { %v12073_v27 = vpop.f32.mrb[99].mxu1 }
0x2062   : > { %v7400_v50 = vpop.f32.mrb[100].mxu1 }
0x2063   : > { %v12080_v10 = vpop.f32.mrb[101].mxu1  ;;  %v7406_v25 = vsel %vm3055_vm5, %v7400_v50, -inf }
0x2064   : > { %7407 = vmax.xlane.f32.xlu1 %v7406_v25  ;;  %v7403_v38 = vpop.f32.mrb[102].mxu1 }
0x2065   : > { %v12081_v41 = vpop.f32.mrb[103].mxu1 }
0x2075   : > { %7475 = vrot.lane.b32.xlu1 %v7173_v48, %s17390_s15 }
0x2079   : > { %7531 = vrot.lane.b32.xlu1 %v16188_v45, %s17390_s15 }
0x207d   : > { %7588 = vrot.lane.b32.xlu1 %v7173_v48, %s17388_s8 }
0x20f1   : > { %v7408_v46 = vpop.xlane.xlu1 %7407 }
0x20f2   : > { %v7409_v7 = vsub.f32 %v7400_v50, %v7408_v46 }
0x20f4   : > { %v7410_v53 = vmul.f32 1.442695, %v7409_v7  ;;  %v7920_v7 = vpop.permute.xlu0 %7919 }
0x20f5   : > { %v7476_v44 = vpop.permute.xlu1 %7475 }
0x20f6   : > { %13513 = vpow2.f32 %v7410_v53 }
0x20f9   : > { %v7532_v13 = vpop.permute.xlu1 %7531 }
0x20fa   : > { %v7537_v48 = vsel %vm3070_vm4, %v7532_v13, 0 }
0x20fd   : > { %v7589_v11 = vpop.permute.xlu1 %7588 }
0x2100   : > { %v16243_v49 = vpop.eup %13513 }
0x2101   : > { %v7416_v55 = vpack.c.bf16 %v16243_v49, %v16243_v49 }
0x2103   : > { %12085 = vmatmul.mubr.msk.bf16.vlgmr.msra.gmra.mrb[104].mxu1 %vm3055_vm5, %v7416_v55 }
0x2104   : > { %12089 = vmatpush3.bf16.msra.mxu1 %v7245_v57  ;;  %12092 = vmatprep.mubr.msk.bf16.mxu1 %vm13645_vm2, %v13644_v16 }
0x2105   : > { %12090 = vmatprep.subr.bf16.mxu1 %v13644_v16 }
0x2108   : > { %12091 = vmatpush3.bf16.msra.mxu1 %v7246_v54 }
0x2109   : > { %12096 = vmatprep.subr.bf16.mxu1 %v13644_v16 }
0x210b   : > { %12093 = vmatmul.mubr.msk.bf16.vlgmr.msra.gmra.mrb[108].mxu1 %vm3011_vm3, %v7476_v44 }
0x210c   : > { %12097 = vmatpush3.bf16.msra.mxu1 %v7537_v48  ;;  %12098 = vmatprep.mubr.msk.bf16.mxu1 %vm13645_vm2, %v13644_v16 }
0x210d   : > { %12102 = vmatprep.subr.bf16.mxu1 %v13644_v16 }
0x21d6   : > { %v16257_v26 = vpop.f32.mrb[104].mxu1 }
0x21d7   : > { %v12086_v57 = vpop.f32.mrb[105].mxu1 }
0x21d8   : > { %v7463_v1 = vpop.f32.mrb[106].mxu1  ;;  %v8033_v57 = vpop.permute.xlu0 %8032 }
0x21d9   : > { %v12087_v15 = vpop.f32.mrb[107].mxu1 }
0x21de   : > { %v7514_v24 = vpop.f32.mrb[108].mxu1 }
0x21df   : > { %v12094_v19 = vpop.f32.mrb[109].mxu1  ;;  %v7520_v54 = vsel %vm3055_vm5, %v7514_v24, -inf }
0x21e0   : > { %7521 = vmax.xlane.f32.xlu1 %v7520_v54  ;;  %v7517_v30 = vpop.f32.mrb[110].mxu1 }
0x21e1   : > { %v12095_v43 = vpop.f32.mrb[111].mxu1 }
0x21f1   : > { %7805 = vrot.lane.b32.xlu1 %v16192_v34, %s17389_s6 }
0x221a   : > { %7209 = vxpose.xlu1.b32.start.end [1/1] (short) %v7128_v20, 128 }
0x226d   : > { %v7522_v22 = vpop.xlane.xlu1 %7521 }
0x226e   : > { %v7523_v36 = vsub.f32 %v7514_v24, %v7522_v22 }
0x2270   : > { %v7524_v42 = vmul.f32 1.442695, %v7523_v36 }
0x2271   : > { %v7806_v35 = vpop.permute.xlu1 %7805 }
0x2272   : > { %13515 = vpow2.f32 %v7524_v42 }
0x227c   : > { %v16265_v37 = vpop.eup %13515 }
0x227d   : > { %v7530_v14 = vpack.c.bf16 %v16265_v37, %v16265_v37  ;;  %v7526_v3 = vsel %vm3055_vm5, %v16265_v37, 0.0 }
0x227f   : > { %12099 = vmatmul.mubr.msk.bf16.vlgmr.msra.gmra.mrb[112].mxu1 %vm3055_vm5, %v7530_v14 }
0x2280   : > { %12103 = vmatpush3.bf16.msra.mxu1 %v7247_v51  ;;  %12106 = vmatprep.mubr.msk.bf16.mxu1 %vm13645_vm2, %v13644_v16 }
0x2281   : > { %12104 = vmatprep.subr.bf16.mxu1 %v13644_v16 }
0x2284   : > { %12105 = vmatpush3.bf16.msra.mxu1 %v7248_v21 }
0x2285   : > { %12116 = vmatprep.subr.bf16.mxu1 %v13644_v16 }
0x2287   : > { %12107 = vmatmul.mubr.msk.bf16.vlgmr.msra.gmra.mrb[116].mxu1 %vm3011_vm3, %v7589_v11  ;;  %v6563_v11 = vrot.slane %v16175_v40, %v2316_v12 }
0x2288   : > { %12120 = vmatprep.mubr.msk.bf16.mxu1 %vm13645_vm2, %v13644_v16 }
0x2289   : > { %v7169_v22 = vadd.f32 %v16181_v58, %v6563_v11 }
0x228b   : > { %v7176_v36 = vpack.c.bf16 %v7169_v22, %v7169_v22 }
0x229a   : > { %v7225_v47 = vpop.trf.xlu1 }
0x229e   : > { %v7226_v60 = vpop.trf.xlu1 }
0x229f   : > { %v7249_v39 = vpack.c.bf16 %v7226_v60, %v7225_v47 }
0x22a1   : > { %12117 = vmatpush3.bf16.msra.mxu1 %v7249_v39 }
0x22a2   : > { %v7227_v51 = vpop.trf.xlu1  ;;  %12118 = vmatprep.subr.bf16.mxu1 %v13644_v16 }
0x22a6   : > { %v7228_v33 = vpop.trf.xlu1 }
0x22a7   : > { %v7250_v9 = vpack.c.bf16 %v7228_v33, %v7227_v51 }
0x22a9   : > { %12119 = vmatpush3.bf16.msra.mxu1 %v7250_v9 }
0x22aa   : > { %v7229_v0 = vpop.trf.xlu1  ;;  %12130 = vmatprep.subr.bf16.mxu1 %v13644_v16 }
0x22ac   : > { %12121 = vmatmul.mubr.msk.bf16.vlgmr.msra.gmra.mrb[120].mxu1 %vm3011_vm3, %v16192_v34 }
0x22ad   : > { %12134 = vmatprep.mubr.msk.bf16.mxu1 %vm13645_vm2, %v13644_v16 }
0x22ae   : > { %v7230_v29 = vpop.trf.xlu1 }
0x22af   : > { %v7251_v21 = vpack.c.bf16 %v7230_v29, %v7229_v0 }
0x22b1   : > { %12131 = vmatpush3.bf16.msra.mxu1 %v7251_v21 }
0x22b2   : > { %v7231_v4 = vpop.trf.xlu1  ;;  %12132 = vmatprep.subr.bf16.mxu1 %v13644_v16 }
0x22b6   : > { %v7232_v52 = vpop.trf.xlu1 }
0x22b7   : > { %v7252_v27 = vpack.c.bf16 %v7232_v52, %v7231_v4 }
0x22b9   : > { %12133 = vmatpush3.bf16.msra.mxu1 %v7252_v27 }
0x22ba   : > { %v7233_v50 = vpop.trf.xlu1  ;;  %12144 = vmatprep.subr.bf16.mxu1 %v13644_v16 }
0x22bc   : > { %12135 = vmatmul.mubr.msk.bf16.vlgmr.msra.gmra.mrb[124].mxu1 %vm3011_vm3, %v7806_v35 }
0x22bd   : > { %12148 = vmatprep.mubr.msk.bf16.mxu1 %vm13645_vm2, %v13644_v16 }
0x22be   : > { %v7234_v34 = vpop.trf.xlu1 }
0x22bf   : > { %v7253_v10 = vpack.c.bf16 %v7234_v34, %v7233_v50 }
0x22c1   : > { %12145 = vmatpush3.bf16.msra.mxu1 %v7253_v10 }
0x22c2   : > { %v7235_v25 = vpop.trf.xlu1  ;;  %12146 = vmatprep.subr.bf16.mxu1 %v13644_v16 }
0x22c6   : > { %v7236_v38 = vpop.trf.xlu1 }
0x22c7   : > { %v7254_v41 = vpack.c.bf16 %v7236_v38, %v7235_v25 }
0x22c9   : > { %12147 = vmatpush3.bf16.msra.mxu1 %v7254_v41 }
0x22ca   : > { %v7237_v46 = vpop.trf.xlu1  ;;  %12158 = vmatprep.subr.bf16.mxu1 %v13644_v16 }
0x22cc   : > { %12149 = vmatmul.mubr.msk.bf16.vlgmr.msra.gmra.mrb[128].mxu1 %vm3011_vm3, %v7920_v7 }
0x22cd   : > { %12162 = vmatprep.mubr.msk.bf16.mxu1 %vm13645_vm2, %v13644_v16 }
0x22ce   : > { %v7238_v53 = vpop.trf.xlu1 }
0x22cf   : > { %v7255_v55 = vpack.c.bf16 %v7238_v53, %v7237_v46  ;;  %v7759_v53 = vsel %vm3070_vm4, %v7176_v36, 0 }
0x22d1   : > { %12159 = vmatpush3.bf16.msra.mxu1 %v7255_v55  ;;  %v7412_v55 = vsel %vm3055_vm5, %v16243_v49, 0.0 }
0x22d2   : > { %v7239_v44 = vpop.trf.xlu1  ;;  %12160 = vmatprep.subr.bf16.mxu1 %v13644_v16 }
0x22d6   : > { %v7240_v13 = vpop.trf.xlu1 }
0x22d7   : > { %v7256_v48 = vpack.c.bf16 %v7240_v13, %v7239_v44 }
0x22d9   : > { %12161 = vmatpush3.bf16.msra.mxu1 %v7256_v48 }
0x22dc   : > { %12163 = vmatmul.mubr.msk.bf16.vlgmr.msra.gmra.mrb[132].mxu1 %vm3011_vm3, %v8033_v57 }
0x2352   : > { %v16301_v1 = vpop.f32.mrb[112].mxu1 }
0x2353   : > { %v12100_v15 = vpop.f32.mrb[113].mxu1 }
0x2354   : > { %v7576_v24 = vpop.f32.mrb[114].mxu1 }
0x2355   : > { %v12101_v19 = vpop.f32.mrb[115].mxu1 }
0x235a   : > { %v7627_v54 = vpop.f32.mrb[116].mxu1 }
0x235b   : > { %v12108_v30 = vpop.f32.mrb[117].mxu1  ;;  %v7633_v43 = vsel %vm3055_vm5, %v7627_v54, -inf }
0x235c   : > { %7634 = vmax.xlane.f32.xlu0 %v7633_v43  ;;  %v7630_v17 = vpop.f32.mrb[118].mxu1 }
0x235d   : > { %v12109_v20 = vpop.f32.mrb[119].mxu1 }
0x2372   : > { %7644 = vrot.lane.b32.xlu0 %v16188_v45, %s17388_s8 }
0x2376   : > { %7862 = vrot.lane.b32.xlu0 %v7176_v36, %s17389_s6 }
0x237f   : > { %v7738_v42 = vpop.f32.mrb[120].mxu1 }
0x2380   : > { %v12122_v14 = vpop.f32.mrb[121].mxu1  ;;  %v7744_v35 = vsel %vm3055_vm5, %v7738_v42, -inf }
0x2381   : > { %7745 = vmax.xlane.f32.xlu1 %v7744_v35  ;;  %v7741_v47 = vpop.f32.mrb[122].mxu1 }
0x2382   : > { %v12123_v60 = vpop.f32.mrb[123].mxu1 }
0x2385   : > { %7527 = vadd.xlane.f32.xlu1 %v7526_v3 }
0x238f   : > { %v7844_v12 = vpop.f32.mrb[124].mxu1 }
0x2390   : > { %v12136_v40 = vpop.f32.mrb[125].mxu1  ;;  %v7850_v45 = vsel %vm3055_vm5, %v7844_v12, -inf }
0x2391   : > { %v7847_v58 = vpop.f32.mrb[126].mxu1 }
0x2392   : > { %v12137_v39 = vpop.f32.mrb[127].mxu1 }
0x2395   : > { %7851 = vmax.xlane.f32.xlu0 %v7850_v45 }
0x239f   : > { %v7958_v51 = vpop.f32.mrb[128].mxu1 }
0x23a0   : > { %v12150_v33 = vpop.f32.mrb[129].mxu1  ;;  %v7964_v37 = vsel %vm3055_vm5, %v7958_v51, -inf }
0x23a1   : > { %v7961_v9 = vpop.f32.mrb[130].mxu1 }
0x23a2   : > { %v12151_v0 = vpop.f32.mrb[131].mxu1  ;;  %v7306_v9 = vsel %vm3055_vm5, %v16222_v18, 0.0 }
0x23ab   : > { %7975 = vrot.lane.b32.xlu0 %v7176_v36, %s17390_s15 }
0x23af   : > { %v8071_v29 = vpop.f32.mrb[132].mxu1 }
0x23b0   : > { %v12164_v21 = vpop.f32.mrb[133].mxu1  ;;  %v8077_v27 = vsel %vm3055_vm5, %v8071_v29, -inf }
0x23b1   : > { %v8074_v4 = vpop.f32.mrb[134].mxu1 }
0x23b2   : > { %v12165_v52 = vpop.f32.mrb[135].mxu1 }
0x23ca   : > { %7965 = vmax.xlane.f32.xlu0 %v7964_v37 }
0x23ce   : > { %8078 = vmax.xlane.f32.xlu0 %v8077_v27 }
0x23e4   : > { %8088 = vrot.lane.b32.xlu0 %v7176_v36, %s17388_s8 }
0x23e9   : > { %v7635_v50 = vpop.xlane.xlu0 %7634 }
0x23ea   : > { %v7636_v34 = vsub.f32 %v7627_v54, %v7635_v50 }
0x23ec   : > { %v7637_v10 = vmul.f32 1.442695, %v7636_v34 }
0x23ed   : > { %v7645_v25 = vpop.permute.xlu0 %7644 }
0x23ee   : > { %13517 = vpow2.f32 %v7637_v10  ;;  %v7650_v38 = vsel %vm3070_vm4, %v7645_v25, 0 }
0x23ef   : > { %12111 = vmatpush3.bf16.msra.mxu0 %v7650_v38 }
0x23f0   : > { %12124 = vmatprep.subr.bf16.mxu0 %v13644_v16 }
0x23f1   : > { %v7863_v15 = vpop.permute.xlu0 %7862 }
0x23f2   : > { %v7868_v19 = vsel %vm3070_vm4, %v7863_v15, 0 }
0x23f8   : > { %v13518_v41 = vpop.eup %13517 }
0x23f9   : > { %v7639_v46 = vsel %vm3055_vm5, %v13518_v41, 0.0  ;;  %v7643_v7 = vpack.c.bf16 %v13518_v41, %v13518_v41 }
0x23fa   : > { %7640 = vadd.xlane.f32.xlu1 %v7639_v46 }
0x23fb   : > { %12113 = vmatmul.mubr.msk.bf16.vlgmr.msra.gmra.mrb[128].mxu0 %vm3055_vm5, %v7643_v7 }
0x23fc   : > { %12125 = vmatpush3.bf16.msra.mxu0 %v7759_v53  ;;  %12126 = vmatprep.mubr.msk.bf16.mxu0 %vm13645_vm2, %v13644_v16 }
0x23fd   : > { %12138 = vmatprep.subr.bf16.mxu0 %v13644_v16 }
0x2403   : > { %7413 = vadd.xlane.f32.xlu0 %v7412_v55 }
0x240e   : > { %v7746_v44 = vpop.xlane.xlu1 %7745 }
0x240f   : > { %v7747_v13 = vsub.f32 %v7738_v42, %v7746_v44 }
0x2411   : > { %v7748_v48 = vmul.f32 1.442695, %v7747_v13 }
0x2412   : > { %v7528_v33 = vpop.xlane.xlu1 %7527 }
0x2413   : > { %13519 = vpow2.f32 %v7748_v48 }
0x241d   : > { %v13520_v57 = vpop.eup %13519 }
0x241e   : > { %v7754_v24 = vpack.c.bf16 %v13520_v57, %v13520_v57 }
0x2420   : > { %12127 = vmatmul.mubr.msk.bf16.vlgmr.msra.gmra.mrb[132].mxu0 %vm3055_vm5, %v7754_v24  ;;  %v13149_v24 = vld [vmem:[%s17387_s12] ss:$8 sps:$4 sm:$0xff]  }
0x2421   : > { %12139 = vmatpush3.bf16.msra.mxu0 %v7868_v19  ;;  %12140 = vmatprep.mubr.msk.bf16.mxu0 %vm13645_vm2, %v13644_v16  ;;  %v13151_v19 = vld [vmem:[%s17387_s12 + $0x4] ss:$8 sps:$4 sm:$0xff]  }
0x2422   : > { %v7852_v54 = vpop.xlane.xlu0 %7851  ;;  %12152 = vmatprep.subr.bf16.mxu0 %v13644_v16  ;;  %8357 = vmatprep.subr.bf16.mxu1 %v13151_v19 }
0x2423   : > { %v7853_v49 = vsub.f32 %v7844_v12, %v7852_v54  ;;  %v13154_v54 = vld [vmem:[%s17387_s12 + $0x14] ss:$8 sps:$4 sm:$0xff]   ;;  %8358 = vmatpush1.bf16.msra.mxu1 %v13149_v24 }
0x2424   : > { %8359 = vmatprep.subr.bf16.mxu1 %v13154_v54  ;;  %v13196_v24 = vld [vmem:[%s17387_s12 + $0xf4] ss:$8 sps:$4 sm:$0xff]  }
0x2425   : > { %v7854_v30 = vmul.f32 1.442695, %v7853_v49 }
0x2426   : > { %v7976_v17 = vpop.permute.xlu0 %7975 }
0x2427   : > { %13521 = vpow2.f32 %v7854_v30  ;;  %v7981_v22 = vsel %vm3070_vm4, %v7976_v17, 0  ;;  %v13152_v30 = vld [vmem:[%s17387_s12 + $0x10] ss:$8 sps:$4 sm:$0xff]   ;;  %v13155_v17 = vld [vmem:[%s17387_s12 + $0x20] ss:$8 sps:$4 sm:$0xff]  }
0x2428   : > { %8360 = vmatpush1.bf16.msra.mxu1 %v13152_v30 }
0x2431   : > { %v13522_v43 = vpop.eup %13521 }
0x2432   : > { %v7856_v20 = vsel %vm3055_vm5, %v13522_v43, 0.0  ;;  %v7860_v11 = vpack.c.bf16 %v13522_v43, %v13522_v43  ;;  %v13157_v43 = vld [vmem:[%s17387_s12 + $0x24] ss:$8 sps:$4 sm:$0xff]  }
0x2433   : > { %7857 = vadd.xlane.f32.xlu1 %v7856_v20  ;;  %8361 = vmatprep.subr.bf16.mxu1 %v13157_v43 }
0x2434   : > { %12141 = vmatmul.mubr.msk.bf16.vlgmr.msra.gmra.mrb[136].mxu0 %vm3055_vm5, %v7860_v11  ;;  %8362 = vmatpush1.bf16.msra.mxu1 %v13155_v17 }
0x2435   : > { %12153 = vmatpush3.bf16.msra.mxu0 %v7981_v22  ;;  %12154 = vmatprep.mubr.msk.bf16.mxu0 %vm13645_vm2, %v13644_v16  ;;  %v13160_v22 = vld [vmem:[%s17387_s12 + $0x34] ss:$8 sps:$4 sm:$0xff]  }
0x2436   : > { %12166 = vmatprep.subr.bf16.mxu0 %v13644_v16  ;;  %8363 = vmatprep.subr.bf16.mxu1 %v13160_v22 }
0x2457   : > { %v7966_v36 = vpop.xlane.xlu0 %7965 }
0x2458   : > { %v7967_v42 = vsub.f32 %v7958_v51, %v7966_v36 }
0x245a   : > { %v7968_v14 = vmul.f32 1.442695, %v7967_v42 }
0x245b   : > { %v8079_v35 = vpop.xlane.xlu0 %8078 }
0x245c   : > { %13523 = vpow2.f32 %v7968_v14  ;;  %v8080_v47 = vsub.f32 %v8071_v29, %v8079_v35  ;;  %v7750_v29 = vsel %vm3055_vm5, %v13520_v57, 0.0 }
0x245e   : > { %v8081_v60 = vmul.f32 1.442695, %v8080_v47 }
0x245f   : > { %v8089_v12 = vpop.permute.xlu0 %8088 }
0x2460   : > { %13525 = vpow2.f32 %v8081_v60  ;;  %v8094_v39 = vsel %vm3070_vm4, %v8089_v12, 0  ;;  %v13158_v12 = vld [vmem:[%s17387_s12 + $0x30] ss:$8 sps:$4 sm:$0xff]  }
0x2461   : > { %13527 = vrcp.f32 %v7528_v33  ;;  %8364 = vmatpush1.bf16.msra.mxu1 %v13158_v12  ;;  %v13166_v33 = vld [vmem:[%s17387_s12 + $0x54] ss:$8 sps:$4 sm:$0xff]  }
0x2466   : > { %v13524_v3 = vpop.eup %13523 }
0x2467   : > { %v7970_v40 = vsel %vm3055_vm5, %v13524_v3, 0.0  ;;  %v7974_v58 = vpack.c.bf16 %v13524_v3, %v13524_v3 }
0x2468   : > { %7971 = vadd.xlane.f32.xlu1 %v7970_v40 }
0x2469   : > { %12155 = vmatmul.mubr.msk.bf16.vlgmr.msra.gmra.mrb[140].mxu0 %vm3055_vm5, %v7974_v58  ;;  %v13163_v58 = vld [vmem:[%s17387_s12 + $0x44] ss:$8 sps:$4 sm:$0xff]  }
0x246a   : > { %v13526_v45 = vpop.eup %13525  ;;  %12167 = vmatpush3.bf16.msra.mxu0 %v8094_v39  ;;  %12168 = vmatprep.mubr.msk.bf16.mxu0 %vm13645_vm2, %v13644_v16 }
0x246b   : > { %v8083_v51 = vsel %vm3055_vm5, %v13526_v45, 0.0  ;;  %v8087_v0 = vpack.c.bf16 %v13526_v45, %v13526_v45  ;;  %v13528_v21 = vpop.eup %13527  ;;  %v13161_v45 = vld [vmem:[%s17387_s12 + $0x40] ss:$8 sps:$4 sm:$0xff]   ;;  %8365 = vmatprep.subr.bf16.mxu1 %v13163_v58  ;;  %v8694_v58 = vld [vmem:[#allocation3 + $0x8] sm:$0xff] }
0x246c   : > { %8084 = vadd.xlane.f32.xlu1 %v8083_v51  ;;  %v7579_v4 = vmul.f32 %v13528_v21, %v16301_v1  ;;  %8366 = vmatpush1.bf16.msra.mxu1 %v13161_v45  ;;  %v13169_v21 = vld [vmem:[%s17387_s12 + $0x64] ss:$8 sps:$4 sm:$0xff]  }
0x246d   : > { %8367 = vmatprep.subr.bf16.mxu1 %v13166_v33 }
0x246e   : > { %v11568_v52 = vpack.c.bf16 %v7579_v4, %v7579_v4  ;;  %v13167_v4 = vld [vmem:[%s17387_s12 + $0x60] ss:$8 sps:$4 sm:$0xff]  }
0x2470   : > { %7307 = vadd.xlane.f32.xlu1 %v7306_v9 }
0x2471   : > { %12169 = vmatmul.mubr.msk.bf16.vlgmr.msra.gmra.mrb[144].mxu0 %vm3055_vm5, %v8087_v0  ;;  %v13164_v0 = vld [vmem:[%s17387_s12 + $0x50] ss:$8 sps:$4 sm:$0xff]  }
0x2472   : > { %8368 = vmatpush1.bf16.msra.mxu1 %v13164_v0 }
0x2473   : > { %8369 = vmatprep.subr.bf16.mxu1 %v13169_v21 }
0x2474   : > { %7751 = vadd.xlane.f32.xlu1 %v7750_v29 }
0x2476   : > { %8370 = vmatpush1.bf16.msra.mxu1 %v13167_v4 }
0x2485   : > { %7584 = vrot.lane.b32.xlu1 %v11568_v52, %s17390_s15  ;;  %v13172_v52 = vld [vmem:[%s17387_s12 + $0x74] ss:$8 sps:$4 sm:$0xff]  }
0x2486   : > { %8371 = vmatprep.subr.bf16.mxu1 %v13172_v52 }
0x2487   : > { %v7641_v34 = vpop.xlane.xlu1 %7640 }
0x2490   : > { %v7414_v37 = vpop.xlane.xlu0 %7413 }
0x2491   : > { %13529 = vrcp.f32 %v7414_v37  ;;  %v13170_v37 = vld [vmem:[%s17387_s12 + $0x70] ss:$8 sps:$4 sm:$0xff]  }
0x2492   : > { %13531 = vrcp.f32 %v7641_v34  ;;  %8372 = vmatpush1.bf16.msra.mxu1 %v13170_v37  ;;  %v13176_v34 = vld [vmem:[%s17387_s12 + $0x90] ss:$8 sps:$4 sm:$0xff]  }
0x249b   : > { %v13530_v27 = vpop.eup %13529 }
0x249c   : > { %v7466_v50 = vmul.f32 %v13530_v27, %v16257_v26  ;;  %v13532_v10 = vpop.eup %13531  ;;  %v13175_v27 = vld [vmem:[%s17387_s12 + $0x84] ss:$8 sps:$4 sm:$0xff]  }
0x249d   : > { %8373 = vmatprep.subr.bf16.mxu1 %v13175_v27  ;;  %v13199_v27 = vld [vmem:[%s17304_s13] ss:$8 sps:$4 sm:$0xff]  }
0x249e   : > { %v11567_v18 = vpack.c.bf16 %v7466_v50, %v7466_v50  ;;  %v13173_v50 = vld [vmem:[%s17387_s12 + $0x80] ss:$8 sps:$4 sm:$0xff]  }
0x249f   : > { %8374 = vmatpush1.bf16.msra.mxu1 %v13173_v50  ;;  %v13201_v50 = vld [vmem:[%s17304_s13 + $0x4] ss:$8 sps:$4 sm:$0xff]  }
0x24a0   : > { %7471 = vrot.lane.b32.xlu0 %v11567_v18, %s17388_s8  ;;  %v13178_v18 = vld [vmem:[%s17387_s12 + $0x94] ss:$8 sps:$4 sm:$0xff]   ;;  %8650 = vmatprep.subr.bf16.mxu0 %v13201_v50 }
0x24a1   : > { %8375 = vmatprep.subr.bf16.mxu1 %v13178_v18  ;;  %8651 = vmatpush1.bf16.msra.mxu0 %v13199_v27  ;;  %v13207_v18 = vld [vmem:[%s17304_s13 + $0x24] ss:$8 sps:$4 sm:$0xff]  }
0x24a3   : > { %8376 = vmatpush1.bf16.msra.mxu1 %v13176_v34  ;;  %v13205_v34 = vld [vmem:[%s17304_s13 + $0x20] ss:$8 sps:$4 sm:$0xff]  }
0x24c0   : > { %v7858_v53 = vpop.xlane.xlu1 %7857 }
0x24c1   : > { %13533 = vrcp.f32 %v7858_v53  ;;  %v13188_v53 = vld [vmem:[%s17387_s12 + $0xd0] ss:$8 sps:$4 sm:$0xff]  }
0x24cb   : > { %v13534_v20 = vpop.eup %13533 }
0x24ce   : > { %v7686_v25 = vpop.f32.mrb[128].mxu0 }
0x24cf   : > { %v7692_v38 = vmul.f32 %v13532_v10, %v7686_v25  ;;  %v12114_v41 = vpop.f32.mrb[129].mxu0  ;;  %v13181_v10 = vld [vmem:[%s17387_s12 + $0xa4] ss:$8 sps:$4 sm:$0xff]   ;;  %v13179_v25 = vld [vmem:[%s17387_s12 + $0xa0] ss:$8 sps:$4 sm:$0xff]  }
0x24d0   : > { %v7689_v46 = vpop.f32.mrb[130].mxu0  ;;  %8377 = vmatprep.subr.bf16.mxu1 %v13181_v10  ;;  %v13182_v41 = vld [vmem:[%s17387_s12 + $0xb0] ss:$8 sps:$4 sm:$0xff]   ;;  %v13210_v10 = vld [vmem:[%s17304_s13 + $0x34] ss:$8 sps:$4 sm:$0xff]  }
0x24d1   : > { %v11569_v7 = vpack.c.bf16 %v7692_v38, %v7692_v38  ;;  %v12115_v1 = vpop.f32.mrb[131].mxu0  ;;  %v13184_v38 = vld [vmem:[%s17387_s12 + $0xb4] ss:$8 sps:$4 sm:$0xff]   ;;  %8378 = vmatpush1.bf16.msra.mxu1 %v13179_v25  ;;  %v13185_v46 = vld [vmem:[%s17387_s12 + $0xc0] ss:$8 sps:$4 sm:$0xff]  }
0x24d2   : > { %8379 = vmatprep.subr.bf16.mxu1 %v13184_v38  ;;  %v13190_v1 = vld [vmem:[%s17387_s12 + $0xd4] ss:$8 sps:$4 sm:$0xff]   ;;  %v13208_v25 = vld [vmem:[%s17304_s13 + $0x30] ss:$8 sps:$4 sm:$0xff]   ;;  %v13213_v38 = vld [vmem:[%s17304_s13 + $0x44] ss:$8 sps:$4 sm:$0xff]  }
0x24d3   : > { %7697 = vrot.lane.b32.xlu0 %v11569_v7, %s17389_s6  ;;  %v13187_v7 = vld [vmem:[%s17387_s12 + $0xc4] ss:$8 sps:$4 sm:$0xff]  }
0x24d5   : > { %8380 = vmatpush1.bf16.msra.mxu1 %v13182_v41  ;;  %v13211_v41 = vld [vmem:[%s17304_s13 + $0x40] ss:$8 sps:$4 sm:$0xff]  }
0x24d6   : > { %8381 = vmatprep.subr.bf16.mxu1 %v13187_v7  ;;  %v13214_v7 = vld [vmem:[%s17304_s13 + $0x50] ss:$8 sps:$4 sm:$0xff]  }
0x24d9   : > { %8382 = vmatpush1.bf16.msra.mxu1 %v13185_v46  ;;  %v13216_v46 = vld [vmem:[%s17304_s13 + $0x54] ss:$8 sps:$4 sm:$0xff]  }
0x24da   : > { %8383 = vmatprep.subr.bf16.mxu1 %v13190_v1  ;;  %v13219_v1 = vld [vmem:[%s17304_s13 + $0x64] ss:$8 sps:$4 sm:$0xff]  }
0x24dd   : > { %8384 = vmatpush1.bf16.msra.mxu1 %v13188_v53  ;;  %v13217_v53 = vld [vmem:[%s17304_s13 + $0x60] ss:$8 sps:$4 sm:$0xff]  }
0x24f3   : > { %v7795_v55 = vpop.f32.mrb[132].mxu0 }
0x24f4   : > { %v12128_v44 = vpop.f32.mrb[133].mxu0 }
0x24f5   : > { %v7798_v13 = vpop.f32.mrb[134].mxu0  ;;  %v16355_v48 = vpop.xlane.xlu1 %7971 }
0x24f6   : > { %v12129_v26 = vpop.f32.mrb[135].mxu0  ;;  %v13191_v13 = vld [vmem:[%s17387_s12 + $0xe0] ss:$8 sps:$4 sm:$0xff]  }
0x24f9   : > { %v16357_v57 = vpop.xlane.xlu1 %8084 }
0x24fd   : > { %v7308_v15 = vpop.xlane.xlu1 %7307 }
0x24fe   : > { %13535 = vrcp.f32 %v7308_v15 }
0x2501   : > { %v7752_v49 = vpop.xlane.xlu1 %7751 }
0x2502   : > { %13537 = vrcp.f32 %v7752_v49  ;;  %v13194_v49 = vld [vmem:[%s17387_s12 + $0xf0] ss:$8 sps:$4 sm:$0xff]  }
0x2503   : > { %13539 = vrcp.f32 %v16355_v48  ;;  %v13193_v48 = vld [vmem:[%s17387_s12 + $0xe4] ss:$8 sps:$4 sm:$0xff]  }
0x2504   : > { %13541 = vrcp.f32 %v16357_v57  ;;  %8385 = vmatprep.subr.bf16.mxu1 %v13193_v48  ;;  %v13223_v48 = vld [vmem:[%s17304_s13 + $0x80] ss:$8 sps:$4 sm:$0xff]  }
0x2505   : > { %v7585_v29 = vpop.permute.xlu1 %7584  ;;  %8386 = vmatpush1.bf16.msra.mxu1 %v13191_v13  ;;  %v13225_v13 = vld [vmem:[%s17304_s13 + $0x84] ss:$8 sps:$4 sm:$0xff]  }
0x2506   : > { %8387 = vmatprep.subr.bf16.mxu1 %v13196_v24  ;;  %v13231_v24 = vld [vmem:[%s17304_s13 + $0xa4] ss:$8 sps:$4 sm:$0xff]  }
0x2507   : > { %v7904_v11 = vpop.f32.mrb[136].mxu0 }
0x2508   : > { %v13536_v36 = vpop.eup %13535  ;;  %v7910_v42 = vmul.f32 %v13534_v20, %v7904_v11  ;;  %v12142_v14 = vpop.f32.mrb[137].mxu0 }
0x2509   : > { %v7357_v35 = vmul.f32 %v13536_v36, %v16236_v56  ;;  %v7907_v47 = vpop.f32.mrb[138].mxu0  ;;  %8388 = vmatpush1.bf16.msra.mxu1 %v13194_v49 }
0x250a   : > { %v11570_v60 = vpack.c.bf16 %v7910_v42, %v7910_v42  ;;  %v12143_v3 = vpop.f32.mrb[139].mxu0  ;;  %12172 = vmatprep.subr.bf16.mxu1 %v13644_v16 }
0x250b   : > { %v7358_v40 = vpack.c.bf16 %v7357_v35, %v7357_v35 }
0x250c   : > { %v13538_v39 = vpop.eup %13537  ;;  %7915 = vrot.lane.b32.xlu1 %v11570_v60, %s17388_s8 }
0x250d   : > { %7359 = vst.msk [vmem:[#allocation2] sm:$0xf] %vm3116_vm6, %v7358_v40  ;;  %v7801_v56 = vmul.f32 %v13538_v39, %v7795_v55  ;;  %v13540_v55 = vpop.eup %13539  ;;  %v8693_v40 = vld [vmem:[#allocation3] sm:$0xff]  ;;  %v8178_v39 = vld [vmem:[%s17391_s11] sm:$0x3] }
0x250e   : > { %v13542_v30 = vpop.eup %13541  ;;  %v8187_v45 = vrot.slane %v8178_v39, %v14042_v6 }
0x250f   : > { %v7802_v51 = vpack.c.bf16 %v7801_v56, %v7801_v56  ;;  %v8183_v56 = vrot.slane %v8178_v39, %v14039_v5 }
0x2511   : > { %7803 = vst.msk [vmem:[#allocation2 + $0x4] sm:$0xf] %vm3116_vm6, %v7802_v51 }
0x2512   : > { %v7472_v9 = vpop.permute.xlu0 %7471 }
0x2513   : > { %7474 = vst.msk [vmem:[#allocation2] sm:$0xf] %vm3232_vm7, %v7472_v9 }
0x2514   : > { %7587 = vst.msk [vmem:[#allocation2] sm:$0xf] %vm3346_vm8, %v7585_v29 }
0x253c   : > { %v8017_v44 = vpop.f32.mrb[140].mxu0 }
0x253d   : > { %v8023_v26 = vmul.f32 %v13540_v55, %v8017_v44  ;;  %v12156_v15 = vpop.f32.mrb[141].mxu0  ;;  %v13222_v55 = vld [vmem:[%s17304_s13 + $0x74] ss:$8 sps:$4 sm:$0xff]   ;;  %v13220_v44 = vld [vmem:[%s17304_s13 + $0x70] ss:$8 sps:$4 sm:$0xff]  }
0x253e   : > { %v8020_v19 = vpop.f32.mrb[142].mxu0  ;;  %v13226_v15 = vld [vmem:[%s17304_s13 + $0x90] ss:$8 sps:$4 sm:$0xff]  }
0x253f   : > { %v11571_v57 = vpack.c.bf16 %v8023_v26, %v8023_v26  ;;  %v12157_v54 = vpop.f32.mrb[143].mxu0  ;;  %v13228_v26 = vld [vmem:[%s17304_s13 + $0x94] ss:$8 sps:$4 sm:$0xff]   ;;  %v13229_v19 = vld [vmem:[%s17304_s13 + $0xa0] ss:$8 sps:$4 sm:$0xff]  }
0x2541   : > { %8028 = vrot.lane.b32.xlu1 %v11571_v57, %s17390_s15 }
0x2544   : > { %v8130_v43 = vpop.f32.mrb[144].mxu0 }
0x2545   : > { %v8136_v17 = vmul.f32 %v13542_v30, %v8130_v43  ;;  %v12170_v20 = vpop.f32.mrb[145].mxu0  ;;  %v7698_v11 = vpop.permute.xlu0 %7697 }
0x2546   : > { %7700 = vst.msk [vmem:[#allocation2] sm:$0xf] %vm3460_vm9, %v7698_v11  ;;  %v8133_v22 = vpop.f32.mrb[146].mxu0  ;;  %v13234_v11 = vld [vmem:[%s17304_s13 + $0xb4] ss:$8 sps:$4 sm:$0xff]  }
0x2547   : > { %v11572_v36 = vpack.c.bf16 %v8136_v17, %v8136_v17  ;;  %v12171_v42 = vpop.f32.mrb[147].mxu0  ;;  %v13232_v22 = vld [vmem:[%s17304_s13 + $0xb0] ss:$8 sps:$4 sm:$0xff]  }
0x2548   : > { %v13235_v42 = vld [vmem:[%s17304_s13 + $0xc0] ss:$8 sps:$4 sm:$0xff]  }
0x2549   : > { %8141 = vrot.lane.b32.xlu1 %v11572_v36, %s17389_s6  ;;  %v13237_v36 = vld [vmem:[%s17304_s13 + $0xc4] ss:$8 sps:$4 sm:$0xff]  }
0x257e   : > { %v7916_v14 = vpop.permute.xlu1 %7915 }
0x257f   : > { %7918 = vst.msk [vmem:[#allocation2 + $0x4] sm:$0xf] %vm3232_vm7, %v7916_v14  ;;  %v13240_v14 = vld [vmem:[%s17304_s13 + $0xd4] ss:$8 sps:$4 sm:$0xff]  }
0x25b3   : > { %v8029_v35 = vpop.permute.xlu1 %8028 }
0x25b4   : > { %8031 = vst.msk [vmem:[#allocation2 + $0x4] sm:$0xf] %vm3346_vm8, %v8029_v35  ;;  %v13238_v35 = vld [vmem:[%s17304_s13 + $0xd0] ss:$8 sps:$4 sm:$0xff]  }
0x25bb   : > { %v8142_v47 = vpop.permute.xlu1 %8141 }
0x25bc   : > { %8144 = vst.msk [vmem:[#allocation2 + $0x4] sm:$0xf] %vm3460_vm9, %v8142_v47  ;;  %v13243_v47 = vld [vmem:[%s17304_s13 + $0xe4] ss:$8 sps:$4 sm:$0xff]  }
0x25c3   : > { %v8145_v60 = vld [vmem:[#allocation2] sm:$0xff] }
0x25c4   : > { %v11331_v3 = vcombine.high %v8145_v60, %v8145_v60  ;;  %v11330_v12 = vcombine.low %v8145_v60, %v8145_v60  ;;  %v13241_v60 = vld [vmem:[%s17304_s13 + $0xe0] ss:$8 sps:$4 sm:$0xff]  }
0x25c6   : > { %8389 = vmatprep.mubr.bf16.mxu1 %v11331_v3  ;;  %v13246_v3 = vld [vmem:[%s17304_s13 + $0xf4] ss:$8 sps:$4 sm:$0xff]  }
0x25c7   : > { %8390 = vmatmul.mubr.bf16.vlgmr.msra.gmra.mrb[136].mxu1 %v11330_v12  ;;  %v13244_v12 = vld [vmem:[%s17304_s13 + $0xf0] ss:$8 sps:$4 sm:$0xff]  }
0x25c8   : > { %12173 = vmatpush3.bf16.msra.mxu1 %v8693_v40  ;;  %12176 = vmatprep.mubr.msk.bf16.mxu1 %vm13645_vm2, %v13644_v16 }
0x25c9   : > { %12174 = vmatprep.subr.bf16.mxu1 %v13644_v16 }
0x25cc   : > { %12175 = vmatpush3.bf16.msra.mxu1 %v8694_v58 }
0x25cd   : > { %12192 = vmatprep.subr.bf16.mxu1 %v13644_v16 }
0x269a   : > { %v8391_v51 = vpop.f32.mrb[136].mxu1 }
0x269b   : > { %v8392_v33 = vadd.f32 %v8391_v51, %v8183_v56  ;;  %v8393_v9 = vpop.f32.mrb[137].mxu1  ;;  %v8416_v56 = vld [vmem:[%s17317_s26] sm:$0x3] }
0x269c   : > { %v8394_v0 = vadd.f32 %v8393_v9, %v8187_v45  ;;  %v8395_v29 = vpop.f32.mrb[138].mxu1  ;;  %v8430_v45 = vld [vmem:[%s17318_s27] sm:$0x3]  ;;  %v8421_v51 = vrot.slane %v8416_v56, %v14039_v5 }
0x269d   : > { %v16480_v21 = vadd.f32 %v8392_v33, %v15849_v2  ;;  %v8396_v4 = vpop.f32.mrb[139].mxu1  ;;  %v13204_v2 = vld [vmem:[%s17304_s13 + $0x14] ss:$8 sps:$4 sm:$0xff]   ;;  %v8425_v33 = vrot.slane %v8416_v56, %v14042_v6  ;;  %v8435_v29 = vrot.slane %v8430_v45, %v14039_v5 }
0x269e   : > { %v16483_v52 = vadd.f32 %v8394_v0, %v15852_v8  ;;  %v13202_v8 = vld [vmem:[%s17304_s13 + $0x10] ss:$8 sps:$4 sm:$0xff]   ;;  %8652 = vmatprep.subr.bf16.mxu0 %v13204_v2  ;;  %v8439_v4 = vrot.slane %v8430_v45, %v14042_v6 }
0x269f   : > { %8653 = vmatpush1.bf16.msra.mxu0 %v13202_v8 }
0x26a0   : > { %v8400_v37 = vadd.f32 %v16483_v52, %v16480_v21  ;;  %8654 = vmatprep.subr.bf16.mxu0 %v13207_v18 }
0x26a2   : > { %8401 = vadd.xlane.f32.xlu0 %v8400_v37 }
0x26a3   : > { %8655 = vmatpush1.bf16.msra.mxu0 %v13205_v34 }
0x26a4   : > { %8656 = vmatprep.subr.bf16.mxu0 %v13210_v10  ;;  %v16609_v10 = vld [vmem:[%s17305_s14] sm:$0x3] }
0x26a7   : > { %8657 = vmatpush1.bf16.msra.mxu0 %v13208_v25  ;;  %v8483_v25 = vrot.slane %v16609_v10, %v14039_v5 }
0x26a8   : > { %8658 = vmatprep.subr.bf16.mxu0 %v13213_v38 }
0x26ab   : > { %8659 = vmatpush1.bf16.msra.mxu0 %v13211_v41 }
0x26ac   : > { %8660 = vmatprep.subr.bf16.mxu0 %v13216_v46 }
0x26af   : > { %8661 = vmatpush1.bf16.msra.mxu0 %v13214_v7 }
0x26b0   : > { %8662 = vmatprep.subr.bf16.mxu0 %v13219_v1 }
0x26b3   : > { %8663 = vmatpush1.bf16.msra.mxu0 %v13217_v53 }
0x26b4   : > { %8664 = vmatprep.subr.bf16.mxu0 %v13222_v55  ;;  %v8695_v55 = vld [vmem:[#allocation3 + $0x10] sm:$0xff] }
0x26b7   : > { %8665 = vmatpush1.bf16.msra.mxu0 %v13220_v44  ;;  %v8696_v44 = vld [vmem:[#allocation3 + $0x18] sm:$0xff] }
0x26b8   : > { %8666 = vmatprep.subr.bf16.mxu0 %v13225_v13 }
0x26bb   : > { %8667 = vmatpush1.bf16.msra.mxu0 %v13223_v48 }
0x26bc   : > { %8668 = vmatprep.subr.bf16.mxu0 %v13228_v26 }
0x26bf   : > { %8669 = vmatpush1.bf16.msra.mxu0 %v13226_v15 }
0x26c0   : > { %8670 = vmatprep.subr.bf16.mxu0 %v13231_v24 }
0x26c3   : > { %8671 = vmatpush1.bf16.msra.mxu0 %v13229_v19 }
0x26c4   : > { %8672 = vmatprep.subr.bf16.mxu0 %v13234_v11 }
0x26c7   : > { %8673 = vmatpush1.bf16.msra.mxu0 %v13232_v22 }
0x26c8   : > { %8674 = vmatprep.subr.bf16.mxu0 %v13237_v36 }
0x26cb   : > { %8675 = vmatpush1.bf16.msra.mxu0 %v13235_v42  ;;  %v8697_v42 = vld [vmem:[#allocation3 + $0x20] sm:$0xff] }
0x26cc   : > { %8676 = vmatprep.subr.bf16.mxu0 %v13240_v14 }
0x26cf   : > { %8677 = vmatpush1.bf16.msra.mxu0 %v13238_v35 }
0x26d0   : > { %8678 = vmatprep.subr.bf16.mxu0 %v13243_v47 }
0x26d3   : > { %8679 = vmatpush1.bf16.msra.mxu0 %v13241_v60 }
0x26d4   : > { %8680 = vmatprep.subr.bf16.mxu0 %v13246_v3 }
0x26d7   : > { %8681 = vmatpush1.bf16.msra.mxu0 %v13244_v12 }
0x26d8   : > { %12180 = vmatprep.subr.bf16.mxu0 %v13644_v16 }
0x272f   : > { %v8402_v57 = vpop.xlane.xlu0 %8401 }
0x2730   : > { %v8403_v54 = vmul.f32 0.00390625, %v8402_v57 }
0x2732   : > { %v8404_v49 = vsub.f32 %v16480_v21, %v8403_v54  ;;  %v8405_v30 = vsub.f32 %v16483_v52, %v8403_v54 }
0x2734   : > { %v8406_v43 = vmul.f32 %v8404_v49, %v8404_v49  ;;  %v8407_v17 = vmul.f32 %v8405_v30, %v8405_v30 }
0x2736   : > { %v8408_v20 = vadd.f32 %v8407_v17, %v8406_v43 }
0x2738   : > { %8409 = vadd.xlane.f32.xlu1 %v8408_v20 }
0x27c5   : > { %v8410_v40 = vpop.xlane.xlu1 %8409 }
0x27c6   : > { %v8411_v58 = vmul.f32 0.00390625, %v8410_v40 }
0x27c8   : > { %v8412_v39 = vadd.f32 1e-05, %v8411_v58 }
0x27ca   : > { %13543 = vrsqrt.f32 %v8412_v39 }
0x27d4   : > { %v13544_v9 = vpop.eup %13543 }
0x27d5   : > { %v8415_v0 = vmul.f32 %v13544_v9, %v8405_v30  ;;  %v8414_v37 = vmul.f32 %v13544_v9, %v8404_v49  ;;  %v8699_v9 = vld [vmem:[#allocation3 + $0x30] sm:$0xff] }
0x27d7   : > { %v8429_v27 = vmul.f32 %v8425_v33, %v8415_v0  ;;  %v8428_v50 = vmul.f32 %v8421_v51, %v8414_v37  ;;  %v8700_v0 = vld [vmem:[#allocation3 + $0x38] sm:$0xff] }
0x27d9   : > { %v8443_v2 = vadd.f32 %v8439_v4, %v8429_v27  ;;  %v8442_v8 = vadd.f32 %v8435_v29, %v8428_v50 }
0x27db   : > { %v8445_v18 = vpack.c.bf16 %v8443_v2, %v8443_v2  ;;  %v8444_v34 = vpack.c.bf16 %v8442_v8, %v8442_v8 }
0x27dd   : > { %8682 = vmatprep.mubr.bf16.mxu0 %v8445_v18 }
0x27de   : > { %8683 = vmatmul.mubr.bf16.vlgmr.msra.gmra.mrb[148].mxu0 %v8444_v34 }
0x27df   : > { %12181 = vmatpush3.bf16.msra.mxu0 %v14532_v59  ;;  %12188 = vmatprep.mubr.msk.bf16.mxu0 %vm13645_vm2, %v13644_v16 }
0x27e0   : > { %12182 = vmatprep.subr.bf16.mxu0 %v13644_v16 }
0x27e3   : > { %12183 = vmatpush3.bf16.msra.mxu0 %v14556_v23 }
0x27e4   : > { %12184 = vmatprep.subr.bf16.mxu0 %v13644_v16 }
0x27e7   : > { %12185 = vmatpush3.bf16.msra.mxu0 %v14675_v31 }
0x27e8   : > { %12186 = vmatprep.subr.bf16.mxu0 %v13644_v16 }
0x27eb   : > { %12187 = vmatpush3.bf16.msra.mxu0 %v14693_v61 }
0x27ec   : > { %12212 = vmatprep.subr.bf16.mxu0 %v13644_v16 }
0x28b1   : > { %v8684_v38 = vpop.f32.mrb[148].mxu0 }
0x28b2   : > { %v8685_v41 = vadd.f32 %v8684_v38, %v8483_v25  ;;  %v16613_v46 = vpop.f32.mrb[149].mxu0 }
0x28b3   : > { %v8688_v7 = vpop.f32.mrb[150].mxu0 }
0x28b4   : > { %v8691_v1 = vpack.c.bf16 %v8685_v41, %v8685_v41  ;;  %v8689_v53 = vpop.f32.mrb[151].mxu0 }
0x28b6   : > { %8818 = vrot.lane.b32.xlu0 %v8691_v1, %s17389_s6  ;;  %12177 = vmatmul.mubr.msk.bf16.vlgmr.msra.gmra.mrb[140].mxu1 %vm3011_vm3, %v8691_v1 }
0x28b7   : > { %12193 = vmatpush3.bf16.msra.mxu1 %v8695_v55  ;;  %12196 = vmatprep.mubr.msk.bf16.mxu1 %vm13645_vm2, %v13644_v16 }
0x28b8   : > { %12194 = vmatprep.subr.bf16.mxu1 %v13644_v16 }
0x28ba   : > { %8880 = vrot.lane.b32.xlu0 %v14556_v23, %s17389_s6 }
0x28bb   : > { %12195 = vmatpush3.bf16.msra.mxu1 %v8696_v44 }
0x28bc   : > { %12200 = vmatprep.subr.bf16.mxu1 %v13644_v16 }
0x28be   : > { %8882 = vrot.lane.b32.xlu0 %v14675_v31, %s17389_s6 }
0x28c2   : > { %8884 = vrot.lane.b32.xlu0 %v14693_v61, %s17389_s6 }
0x28c6   : > { %9062 = vrot.lane.b32.xlu0 %v8691_v1, %s17388_s8 }
0x28ca   : > { %8998 = vrot.lane.b32.xlu0 %v14532_v59, %s17390_s15 }
0x28ce   : > { %9120 = vrot.lane.b32.xlu0 %v14556_v23, %s17388_s8 }
0x28d2   : > { %9122 = vrot.lane.b32.xlu0 %v14675_v31, %s17388_s8 }
0x2928   : > { %v8819_v13 = vpop.permute.xlu0 %8818 }
0x2929   : > { %12197 = vmatmul.mubr.msk.bf16.vlgmr.msra.gmra.mrb[144].mxu1 %vm3011_vm3, %v8819_v13 }
0x292a   : > { %12208 = vmatprep.mubr.msk.bf16.mxu1 %vm13645_vm2, %v13644_v16 }
0x2989   : > { %v8754_v48 = vpop.f32.mrb[140].mxu1 }
0x298a   : > { %v12178_v26 = vpop.f32.mrb[141].mxu1  ;;  %v8760_v15 = vsel %vm2116_vm10, %v8754_v48, -inf }
0x298b   : > { %8761 = vmax.xlane.f32.xlu1 %v8760_v15  ;;  %v8757_v24 = vpop.f32.mrb[142].mxu1 }
0x298c   : > { %v12179_v19 = vpop.f32.mrb[143].mxu1 }
0x29fc   : > { %v8857_v57 = vpop.f32.mrb[144].mxu1 }
0x29fd   : > { %v12198_v54 = vpop.f32.mrb[145].mxu1  ;;  %v8863_v49 = vsel %vm2116_vm10, %v8857_v57, -inf }
0x29fe   : > { %8864 = vmax.xlane.f32.xlu1 %v8863_v49  ;;  %v8860_v30 = vpop.f32.mrb[146].mxu1 }
0x29ff   : > { %v12199_v43 = vpop.f32.mrb[147].mxu1 }
0x2a00   : > { %v8701_v43 = vld [vmem:[#allocation3 + $0x40] sm:$0xff] }
0x2a0f   : > { %8878 = vrot.lane.b32.xlu1 %v14532_v59, %s17389_s6 }
0x2a13   : > { %8942 = vrot.lane.b32.xlu1 %v8691_v1, %s17390_s15  ;;  %v8487_v1 = vrot.slane %v16609_v10, %v14042_v6 }
0x2a15   : > { %v8687_v44 = vadd.f32 %v16613_v46, %v8487_v1 }
0x2a17   : > { %9118 = vrot.lane.b32.xlu1 %v14532_v59, %s17388_s8  ;;  %v8698_v59 = vld [vmem:[#allocation3 + $0x28] sm:$0xff]  ;;  %v16693_v15 = vpack.c.bf16 %v8687_v44, %v8687_v44 }
0x2a18   : > { %v8762_v17 = vpop.xlane.xlu1 %8761 }
0x2a19   : > { %v8763_v20 = vsub.f32 %v8754_v48, %v8762_v17 }
0x2a1b   : > { %v8764_v11 = vmul.f32 1.442695, %v8763_v20  ;;  %9000 = vrot.lane.b32.xlu1 %v14556_v23, %s17390_s15  ;;  %v8881_v23 = vpop.permute.xlu0 %8880 }
0x2a1d   : > { %13545 = vpow2.f32 %v8764_v11  ;;  %v8702_v11 = vld [vmem:[#allocation3 + $0x48] sm:$0xff] }
0x2a1f   : > { %9002 = vrot.lane.b32.xlu1 %v14675_v31, %s17390_s15  ;;  %v8883_v31 = vpop.permute.xlu0 %8882 }
0x2a23   : > { %v8885_v14 = vpop.permute.xlu0 %8884 }
0x2a27   : > { %v16648_v22 = vpop.eup %13545  ;;  %v9063_v60 = vpop.permute.xlu0 %9062 }
0x2a28   : > { %v8770_v36 = vpack.c.bf16 %v16648_v22, %v16648_v22 }
0x2a2a   : > { %12189 = vmatmul.mubr.msk.bf16.vlgmr.msra.gmra.mrb[152].mxu0 %vm2116_vm10, %v8770_v36 }
0x2a2b   : > { %12213 = vmatpush3.bf16.msra.mxu0 %v8697_v42  ;;  %12216 = vmatprep.mubr.msk.bf16.mxu0 %vm13645_vm2, %v13644_v16  ;;  %v8999_v58 = vpop.permute.xlu0 %8998 }
0x2a2c   : > { %12214 = vmatprep.subr.bf16.mxu0 %v13644_v16 }
0x2a2f   : > { %12215 = vmatpush3.bf16.msra.mxu0 %v8698_v59  ;;  %v9121_v29 = vpop.permute.xlu0 %9120 }
0x2a30   : > { %12220 = vmatprep.subr.bf16.mxu0 %v13644_v16 }
0x2a33   : > { %v9123_v4 = vpop.permute.xlu0 %9122 }
0x2a8b   : > { %v8865_v35 = vpop.xlane.xlu1 %8864 }
0x2a8c   : > { %v8866_v47 = vsub.f32 %v8857_v57, %v8865_v35 }
0x2a8e   : > { %v8867_v3 = vmul.f32 1.442695, %v8866_v47 }
0x2a8f   : > { %v8879_v12 = vpop.permute.xlu1 %8878 }
0x2a90   : > { %13547 = vpow2.f32 %v8867_v3  ;;  %12201 = vmatpush3.bf16.msra.mxu1 %v8879_v12 }
0x2a91   : > { %12202 = vmatprep.subr.bf16.mxu1 %v13644_v16 }
0x2a93   : > { %v8943_v40 = vpop.permute.xlu1 %8942 }
0x2a94   : > { %12203 = vmatpush3.bf16.msra.mxu1 %v8881_v23  ;;  %12217 = vmatmul.mubr.msk.bf16.vlgmr.msra.gmra.mrb[156].mxu0 %vm3011_vm3, %v8943_v40  ;;  %v8703_v23 = vld [vmem:[#allocation3 + $0x50] sm:$0xff] }
0x2a95   : > { %12221 = vmatpush3.bf16.msra.mxu0 %v8999_v58  ;;  %12204 = vmatprep.subr.bf16.mxu1 %v13644_v16 }
0x2a96   : > { %12222 = vmatprep.subr.bf16.mxu0 %v13644_v16  ;;  %12228 = vmatprep.mubr.msk.bf16.mxu0 %vm13645_vm2, %v13644_v16 }
0x2a97   : > { %v9119_v39 = vpop.permute.xlu1 %9118 }
0x2a98   : > { %12205 = vmatpush3.bf16.msra.mxu1 %v8883_v31  ;;  %v8704_v31 = vld [vmem:[#allocation3 + $0x58] sm:$0xff] }
0x2a99   : > { %12206 = vmatprep.subr.bf16.mxu1 %v13644_v16 }
0x2a9a   : > { %v16664_v56 = vpop.eup %13547 }
0x2a9b   : > { %v9001_v45 = vpop.permute.xlu1 %9000  ;;  %v8873_v51 = vpack.c.bf16 %v16664_v56, %v16664_v56 }
0x2a9c   : > { %12207 = vmatpush3.bf16.msra.mxu1 %v8885_v14  ;;  %12223 = vmatpush3.bf16.msra.mxu0 %v9001_v45 }
0x2a9d   : > { %12224 = vmatprep.subr.bf16.mxu0 %v13644_v16  ;;  %12232 = vmatprep.subr.bf16.mxu1 %v13644_v16 }
0x2a9f   : > { %12209 = vmatmul.mubr.msk.bf16.vlgmr.msra.gmra.mrb[148].mxu1 %vm2116_vm10, %v8873_v51  ;;  %v9003_v33 = vpop.permute.xlu1 %9002 }
0x2aa0   : > { %12225 = vmatpush3.bf16.msra.mxu0 %v9003_v33  ;;  %12233 = vmatpush3.bf16.msra.mxu1 %v8699_v9 }
0x2aa1   : > { %12234 = vmatprep.subr.bf16.mxu1 %v13644_v16  ;;  %12236 = vmatprep.mubr.msk.bf16.mxu1 %vm13645_vm2, %v13644_v16 }
0x2aa2   : > { %12226 = vmatprep.subr.bf16.mxu0 %v13644_v16 }
0x2aa4   : > { %12235 = vmatpush3.bf16.msra.mxu1 %v8700_v0 }
0x2aa5   : > { %12240 = vmatprep.subr.bf16.mxu1 %v13644_v16 }
0x2aa7   : > { %12237 = vmatmul.mubr.msk.bf16.vlgmr.msra.gmra.mrb[152].mxu1 %vm3011_vm3, %v9063_v60 }
0x2aa8   : > { %12241 = vmatpush3.bf16.msra.mxu1 %v9119_v39  ;;  %12248 = vmatprep.mubr.msk.bf16.mxu1 %vm13645_vm2, %v13644_v16 }
0x2aa9   : > { %12242 = vmatprep.subr.bf16.mxu1 %v13644_v16 }
0x2aac   : > { %12243 = vmatpush3.bf16.msra.mxu1 %v9121_v29 }
0x2aad   : > { %12244 = vmatprep.subr.bf16.mxu1 %v13644_v16 }
0x2ab0   : > { %12245 = vmatpush3.bf16.msra.mxu1 %v9123_v4 }
0x2ab1   : > { %12246 = vmatprep.subr.bf16.mxu1 %v13644_v16 }
0x2afd   : > { %v16682_v37 = vpop.f32.mrb[152].mxu0 }
0x2afe   : > { %v12190_v27 = vpop.f32.mrb[153].mxu0 }
0x2aff   : > { %v8811_v50 = vpop.f32.mrb[154].mxu0 }
0x2b00   : > { %v12191_v2 = vpop.f32.mrb[155].mxu0 }
0x2b67   : > { %v8981_v8 = vpop.f32.mrb[156].mxu0 }
0x2b68   : > { %v12218_v18 = vpop.f32.mrb[157].mxu0  ;;  %v8987_v34 = vsel %vm2116_vm10, %v8981_v8, -inf }
0x2b69   : > { %8988 = vmax.xlane.f32.xlu1 %v8987_v34  ;;  %v8984_v25 = vpop.f32.mrb[158].mxu0 }
0x2b6a   : > { %v12219_v38 = vpop.f32.mrb[159].mxu0 }
0x2b72   : > { %v16685_v41 = vpop.f32.mrb[148].mxu1 }
0x2b73   : > { %v12210_v7 = vpop.f32.mrb[149].mxu1 }
0x2b74   : > { %v8930_v53 = vpop.f32.mrb[150].mxu1 }
0x2b75   : > { %v12211_v55 = vpop.f32.mrb[151].mxu1 }
0x2b7a   : > { %9004 = vrot.lane.b32.xlu1 %v14693_v61, %s17390_s15  ;;  %v9101_v13 = vpop.f32.mrb[152].mxu1 }
0x2b7b   : > { %v12238_v48 = vpop.f32.mrb[153].mxu1  ;;  %v9107_v26 = vsel %vm2116_vm10, %v9101_v13, -inf }
0x2b7c   : > { %9108 = vmax.xlane.f32.xlu0 %v9107_v26  ;;  %v9104_v24 = vpop.f32.mrb[154].mxu1  ;;  %v8706_v48 = vld [vmem:[#allocation3 + $0x68] sm:$0xff] }
0x2b7d   : > { %v12239_v19 = vpop.f32.mrb[155].mxu1 }
0x2b7e   : > { %9283 = vrot.lane.b32.xlu1 %v16693_v15, %s17389_s6 }
0x2b82   : > { %9345 = vrot.lane.b32.xlu1 %v14566_v28, %s17389_s6 }
0x2b92   : > { %9124 = vrot.lane.b32.xlu0 %v14693_v61, %s17388_s8 }
0x2b96   : > { %9343 = vrot.lane.b32.xlu0 %v14539_v63, %s17389_s6 }
0x2bf6   : > { %v8989_v10 = vpop.xlane.xlu1 %8988 }
0x2bf7   : > { %v8990_v46 = vsub.f32 %v8981_v8, %v8989_v10 }
0x2bf9   : > { %v8991_v57 = vmul.f32 1.442695, %v8990_v46 }
0x2bfa   : > { %v9005_v54 = vpop.permute.xlu1 %9004 }
0x2bfb   : > { %13549 = vpow2.f32 %v8991_v57  ;;  %12227 = vmatpush3.bf16.msra.mxu0 %v9005_v54  ;;  %v8707_v57 = vld [vmem:[#allocation3 + $0x70] sm:$0xff] }
0x2bfc   : > { %12252 = vmatprep.subr.bf16.mxu0 %v13644_v16 }
0x2bfe   : > { %v9284_v14 = vpop.permute.xlu1 %9283 }
0x2c02   : > { %v9346_v47 = vpop.permute.xlu1 %9345 }
0x2c05   : > { %v16704_v49 = vpop.eup %13549 }
0x2c06   : > { %v8997_v30 = vpack.c.bf16 %v16704_v49, %v16704_v49 }
0x2c08   : > { %12229 = vmatmul.mubr.msk.bf16.vlgmr.msra.gmra.mrb[160].mxu0 %vm2116_vm10, %v8997_v30  ;;  %v8708_v30 = vld [vmem:[#allocation3 + $0x78] sm:$0xff] }
0x2c09   : > { %12253 = vmatpush3.bf16.msra.mxu0 %v8701_v43  ;;  %v9109_v61 = vpop.xlane.xlu0 %9108  ;;  %12256 = vmatprep.mubr.msk.bf16.mxu0 %vm13645_vm2, %v13644_v16 }
0x2c0a   : > { %v9110_v17 = vsub.f32 %v9101_v13, %v9109_v61  ;;  %12254 = vmatprep.subr.bf16.mxu0 %v13644_v16 }
0x2c0c   : > { %v9111_v20 = vmul.f32 1.442695, %v9110_v17 }
0x2c0d   : > { %12255 = vmatpush3.bf16.msra.mxu0 %v8702_v11  ;;  %v9125_v36 = vpop.permute.xlu0 %9124 }
0x2c0e   : > { %13551 = vpow2.f32 %v9111_v20  ;;  %12247 = vmatpush3.bf16.msra.mxu1 %v9125_v36  ;;  %12260 = vmatprep.subr.bf16.mxu0 %v13644_v16 }
0x2c0f   : > { %12272 = vmatprep.subr.bf16.mxu1 %v13644_v16 }
0x2c10   : > { %12257 = vmatmul.mubr.msk.bf16.vlgmr.msra.gmra.mrb[164].mxu0 %vm3011_vm3, %v16693_v15 }
0x2c11   : > { %12261 = vmatpush3.bf16.msra.mxu0 %v14539_v63  ;;  %12268 = vmatprep.mubr.msk.bf16.mxu0 %vm13645_vm2, %v13644_v16  ;;  %v9344_v35 = vpop.permute.xlu0 %9343 }
0x2c12   : > { %12262 = vmatprep.subr.bf16.mxu0 %v13644_v16 }
0x2c15   : > { %12263 = vmatpush3.bf16.msra.mxu0 %v14566_v28 }
0x2c16   : > { %12264 = vmatprep.subr.bf16.mxu0 %v13644_v16 }
0x2c18   : > { %v16722_v42 = vpop.eup %13551 }
0x2c19   : > { %12265 = vmatpush3.bf16.msra.mxu0 %v14677_v32  ;;  %v9117_v59 = vpack.c.bf16 %v16722_v42, %v16722_v42 }
0x2c1a   : > { %12266 = vmatprep.subr.bf16.mxu0 %v13644_v16 }
0x2c1b   : > { %12249 = vmatmul.mubr.msk.bf16.vlgmr.msra.gmra.mrb[156].mxu1 %vm2116_vm10, %v9117_v59 }
0x2c1c   : > { %12273 = vmatpush3.bf16.msra.mxu1 %v8703_v23  ;;  %12276 = vmatprep.mubr.msk.bf16.mxu1 %vm13645_vm2, %v13644_v16 }
0x2c1d   : > { %12267 = vmatpush3.bf16.msra.mxu0 %v14695_v62  ;;  %12274 = vmatprep.subr.bf16.mxu1 %v13644_v16 }
0x2c1e   : > { %12292 = vmatprep.subr.bf16.mxu0 %v13644_v16 }
0x2c20   : > { %12275 = vmatpush3.bf16.msra.mxu1 %v8704_v31 }
0x2c21   : > { %12280 = vmatprep.subr.bf16.mxu1 %v13644_v16 }
0x2c23   : > { %12277 = vmatmul.mubr.msk.bf16.vlgmr.msra.gmra.mrb[160].mxu1 %vm3011_vm3, %v9284_v14 }
0x2c24   : > { %12281 = vmatpush3.bf16.msra.mxu1 %v9344_v35  ;;  %12288 = vmatprep.mubr.msk.bf16.mxu1 %vm13645_vm2, %v13644_v16 }
0x2c25   : > { %12282 = vmatprep.subr.bf16.mxu1 %v13644_v16 }
0x2c28   : > { %12283 = vmatpush3.bf16.msra.mxu1 %v9346_v47 }
0x2c29   : > { %12284 = vmatprep.subr.bf16.mxu1 %v13644_v16 }
0x2cdb   : > { %v16740_v60 = vpop.f32.mrb[160].mxu0 }
0x2cdc   : > { %v12230_v3 = vpop.f32.mrb[161].mxu0 }
0x2cdd   : > { %v9050_v12 = vpop.f32.mrb[162].mxu0 }
0x2cde   : > { %v12231_v40 = vpop.f32.mrb[163].mxu0 }
0x2ce3   : > { %v9219_v58 = vpop.f32.mrb[164].mxu0 }
0x2ce4   : > { %v12258_v39 = vpop.f32.mrb[165].mxu0  ;;  %v9225_v45 = vsel %vm2116_vm10, %v9219_v58, -inf }
0x2ce5   : > { %v9222_v51 = vpop.f32.mrb[166].mxu0  ;;  %9226 = vmax.xlane.f32.xlu0 %v9225_v45 }
0x2ce6   : > { %v12259_v33 = vpop.f32.mrb[167].mxu0 }
0x2ce7   : > { %v8869_v33 = vsel %vm2116_vm10, %v16664_v56, 0.0 }
0x2cee   : > { %v16743_v9 = vpop.f32.mrb[156].mxu1 }
0x2cef   : > { %v12250_v0 = vpop.f32.mrb[157].mxu1 }
0x2cf0   : > { %v9170_v29 = vpop.f32.mrb[158].mxu1  ;;  %v8993_v0 = vsel %vm2116_vm10, %v16704_v49, 0.0  ;;  %v9113_v49 = vsel %vm2116_vm10, %v16722_v42, 0.0 }
0x2cf1   : > { %v12251_v4 = vpop.f32.mrb[159].mxu1 }
0x2cf6   : > { %v9322_v27 = vpop.f32.mrb[160].mxu1 }
0x2cf7   : > { %v12278_v50 = vpop.f32.mrb[161].mxu1  ;;  %v9328_v2 = vsel %vm2116_vm10, %v9322_v27, -inf }
0x2cf8   : > { %9329 = vmax.xlane.f32.xlu1 %v9328_v2  ;;  %v9325_v8 = vpop.f32.mrb[162].mxu1 }
0x2cf9   : > { %v12279_v18 = vpop.f32.mrb[163].mxu1 }
0x2cfb   : > { %9347 = vrot.lane.b32.xlu0 %v14677_v32, %s17389_s6 }
0x2cff   : > { %9407 = vrot.lane.b32.xlu0 %v16693_v15, %s17390_s15 }
0x2d03   : > { %9463 = vrot.lane.b32.xlu0 %v14539_v63, %s17390_s15 }
0x2d07   : > { %9465 = vrot.lane.b32.xlu0 %v14566_v28, %s17390_s15 }
0x2d09   : > { %9349 = vrot.lane.b32.xlu1 %v14695_v62, %s17389_s6 }
0x2d0b   : > { %9467 = vrot.lane.b32.xlu0 %v14677_v32, %s17390_s15 }
0x2d0d   : > { %9527 = vrot.lane.b32.xlu1 %v16693_v15, %s17388_s8 }
0x2d11   : > { %9583 = vrot.lane.b32.xlu1 %v14539_v63, %s17388_s8 }
0x2d15   : > { %9585 = vrot.lane.b32.xlu1 %v14566_v28, %s17388_s8  ;;  %v8705_v28 = vld [vmem:[#allocation3 + $0x60] sm:$0xff] }
0x2d19   : > { %9587 = vrot.lane.b32.xlu1 %v14677_v32, %s17388_s8 }
0x2d72   : > { %v9227_v34 = vpop.xlane.xlu0 %9226 }
0x2d73   : > { %v9228_v25 = vsub.f32 %v9219_v58, %v9227_v34 }
0x2d75   : > { %v9229_v38 = vmul.f32 1.442695, %v9228_v25 }
0x2d76   : > { %v9348_v7 = vpop.permute.xlu0 %9347 }
0x2d77   : > { %13553 = vpow2.f32 %v9229_v38  ;;  %12285 = vmatpush3.bf16.msra.mxu1 %v9348_v7  ;;  %v8766_v7 = vsel %vm2116_vm10, %v16648_v22, 0.0 }
0x2d78   : > { %12286 = vmatprep.subr.bf16.mxu1 %v13644_v16 }
0x2d7a   : > { %v9408_v53 = vpop.permute.xlu0 %9407 }
0x2d7e   : > { %v9464_v44 = vpop.permute.xlu0 %9463 }
0x2d81   : > { %v16767_v1 = vpop.eup %13553 }
0x2d82   : > { %v9235_v63 = vpack.c.bf16 %v16767_v1, %v16767_v1  ;;  %v9466_v15 = vpop.permute.xlu0 %9465 }
0x2d84   : > { %12269 = vmatmul.mubr.msk.bf16.vlgmr.msra.gmra.mrb[168].mxu0 %vm2116_vm10, %v9235_v63 }
0x2d85   : > { %12293 = vmatpush3.bf16.msra.mxu0 %v8705_v28  ;;  %v9330_v55 = vpop.xlane.xlu1 %9329  ;;  %12296 = vmatprep.mubr.msk.bf16.mxu0 %vm13645_vm2, %v13644_v16 }
0x2d86   : > { %v9331_v32 = vsub.f32 %v9322_v27, %v9330_v55  ;;  %12294 = vmatprep.subr.bf16.mxu0 %v13644_v16  ;;  %v9468_v19 = vpop.permute.xlu0 %9467  ;;  %v9231_v55 = vsel %vm2116_vm10, %v16767_v1, 0.0 }
0x2d88   : > { %v9332_v13 = vmul.f32 1.442695, %v9331_v32 }
0x2d89   : > { %12295 = vmatpush3.bf16.msra.mxu0 %v8706_v48  ;;  %v9350_v26 = vpop.permute.xlu1 %9349 }
0x2d8a   : > { %13555 = vpow2.f32 %v9332_v13  ;;  %12287 = vmatpush3.bf16.msra.mxu1 %v9350_v26  ;;  %12300 = vmatprep.subr.bf16.mxu0 %v13644_v16 }
0x2d8b   : > { %12312 = vmatprep.subr.bf16.mxu1 %v13644_v16 }
0x2d8c   : > { %12297 = vmatmul.mubr.msk.bf16.vlgmr.msra.gmra.mrb[172].mxu0 %vm3011_vm3, %v9408_v53 }
0x2d8d   : > { %12301 = vmatpush3.bf16.msra.mxu0 %v9464_v44  ;;  %12308 = vmatprep.mubr.msk.bf16.mxu0 %vm13645_vm2, %v13644_v16  ;;  %v9528_v10 = vpop.permute.xlu1 %9527 }
0x2d8e   : > { %12302 = vmatprep.subr.bf16.mxu0 %v13644_v16 }
0x2d91   : > { %12303 = vmatpush3.bf16.msra.mxu0 %v9466_v15  ;;  %v9584_v54 = vpop.permute.xlu1 %9583 }
0x2d92   : > { %12304 = vmatprep.subr.bf16.mxu0 %v13644_v16 }
0x2d94   : > { %v13556_v24 = vpop.eup %13555 }
0x2d95   : > { %12305 = vmatpush3.bf16.msra.mxu0 %v9468_v19  ;;  %v9338_v46 = vpack.c.bf16 %v13556_v24, %v13556_v24  ;;  %v9586_v43 = vpop.permute.xlu1 %9585  ;;  %v9334_v29 = vsel %vm2116_vm10, %v13556_v24, 0.0 }
0x2d96   : > { %12306 = vmatprep.subr.bf16.mxu0 %v13644_v16 }
0x2d97   : > { %12289 = vmatmul.mubr.msk.bf16.vlgmr.msra.gmra.mrb[164].mxu1 %vm2116_vm10, %v9338_v46 }
0x2d98   : > { %12313 = vmatpush3.bf16.msra.mxu1 %v8707_v57  ;;  %12316 = vmatprep.mubr.msk.bf16.mxu1 %vm13645_vm2, %v13644_v16  ;;  %v13247_v57 = vld [vmem:[%s17308_s17] ss:$8 sps:$4 sm:$0xff]  }
0x2d99   : > { %12314 = vmatprep.subr.bf16.mxu1 %v13644_v16  ;;  %v9588_v61 = vpop.permute.xlu1 %9587 }
0x2d9c   : > { %12315 = vmatpush3.bf16.msra.mxu1 %v8708_v30 }
0x2d9d   : > { %12320 = vmatprep.subr.bf16.mxu1 %v13644_v16 }
0x2d9f   : > { %12317 = vmatmul.mubr.msk.bf16.vlgmr.msra.gmra.mrb[168].mxu1 %vm3011_vm3, %v9528_v10 }
0x2da0   : > { %12321 = vmatpush3.bf16.msra.mxu1 %v9584_v54  ;;  %12328 = vmatprep.mubr.msk.bf16.mxu1 %vm13645_vm2, %v13644_v16  ;;  %v13249_v54 = vld [vmem:[%s17308_s17 + $0x4] ss:$8 sps:$4 sm:$0xff]  }
0x2da1   : > { %12322 = vmatprep.subr.bf16.mxu1 %v13644_v16 }
0x2da4   : > { %12323 = vmatpush3.bf16.msra.mxu1 %v9586_v43  ;;  %v13250_v43 = vld [vmem:[%s17308_s17 + $0x10] ss:$8 sps:$4 sm:$0xff]  }
0x2da5   : > { %12324 = vmatprep.subr.bf16.mxu1 %v13644_v16 }
0x2da8   : > { %12325 = vmatpush3.bf16.msra.mxu1 %v9588_v61  ;;  %v13255_v61 = vld [vmem:[%s17308_s17 + $0x24] ss:$8 sps:$4 sm:$0xff]  }
0x2da9   : > { %12326 = vmatprep.subr.bf16.mxu1 %v13644_v16 }
0x2e57   : > { %v16794_v17 = vpop.f32.mrb[168].mxu0 }
0x2e58   : > { %v12270_v20 = vpop.f32.mrb[169].mxu0 }
0x2e59   : > { %v9276_v11 = vpop.f32.mrb[170].mxu0  ;;  %v13253_v20 = vld [vmem:[%s17308_s17 + $0x20] ss:$8 sps:$4 sm:$0xff]  }
0x2e5a   : > { %v12271_v36 = vpop.f32.mrb[171].mxu0 }
0x2e5b   : > { %v13258_v36 = vld [vmem:[%s17308_s17 + $0x34] ss:$8 sps:$4 sm:$0xff]  }
0x2e5f   : > { %v9446_v59 = vpop.f32.mrb[172].mxu0 }
0x2e60   : > { %v12298_v23 = vpop.f32.mrb[173].mxu0  ;;  %v9452_v31 = vsel %vm2116_vm10, %v9446_v59, -inf }
0x2e61   : > { %9453 = vmax.xlane.f32.xlu0 %v9452_v31  ;;  %v9449_v14 = vpop.f32.mrb[174].mxu0  ;;  %v13256_v31 = vld [vmem:[%s17308_s17 + $0x30] ss:$8 sps:$4 sm:$0xff]  }
0x2e62   : > { %v12299_v35 = vpop.f32.mrb[175].mxu0 }
0x2e6a   : > { %v9392_v47 = vpop.f32.mrb[164].mxu1 }
0x2e6b   : > { %v12290_v3 = vpop.f32.mrb[165].mxu1 }
0x2e6c   : > { %v9395_v12 = vpop.f32.mrb[166].mxu1 }
0x2e6d   : > { %v12291_v40 = vpop.f32.mrb[167].mxu1 }
0x2e72   : > { %v9566_v58 = vpop.f32.mrb[168].mxu1 }
0x2e73   : > { %v12318_v39 = vpop.f32.mrb[169].mxu1  ;;  %v9572_v16 = vsel %vm2116_vm10, %v9566_v58, -inf }
0x2e74   : > { %9573 = vmax.xlane.f32.xlu1 %v9572_v16  ;;  %v9569_v45 = vpop.f32.mrb[170].mxu1  ;;  %v13267_v16 = vld [vmem:[%s17308_s17 + $0x64] ss:$8 sps:$4 sm:$0xff]  }
0x2e75   : > { %v12319_v51 = vpop.f32.mrb[171].mxu1  ;;  %v13265_v45 = vld [vmem:[%s17308_s17 + $0x60] ss:$8 sps:$4 sm:$0xff]  }
0x2e76   : > { %v13270_v51 = vld [vmem:[%s17308_s17 + $0x74] ss:$8 sps:$4 sm:$0xff]  }
0x2e77   : > { %9469 = vrot.lane.b32.xlu0 %v14695_v62, %s17390_s15 }
0x2e85   : > { %9589 = vrot.lane.b32.xlu1 %v14695_v62, %s17388_s8 }
0x2e96   : > { %8870 = vadd.xlane.f32.xlu0 %v8869_v33 }
0x2e9a   : > { %8994 = vadd.xlane.f32.xlu0 %v8993_v0  ;;  %v13268_v0 = vld [vmem:[%s17308_s17 + $0x70] ss:$8 sps:$4 sm:$0xff]  }
0x2ea9   : > { %9335 = vadd.xlane.f32.xlu1 %v9334_v29 }
0x2eee   : > { %v9454_v4 = vpop.xlane.xlu0 %9453 }
0x2eef   : > { %v9455_v27 = vsub.f32 %v9446_v59, %v9454_v4  ;;  %v13273_v4 = vld [vmem:[%s17308_s17 + $0x84] ss:$8 sps:$4 sm:$0xff]  }
0x2ef1   : > { %v9456_v50 = vmul.f32 1.442695, %v9455_v27 }
0x2ef2   : > { %v9470_v2 = vpop.permute.xlu0 %9469 }
0x2ef3   : > { %13557 = vpow2.f32 %v9456_v50  ;;  %12307 = vmatpush3.bf16.msra.mxu0 %v9470_v2  ;;  %v13271_v50 = vld [vmem:[%s17308_s17 + $0x80] ss:$8 sps:$4 sm:$0xff]  }
0x2ef4   : > { %9859 = vmatprep.subr.bf16.mxu0 %v13249_v54 }
0x2efd   : > { %v13558_v8 = vpop.eup %13557 }
0x2efe   : > { %v9458_v62 = vsel %vm2116_vm10, %v13558_v8, 0.0  ;;  %v9462_v18 = vpack.c.bf16 %v13558_v8, %v13558_v8 }
0x2eff   : > { %9459 = vadd.xlane.f32.xlu0 %v9458_v62  ;;  %v13276_v62 = vld [vmem:[%s17308_s17 + $0x94] ss:$8 sps:$4 sm:$0xff]  }
0x2f00   : > { %12309 = vmatmul.mubr.msk.bf16.vlgmr.msra.gmra.mrb[176].mxu0 %vm2116_vm10, %v9462_v18  ;;  %v13279_v18 = vld [vmem:[%s17308_s17 + $0xa4] ss:$8 sps:$4 sm:$0xff]  }
0x2f01   : > { %v9574_v56 = vpop.xlane.xlu1 %9573  ;;  %9860 = vmatpush1.bf16.msra.mxu0 %v13247_v57 }
0x2f02   : > { %v9575_v34 = vsub.f32 %v9566_v58, %v9574_v56  ;;  %v13264_v58 = vld [vmem:[%s17308_s17 + $0x54] ss:$8 sps:$4 sm:$0xff]   ;;  %v13277_v56 = vld [vmem:[%s17308_s17 + $0xa0] ss:$8 sps:$4 sm:$0xff]  }
0x2f03   : > { %9114 = vadd.xlane.f32.xlu0 %v9113_v49  ;;  %v13280_v49 = vld [vmem:[%s17308_s17 + $0xb0] ss:$8 sps:$4 sm:$0xff]  }
0x2f04   : > { %v9576_v25 = vmul.f32 1.442695, %v9575_v34  ;;  %v13282_v34 = vld [vmem:[%s17308_s17 + $0xb4] ss:$8 sps:$4 sm:$0xff]  }
0x2f05   : > { %v9590_v38 = vpop.permute.xlu1 %9589 }
0x2f06   : > { %13559 = vpow2.f32 %v9576_v25  ;;  %12327 = vmatpush3.bf16.msra.mxu1 %v9590_v38 }
0x2f07   : > { %8767 = vadd.xlane.f32.xlu0 %v8766_v7  ;;  %v13285_v7 = vld [vmem:[%s17308_s17 + $0xc4] ss:$8 sps:$4 sm:$0xff]  }
0x2f10   : > { %v13560_v53 = vpop.eup %13559 }
0x2f11   : > { %v9578_v63 = vsel %vm2116_vm10, %v13560_v53, 0.0  ;;  %v9582_v28 = vpack.c.bf16 %v13560_v53, %v13560_v53 }
0x2f12   : > { %9579 = vadd.xlane.f32.xlu1 %v9578_v63 }
0x2f13   : > { %12329 = vmatmul.mubr.msk.bf16.vlgmr.msra.gmra.mrb[172].mxu1 %vm2116_vm10, %v9582_v28 }
0x2f16   : > { %9232 = vadd.xlane.f32.xlu1 %v9231_v55 }
0x2f23   : > { %v8871_v42 = vpop.xlane.xlu0 %8870 }
0x2f24   : > { %13561 = vrcp.f32 %v8871_v42 }
0x2f27   : > { %v8995_v48 = vpop.xlane.xlu0 %8994 }
0x2f28   : > { %13563 = vrcp.f32 %v8995_v48  ;;  %v13289_v48 = vld [vmem:[%s17308_s17 + $0xe0] ss:$8 sps:$4 sm:$0xff]  }
0x2f2e   : > { %v13562_v32 = vpop.eup %13561 }
0x2f2f   : > { %v8933_v44 = vmul.f32 %v13562_v32, %v16685_v41  ;;  %v13283_v32 = vld [vmem:[%s17308_s17 + $0xc0] ss:$8 sps:$4 sm:$0xff]  }
0x2f31   : > { %v11573_v13 = vpack.c.bf16 %v8933_v44, %v8933_v44  ;;  %v13288_v44 = vld [vmem:[%s17308_s17 + $0xd4] ss:$8 sps:$4 sm:$0xff]  }
0x2f32   : > { %v13564_v26 = vpop.eup %13563 }
0x2f33   : > { %8938 = vrot.lane.b32.xlu0 %v11573_v13, %s17388_s8  ;;  %v9053_v10 = vmul.f32 %v13564_v26, %v16740_v60  ;;  %v13252_v60 = vld [vmem:[%s17308_s17 + $0x14] ss:$8 sps:$4 sm:$0xff]   ;;  %v13286_v13 = vld [vmem:[%s17308_s17 + $0xd0] ss:$8 sps:$4 sm:$0xff]  }
0x2f34   : > { %9861 = vmatprep.subr.bf16.mxu0 %v13252_v60  ;;  %v13294_v26 = vld [vmem:[%s17308_s17 + $0xf4] ss:$8 sps:$4 sm:$0xff]   ;;  %v13345_v60 = vld [vmem:[%s17311_s20] ss:$8 sps:$4 sm:$0xff]  }
0x2f35   : > { %v11574_v1 = vpack.c.bf16 %v9053_v10, %v9053_v10  ;;  %9862 = vmatpush1.bf16.msra.mxu0 %v13250_v43  ;;  %v13347_v43 = vld [vmem:[%s17311_s20 + $0x4] ss:$8 sps:$4 sm:$0xff]  }
0x2f36   : > { %v9336_v22 = vpop.xlane.xlu1 %9335  ;;  %9863 = vmatprep.subr.bf16.mxu0 %v13255_v61  ;;  %v13350_v61 = vld [vmem:[%s17311_s20 + $0x14] ss:$8 sps:$4 sm:$0xff]   ;;  %10128 = vmatprep.subr.bf16.mxu1 %v13347_v43 }
0x2f37   : > { %13565 = vrcp.f32 %v9336_v22  ;;  %v13291_v22 = vld [vmem:[%s17308_s17 + $0xe4] ss:$8 sps:$4 sm:$0xff]   ;;  %10129 = vmatpush1.bf16.msra.mxu1 %v13345_v60  ;;  %v13333_v60 = vld [vmem:[%s17310_s19 + $0xc0] ss:$8 sps:$4 sm:$0xff]   ;;  %v13338_v43 = vld [vmem:[%s17310_s19 + $0xd4] ss:$8 sps:$4 sm:$0xff]  }
0x2f38   : > { %10130 = vmatprep.subr.bf16.mxu1 %v13350_v61  ;;  %v13336_v61 = vld [vmem:[%s17310_s19 + $0xd0] ss:$8 sps:$4 sm:$0xff]  }
0x2f39   : > { %9864 = vmatpush1.bf16.msra.mxu0 %v13253_v20  ;;  %v13348_v20 = vld [vmem:[%s17311_s20 + $0x10] ss:$8 sps:$4 sm:$0xff]  }
0x2f3a   : > { %9865 = vmatprep.subr.bf16.mxu0 %v13258_v36  ;;  %v13351_v36 = vld [vmem:[%s17311_s20 + $0x20] ss:$8 sps:$4 sm:$0xff]  }
0x2f3b   : > { %10131 = vmatpush1.bf16.msra.mxu1 %v13348_v20  ;;  %v13341_v20 = vld [vmem:[%s17310_s19 + $0xe4] ss:$8 sps:$4 sm:$0xff]  }
0x2f3d   : > { %9866 = vmatpush1.bf16.msra.mxu0 %v13256_v31  ;;  %v13359_v31 = vld [vmem:[%s17311_s20 + $0x44] ss:$8 sps:$4 sm:$0xff]  }
0x2f41   : > { %v13566_v15 = vpop.eup %13565 }
0x2f42   : > { %v9398_v24 = vmul.f32 %v13566_v15, %v9392_v47  ;;  %v13261_v47 = vld [vmem:[%s17308_s17 + $0x44] ss:$8 sps:$4 sm:$0xff]   ;;  %v13292_v15 = vld [vmem:[%s17308_s17 + $0xf0] ss:$8 sps:$4 sm:$0xff]  }
0x2f43   : > { %9867 = vmatprep.subr.bf16.mxu0 %v13261_v47  ;;  %v13360_v47 = vld [vmem:[%s17311_s20 + $0x50] ss:$8 sps:$4 sm:$0xff]  }
0x2f44   : > { %v11576_v19 = vpack.c.bf16 %v9398_v24, %v9398_v24 }
0x2f46   : > { %9403 = vrot.lane.b32.xlu1 %v11576_v19, %s17388_s8  ;;  %s13648_s8 = smov [#allocation5]  }
0x2f47   : > { %s13582_s28 = sshll.u32 %s13648_s8, 4  ;;  %s13583_s28 = int_to_ptr.vmem [resolvable:$false] %s13582_s28 }
0x2f48   : > { %s13584_s30 = scalar_lea.vmem %s13583_s28, 512  ;;  %p13585_p0 = scmp.lt.s32.totalorder %s17251_s5, %s13583_s28 }
0x2f49   : > { %p13586_p1 = scmp.lt.s32.totalorder %s13584_s30, %s13578_s16 }
0x2f4a   : > { %9058 = vrot.lane.b32.xlu1 %v11574_v1, %s17390_s15 }
0x2f4b   : > { %p13587_p2 = por %p13586_p1, %p13585_p0 }
0x2f4d   : > { %p13588_p3 = pnand %p13587_p2, %p13581_p13 }
0x2f8c   : > { %v9460_v46 = vpop.xlane.xlu0 %9459 }
0x2f90   : > { %v9115_v41 = vpop.xlane.xlu0 %9114 }
0x2f91   : > { %13567 = vrcp.f32 %v9115_v41 }
0x2f94   : > { %v8768_v30 = vpop.xlane.xlu0 %8767 }
0x2f95   : > { %13569 = vrcp.f32 %v8768_v30 }
0x2f9b   : > { %v13568_v11 = vpop.eup %13567 }
0x2f9c   : > { %v9173_v59 = vmul.f32 %v13568_v11, %v16743_v9  ;;  %v13259_v9 = vld [vmem:[%s17308_s17 + $0x40] ss:$8 sps:$4 sm:$0xff]   ;;  %v13353_v11 = vld [vmem:[%s17311_s20 + $0x24] ss:$8 sps:$4 sm:$0xff]  }
0x2f9d   : > { %9868 = vmatpush1.bf16.msra.mxu0 %v13259_v9  ;;  %10132 = vmatprep.subr.bf16.mxu1 %v13353_v11  ;;  %v13368_v9 = vld [vmem:[%s17311_s20 + $0x74] ss:$8 sps:$4 sm:$0xff]   ;;  %v13339_v11 = vld [vmem:[%s17310_s19 + $0xe0] ss:$8 sps:$4 sm:$0xff]  }
0x2f9e   : > { %v11575_v23 = vpack.c.bf16 %v9173_v59, %v9173_v59  ;;  %9869 = vmatprep.subr.bf16.mxu0 %v13264_v58  ;;  %v13356_v59 = vld [vmem:[%s17311_s20 + $0x34] ss:$8 sps:$4 sm:$0xff]   ;;  %10133 = vmatpush1.bf16.msra.mxu1 %v13351_v36  ;;  %v13371_v58 = vld [vmem:[%s17311_s20 + $0x84] ss:$8 sps:$4 sm:$0xff]  }
0x2f9f   : > { %v13570_v14 = vpop.eup %13569  ;;  %v16847_v35 = vpop.xlane.xlu1 %9579  ;;  %10134 = vmatprep.subr.bf16.mxu1 %v13356_v59  ;;  %v13344_v36 = vld [vmem:[%s17310_s19 + $0xf4] ss:$8 sps:$4 sm:$0xff]   ;;  %v13342_v59 = vld [vmem:[%s17310_s19 + $0xf0] ss:$8 sps:$4 sm:$0xff]  }
0x2fa0   : > { %v8814_v3 = vmul.f32 %v13570_v14, %v16682_v37  ;;  %9178 = vrot.lane.b32.xlu0 %v11575_v23, %s17389_s6  ;;  %v13262_v37 = vld [vmem:[%s17308_s17 + $0x50] ss:$8 sps:$4 sm:$0xff]   ;;  %v13357_v14 = vld [vmem:[%s17311_s20 + $0x40] ss:$8 sps:$4 sm:$0xff]  }
0x2fa1   : > { %9870 = vmatpush1.bf16.msra.mxu0 %v13262_v37  ;;  %v13354_v23 = vld [vmem:[%s17311_s20 + $0x30] ss:$8 sps:$4 sm:$0xff]   ;;  %v13374_v37 = vld [vmem:[%s17311_s20 + $0x94] ss:$8 sps:$4 sm:$0xff]  }
0x2fa2   : > { %v8815_v12 = vpack.c.bf16 %v8814_v3, %v8814_v3  ;;  %9871 = vmatprep.subr.bf16.mxu0 %v13267_v16  ;;  %10135 = vmatpush1.bf16.msra.mxu1 %v13354_v23  ;;  %v13365_v3 = vld [vmem:[%s17311_s20 + $0x64] ss:$8 sps:$4 sm:$0xff]   ;;  %v9900_v23 = vpack.c.bf16 %v16480_v21, %v16480_v21 }
0x2fa3   : > { %v9233_v40 = vpop.xlane.xlu1 %9232  ;;  %10136 = vmatprep.subr.bf16.mxu1 %v13359_v31  ;;  %v13392_v31 = vld [vmem:[%s17311_s20 + $0xf4] ss:$8 sps:$4 sm:$0xff]  }
0x2fa4   : > { %8816 = vst.msk [vmem:[#allocation2] sm:$0xf] %vm3116_vm6, %v8815_v12  ;;  %13571 = vrcp.f32 %v9233_v40  ;;  %v13363_v12 = vld [vmem:[%s17311_s20 + $0x60] ss:$8 sps:$4 sm:$0xff]   ;;  %v13366_v40 = vld [vmem:[%s17311_s20 + $0x70] ss:$8 sps:$4 sm:$0xff]  }
0x2fa5   : > { %v8939_v39 = vpop.permute.xlu0 %8938  ;;  %9872 = vmatpush1.bf16.msra.mxu0 %v13265_v45  ;;  %13573 = vrcp.f32 %v9460_v46  ;;  %v13299_v46 = vld [vmem:[%s17310_s19 + $0x4] ss:$8 sps:$4 sm:$0xff]   ;;  %v13372_v45 = vld [vmem:[%s17311_s20 + $0x90] ss:$8 sps:$4 sm:$0xff]  }
0x2fa6   : > { %8941 = vst.msk [vmem:[#allocation2] sm:$0xf] %vm3232_vm7, %v8939_v39  ;;  %9873 = vmatprep.subr.bf16.mxu0 %v13270_v51  ;;  %13575 = vrcp.f32 %v16847_v35  ;;  %v13362_v35 = vld [vmem:[%s17311_s20 + $0x54] ss:$8 sps:$4 sm:$0xff]   ;;  %10137 = vmatpush1.bf16.msra.mxu1 %v13357_v14  ;;  %v13369_v39 = vld [vmem:[%s17311_s20 + $0x80] ss:$8 sps:$4 sm:$0xff]  }
0x2fa7   : > { %10138 = vmatprep.subr.bf16.mxu1 %v13362_v35  ;;  %v13377_v51 = vld [vmem:[%s17311_s20 + $0xa4] ss:$8 sps:$4 sm:$0xff]   ;;  %v13390_v14 = vld [vmem:[%s17311_s20 + $0xf0] ss:$8 sps:$4 sm:$0xff]  }
0x2fa8   : > { %v13395_v35 = vld [vmem:[%s17313_s22 + $0x4] ss:$8 sps:$4 sm:$0xff]  }
0x2fa9   : > { %9874 = vmatpush1.bf16.msra.mxu0 %v13268_v0  ;;  %v13380_v0 = vld [vmem:[%s17311_s20 + $0xb4] ss:$8 sps:$4 sm:$0xff]  }
0x2faa   : > { %9875 = vmatprep.subr.bf16.mxu0 %v13273_v4  ;;  %10139 = vmatpush1.bf16.msra.mxu1 %v13360_v47  ;;  %v13383_v4 = vld [vmem:[%s17311_s20 + $0xc4] ss:$8 sps:$4 sm:$0xff]   ;;  %v9680_v47 = vld [vmem:[%s17309_s18] sm:$0x3] }
0x2fab   : > { %10140 = vmatprep.subr.bf16.mxu1 %v13365_v3  ;;  %v9685_v3 = vrot.slane %v9680_v47, %v14039_v5 }
0x2fad   : > { %9876 = vmatpush1.bf16.msra.mxu0 %v13271_v50  ;;  %v13386_v50 = vld [vmem:[%s17311_s20 + $0xd4] ss:$8 sps:$4 sm:$0xff]  }
0x2fae   : > { %v13572_v33 = vpop.eup %13571  ;;  %9877 = vmatprep.subr.bf16.mxu0 %v13276_v62  ;;  %10141 = vmatpush1.bf16.msra.mxu1 %v13363_v12  ;;  %v13387_v62 = vld [vmem:[%s17311_s20 + $0xe0] ss:$8 sps:$4 sm:$0xff]   ;;  %v9689_v12 = vrot.slane %v9680_v47, %v14042_v6 }
0x2faf   : > { %v9279_v29 = vmul.f32 %v13572_v33, %v16794_v17  ;;  %v13274_v17 = vld [vmem:[%s17308_s17 + $0x90] ss:$8 sps:$4 sm:$0xff]   ;;  %v13574_v25 = vpop.eup %13573  ;;  %10142 = vmatprep.subr.bf16.mxu1 %v13368_v9  ;;  %v13375_v33 = vld [vmem:[%s17311_s20 + $0xa0] ss:$8 sps:$4 sm:$0xff]  }
0x2fb0   : > { %v13576_v24 = vpop.eup %13575 }
0x2fb1   : > { %v9280_v27 = vpack.c.bf16 %v9279_v29, %v9279_v29  ;;  %9878 = vmatpush1.bf16.msra.mxu0 %v13274_v17  ;;  %v13378_v29 = vld [vmem:[%s17311_s20 + $0xb0] ss:$8 sps:$4 sm:$0xff]   ;;  %v13389_v17 = vld [vmem:[%s17311_s20 + $0xe4] ss:$8 sps:$4 sm:$0xff]  }
0x2fb2   : > { %9879 = vmatprep.subr.bf16.mxu0 %v13279_v18  ;;  %10143 = vmatpush1.bf16.msra.mxu1 %v13366_v40 }
0x2fb3   : > { %9281 = vst.msk [vmem:[#allocation2 + $0x4] sm:$0xf] %vm3116_vm6, %v9280_v27  ;;  %10144 = vmatprep.subr.bf16.mxu1 %v13371_v58  ;;  %v13381_v27 = vld [vmem:[%s17311_s20 + $0xc0] ss:$8 sps:$4 sm:$0xff]  }
0x2fb5   : > { %9880 = vmatpush1.bf16.msra.mxu0 %v13277_v56 }
0x2fb6   : > { %9881 = vmatprep.subr.bf16.mxu0 %v13282_v34  ;;  %10145 = vmatpush1.bf16.msra.mxu1 %v13369_v39 }
0x2fb7   : > { %10146 = vmatprep.subr.bf16.mxu1 %v13374_v37 }
0x2fb8   : > { %v9404_v2 = vpop.permute.xlu1 %9403 }
0x2fb9   : > { %9406 = vst.msk [vmem:[#allocation2 + $0x4] sm:$0xf] %vm3232_vm7, %v9404_v2  ;;  %9882 = vmatpush1.bf16.msra.mxu0 %v13280_v49  ;;  %v13384_v2 = vld [vmem:[%s17311_s20 + $0xd0] ss:$8 sps:$4 sm:$0xff]   ;;  %v13297_v49 = vld [vmem:[%s17310_s19] ss:$8 sps:$4 sm:$0xff]  }
0x2fba   : > { %9883 = vmatprep.subr.bf16.mxu0 %v13285_v7  ;;  %10147 = vmatpush1.bf16.msra.mxu1 %v13372_v45  ;;  %v13300_v7 = vld [vmem:[%s17310_s19 + $0x10] ss:$8 sps:$4 sm:$0xff]  }
0x2fbb   : > { %10148 = vmatprep.subr.bf16.mxu1 %v13377_v51  ;;  %v13393_v51 = vld [vmem:[%s17313_s22] ss:$8 sps:$4 sm:$0xff]  }
0x2fbc   : > { %v9059_v8 = vpop.permute.xlu1 %9058 }
0x2fbd   : > { %9061 = vst.msk [vmem:[#allocation2] sm:$0xf] %vm3346_vm8, %v9059_v8  ;;  %9884 = vmatpush1.bf16.msra.mxu0 %v13283_v32  ;;  %v13309_v32 = vld [vmem:[%s17310_s19 + $0x40] ss:$8 sps:$4 sm:$0xff]  }
0x2fbe   : > { %9885 = vmatprep.subr.bf16.mxu0 %v13288_v44  ;;  %10149 = vmatpush1.bf16.msra.mxu1 %v13375_v33  ;;  %v13314_v44 = vld [vmem:[%s17310_s19 + $0x54] ss:$8 sps:$4 sm:$0xff]  }
0x2fbf   : > { %10150 = vmatprep.subr.bf16.mxu1 %v13380_v0  ;;  %v13398_v0 = vld [vmem:[%s17313_s22 + $0x14] ss:$8 sps:$4 sm:$0xff]  }
0x2fc1   : > { %9886 = vmatpush1.bf16.msra.mxu0 %v13286_v13  ;;  %v13312_v13 = vld [vmem:[%s17310_s19 + $0x50] ss:$8 sps:$4 sm:$0xff]  }
0x2fc2   : > { %9887 = vmatprep.subr.bf16.mxu0 %v13291_v22  ;;  %10151 = vmatpush1.bf16.msra.mxu1 %v13378_v29  ;;  %v13315_v22 = vld [vmem:[%s17310_s19 + $0x60] ss:$8 sps:$4 sm:$0xff]   ;;  %v13396_v29 = vld [vmem:[%s17313_s22 + $0x10] ss:$8 sps:$4 sm:$0xff]  }
0x2fc3   : > { %10152 = vmatprep.subr.bf16.mxu1 %v13383_v4  ;;  %v13401_v4 = vld [vmem:[%s17313_s22 + $0x24] ss:$8 sps:$4 sm:$0xff]  }
0x2fc5   : > { %9888 = vmatpush1.bf16.msra.mxu0 %v13289_v48  ;;  %v13317_v48 = vld [vmem:[%s17310_s19 + $0x64] ss:$8 sps:$4 sm:$0xff]  }
0x2fc6   : > { %9889 = vmatprep.subr.bf16.mxu0 %v13294_v26  ;;  %10153 = vmatpush1.bf16.msra.mxu1 %v13381_v27  ;;  %v13320_v26 = vld [vmem:[%s17310_s19 + $0x74] ss:$8 sps:$4 sm:$0xff]   ;;  %v13399_v27 = vld [vmem:[%s17313_s22 + $0x20] ss:$8 sps:$4 sm:$0xff]  }
0x2fc7   : > { %10154 = vmatprep.subr.bf16.mxu1 %v13386_v50  ;;  %v13404_v50 = vld [vmem:[%s17313_s22 + $0x34] ss:$8 sps:$4 sm:$0xff]  }
0x2fc9   : > { %9890 = vmatpush1.bf16.msra.mxu0 %v13292_v15  ;;  %v13318_v15 = vld [vmem:[%s17310_s19 + $0x70] ss:$8 sps:$4 sm:$0xff]  }
0x2fca   : > { %10329 = vmatprep.subr.bf16.mxu0 %v13299_v46  ;;  %10155 = vmatpush1.bf16.msra.mxu1 %v13384_v2  ;;  %v13329_v46 = vld [vmem:[%s17310_s19 + $0xa4] ss:$8 sps:$4 sm:$0xff]   ;;  %v13402_v2 = vld [vmem:[%s17313_s22 + $0x30] ss:$8 sps:$4 sm:$0xff]  }
0x2fcb   : > { %10156 = vmatprep.subr.bf16.mxu1 %v13389_v17  ;;  %v13405_v17 = vld [vmem:[%s17313_s22 + $0x40] ss:$8 sps:$4 sm:$0xff]  }
0x2fce   : > { %10157 = vmatpush1.bf16.msra.mxu1 %v13387_v62  ;;  %v13410_v62 = vld [vmem:[%s17313_s22 + $0x54] ss:$8 sps:$4 sm:$0xff]  }
0x2fcf   : > { %10158 = vmatprep.subr.bf16.mxu1 %v13392_v31 }
0x2fd2   : > { %10159 = vmatpush1.bf16.msra.mxu1 %v13390_v14 }
0x2fd3   : > { %v9512_v38 = vpop.f32.mrb[176].mxu0  ;;  %10592 = vmatprep.subr.bf16.mxu1 %v13395_v35 }
0x2fd4   : > { %v9518_v53 = vmul.f32 %v13574_v25, %v9512_v38  ;;  %v12310_v63 = vpop.f32.mrb[177].mxu0  ;;  %v13302_v25 = vld [vmem:[%s17310_s19 + $0x14] ss:$8 sps:$4 sm:$0xff]   ;;  %v9901_v38 = vpack.c.bf16 %v16483_v52, %v16483_v52 }
0x2fd5   : > { %v9515_v28 = vpop.f32.mrb[178].mxu0  ;;  %v13303_v63 = vld [vmem:[%s17310_s19 + $0x20] ss:$8 sps:$4 sm:$0xff]  }
0x2fd6   : > { %v11577_v55 = vpack.c.bf16 %v9518_v53, %v9518_v53  ;;  %v12311_v42 = vpop.f32.mrb[179].mxu0  ;;  %v13305_v53 = vld [vmem:[%s17310_s19 + $0x24] ss:$8 sps:$4 sm:$0xff]   ;;  %v13308_v28 = vld [vmem:[%s17310_s19 + $0x34] ss:$8 sps:$4 sm:$0xff]  }
0x2fd7   : > { %v13311_v42 = vld [vmem:[%s17310_s19 + $0x44] ss:$8 sps:$4 sm:$0xff]  }
0x2fd8   : > { %9523 = vrot.lane.b32.xlu1 %v11577_v55, %s17390_s15  ;;  %v13306_v55 = vld [vmem:[%s17310_s19 + $0x30] ss:$8 sps:$4 sm:$0xff]   ;;  %s17395_s15 = sld [smem:[#allocation32_spill]] }
0x2fde   : > { %s17249_s4 = scalar_lea.hbm %s17395_s15, %s11579_s2 }
0x2fe6   : > { %v9632_v19 = vpop.f32.mrb[172].mxu1 }
0x2fe7   : > { %v9638_v10 = vmul.f32 %v13576_v24, %v9632_v19  ;;  %v12330_v1 = vpop.f32.mrb[173].mxu1  ;;  %v13323_v24 = vld [vmem:[%s17310_s19 + $0x84] ss:$8 sps:$4 sm:$0xff]   ;;  %v13321_v19 = vld [vmem:[%s17310_s19 + $0x80] ss:$8 sps:$4 sm:$0xff]  }
0x2fe8   : > { %v9635_v41 = vpop.f32.mrb[174].mxu1  ;;  %v13324_v1 = vld [vmem:[%s17310_s19 + $0x90] ss:$8 sps:$4 sm:$0xff]  }
0x2fe9   : > { %v11578_v57 = vpack.c.bf16 %v9638_v10, %v9638_v10  ;;  %v12331_v54 = vpop.f32.mrb[175].mxu1  ;;  %v13326_v10 = vld [vmem:[%s17310_s19 + $0x94] ss:$8 sps:$4 sm:$0xff]   ;;  %v13327_v41 = vld [vmem:[%s17310_s19 + $0xa0] ss:$8 sps:$4 sm:$0xff]  }
0x2fea   : > { %v13330_v54 = vld [vmem:[%s17310_s19 + $0xb0] ss:$8 sps:$4 sm:$0xff]  }
0x2feb   : > { %9643 = vrot.lane.b32.xlu1 %v11578_v57, %s17389_s6  ;;  %v13332_v57 = vld [vmem:[%s17310_s19 + $0xb4] ss:$8 sps:$4 sm:$0xff]  }
0x3012   : > { %v9179_v30 = vpop.permute.xlu0 %9178 }
0x3013   : > { %9181 = vst.msk [vmem:[#allocation2] sm:$0xf] %vm3460_vm9, %v9179_v30  ;;  %v13335_v30 = vld [vmem:[%s17310_s19 + $0xc4] ss:$8 sps:$4 sm:$0xff]  }
0x304a   : > { %v9524_v16 = vpop.permute.xlu1 %9523 }
0x304b   : > { %9526 = vst.msk [vmem:[#allocation2 + $0x4] sm:$0xf] %vm3346_vm8, %v9524_v16 }
0x305d   : > { %v9644_v8 = vpop.permute.xlu1 %9643 }
0x305e   : > { %9646 = vst.msk [vmem:[#allocation2 + $0x4] sm:$0xf] %vm3460_vm9, %v9644_v8  ;;  %v13407_v8 = vld [vmem:[%s17313_s22 + $0x44] ss:$8 sps:$4 sm:$0xff]  }
0x3065   : > { %v9647_v18 = vld [vmem:[#allocation2] sm:$0xff] }
0x3066   : > { %v11418_v56 = vcombine.low %v9647_v18, %v9647_v18  ;;  %v11419_v34 = vcombine.high %v9647_v18, %v9647_v18  ;;  %v13408_v18 = vld [vmem:[%s17313_s22 + $0x50] ss:$8 sps:$4 sm:$0xff]  }
0x3068   : > { %9891 = vmatprep.mubr.bf16.mxu0 %v11419_v34  ;;  %v13411_v34 = vld [vmem:[%s17313_s22 + $0x60] ss:$8 sps:$4 sm:$0xff]  }
0x3069   : > { %9892 = vmatmul.mubr.bf16.vlgmr.msra.gmra.mrb[180].mxu0 %v11418_v56  ;;  %v13413_v56 = vld [vmem:[%s17313_s22 + $0x64] ss:$8 sps:$4 sm:$0xff]  }
0x306a   : > { %10330 = vmatpush1.bf16.msra.mxu0 %v13297_v49  ;;  %10361 = vmatprep.mubr.bf16.mxu0 %v9901_v38  ;;  %v13416_v49 = vld [vmem:[%s17313_s22 + $0x74] ss:$8 sps:$4 sm:$0xff]   ;;  %v13419_v38 = vld [vmem:[%s17313_s22 + $0x84] ss:$8 sps:$4 sm:$0xff]  }
0x306b   : > { %10331 = vmatprep.subr.bf16.mxu0 %v13302_v25  ;;  %v13414_v25 = vld [vmem:[%s17313_s22 + $0x70] ss:$8 sps:$4 sm:$0xff]  }
0x306e   : > { %10332 = vmatpush1.bf16.msra.mxu0 %v13300_v7  ;;  %v13417_v7 = vld [vmem:[%s17313_s22 + $0x80] ss:$8 sps:$4 sm:$0xff]  }
0x306f   : > { %10333 = vmatprep.subr.bf16.mxu0 %v13305_v53  ;;  %v13422_v53 = vld [vmem:[%s17313_s22 + $0x94] ss:$8 sps:$4 sm:$0xff]  }
0x3072   : > { %10334 = vmatpush1.bf16.msra.mxu0 %v13303_v63  ;;  %v13420_v63 = vld [vmem:[%s17313_s22 + $0x90] ss:$8 sps:$4 sm:$0xff]  }
0x3073   : > { %10335 = vmatprep.subr.bf16.mxu0 %v13308_v28  ;;  %v13425_v28 = vld [vmem:[%s17313_s22 + $0xa4] ss:$8 sps:$4 sm:$0xff]  }
0x3076   : > { %10336 = vmatpush1.bf16.msra.mxu0 %v13306_v55  ;;  %v13423_v55 = vld [vmem:[%s17313_s22 + $0xa0] ss:$8 sps:$4 sm:$0xff]  }
0x3077   : > { %10337 = vmatprep.subr.bf16.mxu0 %v13311_v42  ;;  %v13428_v42 = vld [vmem:[%s17313_s22 + $0xb4] ss:$8 sps:$4 sm:$0xff]  }
0x307a   : > { %10338 = vmatpush1.bf16.msra.mxu0 %v13309_v32  ;;  %v13426_v32 = vld [vmem:[%s17313_s22 + $0xb0] ss:$8 sps:$4 sm:$0xff]  }
0x307b   : > { %10339 = vmatprep.subr.bf16.mxu0 %v13314_v44  ;;  %v13431_v44 = vld [vmem:[%s17313_s22 + $0xc4] ss:$8 sps:$4 sm:$0xff]  }
0x307e   : > { %10340 = vmatpush1.bf16.msra.mxu0 %v13312_v13  ;;  %v13429_v13 = vld [vmem:[%s17313_s22 + $0xc0] ss:$8 sps:$4 sm:$0xff]  }
0x307f   : > { %10341 = vmatprep.subr.bf16.mxu0 %v13317_v48  ;;  %v13434_v48 = vld [vmem:[%s17313_s22 + $0xd4] ss:$8 sps:$4 sm:$0xff]  }
0x3082   : > { %10342 = vmatpush1.bf16.msra.mxu0 %v13315_v22  ;;  %v13432_v22 = vld [vmem:[%s17313_s22 + $0xd0] ss:$8 sps:$4 sm:$0xff]  }
0x3083   : > { %10343 = vmatprep.subr.bf16.mxu0 %v13320_v26 }
0x3086   : > { %10344 = vmatpush1.bf16.msra.mxu0 %v13318_v15 }
0x3087   : > { %10345 = vmatprep.subr.bf16.mxu0 %v13323_v24 }
0x308a   : > { %10346 = vmatpush1.bf16.msra.mxu0 %v13321_v19 }
0x308b   : > { %10347 = vmatprep.subr.bf16.mxu0 %v13326_v10  ;;  %v13437_v10 = vld [vmem:[%s17313_s22 + $0xe4] ss:$8 sps:$4 sm:$0xff]  }
0x308e   : > { %10348 = vmatpush1.bf16.msra.mxu0 %v13324_v1  ;;  %v13435_v1 = vld [vmem:[%s17313_s22 + $0xe0] ss:$8 sps:$4 sm:$0xff]  }
0x308f   : > { %10349 = vmatprep.subr.bf16.mxu0 %v13329_v46  ;;  %v13440_v46 = vld [vmem:[%s17313_s22 + $0xf4] ss:$8 sps:$4 sm:$0xff]  }
0x3092   : > { %10350 = vmatpush1.bf16.msra.mxu0 %v13327_v41  ;;  %v13438_v41 = vld [vmem:[%s17313_s22 + $0xf0] ss:$8 sps:$4 sm:$0xff]  }
0x3093   : > { %10351 = vmatprep.subr.bf16.mxu0 %v13332_v57  ;;  %v10370_v57 = vld [vmem:[%s17312_s21] sm:$0x3] }
0x3096   : > { %10352 = vmatpush1.bf16.msra.mxu0 %v13330_v54  ;;  %v10375_v54 = vrot.slane %v10370_v57, %v14039_v5 }
0x3097   : > { %10353 = vmatprep.subr.bf16.mxu0 %v13335_v30 }
0x309a   : > { %10354 = vmatpush1.bf16.msra.mxu0 %v13333_v60  ;;  %v10379_v60 = vrot.slane %v10370_v57, %v14042_v6 }
0x309b   : > { %10355 = vmatprep.subr.bf16.mxu0 %v13338_v43 }
0x309e   : > { %10356 = vmatpush1.bf16.msra.mxu0 %v13336_v61 }
0x309f   : > { %10357 = vmatprep.subr.bf16.mxu0 %v13341_v20 }
0x30a2   : > { %10358 = vmatpush1.bf16.msra.mxu0 %v13339_v11 }
0x30a3   : > { %10359 = vmatprep.subr.bf16.mxu0 %v13344_v36 }
0x30a6   : > { %10360 = vmatpush1.bf16.msra.mxu0 %v13342_v59 }
0x30a9   : > { %10362 = vmatmul.mubr.bf16.vlgmr.msra.gmra.mrb[184].mxu0 %v9900_v23 }
0x313c   : > { %v9893_v9 = vpop.f32.mrb[180].mxu0 }
0x313d   : > { %v9894_v40 = vadd.f32 %v9893_v9, %v9685_v3  ;;  %v9895_v58 = vpop.f32.mrb[181].mxu0  ;;  %v10420_v3 = vld [vmem:[%s17314_s23] sm:$0x3] }
0x313e   : > { %v9896_v39 = vadd.f32 %v9895_v58, %v9689_v12  ;;  %v9897_v37 = vpop.f32.mrb[182].mxu0  ;;  %v10425_v12 = vrot.slane %v10420_v3, %v14039_v5  ;;  %v10429_v9 = vrot.slane %v10420_v3, %v14042_v6 }
0x313f   : > { %v9898_v16 = vpop.f32.mrb[183].mxu0  ;;  %v9934_v33 = vpack.c.bf16 %v9894_v40, %v9894_v40 }
0x3140   : > { %v9935_v45 = vpack.c.bf16 %v9896_v39, %v9896_v39 }
0x3142   : > { %10160 = vmatprep.mubr.bf16.mxu1 %v9935_v45 }
0x3143   : > { %10161 = vmatmul.mubr.bf16.vlgmr.msra.gmra.mrb[176].mxu1 %v9934_v33 }
0x3144   : > { %10593 = vmatpush1.bf16.msra.mxu1 %v13393_v51 }
0x3145   : > { %10594 = vmatprep.subr.bf16.mxu1 %v13398_v0 }
0x3148   : > { %10595 = vmatpush1.bf16.msra.mxu1 %v13396_v29 }
0x3149   : > { %10596 = vmatprep.subr.bf16.mxu1 %v13401_v4 }
0x314c   : > { %10597 = vmatpush1.bf16.msra.mxu1 %v13399_v27 }
0x314d   : > { %10598 = vmatprep.subr.bf16.mxu1 %v13404_v50 }
0x3150   : > { %10599 = vmatpush1.bf16.msra.mxu1 %v13402_v2 }
0x3151   : > { %10600 = vmatprep.subr.bf16.mxu1 %v13407_v8 }
0x3154   : > { %10601 = vmatpush1.bf16.msra.mxu1 %v13405_v17 }
0x3155   : > { %10602 = vmatprep.subr.bf16.mxu1 %v13410_v62 }
0x3158   : > { %10603 = vmatpush1.bf16.msra.mxu1 %v13408_v18 }
0x3159   : > { %10604 = vmatprep.subr.bf16.mxu1 %v13413_v56 }
0x315c   : > { %10605 = vmatpush1.bf16.msra.mxu1 %v13411_v34 }
0x315d   : > { %10606 = vmatprep.subr.bf16.mxu1 %v13416_v49 }
0x3160   : > { %10607 = vmatpush1.bf16.msra.mxu1 %v13414_v25 }
0x3161   : > { %10608 = vmatprep.subr.bf16.mxu1 %v13419_v38 }
0x3164   : > { %10609 = vmatpush1.bf16.msra.mxu1 %v13417_v7 }
0x3165   : > { %10610 = vmatprep.subr.bf16.mxu1 %v13422_v53 }
0x3168   : > { %10611 = vmatpush1.bf16.msra.mxu1 %v13420_v63 }
0x3169   : > { %10612 = vmatprep.subr.bf16.mxu1 %v13425_v28 }
0x316c   : > { %10613 = vmatpush1.bf16.msra.mxu1 %v13423_v55 }
0x316d   : > { %10614 = vmatprep.subr.bf16.mxu1 %v13428_v42 }
0x3170   : > { %10615 = vmatpush1.bf16.msra.mxu1 %v13426_v32 }
0x3171   : > { %10616 = vmatprep.subr.bf16.mxu1 %v13431_v44 }
0x3174   : > { %10617 = vmatpush1.bf16.msra.mxu1 %v13429_v13 }
0x3175   : > { %10618 = vmatprep.subr.bf16.mxu1 %v13434_v48 }
0x3178   : > { %10619 = vmatpush1.bf16.msra.mxu1 %v13432_v22 }
0x3179   : > { %10620 = vmatprep.subr.bf16.mxu1 %v13437_v10 }
0x317c   : > { %v10363_v26 = vpop.f32.mrb[184].mxu0  ;;  %10621 = vmatpush1.bf16.msra.mxu1 %v13435_v1 }
0x317d   : > { %v10365_v15 = vpop.f32.mrb[185].mxu0  ;;  %10622 = vmatprep.subr.bf16.mxu1 %v13440_v46 }
0x317e   : > { %v10367_v24 = vpop.f32.mrb[186].mxu0 }
0x317f   : > { %v10368_v19 = vpop.f32.mrb[187].mxu0 }
0x3180   : > { %10623 = vmatpush1.bf16.msra.mxu1 %v13438_v41 }
0x3216   : > { %v10162_v30 = vpop.f32.mrb[176].mxu1 }
0x3217   : > { %v10364_v43 = vadd.f32 %v10363_v26, %v10162_v30  ;;  %v10164_v61 = vpop.f32.mrb[177].mxu1 }
0x3218   : > { %v10366_v20 = vadd.f32 %v10365_v15, %v10164_v61  ;;  %v10166_v11 = vpop.f32.mrb[178].mxu1 }
0x3219   : > { %v10382_v36 = vadd.f32 %v10375_v54, %v10364_v43  ;;  %v10167_v59 = vpop.f32.mrb[179].mxu1 }
0x321a   : > { %v10383_v23 = vadd.f32 %v10379_v60, %v10366_v20 }
0x321b   : > { %v10384_v31 = vmax.f32 %v10382_v36, 0.0 }
0x321c   : > { %v10385_v14 = vmax.f32 %v10383_v23, 0.0 }
0x321d   : > { %v10386_v47 = vpack.c.bf16 %v10384_v31, %v10384_v31 }
0x321e   : > { %v10387_v35 = vpack.c.bf16 %v10385_v14, %v10385_v14 }
0x3220   : > { %10624 = vmatprep.mubr.bf16.mxu1 %v10387_v35 }
0x3221   : > { %10625 = vmatmul.mubr.bf16.vlgmr.msra.gmra.mrb[180].mxu1 %v10386_v47 }
0x32f4   : > { %v10626_v40 = vpop.f32.mrb[180].mxu1 }
0x32f5   : > { %v10627_v58 = vadd.f32 %v10626_v40, %v10425_v12  ;;  %v10628_v39 = vpop.f32.mrb[181].mxu1 }
0x32f6   : > { %v10629_v37 = vadd.f32 %v10628_v39, %v10429_v9  ;;  %v10630_v16 = vpop.f32.mrb[182].mxu1 }
0x32f7   : > { %v10633_v45 = vadd.f32 %v10627_v58, %v16480_v21  ;;  %v10631_v51 = vpop.f32.mrb[183].mxu1 }
0x32f8   : > { %v10634_v33 = vadd.f32 %v10629_v37, %v16483_v52 }
0x32f9   : > { %10635 = vst [vmem:[%s866_s10] sm:$0xff] %v10633_v45 }
0x32fa   : > { %10636 = vst [vmem:[%s866_s10 + $0x8] sm:$0xff] %v10634_v33 }
0x32fb   : > { %13591 = shalt.err (!%p13588_p3)
}
0x32fc   : > { %s13592_s9 = scalar_lea.hbm %s17249_s4, 256  ;;  %s13596_s6 = scalar_lea.hbm %s17395_s15, 512 }
0x32fd   : > { %p13593_p4 = scmp.ne.s32.totalorder %s17249_s4, %s13592_s9  ;;  %p13597_p9 = scmp.lt.u32.totalorder %s17249_s4, %s17395_s15 }
0x32fe   : > { %p13598_p10 = scmp.lt.u32.totalorder %s13596_s6, %s13592_s9  ;;  %p13600_p12 = scmp.lt.u32.totalorder %s13592_s9, %s17249_s4 }
0x32ff   : > { %p13594_p7 = pnand %p13593_p4, %p13832_p5 }
0x3300   : > { %p13599_p11 = por %p13598_p10, %p13597_p9 }
0x3301   : > { %p13595_p8 = pneg %p13594_p7 }
0x3302   : > { %p13601_p13 = por %p13600_p12, %p13599_p11 }
0x3304   : > { %p13602_p0 = pnand %p13601_p13, %p13595_p8 }
0x3306   : > { %13605 = shalt.err (!%p13602_p0)
}
0x3307   : > { %12332 = dma.vmem_to_hbm [thread:$0]  (%p13832_p5), %s17251_s5, 256, %s17249_s4, %s10638_s1  }
0x3308 PF: > { %s17396_s16 = sld [smem:[#allocation11_spill]]  ;;  %s17397_s28 = sld [smem:[#allocation8_spill]] }
0x330e   : > { %p12338_p1 = scmp.ge.s32.totalorder %s17396_s16, 2  ;;  %s10664_s2 = sand.u32 1, %s17397_s28  }
0x330f   : > { %s10665_s10 = scalar_lea.sflag [#allocation6], %s10664_s2 }
0x3310   : > { %p12335_p2 = pnand %p12338_p1, %p13836_p6 }
0x3312   : > { %13623 = dma.done.wait (!%p12335_p2), %s10665_s10, 256  }
0x3313   : > { %13625 = vsyncadd (!%p12335_p2), %s10665_s10, 4294967040  ;;  %s17399_s30 = sld [smem:[#allocation13_spill]]  ;;  %s17400_s8 = sld [smem:[#allocation9_spill]] }
0x3314   : > { %s17401_s5 = sld [smem:[#allocation10_spill]]  ;;  %s17402_s9 = sld [smem:[#allocation14_spill]] }
0x3319   : > { %p38_p3 = scmp.ge.s32.totalorder %s17399_s30, 4  }
0x331b   :  { %40 = sbr.rel (!%p38_p3) target bundleno = 20 (0x14), region = 173 }
0x3322   :  { %10670 = vsyncpa [#allocation6], 1 }
0x3323   :  { %10672 = vsyncpa [#allocation6 + $0x1], 1 }

</bundles_post_ra>
